<compile_context>
chip_gen: v7x
topology: tpu7x:2x2x1
jax: 0.10.0
libtpu: 0.0.40
codegen_flags: <defaults>
</compile_context>

<pallas_src>
import functools
from typing import NamedTuple

import numpy as np
import jax
import jax.numpy as jnp
from jax.experimental import pallas as pl
from jax.experimental.pallas import tpu as pltpu

C_PAD = 128   # lane-dense channel / class padding (vreg lane width)
CHUNK = 128   # conv-output row chunk: f32 accumulator stays at ~16 vregs


class Geom(NamedTuple):
    ph: int    # padded height
    pw: int    # padded width  (= row stride of the flattened padded layout)
    mp: int    # rows of the padded flattened activation
    base: int  # first interior row == largest |tap shift|
    L: int     # number of conv-output rows computed
    L2: int    # number of 2x2-anchored max rows computed


def _geom(h, w):
    ph, pw = h + 2, w + 2
    mp = ph * pw
    base = pw + 1
    L = mp - 2 * base
    L2 = L - pw - 1
    return Geom(ph, pw, mp, base, L, L2)


def _roundup(x, m):
    return -(-x // m) * m


# ----------------------------------------------------------------------------
# Fused kernel: 4 x (conv3x3 + BN + ReLU + maxpool2x2) + linear classifier,
# for B images per grid program.  Everything stays in VMEM.
# ----------------------------------------------------------------------------
def fused_forward_kernel(block_hw, B, chunk, *refs):
    n_blocks = len(block_hw)
    n_sel = n_blocks - 1
    x_ref, w0_ref, wt_ref, scale_ref, shift_ref = refs[:5]
    sel_refs = refs[5:5 + n_sel]
    cw_ref = refs[5 + n_sel]
    o_ref = refs[6 + n_sel]
    a_ref, y_ref, feat_ref = refs[7 + n_sel:10 + n_sel]

    geoms = [_geom(h, w) for (h, w) in block_hw]

    # Zero the activation-scratch tail once: rows past what the block-0
    # re-embed writes are read (harmlessly) by the last overrun chunk of block 1.
    tail = B * geoms[1].mp
    a_rows = a_ref.shape[0]
    if tail < a_rows:
        a_ref[tail:a_rows, :] = jnp.zeros((a_rows - tail, C_PAD), jnp.float32)

    def bn_relu(acc, b):
        # BatchNorm (inference stats, conv bias folded into shift) + ReLU, f32.
        return jnp.maximum(acc * scale_ref[b] + shift_ref[b], 0.0)

    def pool_and_reembed(b, y_stride):
        """MaxPool 2x2/2 of block b's conv output (per image) + re-embed into
        block b+1's zero-padded layout via the 0/1 selection matmul.  The sel
        matmul also masks the garbage (non-interior / cross-image) rows of y."""
        g = geoms[b]
        if b + 1 < n_blocks:
            gn = geoms[b + 1]
            for img in range(B):
                off = img * y_stride
                m = jnp.maximum(
                    jnp.maximum(y_ref[off:off + g.L2, :],
                                y_ref[off + 1:off + 1 + g.L2, :]),
                    jnp.maximum(y_ref[off + g.pw:off + g.pw + g.L2, :],
                                y_ref[off + g.pw + 1:off + g.pw + 1 + g.L2, :]))
                nxt = jnp.dot(sel_refs[b][...], m.astype(jnp.bfloat16),
                              preferred_element_type=jnp.float32)
                a_ref[img * gn.mp:(img + 1) * gn.mp, :] = nxt
        else:
            # Final spatial is 2x2 -> pooled 1x1; the only anchor row is q == 0.
            for img in range(B):
                off = img * y_stride
                m = jnp.maximum(
                    jnp.maximum(y_ref[off:off + 1, :], y_ref[off + 1:off + 2, :]),
                    jnp.maximum(y_ref[off + g.pw:off + g.pw + 1, :],
                                y_ref[off + g.pw + 1:off + g.pw + 2, :]))
                feat_ref[img:img + 1, :] = m

    # --- Block 0: conv3x3 as ONE im2col matmul per 128-row chunk (K = 9*C_in
    #     lanes packed host-side), fused BN+ReLU epilogue.
    g0 = geoms[0]
    m0_pad = x_ref.shape[1]
    for ci in range(m0_pad // chunk):
        cs = ci * chunk
        acc = jnp.dot(x_ref[0, cs:cs + chunk, :], w0_ref[...],
                      preferred_element_type=jnp.float32)
        y_ref[cs:cs + chunk, :] = bn_relu(acc, 0)
    pool_and_reembed(0, g0.L)

    # --- Blocks 1..: conv3x3 = 9 accumulated matmuls over statically shifted
    #     row views of the concatenated (B-image) activation buffer, processed
    #     in 128-row chunks with the BN/ReLU epilogue fused per chunk.
    for b in range(1, n_blocks):
        g = geoms[b]
        mb = B * g.mp - 2 * g.base
        shifts = [(kh - 1) * g.pw + (kw - 1) for kh in range(3) for kw in range(3)]
        for ci in range(-(-mb // chunk)):
            cs = ci * chunk
            acc = None
            for t, s in enumerate(shifts):
                lhs = a_ref[cs + g.base + s:cs + g.base + s + chunk, :].astype(jnp.bfloat16)
                d = jnp.dot(lhs, wt_ref[b - 1, t], preferred_element_type=jnp.float32)
                acc = d if acc is None else acc + d
            y_ref[cs:cs + chunk, :] = bn_relu(acc, b)
        pool_and_reembed(b, g.mp)

    # --- Classifier: Linear(feat_dim, num_class) over all B images at once.
    #     Bias dropped: BaselineTrain fills classifier.bias with 0.
    o_ref[0] = jnp.dot(feat_ref[...].astype(jnp.bfloat16), cw_ref[...],
                       preferred_element_type=jnp.float32)


# ----------------------------------------------------------------------------
# Host-side constant construction (one-time glue).
# ----------------------------------------------------------------------------
def build_pool_select(h, w):
    """0/1 matrix mapping 2x2-anchored max rows of an (h, w) conv output to the
    next block's zero-padded flattened layout (spatial h//2 x w//2)."""
    g = _geom(h, w)
    h2, w2 = h // 2, w // 2
    pw2 = w2 + 2
    S = np.zeros(((h2 + 2) * pw2, g.L2), np.float32)
    for i2 in range(h2):
        for j2 in range(w2):
            p2 = (i2 + 1) * pw2 + (j2 + 1)                    # interior row, next layout
            q = (2 * i2 + 1) * g.pw + (2 * j2 + 1) - g.base   # anchor row in m
            S[p2, q] = 1.0
    return jnp.asarray(S, jnp.bfloat16)


def prep_input_im2col(x_nchw, B, chunk, k0_lanes):
    """NCHW -> im2col patch groups [n_groups, roundup(B*L0, chunk), k0_lanes] bf16.

    Lane (kh*3+kw)*C + c of patch row q holds the zero-padded input at
    flattened padded row (base + q + (kh-1)*pw + (kw-1)), channel c -- i.e.
    exactly the LHS of the single block-0 conv matmul."""
    n, c, h, w = x_nchw.shape
    assert 9 * c <= k0_lanes
    g = _geom(h, w)
    x_nhwc = jnp.transpose(x_nchw, (0, 2, 3, 1))
    xp = jnp.zeros((n, g.ph, g.pw, c), jnp.float32)
    xp = xp.at[:, 1:h + 1, 1:w + 1, :].set(x_nhwc)
    xflat = xp.reshape(n, g.mp, c)
    taps = [xflat[:, g.base + (kh - 1) * g.pw + (kw - 1):
                     g.base + (kh - 1) * g.pw + (kw - 1) + g.L, :]
            for kh in range(3) for kw in range(3)]
    patches = jnp.concatenate(taps, axis=-1)                          # [n, L0, 9c]
    patches = jnp.pad(patches, ((0, 0), (0, 0), (0, k0_lanes - 9 * c)))
    n_pad = _roundup(n, B)
    patches = jnp.pad(patches, ((0, n_pad - n), (0, 0), (0, 0)))
    n_groups = n_pad // B
    patches = patches.reshape(n_groups, B * g.L, k0_lanes)
    m0_pad = _roundup(B * g.L, chunk)
    patches = jnp.pad(patches, ((0, 0), (0, m0_pad - B * g.L), (0, 0)))
    return patches.astype(jnp.bfloat16), n_groups, n_pad


def make_params(key, in_ch, hidden, n_blocks, num_class):
    """Synthetic Conv4 + linear-head parameters: block 0 as an im2col weight
    (9*C_in packed rows), blocks 1.. as per-tap 128x128 weights; inference BN
    and conv bias folded into scale/shift; everything 128-lane padded."""
    assert hidden <= C_PAD and num_class <= C_PAD
    k0_lanes = 64 if 9 * in_ch <= 64 else C_PAD
    assert 9 * in_ch <= k0_lanes
    eps = 1e-5
    scale_stack, shift_stack, wt_stack = [], [], []
    w0p = None
    c_in = in_ch
    for b in range(n_blocks):
        key, kw_, kb_, kg_, kbe_, km_, kv_ = jax.random.split(key, 7)
        w = jax.random.normal(kw_, (3, 3, c_in, hidden), jnp.float32) * 0.1
        bias = jax.random.normal(kb_, (hidden,), jnp.float32) * 0.1
        gamma = 1.0 + 0.1 * jax.random.normal(kg_, (hidden,), jnp.float32)
        beta = 0.1 * jax.random.normal(kbe_, (hidden,), jnp.float32)
        mean = 0.1 * jax.random.normal(km_, (hidden,), jnp.float32)
        var = jnp.abs(jax.random.normal(kv_, (hidden,), jnp.float32)) + 0.5
        scale = gamma / jnp.sqrt(var + eps)
        shift = beta - mean * scale + bias * scale         # conv bias folded in
        scale_stack.append(jnp.zeros((C_PAD,), jnp.float32).at[:hidden].set(scale))
        shift_stack.append(jnp.zeros((C_PAD,), jnp.float32).at[:hidden].set(shift))
        if b == 0:
            # im2col weight: row (kh*3+kw)*C_in + c -> output-channel lanes
            w0 = jnp.zeros((k0_lanes, C_PAD), jnp.float32)
            w0 = w0.at[:9 * c_in, :hidden].set(w.reshape(9 * c_in, hidden))
            w0p = w0
        else:
            wp = jnp.zeros((3, 3, C_PAD, C_PAD), jnp.float32)
            wp = wp.at[:, :, :c_in, :hidden].set(w)
            wt_stack.append(wp.reshape(9, C_PAD, C_PAD))
        c_in = hidden
    key, kc = jax.random.split(key)
    cls_w = jax.random.normal(kc, (hidden, num_class), jnp.float32) * 0.1   # W^T
    cw = jnp.zeros((C_PAD, C_PAD), jnp.float32).at[:hidden, :num_class].set(cls_w)
    return dict(
        w0=w0p.astype(jnp.bfloat16),                      # [k0_lanes, 128]
        wt=jnp.stack(wt_stack).astype(jnp.bfloat16),      # [n_blocks-1, 9, 128, 128]
        scale=jnp.stack(scale_stack)[:, None, :],         # [n_blocks, 1, 128] f32
        shift=jnp.stack(shift_stack)[:, None, :],         # [n_blocks, 1, 128] f32
        cw=cw.astype(jnp.bfloat16),                       # [128, 128]
    )


# ----------------------------------------------------------------------------
# Wrapper: BaselineTrain.forward = feature(x) -> classifier -> scores
# ----------------------------------------------------------------------------
def baseline_train_forward(x_nchw, params, num_class, *, images_per_program=8,
                           chunk=CHUNK):
    n, c, h, w = x_nchw.shape
    n_blocks = params["wt"].shape[0] + 1
    k0_lanes = params["w0"].shape[0]

    block_hw, hh, ww = [], h, w
    for _ in range(n_blocks):
        block_hw.append((hh, ww))
        hh, ww = hh // 2, ww // 2
    assert hh == 1 and ww == 1, "flatten order assumes spatial collapses to 1x1"
    block_hw = tuple(block_hw)
    geoms = [_geom(bh, bw) for bh, bw in block_hw]

    B = max(1, min(images_per_program, n))   # images per grid program (M-batching)

    x_groups, n_groups, n_pad = prep_input_im2col(x_nchw, B, chunk, k0_lanes)
    m0_pad = x_groups.shape[1]
    sel = [build_pool_select(*block_hw[b]) for b in range(n_blocks - 1)]

    # Scratch sizing: conv-output rows per block (valid + cross-image garbage),
    # including the last chunk's overrun.
    m_rows = [B * geoms[0].L] + [B * g.mp - 2 * g.base for g in geoms[1:]]
    y_rows = max(_roundup(m, chunk) for m in m_rows)
    a_rows = max(_roundup(m, chunk) + 2 * g.base
                 for m, g in zip(m_rows[1:], geoms[1:]))
    # VMEM use (B<=16) stays a few MiB -- well under the scoped default on
    # v5e/v6e/v7x, so no vmem_limit_bytes override needed.

    def _fixed(shape):
        nd = len(shape)
        return pl.BlockSpec(shape, lambda i, _nd=nd: (0,) * _nd)

    kernel = functools.partial(fused_forward_kernel, block_hw, B, chunk)

    out = pl.pallas_call(
        kernel,
        out_shape=jax.ShapeDtypeStruct((n_groups, B, C_PAD), jnp.float32),
        grid=(n_groups,),
        in_specs=[
            pl.BlockSpec((1, m0_pad, k0_lanes), lambda i: (i, 0, 0)),  # im2col input
            _fixed(params["w0"].shape),
            _fixed(params["wt"].shape),
            _fixed(params["scale"].shape),
            _fixed(params["shift"].shape),
        ] + [_fixed(s.shape) for s in sel] + [
            _fixed(params["cw"].shape),
        ],
        out_specs=pl.BlockSpec((1, B, C_PAD), lambda i: (i, 0, 0)),
        scratch_shapes=[
            pltpu.VMEM((a_rows, C_PAD), jnp.float32),   # padded activations, B images
            pltpu.VMEM((y_rows, C_PAD), jnp.float32),   # conv+BN+ReLU output, B images
            pltpu.VMEM((B, C_PAD), jnp.float32),        # pooled per-image features
        ],
        compiler_params=pltpu.CompilerParams(
            dimension_semantics=("parallel",)),          # image groups across TCs (v7x)
    )(x_groups, params["w0"], params["wt"], params["scale"], params["shift"],
      *sel, params["cw"])

    return out.reshape(n_pad, C_PAD)[:n, :num_class]   # drop batch + class padding


# ----------------------------------------------------------------------------
if __name__ == "__main__":
    key = jax.random.PRNGKey(0)
    k_x, k_p = jax.random.split(key)

    N, C, H, W = 2, 4, 16, 16        # small NCHW input (PyTorch convention)
    hidden = 32                      # conv channels per block
    n_blocks = 4                     # 16 -> 8 -> 4 -> 2 -> 1 spatial
    num_class = 10                   # <= 200 -> softmax head

    x = jax.random.normal(k_x, (N, C, H, W), jnp.float32)
    params = make_params(k_p, C, hidden, n_blocks, num_class)

    scores = baseline_train_forward(x, params, num_class)
    scores = jax.block_until_ready(scores)

    assert scores.shape == (N, num_class)
    assert scores.dtype == jnp.float32
    assert bool(jnp.isfinite(scores).all())
    print("KERNEL_OK")
</pallas_src>

<mosaic_0001>
module attributes {stable_mosaic.version = 11 : i64} {
  func.func @fused_forward_kernel(%arg0: i32, %arg1: memref<1x640x64xbf16, #tpu.memory_space<vmem>>, %arg2: memref<64x128xbf16, #tpu.memory_space<vmem>>, %arg3: memref<3x9x128x128xbf16, #tpu.memory_space<vmem>>, %arg4: memref<4x1x128xf32, #tpu.memory_space<vmem>>, %arg5: memref<4x1x128xf32, #tpu.memory_space<vmem>>, %arg6: memref<100x267xbf16, #tpu.memory_space<vmem>>, %arg7: memref<36x67xbf16, #tpu.memory_space<vmem>>, %arg8: memref<16x15xbf16, #tpu.memory_space<vmem>>, %arg9: memref<128x128xbf16, #tpu.memory_space<vmem>>, %arg10: memref<1x2x128xf32, #tpu.memory_space<vmem>>, %arg11: memref<278x128xf32, #tpu.memory_space<vmem>>, %arg12: memref<640x128xf32, #tpu.memory_space<vmem>>, %arg13: memref<2x128xf32, #tpu.memory_space<vmem>>) attributes {dimension_semantics = [#tpu.dimension_semantics<parallel>], iteration_bounds = array<i64: 1>, scalar_prefetch = 0 : i64, scratch_operands = 3 : i64, tpu.core_type = #tpu.core_type<tc>, window_params = [{transform_indices = @transform_0, window_bounds = array<i64: 1, 640, 64>}, {pipeline_mode = #tpu.pipeline_mode<synchronous>, transform_indices = @transform_1, window_bounds = array<i64: 64, 128>}, {pipeline_mode = #tpu.pipeline_mode<synchronous>, transform_indices = @transform_2, window_bounds = array<i64: 3, 9, 128, 128>}, {pipeline_mode = #tpu.pipeline_mode<synchronous>, transform_indices = @transform_3, window_bounds = array<i64: 4, 1, 128>}, {pipeline_mode = #tpu.pipeline_mode<synchronous>, transform_indices = @transform_4, window_bounds = array<i64: 4, 1, 128>}, {pipeline_mode = #tpu.pipeline_mode<synchronous>, transform_indices = @transform_5, window_bounds = array<i64: 100, 267>}, {pipeline_mode = #tpu.pipeline_mode<synchronous>, transform_indices = @transform_6, window_bounds = array<i64: 36, 67>}, {pipeline_mode = #tpu.pipeline_mode<synchronous>, transform_indices = @transform_7, window_bounds = array<i64: 16, 15>}, {pipeline_mode = #tpu.pipeline_mode<synchronous>, transform_indices = @transform_8, window_bounds = array<i64: 128, 128>}, {transform_indices = @transform_9, window_bounds = array<i64: 1, 2, 128>}]} {
    %cst = arith.constant 0.000000e+00 : f32
    %0 = vector.broadcast %cst : f32 to vector<78x128xf32>
    %c200 = arith.constant 200 : index
    %c0 = arith.constant 0 : index
    %1 = vector.load %arg11[%c200, %c0] : memref<278x128xf32, #tpu.memory_space<vmem>>, vector<78x128xf32>
    tpu.vector_store %arg11[%c200, %c0], %0 {strides = array<i32>} : memref<278x128xf32, #tpu.memory_space<vmem>>, vector<78x128xf32>,
    %c0_0 = arith.constant 0 : index
    %c0_1 = arith.constant 0 : index
    %c0_2 = arith.constant 0 : index
    %2 = vector.load %arg1[%c0_0, %c0_1, %c0_2] : memref<1x640x64xbf16, #tpu.memory_space<vmem>>, vector<1x128x64xbf16>
    %3 = vector.shape_cast %2 : vector<1x128x64xbf16> to vector<128x64xbf16>
    %c0_3 = arith.constant 0 : index
    %c0_4 = arith.constant 0 : index
    %4 = vector.load %arg2[%c0_3, %c0_4] : memref<64x128xbf16, #tpu.memory_space<vmem>>, vector<64x128xbf16>
    %cst_5 = arith.constant dense<0.000000e+00> : vector<128x128xf32>
    %5 = tpu.matmul %3, %4, %cst_5 {dimension_numbers = #tpu.dot_dimension_numbers<[1], [0], [0], [1], [0, 0, 1, 1], [], []>} : vector<128x64xbf16>, vector<64x128xbf16>, vector<128x128xf32> -> vector<128x128xf32>
    %c0_6 = arith.constant 0 : index
    %c0_7 = arith.constant 0 : index
    %c0_8 = arith.constant 0 : index
    %6 = vector.load %arg4[%c0_6, %c0_7, %c0_8] : memref<4x1x128xf32, #tpu.memory_space<vmem>>, vector<1x1x128xf32>
    %7 = vector.shape_cast %6 : vector<1x1x128xf32> to vector<1x128xf32>
    %8 = vector.broadcast %7 : vector<1x128xf32> to vector<128x128xf32>
    %9 = arith.mulf %5, %8 : vector<128x128xf32>
    %c0_9 = arith.constant 0 : index
    %c0_10 = arith.constant 0 : index
    %c0_11 = arith.constant 0 : index
    %10 = vector.load %arg5[%c0_9, %c0_10, %c0_11] : memref<4x1x128xf32, #tpu.memory_space<vmem>>, vector<1x1x128xf32>
    %11 = vector.shape_cast %10 : vector<1x1x128xf32> to vector<1x128xf32>
    %12 = vector.broadcast %11 : vector<1x128xf32> to vector<128x128xf32>
    %13 = arith.addf %9, %12 : vector<128x128xf32>
    %cst_12 = arith.constant 0.000000e+00 : f32
    %14 = vector.broadcast %cst_12 : f32 to vector<128x128xf32>
    %15 = arith.maximumf %13, %14 : vector<128x128xf32>
    %c0_13 = arith.constant 0 : index
    %c0_14 = arith.constant 0 : index
    %16 = vector.load %arg12[%c0_13, %c0_14] : memref<640x128xf32, #tpu.memory_space<vmem>>, vector<128x128xf32>
    tpu.vector_store %arg12[%c0_13, %c0_14], %15 {strides = array<i32>} : memref<640x128xf32, #tpu.memory_space<vmem>>, vector<128x128xf32>,
    %c0_15 = arith.constant 0 : index
    %c128 = arith.constant 128 : index
    %c0_16 = arith.constant 0 : index
    %17 = vector.load %arg1[%c0_15, %c128, %c0_16] : memref<1x640x64xbf16, #tpu.memory_space<vmem>>, vector<1x128x64xbf16>
    %18 = vector.shape_cast %17 : vector<1x128x64xbf16> to vector<128x64xbf16>
    %c0_17 = arith.constant 0 : index
    %c0_18 = arith.constant 0 : index
    %19 = vector.load %arg2[%c0_17, %c0_18] : memref<64x128xbf16, #tpu.memory_space<vmem>>, vector<64x128xbf16>
    %cst_19 = arith.constant dense<0.000000e+00> : vector<128x128xf32>
    %20 = tpu.matmul %18, %19, %cst_19 {dimension_numbers = #tpu.dot_dimension_numbers<[1], [0], [0], [1], [0, 0, 1, 1], [], []>} : vector<128x64xbf16>, vector<64x128xbf16>, vector<128x128xf32> -> vector<128x128xf32>
    %c0_20 = arith.constant 0 : index
    %c0_21 = arith.constant 0 : index
    %c0_22 = arith.constant 0 : index
    %21 = vector.load %arg4[%c0_20, %c0_21, %c0_22] : memref<4x1x128xf32, #tpu.memory_space<vmem>>, vector<1x1x128xf32>
    %22 = vector.shape_cast %21 : vector<1x1x128xf32> to vector<1x128xf32>
    %23 = vector.broadcast %22 : vector<1x128xf32> to vector<128x128xf32>
    %24 = arith.mulf %20, %23 : vector<128x128xf32>
    %c0_23 = arith.constant 0 : index
    %c0_24 = arith.constant 0 : index
    %c0_25 = arith.constant 0 : index
    %25 = vector.load %arg5[%c0_23, %c0_24, %c0_25] : memref<4x1x128xf32, #tpu.memory_space<vmem>>, vector<1x1x128xf32>
    %26 = vector.shape_cast %25 : vector<1x1x128xf32> to vector<1x128xf32>
    %27 = vector.broadcast %26 : vector<1x128xf32> to vector<128x128xf32>
    %28 = arith.addf %24, %27 : vector<128x128xf32>
    %cst_26 = arith.constant 0.000000e+00 : f32
    %29 = vector.broadcast %cst_26 : f32 to vector<128x128xf32>
    %30 = arith.maximumf %28, %29 : vector<128x128xf32>
    %c128_27 = arith.constant 128 : index
    %c0_28 = arith.constant 0 : index
    %31 = vector.load %arg12[%c128_27, %c0_28] : memref<640x128xf32, #tpu.memory_space<vmem>>, vector<128x128xf32>
    tpu.vector_store %arg12[%c128_27, %c0_28], %30 {strides = array<i32>} : memref<640x128xf32, #tpu.memory_space<vmem>>, vector<128x128xf32>,
    %c0_29 = arith.constant 0 : index
    %c256 = arith.constant 256 : index
    %c0_30 = arith.constant 0 : index
    %32 = vector.load %arg1[%c0_29, %c256, %c0_30] : memref<1x640x64xbf16, #tpu.memory_space<vmem>>, vector<1x128x64xbf16>
    %33 = vector.shape_cast %32 : vector<1x128x64xbf16> to vector<128x64xbf16>
    %c0_31 = arith.constant 0 : index
    %c0_32 = arith.constant 0 : index
    %34 = vector.load %arg2[%c0_31, %c0_32] : memref<64x128xbf16, #tpu.memory_space<vmem>>, vector<64x128xbf16>
    %cst_33 = arith.constant dense<0.000000e+00> : vector<128x128xf32>
    %35 = tpu.matmul %33, %34, %cst_33 {dimension_numbers = #tpu.dot_dimension_numbers<[1], [0], [0], [1], [0, 0, 1, 1], [], []>} : vector<128x64xbf16>, vector<64x128xbf16>, vector<128x128xf32> -> vector<128x128xf32>
    %c0_34 = arith.constant 0 : index
    %c0_35 = arith.constant 0 : index
    %c0_36 = arith.constant 0 : index
    %36 = vector.load %arg4[%c0_34, %c0_35, %c0_36] : memref<4x1x128xf32, #tpu.memory_space<vmem>>, vector<1x1x128xf32>
    %37 = vector.shape_cast %36 : vector<1x1x128xf32> to vector<1x128xf32>
    %38 = vector.broadcast %37 : vector<1x128xf32> to vector<128x128xf32>
    %39 = arith.mulf %35, %38 : vector<128x128xf32>
    %c0_37 = arith.constant 0 : index
    %c0_38 = arith.constant 0 : index
    %c0_39 = arith.constant 0 : index
    %40 = vector.load %arg5[%c0_37, %c0_38, %c0_39] : memref<4x1x128xf32, #tpu.memory_space<vmem>>, vector<1x1x128xf32>
    %41 = vector.shape_cast %40 : vector<1x1x128xf32> to vector<1x128xf32>
    %42 = vector.broadcast %41 : vector<1x128xf32> to vector<128x128xf32>
    %43 = arith.addf %39, %42 : vector<128x128xf32>
    %cst_40 = arith.constant 0.000000e+00 : f32
    %44 = vector.broadcast %cst_40 : f32 to vector<128x128xf32>
    %45 = arith.maximumf %43, %44 : vector<128x128xf32>
    %c256_41 = arith.constant 256 : index
    %c0_42 = arith.constant 0 : index
    %46 = vector.load %arg12[%c256_41, %c0_42] : memref<640x128xf32, #tpu.memory_space<vmem>>, vector<128x128xf32>
    tpu.vector_store %arg12[%c256_41, %c0_42], %45 {strides = array<i32>} : memref<640x128xf32, #tpu.memory_space<vmem>>, vector<128x128xf32>,
    %c0_43 = arith.constant 0 : index
    %c384 = arith.constant 384 : index
    %c0_44 = arith.constant 0 : index
    %47 = vector.load %arg1[%c0_43, %c384, %c0_44] : memref<1x640x64xbf16, #tpu.memory_space<vmem>>, vector<1x128x64xbf16>
    %48 = vector.shape_cast %47 : vector<1x128x64xbf16> to vector<128x64xbf16>
    %c0_45 = arith.constant 0 : index
    %c0_46 = arith.constant 0 : index
    %49 = vector.load %arg2[%c0_45, %c0_46] : memref<64x128xbf16, #tpu.memory_space<vmem>>, vector<64x128xbf16>
    %cst_47 = arith.constant dense<0.000000e+00> : vector<128x128xf32>
    %50 = tpu.matmul %48, %49, %cst_47 {dimension_numbers = #tpu.dot_dimension_numbers<[1], [0], [0], [1], [0, 0, 1, 1], [], []>} : vector<128x64xbf16>, vector<64x128xbf16>, vector<128x128xf32> -> vector<128x128xf32>
    %c0_48 = arith.constant 0 : index
    %c0_49 = arith.constant 0 : index
    %c0_50 = arith.constant 0 : index
    %51 = vector.load %arg4[%c0_48, %c0_49, %c0_50] : memref<4x1x128xf32, #tpu.memory_space<vmem>>, vector<1x1x128xf32>
    %52 = vector.shape_cast %51 : vector<1x1x128xf32> to vector<1x128xf32>
    %53 = vector.broadcast %52 : vector<1x128xf32> to vector<128x128xf32>
    %54 = arith.mulf %50, %53 : vector<128x128xf32>
    %c0_51 = arith.constant 0 : index
    %c0_52 = arith.constant 0 : index
    %c0_53 = arith.constant 0 : index
    %55 = vector.load %arg5[%c0_51, %c0_52, %c0_53] : memref<4x1x128xf32, #tpu.memory_space<vmem>>, vector<1x1x128xf32>
    %56 = vector.shape_cast %55 : vector<1x1x128xf32> to vector<1x128xf32>
    %57 = vector.broadcast %56 : vector<1x128xf32> to vector<128x128xf32>
    %58 = arith.addf %54, %57 : vector<128x128xf32>
    %cst_54 = arith.constant 0.000000e+00 : f32
    %59 = vector.broadcast %cst_54 : f32 to vector<128x128xf32>
    %60 = arith.maximumf %58, %59 : vector<128x128xf32>
    %c384_55 = arith.constant 384 : index
    %c0_56 = arith.constant 0 : index
    %61 = vector.load %arg12[%c384_55, %c0_56] : memref<640x128xf32, #tpu.memory_space<vmem>>, vector<128x128xf32>
    tpu.vector_store %arg12[%c384_55, %c0_56], %60 {strides = array<i32>} : memref<640x128xf32, #tpu.memory_space<vmem>>, vector<128x128xf32>,
    %c0_57 = arith.constant 0 : index
    %c512 = arith.constant 512 : index
    %c0_58 = arith.constant 0 : index
    %62 = vector.load %arg1[%c0_57, %c512, %c0_58] : memref<1x640x64xbf16, #tpu.memory_space<vmem>>, vector<1x128x64xbf16>
    %63 = vector.shape_cast %62 : vector<1x128x64xbf16> to vector<128x64xbf16>
    %c0_59 = arith.constant 0 : index
    %c0_60 = arith.constant 0 : index
    %64 = vector.load %arg2[%c0_59, %c0_60] : memref<64x128xbf16, #tpu.memory_space<vmem>>, vector<64x128xbf16>
    %cst_61 = arith.constant dense<0.000000e+00> : vector<128x128xf32>
    %65 = tpu.matmul %63, %64, %cst_61 {dimension_numbers = #tpu.dot_dimension_numbers<[1], [0], [0], [1], [0, 0, 1, 1], [], []>} : vector<128x64xbf16>, vector<64x128xbf16>, vector<128x128xf32> -> vector<128x128xf32>
    %c0_62 = arith.constant 0 : index
    %c0_63 = arith.constant 0 : index
    %c0_64 = arith.constant 0 : index
    %66 = vector.load %arg4[%c0_62, %c0_63, %c0_64] : memref<4x1x128xf32, #tpu.memory_space<vmem>>, vector<1x1x128xf32>
    %67 = vector.shape_cast %66 : vector<1x1x128xf32> to vector<1x128xf32>
    %68 = vector.broadcast %67 : vector<1x128xf32> to vector<128x128xf32>
    %69 = arith.mulf %65, %68 : vector<128x128xf32>
    %c0_65 = arith.constant 0 : index
    %c0_66 = arith.constant 0 : index
    %c0_67 = arith.constant 0 : index
    %70 = vector.load %arg5[%c0_65, %c0_66, %c0_67] : memref<4x1x128xf32, #tpu.memory_space<vmem>>, vector<1x1x128xf32>
    %71 = vector.shape_cast %70 : vector<1x1x128xf32> to vector<1x128xf32>
    %72 = vector.broadcast %71 : vector<1x128xf32> to vector<128x128xf32>
    %73 = arith.addf %69, %72 : vector<128x128xf32>
    %cst_68 = arith.constant 0.000000e+00 : f32
    %74 = vector.broadcast %cst_68 : f32 to vector<128x128xf32>
    %75 = arith.maximumf %73, %74 : vector<128x128xf32>
    %c512_69 = arith.constant 512 : index
    %c0_70 = arith.constant 0 : index
    %76 = vector.load %arg12[%c512_69, %c0_70] : memref<640x128xf32, #tpu.memory_space<vmem>>, vector<128x128xf32>
    tpu.vector_store %arg12[%c512_69, %c0_70], %75 {strides = array<i32>} : memref<640x128xf32, #tpu.memory_space<vmem>>, vector<128x128xf32>,
    %c0_71 = arith.constant 0 : index
    %c0_72 = arith.constant 0 : index
    %77 = vector.load %arg12[%c0_71, %c0_72] : memref<640x128xf32, #tpu.memory_space<vmem>>, vector<267x128xf32>
    %c1 = arith.constant 1 : index
    %c0_73 = arith.constant 0 : index
    %78 = vector.load %arg12[%c1, %c0_73] : memref<640x128xf32, #tpu.memory_space<vmem>>, vector<267x128xf32>
    %79 = arith.maximumf %77, %78 : vector<267x128xf32>
    %c18 = arith.constant 18 : index
    %c0_74 = arith.constant 0 : index
    %80 = vector.load %arg12[%c18, %c0_74] : memref<640x128xf32, #tpu.memory_space<vmem>>, vector<267x128xf32>
    %c19 = arith.constant 19 : index
    %c0_75 = arith.constant 0 : index
    %81 = vector.load %arg12[%c19, %c0_75] : memref<640x128xf32, #tpu.memory_space<vmem>>, vector<267x128xf32>
    %82 = arith.maximumf %80, %81 : vector<267x128xf32>
    %83 = arith.maximumf %79, %82 : vector<267x128xf32>
    %c0_76 = arith.constant 0 : index
    %c0_77 = arith.constant 0 : index
    %84 = vector.load %arg6[%c0_76, %c0_77] : memref<100x267xbf16, #tpu.memory_space<vmem>>, vector<100x267xbf16>
    %85 = arith.truncf %83 : vector<267x128xf32> to vector<267x128xbf16>
    %cst_78 = arith.constant dense<0.000000e+00> : vector<100x128xf32>
    %86 = tpu.matmul %84, %85, %cst_78 {dimension_numbers = #tpu.dot_dimension_numbers<[1], [0], [0], [1], [0, 0, 1, 1], [], []>} : vector<100x267xbf16>, vector<267x128xbf16>, vector<100x128xf32> -> vector<100x128xf32>
    %c0_79 = arith.constant 0 : index
    %c0_80 = arith.constant 0 : index
    %87 = vector.load %arg11[%c0_79, %c0_80] : memref<278x128xf32, #tpu.memory_space<vmem>>, vector<100x128xf32>
    tpu.vector_store %arg11[%c0_79, %c0_80], %86 {strides = array<i32>} : memref<278x128xf32, #tpu.memory_space<vmem>>, vector<100x128xf32>,
    %c286 = arith.constant 286 : index
    %c0_81 = arith.constant 0 : index
    %88 = vector.load %arg12[%c286, %c0_81] : memref<640x128xf32, #tpu.memory_space<vmem>>, vector<267x128xf32>
    %c287 = arith.constant 287 : index
    %c0_82 = arith.constant 0 : index
    %89 = vector.load %arg12[%c287, %c0_82] : memref<640x128xf32, #tpu.memory_space<vmem>>, vector<267x128xf32>
    %90 = arith.maximumf %88, %89 : vector<267x128xf32>
    %c304 = arith.constant 304 : index
    %c0_83 = arith.constant 0 : index
    %91 = vector.load %arg12[%c304, %c0_83] : memref<640x128xf32, #tpu.memory_space<vmem>>, vector<267x128xf32>
    %c305 = arith.constant 305 : index
    %c0_84 = arith.constant 0 : index
    %92 = vector.load %arg12[%c305, %c0_84] : memref<640x128xf32, #tpu.memory_space<vmem>>, vector<267x128xf32>
    %93 = arith.maximumf %91, %92 : vector<267x128xf32>
    %94 = arith.maximumf %90, %93 : vector<267x128xf32>
    %c0_85 = arith.constant 0 : index
    %c0_86 = arith.constant 0 : index
    %95 = vector.load %arg6[%c0_85, %c0_86] : memref<100x267xbf16, #tpu.memory_space<vmem>>, vector<100x267xbf16>
    %96 = arith.truncf %94 : vector<267x128xf32> to vector<267x128xbf16>
    %cst_87 = arith.constant dense<0.000000e+00> : vector<100x128xf32>
    %97 = tpu.matmul %95, %96, %cst_87 {dimension_numbers = #tpu.dot_dimension_numbers<[1], [0], [0], [1], [0, 0, 1, 1], [], []>} : vector<100x267xbf16>, vector<267x128xbf16>, vector<100x128xf32> -> vector<100x128xf32>
    %c100 = arith.constant 100 : index
    %c0_88 = arith.constant 0 : index
    %98 = vector.load %arg11[%c100, %c0_88] : memref<278x128xf32, #tpu.memory_space<vmem>>, vector<100x128xf32>
    tpu.vector_store %arg11[%c100, %c0_88], %97 {strides = array<i32>} : memref<278x128xf32, #tpu.memory_space<vmem>>, vector<100x128xf32>,
    %c0_89 = arith.constant 0 : index
    %c0_90 = arith.constant 0 : index
    %99 = vector.load %arg11[%c0_89, %c0_90] : memref<278x128xf32, #tpu.memory_space<vmem>>, vector<128x128xf32>
    %100 = arith.truncf %99 : vector<128x128xf32> to vector<128x128xbf16>
    %c0_91 = arith.constant 0 : index
    %c0_92 = arith.constant 0 : index
    %c0_93 = arith.constant 0 : index
    %c0_94 = arith.constant 0 : index
    %101 = vector.load %arg3[%c0_91, %c0_92, %c0_93, %c0_94] : memref<3x9x128x128xbf16, #tpu.memory_space<vmem>>, vector<1x1x128x128xbf16>
    %102 = vector.shape_cast %101 : vector<1x1x128x128xbf16> to vector<128x128xbf16>
    %cst_95 = arith.constant dense<0.000000e+00> : vector<128x128xf32>
    %103 = tpu.matmul %100, %102, %cst_95 {dimension_numbers = #tpu.dot_dimension_numbers<[1], [0], [0], [1], [0, 0, 1, 1], [], []>} : vector<128x128xbf16>, vector<128x128xbf16>, vector<128x128xf32> -> vector<128x128xf32>
    %c1_96 = arith.constant 1 : index
    %c0_97 = arith.constant 0 : index
    %104 = vector.load %arg11[%c1_96, %c0_97] : memref<278x128xf32, #tpu.memory_space<vmem>>, vector<128x128xf32>
    %105 = arith.truncf %104 : vector<128x128xf32> to vector<128x128xbf16>
    %c0_98 = arith.constant 0 : index
    %c1_99 = arith.constant 1 : index
    %c0_100 = arith.constant 0 : index
    %c0_101 = arith.constant 0 : index
    %106 = vector.load %arg3[%c0_98, %c1_99, %c0_100, %c0_101] : memref<3x9x128x128xbf16, #tpu.memory_space<vmem>>, vector<1x1x128x128xbf16>
    %107 = vector.shape_cast %106 : vector<1x1x128x128xbf16> to vector<128x128xbf16>
    %cst_102 = arith.constant dense<0.000000e+00> : vector<128x128xf32>
    %108 = tpu.matmul %105, %107, %cst_102 {dimension_numbers = #tpu.dot_dimension_numbers<[1], [0], [0], [1], [0, 0, 1, 1], [], []>} : vector<128x128xbf16>, vector<128x128xbf16>, vector<128x128xf32> -> vector<128x128xf32>
    %109 = arith.addf %103, %108 : vector<128x128xf32>
    %c2 = arith.constant 2 : index
    %c0_103 = arith.constant 0 : index
    %110 = vector.load %arg11[%c2, %c0_103] : memref<278x128xf32, #tpu.memory_space<vmem>>, vector<128x128xf32>
    %111 = arith.truncf %110 : vector<128x128xf32> to vector<128x128xbf16>
    %c0_104 = arith.constant 0 : index
    %c2_105 = arith.constant 2 : index
    %c0_106 = arith.constant 0 : index
    %c0_107 = arith.constant 0 : index
    %112 = vector.load %arg3[%c0_104, %c2_105, %c0_106, %c0_107] : memref<3x9x128x128xbf16, #tpu.memory_space<vmem>>, vector<1x1x128x128xbf16>
    %113 = vector.shape_cast %112 : vector<1x1x128x128xbf16> to vector<128x128xbf16>
    %cst_108 = arith.constant dense<0.000000e+00> : vector<128x128xf32>
    %114 = tpu.matmul %111, %113, %cst_108 {dimension_numbers = #tpu.dot_dimension_numbers<[1], [0], [0], [1], [0, 0, 1, 1], [], []>} : vector<128x128xbf16>, vector<128x128xbf16>, vector<128x128xf32> -> vector<128x128xf32>
    %115 = arith.addf %109, %114 : vector<128x128xf32>
    %c10 = arith.constant 10 : index
    %c0_109 = arith.constant 0 : index
    %116 = vector.load %arg11[%c10, %c0_109] : memref<278x128xf32, #tpu.memory_space<vmem>>, vector<128x128xf32>
    %117 = arith.truncf %116 : vector<128x128xf32> to vector<128x128xbf16>
    %c0_110 = arith.constant 0 : index
    %c3 = arith.constant 3 : index
    %c0_111 = arith.constant 0 : index
    %c0_112 = arith.constant 0 : index
    %118 = vector.load %arg3[%c0_110, %c3, %c0_111, %c0_112] : memref<3x9x128x128xbf16, #tpu.memory_space<vmem>>, vector<1x1x128x128xbf16>
    %119 = vector.shape_cast %118 : vector<1x1x128x128xbf16> to vector<128x128xbf16>
    %cst_113 = arith.constant dense<0.000000e+00> : vector<128x128xf32>
    %120 = tpu.matmul %117, %119, %cst_113 {dimension_numbers = #tpu.dot_dimension_numbers<[1], [0], [0], [1], [0, 0, 1, 1], [], []>} : vector<128x128xbf16>, vector<128x128xbf16>, vector<128x128xf32> -> vector<128x128xf32>
    %121 = arith.addf %115, %120 : vector<128x128xf32>
    %c11 = arith.constant 11 : index
    %c0_114 = arith.constant 0 : index
    %122 = vector.load %arg11[%c11, %c0_114] : memref<278x128xf32, #tpu.memory_space<vmem>>, vector<128x128xf32>
    %123 = arith.truncf %122 : vector<128x128xf32> to vector<128x128xbf16>
    %c0_115 = arith.constant 0 : index
    %c4 = arith.constant 4 : index
    %c0_116 = arith.constant 0 : index
    %c0_117 = arith.constant 0 : index
    %124 = vector.load %arg3[%c0_115, %c4, %c0_116, %c0_117] : memref<3x9x128x128xbf16, #tpu.memory_space<vmem>>, vector<1x1x128x128xbf16>
    %125 = vector.shape_cast %124 : vector<1x1x128x128xbf16> to vector<128x128xbf16>
    %cst_118 = arith.constant dense<0.000000e+00> : vector<128x128xf32>
    %126 = tpu.matmul %123, %125, %cst_118 {dimension_numbers = #tpu.dot_dimension_numbers<[1], [0], [0], [1], [0, 0, 1, 1], [], []>} : vector<128x128xbf16>, vector<128x128xbf16>, vector<128x128xf32> -> vector<128x128xf32>
    %127 = arith.addf %121, %126 : vector<128x128xf32>
    %c12 = arith.constant 12 : index
    %c0_119 = arith.constant 0 : index
    %128 = vector.load %arg11[%c12, %c0_119] : memref<278x128xf32, #tpu.memory_space<vmem>>, vector<128x128xf32>
    %129 = arith.truncf %128 : vector<128x128xf32> to vector<128x128xbf16>
    %c0_120 = arith.constant 0 : index
    %c5 = arith.constant 5 : index
    %c0_121 = arith.constant 0 : index
    %c0_122 = arith.constant 0 : index
    %130 = vector.load %arg3[%c0_120, %c5, %c0_121, %c0_122] : memref<3x9x128x128xbf16, #tpu.memory_space<vmem>>, vector<1x1x128x128xbf16>
    %131 = vector.shape_cast %130 : vector<1x1x128x128xbf16> to vector<128x128xbf16>
    %cst_123 = arith.constant dense<0.000000e+00> : vector<128x128xf32>
    %132 = tpu.matmul %129, %131, %cst_123 {dimension_numbers = #tpu.dot_dimension_numbers<[1], [0], [0], [1], [0, 0, 1, 1], [], []>} : vector<128x128xbf16>, vector<128x128xbf16>, vector<128x128xf32> -> vector<128x128xf32>
    %133 = arith.addf %127, %132 : vector<128x128xf32>
    %c20 = arith.constant 20 : index
    %c0_124 = arith.constant 0 : index
    %134 = vector.load %arg11[%c20, %c0_124] : memref<278x128xf32, #tpu.memory_space<vmem>>, vector<128x128xf32>
    %135 = arith.truncf %134 : vector<128x128xf32> to vector<128x128xbf16>
    %c0_125 = arith.constant 0 : index
    %c6 = arith.constant 6 : index
    %c0_126 = arith.constant 0 : index
    %c0_127 = arith.constant 0 : index
    %136 = vector.load %arg3[%c0_125, %c6, %c0_126, %c0_127] : memref<3x9x128x128xbf16, #tpu.memory_space<vmem>>, vector<1x1x128x128xbf16>
    %137 = vector.shape_cast %136 : vector<1x1x128x128xbf16> to vector<128x128xbf16>
    %cst_128 = arith.constant dense<0.000000e+00> : vector<128x128xf32>
    %138 = tpu.matmul %135, %137, %cst_128 {dimension_numbers = #tpu.dot_dimension_numbers<[1], [0], [0], [1], [0, 0, 1, 1], [], []>} : vector<128x128xbf16>, vector<128x128xbf16>, vector<128x128xf32> -> vector<128x128xf32>
    %139 = arith.addf %133, %138 : vector<128x128xf32>
    %c21 = arith.constant 21 : index
    %c0_129 = arith.constant 0 : index
    %140 = vector.load %arg11[%c21, %c0_129] : memref<278x128xf32, #tpu.memory_space<vmem>>, vector<128x128xf32>
    %141 = arith.truncf %140 : vector<128x128xf32> to vector<128x128xbf16>
    %c0_130 = arith.constant 0 : index
    %c7 = arith.constant 7 : index
    %c0_131 = arith.constant 0 : index
    %c0_132 = arith.constant 0 : index
    %142 = vector.load %arg3[%c0_130, %c7, %c0_131, %c0_132] : memref<3x9x128x128xbf16, #tpu.memory_space<vmem>>, vector<1x1x128x128xbf16>
    %143 = vector.shape_cast %142 : vector<1x1x128x128xbf16> to vector<128x128xbf16>
    %cst_133 = arith.constant dense<0.000000e+00> : vector<128x128xf32>
    %144 = tpu.matmul %141, %143, %cst_133 {dimension_numbers = #tpu.dot_dimension_numbers<[1], [0], [0], [1], [0, 0, 1, 1], [], []>} : vector<128x128xbf16>, vector<128x128xbf16>, vector<128x128xf32> -> vector<128x128xf32>
    %145 = arith.addf %139, %144 : vector<128x128xf32>
    %c22 = arith.constant 22 : index
    %c0_134 = arith.constant 0 : index
    %146 = vector.load %arg11[%c22, %c0_134] : memref<278x128xf32, #tpu.memory_space<vmem>>, vector<128x128xf32>
    %147 = arith.truncf %146 : vector<128x128xf32> to vector<128x128xbf16>
    %c0_135 = arith.constant 0 : index
    %c8 = arith.constant 8 : index
    %c0_136 = arith.constant 0 : index
    %c0_137 = arith.constant 0 : index
    %148 = vector.load %arg3[%c0_135, %c8, %c0_136, %c0_137] : memref<3x9x128x128xbf16, #tpu.memory_space<vmem>>, vector<1x1x128x128xbf16>
    %149 = vector.shape_cast %148 : vector<1x1x128x128xbf16> to vector<128x128xbf16>
    %cst_138 = arith.constant dense<0.000000e+00> : vector<128x128xf32>
    %150 = tpu.matmul %147, %149, %cst_138 {dimension_numbers = #tpu.dot_dimension_numbers<[1], [0], [0], [1], [0, 0, 1, 1], [], []>} : vector<128x128xbf16>, vector<128x128xbf16>, vector<128x128xf32> -> vector<128x128xf32>
    %151 = arith.addf %145, %150 : vector<128x128xf32>
    %c1_139 = arith.constant 1 : index
    %c0_140 = arith.constant 0 : index
    %c0_141 = arith.constant 0 : index
    %152 = vector.load %arg4[%c1_139, %c0_140, %c0_141] : memref<4x1x128xf32, #tpu.memory_space<vmem>>, vector<1x1x128xf32>
    %153 = vector.shape_cast %152 : vector<1x1x128xf32> to vector<1x128xf32>
    %154 = vector.broadcast %153 : vector<1x128xf32> to vector<128x128xf32>
    %155 = arith.mulf %151, %154 : vector<128x128xf32>
    %c1_142 = arith.constant 1 : index
    %c0_143 = arith.constant 0 : index
    %c0_144 = arith.constant 0 : index
    %156 = vector.load %arg5[%c1_142, %c0_143, %c0_144] : memref<4x1x128xf32, #tpu.memory_space<vmem>>, vector<1x1x128xf32>
    %157 = vector.shape_cast %156 : vector<1x1x128xf32> to vector<1x128xf32>
    %158 = vector.broadcast %157 : vector<1x128xf32> to vector<128x128xf32>
    %159 = arith.addf %155, %158 : vector<128x128xf32>
    %cst_145 = arith.constant 0.000000e+00 : f32
    %160 = vector.broadcast %cst_145 : f32 to vector<128x128xf32>
    %161 = arith.maximumf %159, %160 : vector<128x128xf32>
    %c0_146 = arith.constant 0 : index
    %c0_147 = arith.constant 0 : index
    %162 = vector.load %arg12[%c0_146, %c0_147] : memref<640x128xf32, #tpu.memory_space<vmem>>, vector<128x128xf32>
    tpu.vector_store %arg12[%c0_146, %c0_147], %161 {strides = array<i32>} : memref<640x128xf32, #tpu.memory_space<vmem>>, vector<128x128xf32>,
    %c128_148 = arith.constant 128 : index
    %c0_149 = arith.constant 0 : index
    %163 = vector.load %arg11[%c128_148, %c0_149] : memref<278x128xf32, #tpu.memory_space<vmem>>, vector<128x128xf32>
    %164 = arith.truncf %163 : vector<128x128xf32> to vector<128x128xbf16>
    %c0_150 = arith.constant 0 : index
    %c0_151 = arith.constant 0 : index
    %c0_152 = arith.constant 0 : index
    %c0_153 = arith.constant 0 : index
    %165 = vector.load %arg3[%c0_150, %c0_151, %c0_152, %c0_153] : memref<3x9x128x128xbf16, #tpu.memory_space<vmem>>, vector<1x1x128x128xbf16>
    %166 = vector.shape_cast %165 : vector<1x1x128x128xbf16> to vector<128x128xbf16>
    %cst_154 = arith.constant dense<0.000000e+00> : vector<128x128xf32>
    %167 = tpu.matmul %164, %166, %cst_154 {dimension_numbers = #tpu.dot_dimension_numbers<[1], [0], [0], [1], [0, 0, 1, 1], [], []>} : vector<128x128xbf16>, vector<128x128xbf16>, vector<128x128xf32> -> vector<128x128xf32>
    %c129 = arith.constant 129 : index
    %c0_155 = arith.constant 0 : index
    %168 = vector.load %arg11[%c129, %c0_155] : memref<278x128xf32, #tpu.memory_space<vmem>>, vector<128x128xf32>
    %169 = arith.truncf %168 : vector<128x128xf32> to vector<128x128xbf16>
    %c0_156 = arith.constant 0 : index
    %c1_157 = arith.constant 1 : index
    %c0_158 = arith.constant 0 : index
    %c0_159 = arith.constant 0 : index
    %170 = vector.load %arg3[%c0_156, %c1_157, %c0_158, %c0_159] : memref<3x9x128x128xbf16, #tpu.memory_space<vmem>>, vector<1x1x128x128xbf16>
    %171 = vector.shape_cast %170 : vector<1x1x128x128xbf16> to vector<128x128xbf16>
    %cst_160 = arith.constant dense<0.000000e+00> : vector<128x128xf32>
    %172 = tpu.matmul %169, %171, %cst_160 {dimension_numbers = #tpu.dot_dimension_numbers<[1], [0], [0], [1], [0, 0, 1, 1], [], []>} : vector<128x128xbf16>, vector<128x128xbf16>, vector<128x128xf32> -> vector<128x128xf32>
    %173 = arith.addf %167, %172 : vector<128x128xf32>
    %c130 = arith.constant 130 : index
    %c0_161 = arith.constant 0 : index
    %174 = vector.load %arg11[%c130, %c0_161] : memref<278x128xf32, #tpu.memory_space<vmem>>, vector<128x128xf32>
    %175 = arith.truncf %174 : vector<128x128xf32> to vector<128x128xbf16>
    %c0_162 = arith.constant 0 : index
    %c2_163 = arith.constant 2 : index
    %c0_164 = arith.constant 0 : index
    %c0_165 = arith.constant 0 : index
    %176 = vector.load %arg3[%c0_162, %c2_163, %c0_164, %c0_165] : memref<3x9x128x128xbf16, #tpu.memory_space<vmem>>, vector<1x1x128x128xbf16>
    %177 = vector.shape_cast %176 : vector<1x1x128x128xbf16> to vector<128x128xbf16>
    %cst_166 = arith.constant dense<0.000000e+00> : vector<128x128xf32>
    %178 = tpu.matmul %175, %177, %cst_166 {dimension_numbers = #tpu.dot_dimension_numbers<[1], [0], [0], [1], [0, 0, 1, 1], [], []>} : vector<128x128xbf16>, vector<128x128xbf16>, vector<128x128xf32> -> vector<128x128xf32>
    %179 = arith.addf %173, %178 : vector<128x128xf32>
    %c138 = arith.constant 138 : index
    %c0_167 = arith.constant 0 : index
    %180 = vector.load %arg11[%c138, %c0_167] : memref<278x128xf32, #tpu.memory_space<vmem>>, vector<128x128xf32>
    %181 = arith.truncf %180 : vector<128x128xf32> to vector<128x128xbf16>
    %c0_168 = arith.constant 0 : index
    %c3_169 = arith.constant 3 : index
    %c0_170 = arith.constant 0 : index
    %c0_171 = arith.constant 0 : index
    %182 = vector.load %arg3[%c0_168, %c3_169, %c0_170, %c0_171] : memref<3x9x128x128xbf16, #tpu.memory_space<vmem>>, vector<1x1x128x128xbf16>
    %183 = vector.shape_cast %182 : vector<1x1x128x128xbf16> to vector<128x128xbf16>
    %cst_172 = arith.constant dense<0.000000e+00> : vector<128x128xf32>
    %184 = tpu.matmul %181, %183, %cst_172 {dimension_numbers = #tpu.dot_dimension_numbers<[1], [0], [0], [1], [0, 0, 1, 1], [], []>} : vector<128x128xbf16>, vector<128x128xbf16>, vector<128x128xf32> -> vector<128x128xf32>
    %185 = arith.addf %179, %184 : vector<128x128xf32>
    %c139 = arith.constant 139 : index
    %c0_173 = arith.constant 0 : index
    %186 = vector.load %arg11[%c139, %c0_173] : memref<278x128xf32, #tpu.memory_space<vmem>>, vector<128x128xf32>
    %187 = arith.truncf %186 : vector<128x128xf32> to vector<128x128xbf16>
    %c0_174 = arith.constant 0 : index
    %c4_175 = arith.constant 4 : index
    %c0_176 = arith.constant 0 : index
    %c0_177 = arith.constant 0 : index
    %188 = vector.load %arg3[%c0_174, %c4_175, %c0_176, %c0_177] : memref<3x9x128x128xbf16, #tpu.memory_space<vmem>>, vector<1x1x128x128xbf16>
    %189 = vector.shape_cast %188 : vector<1x1x128x128xbf16> to vector<128x128xbf16>
    %cst_178 = arith.constant dense<0.000000e+00> : vector<128x128xf32>
    %190 = tpu.matmul %187, %189, %cst_178 {dimension_numbers = #tpu.dot_dimension_numbers<[1], [0], [0], [1], [0, 0, 1, 1], [], []>} : vector<128x128xbf16>, vector<128x128xbf16>, vector<128x128xf32> -> vector<128x128xf32>
    %191 = arith.addf %185, %190 : vector<128x128xf32>
    %c140 = arith.constant 140 : index
    %c0_179 = arith.constant 0 : index
    %192 = vector.load %arg11[%c140, %c0_179] : memref<278x128xf32, #tpu.memory_space<vmem>>, vector<128x128xf32>
    %193 = arith.truncf %192 : vector<128x128xf32> to vector<128x128xbf16>
    %c0_180 = arith.constant 0 : index
    %c5_181 = arith.constant 5 : index
    %c0_182 = arith.constant 0 : index
    %c0_183 = arith.constant 0 : index
    %194 = vector.load %arg3[%c0_180, %c5_181, %c0_182, %c0_183] : memref<3x9x128x128xbf16, #tpu.memory_space<vmem>>, vector<1x1x128x128xbf16>
    %195 = vector.shape_cast %194 : vector<1x1x128x128xbf16> to vector<128x128xbf16>
    %cst_184 = arith.constant dense<0.000000e+00> : vector<128x128xf32>
    %196 = tpu.matmul %193, %195, %cst_184 {dimension_numbers = #tpu.dot_dimension_numbers<[1], [0], [0], [1], [0, 0, 1, 1], [], []>} : vector<128x128xbf16>, vector<128x128xbf16>, vector<128x128xf32> -> vector<128x128xf32>
    %197 = arith.addf %191, %196 : vector<128x128xf32>
    %c148 = arith.constant 148 : index
    %c0_185 = arith.constant 0 : index
    %198 = vector.load %arg11[%c148, %c0_185] : memref<278x128xf32, #tpu.memory_space<vmem>>, vector<128x128xf32>
    %199 = arith.truncf %198 : vector<128x128xf32> to vector<128x128xbf16>
    %c0_186 = arith.constant 0 : index
    %c6_187 = arith.constant 6 : index
    %c0_188 = arith.constant 0 : index
    %c0_189 = arith.constant 0 : index
    %200 = vector.load %arg3[%c0_186, %c6_187, %c0_188, %c0_189] : memref<3x9x128x128xbf16, #tpu.memory_space<vmem>>, vector<1x1x128x128xbf16>
    %201 = vector.shape_cast %200 : vector<1x1x128x128xbf16> to vector<128x128xbf16>
    %cst_190 = arith.constant dense<0.000000e+00> : vector<128x128xf32>
    %202 = tpu.matmul %199, %201, %cst_190 {dimension_numbers = #tpu.dot_dimension_numbers<[1], [0], [0], [1], [0, 0, 1, 1], [], []>} : vector<128x128xbf16>, vector<128x128xbf16>, vector<128x128xf32> -> vector<128x128xf32>
    %203 = arith.addf %197, %202 : vector<128x128xf32>
    %c149 = arith.constant 149 : index
    %c0_191 = arith.constant 0 : index
    %204 = vector.load %arg11[%c149, %c0_191] : memref<278x128xf32, #tpu.memory_space<vmem>>, vector<128x128xf32>
    %205 = arith.truncf %204 : vector<128x128xf32> to vector<128x128xbf16>
    %c0_192 = arith.constant 0 : index
    %c7_193 = arith.constant 7 : index
    %c0_194 = arith.constant 0 : index
    %c0_195 = arith.constant 0 : index
    %206 = vector.load %arg3[%c0_192, %c7_193, %c0_194, %c0_195] : memref<3x9x128x128xbf16, #tpu.memory_space<vmem>>, vector<1x1x128x128xbf16>
    %207 = vector.shape_cast %206 : vector<1x1x128x128xbf16> to vector<128x128xbf16>
    %cst_196 = arith.constant dense<0.000000e+00> : vector<128x128xf32>
    %208 = tpu.matmul %205, %207, %cst_196 {dimension_numbers = #tpu.dot_dimension_numbers<[1], [0], [0], [1], [0, 0, 1, 1], [], []>} : vector<128x128xbf16>, vector<128x128xbf16>, vector<128x128xf32> -> vector<128x128xf32>
    %209 = arith.addf %203, %208 : vector<128x128xf32>
    %c150 = arith.constant 150 : index
    %c0_197 = arith.constant 0 : index
    %210 = vector.load %arg11[%c150, %c0_197] : memref<278x128xf32, #tpu.memory_space<vmem>>, vector<128x128xf32>
    %211 = arith.truncf %210 : vector<128x128xf32> to vector<128x128xbf16>
    %c0_198 = arith.constant 0 : index
    %c8_199 = arith.constant 8 : index
    %c0_200 = arith.constant 0 : index
    %c0_201 = arith.constant 0 : index
    %212 = vector.load %arg3[%c0_198, %c8_199, %c0_200, %c0_201] : memref<3x9x128x128xbf16, #tpu.memory_space<vmem>>, vector<1x1x128x128xbf16>
    %213 = vector.shape_cast %212 : vector<1x1x128x128xbf16> to vector<128x128xbf16>
    %cst_202 = arith.constant dense<0.000000e+00> : vector<128x128xf32>
    %214 = tpu.matmul %211, %213, %cst_202 {dimension_numbers = #tpu.dot_dimension_numbers<[1], [0], [0], [1], [0, 0, 1, 1], [], []>} : vector<128x128xbf16>, vector<128x128xbf16>, vector<128x128xf32> -> vector<128x128xf32>
    %215 = arith.addf %209, %214 : vector<128x128xf32>
    %c1_203 = arith.constant 1 : index
    %c0_204 = arith.constant 0 : index
    %c0_205 = arith.constant 0 : index
    %216 = vector.load %arg4[%c1_203, %c0_204, %c0_205] : memref<4x1x128xf32, #tpu.memory_space<vmem>>, vector<1x1x128xf32>
    %217 = vector.shape_cast %216 : vector<1x1x128xf32> to vector<1x128xf32>
    %218 = vector.broadcast %217 : vector<1x128xf32> to vector<128x128xf32>
    %219 = arith.mulf %215, %218 : vector<128x128xf32>
    %c1_206 = arith.constant 1 : index
    %c0_207 = arith.constant 0 : index
    %c0_208 = arith.constant 0 : index
    %220 = vector.load %arg5[%c1_206, %c0_207, %c0_208] : memref<4x1x128xf32, #tpu.memory_space<vmem>>, vector<1x1x128xf32>
    %221 = vector.shape_cast %220 : vector<1x1x128xf32> to vector<1x128xf32>
    %222 = vector.broadcast %221 : vector<1x128xf32> to vector<128x128xf32>
    %223 = arith.addf %219, %222 : vector<128x128xf32>
    %cst_209 = arith.constant 0.000000e+00 : f32
    %224 = vector.broadcast %cst_209 : f32 to vector<128x128xf32>
    %225 = arith.maximumf %223, %224 : vector<128x128xf32>
    %c128_210 = arith.constant 128 : index
    %c0_211 = arith.constant 0 : index
    %226 = vector.load %arg12[%c128_210, %c0_211] : memref<640x128xf32, #tpu.memory_space<vmem>>, vector<128x128xf32>
    tpu.vector_store %arg12[%c128_210, %c0_211], %225 {strides = array<i32>} : memref<640x128xf32, #tpu.memory_space<vmem>>, vector<128x128xf32>,
    %c0_212 = arith.constant 0 : index
    %c0_213 = arith.constant 0 : index
    %227 = vector.load %arg12[%c0_212, %c0_213] : memref<640x128xf32, #tpu.memory_space<vmem>>, vector<67x128xf32>
    %c1_214 = arith.constant 1 : index
    %c0_215 = arith.constant 0 : index
    %228 = vector.load %arg12[%c1_214, %c0_215] : memref<640x128xf32, #tpu.memory_space<vmem>>, vector<67x128xf32>
    %229 = arith.maximumf %227, %228 : vector<67x128xf32>
    %c10_216 = arith.constant 10 : index
    %c0_217 = arith.constant 0 : index
    %230 = vector.load %arg12[%c10_216, %c0_217] : memref<640x128xf32, #tpu.memory_space<vmem>>, vector<67x128xf32>
    %c11_218 = arith.constant 11 : index
    %c0_219 = arith.constant 0 : index
    %231 = vector.load %arg12[%c11_218, %c0_219] : memref<640x128xf32, #tpu.memory_space<vmem>>, vector<67x128xf32>
    %232 = arith.maximumf %230, %231 : vector<67x128xf32>
    %233 = arith.maximumf %229, %232 : vector<67x128xf32>
    %c0_220 = arith.constant 0 : index
    %c0_221 = arith.constant 0 : index
    %234 = vector.load %arg7[%c0_220, %c0_221] : memref<36x67xbf16, #tpu.memory_space<vmem>>, vector<36x67xbf16>
    %235 = arith.truncf %233 : vector<67x128xf32> to vector<67x128xbf16>
    %cst_222 = arith.constant dense<0.000000e+00> : vector<36x128xf32>
    %236 = tpu.matmul %234, %235, %cst_222 {dimension_numbers = #tpu.dot_dimension_numbers<[1], [0], [0], [1], [0, 0, 1, 1], [], []>} : vector<36x67xbf16>, vector<67x128xbf16>, vector<36x128xf32> -> vector<36x128xf32>
    %c0_223 = arith.constant 0 : index
    %c0_224 = arith.constant 0 : index
    %237 = vector.load %arg11[%c0_223, %c0_224] : memref<278x128xf32, #tpu.memory_space<vmem>>, vector<36x128xf32>
    tpu.vector_store %arg11[%c0_223, %c0_224], %236 {strides = array<i32>} : memref<278x128xf32, #tpu.memory_space<vmem>>, vector<36x128xf32>,
    %c100_225 = arith.constant 100 : index
    %c0_226 = arith.constant 0 : index
    %238 = vector.load %arg12[%c100_225, %c0_226] : memref<640x128xf32, #tpu.memory_space<vmem>>, vector<67x128xf32>
    %c101 = arith.constant 101 : index
    %c0_227 = arith.constant 0 : index
    %239 = vector.load %arg12[%c101, %c0_227] : memref<640x128xf32, #tpu.memory_space<vmem>>, vector<67x128xf32>
    %240 = arith.maximumf %238, %239 : vector<67x128xf32>
    %c110 = arith.constant 110 : index
    %c0_228 = arith.constant 0 : index
    %241 = vector.load %arg12[%c110, %c0_228] : memref<640x128xf32, #tpu.memory_space<vmem>>, vector<67x128xf32>
    %c111 = arith.constant 111 : index
    %c0_229 = arith.constant 0 : index
    %242 = vector.load %arg12[%c111, %c0_229] : memref<640x128xf32, #tpu.memory_space<vmem>>, vector<67x128xf32>
    %243 = arith.maximumf %241, %242 : vector<67x128xf32>
    %244 = arith.maximumf %240, %243 : vector<67x128xf32>
    %c0_230 = arith.constant 0 : index
    %c0_231 = arith.constant 0 : index
    %245 = vector.load %arg7[%c0_230, %c0_231] : memref<36x67xbf16, #tpu.memory_space<vmem>>, vector<36x67xbf16>
    %246 = arith.truncf %244 : vector<67x128xf32> to vector<67x128xbf16>
    %cst_232 = arith.constant dense<0.000000e+00> : vector<36x128xf32>
    %247 = tpu.matmul %245, %246, %cst_232 {dimension_numbers = #tpu.dot_dimension_numbers<[1], [0], [0], [1], [0, 0, 1, 1], [], []>} : vector<36x67xbf16>, vector<67x128xbf16>, vector<36x128xf32> -> vector<36x128xf32>
    %c36 = arith.constant 36 : index
    %c0_233 = arith.constant 0 : index
    %248 = vector.load %arg11[%c36, %c0_233] : memref<278x128xf32, #tpu.memory_space<vmem>>, vector<36x128xf32>
    tpu.vector_store %arg11[%c36, %c0_233], %247 {strides = array<i32>} : memref<278x128xf32, #tpu.memory_space<vmem>>, vector<36x128xf32>,
    %c0_234 = arith.constant 0 : index
    %c0_235 = arith.constant 0 : index
    %249 = vector.load %arg11[%c0_234, %c0_235] : memref<278x128xf32, #tpu.memory_space<vmem>>, vector<128x128xf32>
    %250 = arith.truncf %249 : vector<128x128xf32> to vector<128x128xbf16>
    %c1_236 = arith.constant 1 : index
    %c0_237 = arith.constant 0 : index
    %c0_238 = arith.constant 0 : index
    %c0_239 = arith.constant 0 : index
    %251 = vector.load %arg3[%c1_236, %c0_237, %c0_238, %c0_239] : memref<3x9x128x128xbf16, #tpu.memory_space<vmem>>, vector<1x1x128x128xbf16>
    %252 = vector.shape_cast %251 : vector<1x1x128x128xbf16> to vector<128x128xbf16>
    %cst_240 = arith.constant dense<0.000000e+00> : vector<128x128xf32>
    %253 = tpu.matmul %250, %252, %cst_240 {dimension_numbers = #tpu.dot_dimension_numbers<[1], [0], [0], [1], [0, 0, 1, 1], [], []>} : vector<128x128xbf16>, vector<128x128xbf16>, vector<128x128xf32> -> vector<128x128xf32>
    %c1_241 = arith.constant 1 : index
    %c0_242 = arith.constant 0 : index
    %254 = vector.load %arg11[%c1_241, %c0_242] : memref<278x128xf32, #tpu.memory_space<vmem>>, vector<128x128xf32>
    %255 = arith.truncf %254 : vector<128x128xf32> to vector<128x128xbf16>
    %c1_243 = arith.constant 1 : index
    %c1_244 = arith.constant 1 : index
    %c0_245 = arith.constant 0 : index
    %c0_246 = arith.constant 0 : index
    %256 = vector.load %arg3[%c1_243, %c1_244, %c0_245, %c0_246] : memref<3x9x128x128xbf16, #tpu.memory_space<vmem>>, vector<1x1x128x128xbf16>
    %257 = vector.shape_cast %256 : vector<1x1x128x128xbf16> to vector<128x128xbf16>
    %cst_247 = arith.constant dense<0.000000e+00> : vector<128x128xf32>
    %258 = tpu.matmul %255, %257, %cst_247 {dimension_numbers = #tpu.dot_dimension_numbers<[1], [0], [0], [1], [0, 0, 1, 1], [], []>} : vector<128x128xbf16>, vector<128x128xbf16>, vector<128x128xf32> -> vector<128x128xf32>
    %259 = arith.addf %253, %258 : vector<128x128xf32>
    %c2_248 = arith.constant 2 : index
    %c0_249 = arith.constant 0 : index
    %260 = vector.load %arg11[%c2_248, %c0_249] : memref<278x128xf32, #tpu.memory_space<vmem>>, vector<128x128xf32>
    %261 = arith.truncf %260 : vector<128x128xf32> to vector<128x128xbf16>
    %c1_250 = arith.constant 1 : index
    %c2_251 = arith.constant 2 : index
    %c0_252 = arith.constant 0 : index
    %c0_253 = arith.constant 0 : index
    %262 = vector.load %arg3[%c1_250, %c2_251, %c0_252, %c0_253] : memref<3x9x128x128xbf16, #tpu.memory_space<vmem>>, vector<1x1x128x128xbf16>
    %263 = vector.shape_cast %262 : vector<1x1x128x128xbf16> to vector<128x128xbf16>
    %cst_254 = arith.constant dense<0.000000e+00> : vector<128x128xf32>
    %264 = tpu.matmul %261, %263, %cst_254 {dimension_numbers = #tpu.dot_dimension_numbers<[1], [0], [0], [1], [0, 0, 1, 1], [], []>} : vector<128x128xbf16>, vector<128x128xbf16>, vector<128x128xf32> -> vector<128x128xf32>
    %265 = arith.addf %259, %264 : vector<128x128xf32>
    %c6_255 = arith.constant 6 : index
    %c0_256 = arith.constant 0 : index
    %266 = vector.load %arg11[%c6_255, %c0_256] : memref<278x128xf32, #tpu.memory_space<vmem>>, vector<128x128xf32>
    %267 = arith.truncf %266 : vector<128x128xf32> to vector<128x128xbf16>
    %c1_257 = arith.constant 1 : index
    %c3_258 = arith.constant 3 : index
    %c0_259 = arith.constant 0 : index
    %c0_260 = arith.constant 0 : index
    %268 = vector.load %arg3[%c1_257, %c3_258, %c0_259, %c0_260] : memref<3x9x128x128xbf16, #tpu.memory_space<vmem>>, vector<1x1x128x128xbf16>
    %269 = vector.shape_cast %268 : vector<1x1x128x128xbf16> to vector<128x128xbf16>
    %cst_261 = arith.constant dense<0.000000e+00> : vector<128x128xf32>
    %270 = tpu.matmul %267, %269, %cst_261 {dimension_numbers = #tpu.dot_dimension_numbers<[1], [0], [0], [1], [0, 0, 1, 1], [], []>} : vector<128x128xbf16>, vector<128x128xbf16>, vector<128x128xf32> -> vector<128x128xf32>
    %271 = arith.addf %265, %270 : vector<128x128xf32>
    %c7_262 = arith.constant 7 : index
    %c0_263 = arith.constant 0 : index
    %272 = vector.load %arg11[%c7_262, %c0_263] : memref<278x128xf32, #tpu.memory_space<vmem>>, vector<128x128xf32>
    %273 = arith.truncf %272 : vector<128x128xf32> to vector<128x128xbf16>
    %c1_264 = arith.constant 1 : index
    %c4_265 = arith.constant 4 : index
    %c0_266 = arith.constant 0 : index
    %c0_267 = arith.constant 0 : index
    %274 = vector.load %arg3[%c1_264, %c4_265, %c0_266, %c0_267] : memref<3x9x128x128xbf16, #tpu.memory_space<vmem>>, vector<1x1x128x128xbf16>
    %275 = vector.shape_cast %274 : vector<1x1x128x128xbf16> to vector<128x128xbf16>
    %cst_268 = arith.constant dense<0.000000e+00> : vector<128x128xf32>
    %276 = tpu.matmul %273, %275, %cst_268 {dimension_numbers = #tpu.dot_dimension_numbers<[1], [0], [0], [1], [0, 0, 1, 1], [], []>} : vector<128x128xbf16>, vector<128x128xbf16>, vector<128x128xf32> -> vector<128x128xf32>
    %277 = arith.addf %271, %276 : vector<128x128xf32>
    %c8_269 = arith.constant 8 : index
    %c0_270 = arith.constant 0 : index
    %278 = vector.load %arg11[%c8_269, %c0_270] : memref<278x128xf32, #tpu.memory_space<vmem>>, vector<128x128xf32>
    %279 = arith.truncf %278 : vector<128x128xf32> to vector<128x128xbf16>
    %c1_271 = arith.constant 1 : index
    %c5_272 = arith.constant 5 : index
    %c0_273 = arith.constant 0 : index
    %c0_274 = arith.constant 0 : index
    %280 = vector.load %arg3[%c1_271, %c5_272, %c0_273, %c0_274] : memref<3x9x128x128xbf16, #tpu.memory_space<vmem>>, vector<1x1x128x128xbf16>
    %281 = vector.shape_cast %280 : vector<1x1x128x128xbf16> to vector<128x128xbf16>
    %cst_275 = arith.constant dense<0.000000e+00> : vector<128x128xf32>
    %282 = tpu.matmul %279, %281, %cst_275 {dimension_numbers = #tpu.dot_dimension_numbers<[1], [0], [0], [1], [0, 0, 1, 1], [], []>} : vector<128x128xbf16>, vector<128x128xbf16>, vector<128x128xf32> -> vector<128x128xf32>
    %283 = arith.addf %277, %282 : vector<128x128xf32>
    %c12_276 = arith.constant 12 : index
    %c0_277 = arith.constant 0 : index
    %284 = vector.load %arg11[%c12_276, %c0_277] : memref<278x128xf32, #tpu.memory_space<vmem>>, vector<128x128xf32>
    %285 = arith.truncf %284 : vector<128x128xf32> to vector<128x128xbf16>
    %c1_278 = arith.constant 1 : index
    %c6_279 = arith.constant 6 : index
    %c0_280 = arith.constant 0 : index
    %c0_281 = arith.constant 0 : index
    %286 = vector.load %arg3[%c1_278, %c6_279, %c0_280, %c0_281] : memref<3x9x128x128xbf16, #tpu.memory_space<vmem>>, vector<1x1x128x128xbf16>
    %287 = vector.shape_cast %286 : vector<1x1x128x128xbf16> to vector<128x128xbf16>
    %cst_282 = arith.constant dense<0.000000e+00> : vector<128x128xf32>
    %288 = tpu.matmul %285, %287, %cst_282 {dimension_numbers = #tpu.dot_dimension_numbers<[1], [0], [0], [1], [0, 0, 1, 1], [], []>} : vector<128x128xbf16>, vector<128x128xbf16>, vector<128x128xf32> -> vector<128x128xf32>
    %289 = arith.addf %283, %288 : vector<128x128xf32>
    %c13 = arith.constant 13 : index
    %c0_283 = arith.constant 0 : index
    %290 = vector.load %arg11[%c13, %c0_283] : memref<278x128xf32, #tpu.memory_space<vmem>>, vector<128x128xf32>
    %291 = arith.truncf %290 : vector<128x128xf32> to vector<128x128xbf16>
    %c1_284 = arith.constant 1 : index
    %c7_285 = arith.constant 7 : index
    %c0_286 = arith.constant 0 : index
    %c0_287 = arith.constant 0 : index
    %292 = vector.load %arg3[%c1_284, %c7_285, %c0_286, %c0_287] : memref<3x9x128x128xbf16, #tpu.memory_space<vmem>>, vector<1x1x128x128xbf16>
    %293 = vector.shape_cast %292 : vector<1x1x128x128xbf16> to vector<128x128xbf16>
    %cst_288 = arith.constant dense<0.000000e+00> : vector<128x128xf32>
    %294 = tpu.matmul %291, %293, %cst_288 {dimension_numbers = #tpu.dot_dimension_numbers<[1], [0], [0], [1], [0, 0, 1, 1], [], []>} : vector<128x128xbf16>, vector<128x128xbf16>, vector<128x128xf32> -> vector<128x128xf32>
    %295 = arith.addf %289, %294 : vector<128x128xf32>
    %c14 = arith.constant 14 : index
    %c0_289 = arith.constant 0 : index
    %296 = vector.load %arg11[%c14, %c0_289] : memref<278x128xf32, #tpu.memory_space<vmem>>, vector<128x128xf32>
    %297 = arith.truncf %296 : vector<128x128xf32> to vector<128x128xbf16>
    %c1_290 = arith.constant 1 : index
    %c8_291 = arith.constant 8 : index
    %c0_292 = arith.constant 0 : index
    %c0_293 = arith.constant 0 : index
    %298 = vector.load %arg3[%c1_290, %c8_291, %c0_292, %c0_293] : memref<3x9x128x128xbf16, #tpu.memory_space<vmem>>, vector<1x1x128x128xbf16>
    %299 = vector.shape_cast %298 : vector<1x1x128x128xbf16> to vector<128x128xbf16>
    %cst_294 = arith.constant dense<0.000000e+00> : vector<128x128xf32>
    %300 = tpu.matmul %297, %299, %cst_294 {dimension_numbers = #tpu.dot_dimension_numbers<[1], [0], [0], [1], [0, 0, 1, 1], [], []>} : vector<128x128xbf16>, vector<128x128xbf16>, vector<128x128xf32> -> vector<128x128xf32>
    %301 = arith.addf %295, %300 : vector<128x128xf32>
    %c2_295 = arith.constant 2 : index
    %c0_296 = arith.constant 0 : index
    %c0_297 = arith.constant 0 : index
    %302 = vector.load %arg4[%c2_295, %c0_296, %c0_297] : memref<4x1x128xf32, #tpu.memory_space<vmem>>, vector<1x1x128xf32>
    %303 = vector.shape_cast %302 : vector<1x1x128xf32> to vector<1x128xf32>
    %304 = vector.broadcast %303 : vector<1x128xf32> to vector<128x128xf32>
    %305 = arith.mulf %301, %304 : vector<128x128xf32>
    %c2_298 = arith.constant 2 : index
    %c0_299 = arith.constant 0 : index
    %c0_300 = arith.constant 0 : index
    %306 = vector.load %arg5[%c2_298, %c0_299, %c0_300] : memref<4x1x128xf32, #tpu.memory_space<vmem>>, vector<1x1x128xf32>
    %307 = vector.shape_cast %306 : vector<1x1x128xf32> to vector<1x128xf32>
    %308 = vector.broadcast %307 : vector<1x128xf32> to vector<128x128xf32>
    %309 = arith.addf %305, %308 : vector<128x128xf32>
    %cst_301 = arith.constant 0.000000e+00 : f32
    %310 = vector.broadcast %cst_301 : f32 to vector<128x128xf32>
    %311 = arith.maximumf %309, %310 : vector<128x128xf32>
    %c0_302 = arith.constant 0 : index
    %c0_303 = arith.constant 0 : index
    %312 = vector.load %arg12[%c0_302, %c0_303] : memref<640x128xf32, #tpu.memory_space<vmem>>, vector<128x128xf32>
    tpu.vector_store %arg12[%c0_302, %c0_303], %311 {strides = array<i32>} : memref<640x128xf32, #tpu.memory_space<vmem>>, vector<128x128xf32>,
    %c0_304 = arith.constant 0 : index
    %c0_305 = arith.constant 0 : index
    %313 = vector.load %arg12[%c0_304, %c0_305] : memref<640x128xf32, #tpu.memory_space<vmem>>, vector<15x128xf32>
    %c1_306 = arith.constant 1 : index
    %c0_307 = arith.constant 0 : index
    %314 = vector.load %arg12[%c1_306, %c0_307] : memref<640x128xf32, #tpu.memory_space<vmem>>, vector<15x128xf32>
    %315 = arith.maximumf %313, %314 : vector<15x128xf32>
    %c6_308 = arith.constant 6 : index
    %c0_309 = arith.constant 0 : index
    %316 = vector.load %arg12[%c6_308, %c0_309] : memref<640x128xf32, #tpu.memory_space<vmem>>, vector<15x128xf32>
    %c7_310 = arith.constant 7 : index
    %c0_311 = arith.constant 0 : index
    %317 = vector.load %arg12[%c7_310, %c0_311] : memref<640x128xf32, #tpu.memory_space<vmem>>, vector<15x128xf32>
    %318 = arith.maximumf %316, %317 : vector<15x128xf32>
    %319 = arith.maximumf %315, %318 : vector<15x128xf32>
    %c0_312 = arith.constant 0 : index
    %c0_313 = arith.constant 0 : index
    %320 = vector.load %arg8[%c0_312, %c0_313] : memref<16x15xbf16, #tpu.memory_space<vmem>>, vector<16x15xbf16>
    %321 = arith.truncf %319 : vector<15x128xf32> to vector<15x128xbf16>
    %cst_314 = arith.constant dense<0.000000e+00> : vector<16x128xf32>
    %322 = tpu.matmul %320, %321, %cst_314 {dimension_numbers = #tpu.dot_dimension_numbers<[1], [0], [0], [1], [0, 0, 1, 1], [], []>} : vector<16x15xbf16>, vector<15x128xbf16>, vector<16x128xf32> -> vector<16x128xf32>
    %c0_315 = arith.constant 0 : index
    %c0_316 = arith.constant 0 : index
    %323 = vector.load %arg11[%c0_315, %c0_316] : memref<278x128xf32, #tpu.memory_space<vmem>>, vector<16x128xf32>
    tpu.vector_store %arg11[%c0_315, %c0_316], %322 {strides = array<i32>} : memref<278x128xf32, #tpu.memory_space<vmem>>, vector<16x128xf32>,
    %c36_317 = arith.constant 36 : index
    %c0_318 = arith.constant 0 : index
    %324 = vector.load %arg12[%c36_317, %c0_318] : memref<640x128xf32, #tpu.memory_space<vmem>>, vector<15x128xf32>
    %c37 = arith.constant 37 : index
    %c0_319 = arith.constant 0 : index
    %325 = vector.load %arg12[%c37, %c0_319] : memref<640x128xf32, #tpu.memory_space<vmem>>, vector<15x128xf32>
    %326 = arith.maximumf %324, %325 : vector<15x128xf32>
    %c42 = arith.constant 42 : index
    %c0_320 = arith.constant 0 : index
    %327 = vector.load %arg12[%c42, %c0_320] : memref<640x128xf32, #tpu.memory_space<vmem>>, vector<15x128xf32>
    %c43 = arith.constant 43 : index
    %c0_321 = arith.constant 0 : index
    %328 = vector.load %arg12[%c43, %c0_321] : memref<640x128xf32, #tpu.memory_space<vmem>>, vector<15x128xf32>
    %329 = arith.maximumf %327, %328 : vector<15x128xf32>
    %330 = arith.maximumf %326, %329 : vector<15x128xf32>
    %c0_322 = arith.constant 0 : index
    %c0_323 = arith.constant 0 : index
    %331 = vector.load %arg8[%c0_322, %c0_323] : memref<16x15xbf16, #tpu.memory_space<vmem>>, vector<16x15xbf16>
    %332 = arith.truncf %330 : vector<15x128xf32> to vector<15x128xbf16>
    %cst_324 = arith.constant dense<0.000000e+00> : vector<16x128xf32>
    %333 = tpu.matmul %331, %332, %cst_324 {dimension_numbers = #tpu.dot_dimension_numbers<[1], [0], [0], [1], [0, 0, 1, 1], [], []>} : vector<16x15xbf16>, vector<15x128xbf16>, vector<16x128xf32> -> vector<16x128xf32>
    %c16 = arith.constant 16 : index
    %c0_325 = arith.constant 0 : index
    %334 = vector.load %arg11[%c16, %c0_325] : memref<278x128xf32, #tpu.memory_space<vmem>>, vector<16x128xf32>
    tpu.vector_store %arg11[%c16, %c0_325], %333 {strides = array<i32>} : memref<278x128xf32, #tpu.memory_space<vmem>>, vector<16x128xf32>,
    %c0_326 = arith.constant 0 : index
    %c0_327 = arith.constant 0 : index
    %335 = vector.load %arg11[%c0_326, %c0_327] : memref<278x128xf32, #tpu.memory_space<vmem>>, vector<128x128xf32>
    %336 = arith.truncf %335 : vector<128x128xf32> to vector<128x128xbf16>
    %c2_328 = arith.constant 2 : index
    %c0_329 = arith.constant 0 : index
    %c0_330 = arith.constant 0 : index
    %c0_331 = arith.constant 0 : index
    %337 = vector.load %arg3[%c2_328, %c0_329, %c0_330, %c0_331] : memref<3x9x128x128xbf16, #tpu.memory_space<vmem>>, vector<1x1x128x128xbf16>
    %338 = vector.shape_cast %337 : vector<1x1x128x128xbf16> to vector<128x128xbf16>
    %cst_332 = arith.constant dense<0.000000e+00> : vector<128x128xf32>
    %339 = tpu.matmul %336, %338, %cst_332 {dimension_numbers = #tpu.dot_dimension_numbers<[1], [0], [0], [1], [0, 0, 1, 1], [], []>} : vector<128x128xbf16>, vector<128x128xbf16>, vector<128x128xf32> -> vector<128x128xf32>
    %c1_333 = arith.constant 1 : index
    %c0_334 = arith.constant 0 : index
    %340 = vector.load %arg11[%c1_333, %c0_334] : memref<278x128xf32, #tpu.memory_space<vmem>>, vector<128x128xf32>
    %341 = arith.truncf %340 : vector<128x128xf32> to vector<128x128xbf16>
    %c2_335 = arith.constant 2 : index
    %c1_336 = arith.constant 1 : index
    %c0_337 = arith.constant 0 : index
    %c0_338 = arith.constant 0 : index
    %342 = vector.load %arg3[%c2_335, %c1_336, %c0_337, %c0_338] : memref<3x9x128x128xbf16, #tpu.memory_space<vmem>>, vector<1x1x128x128xbf16>
    %343 = vector.shape_cast %342 : vector<1x1x128x128xbf16> to vector<128x128xbf16>
    %cst_339 = arith.constant dense<0.000000e+00> : vector<128x128xf32>
    %344 = tpu.matmul %341, %343, %cst_339 {dimension_numbers = #tpu.dot_dimension_numbers<[1], [0], [0], [1], [0, 0, 1, 1], [], []>} : vector<128x128xbf16>, vector<128x128xbf16>, vector<128x128xf32> -> vector<128x128xf32>
    %345 = arith.addf %339, %344 : vector<128x128xf32>
    %c2_340 = arith.constant 2 : index
    %c0_341 = arith.constant 0 : index
    %346 = vector.load %arg11[%c2_340, %c0_341] : memref<278x128xf32, #tpu.memory_space<vmem>>, vector<128x128xf32>
    %347 = arith.truncf %346 : vector<128x128xf32> to vector<128x128xbf16>
    %c2_342 = arith.constant 2 : index
    %c2_343 = arith.constant 2 : index
    %c0_344 = arith.constant 0 : index
    %c0_345 = arith.constant 0 : index
    %348 = vector.load %arg3[%c2_342, %c2_343, %c0_344, %c0_345] : memref<3x9x128x128xbf16, #tpu.memory_space<vmem>>, vector<1x1x128x128xbf16>
    %349 = vector.shape_cast %348 : vector<1x1x128x128xbf16> to vector<128x128xbf16>
    %cst_346 = arith.constant dense<0.000000e+00> : vector<128x128xf32>
    %350 = tpu.matmul %347, %349, %cst_346 {dimension_numbers = #tpu.dot_dimension_numbers<[1], [0], [0], [1], [0, 0, 1, 1], [], []>} : vector<128x128xbf16>, vector<128x128xbf16>, vector<128x128xf32> -> vector<128x128xf32>
    %351 = arith.addf %345, %350 : vector<128x128xf32>
    %c4_347 = arith.constant 4 : index
    %c0_348 = arith.constant 0 : index
    %352 = vector.load %arg11[%c4_347, %c0_348] : memref<278x128xf32, #tpu.memory_space<vmem>>, vector<128x128xf32>
    %353 = arith.truncf %352 : vector<128x128xf32> to vector<128x128xbf16>
    %c2_349 = arith.constant 2 : index
    %c3_350 = arith.constant 3 : index
    %c0_351 = arith.constant 0 : index
    %c0_352 = arith.constant 0 : index
    %354 = vector.load %arg3[%c2_349, %c3_350, %c0_351, %c0_352] : memref<3x9x128x128xbf16, #tpu.memory_space<vmem>>, vector<1x1x128x128xbf16>
    %355 = vector.shape_cast %354 : vector<1x1x128x128xbf16> to vector<128x128xbf16>
    %cst_353 = arith.constant dense<0.000000e+00> : vector<128x128xf32>
    %356 = tpu.matmul %353, %355, %cst_353 {dimension_numbers = #tpu.dot_dimension_numbers<[1], [0], [0], [1], [0, 0, 1, 1], [], []>} : vector<128x128xbf16>, vector<128x128xbf16>, vector<128x128xf32> -> vector<128x128xf32>
    %357 = arith.addf %351, %356 : vector<128x128xf32>
    %c5_354 = arith.constant 5 : index
    %c0_355 = arith.constant 0 : index
    %358 = vector.load %arg11[%c5_354, %c0_355] : memref<278x128xf32, #tpu.memory_space<vmem>>, vector<128x128xf32>
    %359 = arith.truncf %358 : vector<128x128xf32> to vector<128x128xbf16>
    %c2_356 = arith.constant 2 : index
    %c4_357 = arith.constant 4 : index
    %c0_358 = arith.constant 0 : index
    %c0_359 = arith.constant 0 : index
    %360 = vector.load %arg3[%c2_356, %c4_357, %c0_358, %c0_359] : memref<3x9x128x128xbf16, #tpu.memory_space<vmem>>, vector<1x1x128x128xbf16>
    %361 = vector.shape_cast %360 : vector<1x1x128x128xbf16> to vector<128x128xbf16>
    %cst_360 = arith.constant dense<0.000000e+00> : vector<128x128xf32>
    %362 = tpu.matmul %359, %361, %cst_360 {dimension_numbers = #tpu.dot_dimension_numbers<[1], [0], [0], [1], [0, 0, 1, 1], [], []>} : vector<128x128xbf16>, vector<128x128xbf16>, vector<128x128xf32> -> vector<128x128xf32>
    %363 = arith.addf %357, %362 : vector<128x128xf32>
    %c6_361 = arith.constant 6 : index
    %c0_362 = arith.constant 0 : index
    %364 = vector.load %arg11[%c6_361, %c0_362] : memref<278x128xf32, #tpu.memory_space<vmem>>, vector<128x128xf32>
    %365 = arith.truncf %364 : vector<128x128xf32> to vector<128x128xbf16>
    %c2_363 = arith.constant 2 : index
    %c5_364 = arith.constant 5 : index
    %c0_365 = arith.constant 0 : index
    %c0_366 = arith.constant 0 : index
    %366 = vector.load %arg3[%c2_363, %c5_364, %c0_365, %c0_366] : memref<3x9x128x128xbf16, #tpu.memory_space<vmem>>, vector<1x1x128x128xbf16>
    %367 = vector.shape_cast %366 : vector<1x1x128x128xbf16> to vector<128x128xbf16>
    %cst_367 = arith.constant dense<0.000000e+00> : vector<128x128xf32>
    %368 = tpu.matmul %365, %367, %cst_367 {dimension_numbers = #tpu.dot_dimension_numbers<[1], [0], [0], [1], [0, 0, 1, 1], [], []>} : vector<128x128xbf16>, vector<128x128xbf16>, vector<128x128xf32> -> vector<128x128xf32>
    %369 = arith.addf %363, %368 : vector<128x128xf32>
    %c8_368 = arith.constant 8 : index
    %c0_369 = arith.constant 0 : index
    %370 = vector.load %arg11[%c8_368, %c0_369] : memref<278x128xf32, #tpu.memory_space<vmem>>, vector<128x128xf32>
    %371 = arith.truncf %370 : vector<128x128xf32> to vector<128x128xbf16>
    %c2_370 = arith.constant 2 : index
    %c6_371 = arith.constant 6 : index
    %c0_372 = arith.constant 0 : index
    %c0_373 = arith.constant 0 : index
    %372 = vector.load %arg3[%c2_370, %c6_371, %c0_372, %c0_373] : memref<3x9x128x128xbf16, #tpu.memory_space<vmem>>, vector<1x1x128x128xbf16>
    %373 = vector.shape_cast %372 : vector<1x1x128x128xbf16> to vector<128x128xbf16>
    %cst_374 = arith.constant dense<0.000000e+00> : vector<128x128xf32>
    %374 = tpu.matmul %371, %373, %cst_374 {dimension_numbers = #tpu.dot_dimension_numbers<[1], [0], [0], [1], [0, 0, 1, 1], [], []>} : vector<128x128xbf16>, vector<128x128xbf16>, vector<128x128xf32> -> vector<128x128xf32>
    %375 = arith.addf %369, %374 : vector<128x128xf32>
    %c9 = arith.constant 9 : index
    %c0_375 = arith.constant 0 : index
    %376 = vector.load %arg11[%c9, %c0_375] : memref<278x128xf32, #tpu.memory_space<vmem>>, vector<128x128xf32>
    %377 = arith.truncf %376 : vector<128x128xf32> to vector<128x128xbf16>
    %c2_376 = arith.constant 2 : index
    %c7_377 = arith.constant 7 : index
    %c0_378 = arith.constant 0 : index
    %c0_379 = arith.constant 0 : index
    %378 = vector.load %arg3[%c2_376, %c7_377, %c0_378, %c0_379] : memref<3x9x128x128xbf16, #tpu.memory_space<vmem>>, vector<1x1x128x128xbf16>
    %379 = vector.shape_cast %378 : vector<1x1x128x128xbf16> to vector<128x128xbf16>
    %cst_380 = arith.constant dense<0.000000e+00> : vector<128x128xf32>
    %380 = tpu.matmul %377, %379, %cst_380 {dimension_numbers = #tpu.dot_dimension_numbers<[1], [0], [0], [1], [0, 0, 1, 1], [], []>} : vector<128x128xbf16>, vector<128x128xbf16>, vector<128x128xf32> -> vector<128x128xf32>
    %381 = arith.addf %375, %380 : vector<128x128xf32>
    %c10_381 = arith.constant 10 : index
    %c0_382 = arith.constant 0 : index
    %382 = vector.load %arg11[%c10_381, %c0_382] : memref<278x128xf32, #tpu.memory_space<vmem>>, vector<128x128xf32>
    %383 = arith.truncf %382 : vector<128x128xf32> to vector<128x128xbf16>
    %c2_383 = arith.constant 2 : index
    %c8_384 = arith.constant 8 : index
    %c0_385 = arith.constant 0 : index
    %c0_386 = arith.constant 0 : index
    %384 = vector.load %arg3[%c2_383, %c8_384, %c0_385, %c0_386] : memref<3x9x128x128xbf16, #tpu.memory_space<vmem>>, vector<1x1x128x128xbf16>
    %385 = vector.shape_cast %384 : vector<1x1x128x128xbf16> to vector<128x128xbf16>
    %cst_387 = arith.constant dense<0.000000e+00> : vector<128x128xf32>
    %386 = tpu.matmul %383, %385, %cst_387 {dimension_numbers = #tpu.dot_dimension_numbers<[1], [0], [0], [1], [0, 0, 1, 1], [], []>} : vector<128x128xbf16>, vector<128x128xbf16>, vector<128x128xf32> -> vector<128x128xf32>
    %387 = arith.addf %381, %386 : vector<128x128xf32>
    %c3_388 = arith.constant 3 : index
    %c0_389 = arith.constant 0 : index
    %c0_390 = arith.constant 0 : index
    %388 = vector.load %arg4[%c3_388, %c0_389, %c0_390] : memref<4x1x128xf32, #tpu.memory_space<vmem>>, vector<1x1x128xf32>
    %389 = vector.shape_cast %388 : vector<1x1x128xf32> to vector<1x128xf32>
    %390 = vector.broadcast %389 : vector<1x128xf32> to vector<128x128xf32>
    %391 = arith.mulf %387, %390 : vector<128x128xf32>
    %c3_391 = arith.constant 3 : index
    %c0_392 = arith.constant 0 : index
    %c0_393 = arith.constant 0 : index
    %392 = vector.load %arg5[%c3_391, %c0_392, %c0_393] : memref<4x1x128xf32, #tpu.memory_space<vmem>>, vector<1x1x128xf32>
    %393 = vector.shape_cast %392 : vector<1x1x128xf32> to vector<1x128xf32>
    %394 = vector.broadcast %393 : vector<1x128xf32> to vector<128x128xf32>
    %395 = arith.addf %391, %394 : vector<128x128xf32>
    %cst_394 = arith.constant 0.000000e+00 : f32
    %396 = vector.broadcast %cst_394 : f32 to vector<128x128xf32>
    %397 = arith.maximumf %395, %396 : vector<128x128xf32>
    %c0_395 = arith.constant 0 : index
    %c0_396 = arith.constant 0 : index
    %398 = vector.load %arg12[%c0_395, %c0_396] : memref<640x128xf32, #tpu.memory_space<vmem>>, vector<128x128xf32>
    tpu.vector_store %arg12[%c0_395, %c0_396], %397 {strides = array<i32>} : memref<640x128xf32, #tpu.memory_space<vmem>>, vector<128x128xf32>,
    %c0_397 = arith.constant 0 : index
    %c0_398 = arith.constant 0 : index
    %399 = vector.load %arg12[%c0_397, %c0_398] : memref<640x128xf32, #tpu.memory_space<vmem>>, vector<1x128xf32>
    %c1_399 = arith.constant 1 : index
    %c0_400 = arith.constant 0 : index
    %400 = vector.load %arg12[%c1_399, %c0_400] : memref<640x128xf32, #tpu.memory_space<vmem>>, vector<1x128xf32>
    %401 = arith.maximumf %399, %400 : vector<1x128xf32>
    %c4_401 = arith.constant 4 : index
    %c0_402 = arith.constant 0 : index
    %402 = vector.load %arg12[%c4_401, %c0_402] : memref<640x128xf32, #tpu.memory_space<vmem>>, vector<1x128xf32>
    %c5_403 = arith.constant 5 : index
    %c0_404 = arith.constant 0 : index
    %403 = vector.load %arg12[%c5_403, %c0_404] : memref<640x128xf32, #tpu.memory_space<vmem>>, vector<1x128xf32>
    %404 = arith.maximumf %402, %403 : vector<1x128xf32>
    %405 = arith.maximumf %401, %404 : vector<1x128xf32>
    %c0_405 = arith.constant 0 : index
    %c0_406 = arith.constant 0 : index
    %406 = vector.load %arg13[%c0_405, %c0_406] : memref<2x128xf32, #tpu.memory_space<vmem>>, vector<1x128xf32>
    tpu.vector_store %arg13[%c0_405, %c0_406], %405 {strides = array<i32>} : memref<2x128xf32, #tpu.memory_space<vmem>>, vector<1x128xf32>,
    %c16_407 = arith.constant 16 : index
    %c0_408 = arith.constant 0 : index
    %407 = vector.load %arg12[%c16_407, %c0_408] : memref<640x128xf32, #tpu.memory_space<vmem>>, vector<1x128xf32>
    %c17 = arith.constant 17 : index
    %c0_409 = arith.constant 0 : index
    %408 = vector.load %arg12[%c17, %c0_409] : memref<640x128xf32, #tpu.memory_space<vmem>>, vector<1x128xf32>
    %409 = arith.maximumf %407, %408 : vector<1x128xf32>
    %c20_410 = arith.constant 20 : index
    %c0_411 = arith.constant 0 : index
    %410 = vector.load %arg12[%c20_410, %c0_411] : memref<640x128xf32, #tpu.memory_space<vmem>>, vector<1x128xf32>
    %c21_412 = arith.constant 21 : index
    %c0_413 = arith.constant 0 : index
    %411 = vector.load %arg12[%c21_412, %c0_413] : memref<640x128xf32, #tpu.memory_space<vmem>>, vector<1x128xf32>
    %412 = arith.maximumf %410, %411 : vector<1x128xf32>
    %413 = arith.maximumf %409, %412 : vector<1x128xf32>
    %c1_414 = arith.constant 1 : index
    %c0_415 = arith.constant 0 : index
    %414 = vector.load %arg13[%c1_414, %c0_415] : memref<2x128xf32, #tpu.memory_space<vmem>>, vector<1x128xf32>
    tpu.vector_store %arg13[%c1_414, %c0_415], %413 {strides = array<i32>} : memref<2x128xf32, #tpu.memory_space<vmem>>, vector<1x128xf32>,
    %c0_416 = arith.constant 0 : index
    %c0_417 = arith.constant 0 : index
    %415 = vector.load %arg13[%c0_416, %c0_417] : memref<2x128xf32, #tpu.memory_space<vmem>>, vector<2x128xf32>
    %416 = arith.truncf %415 : vector<2x128xf32> to vector<2x128xbf16>
    %c0_418 = arith.constant 0 : index
    %c0_419 = arith.constant 0 : index
    %417 = vector.load %arg9[%c0_418, %c0_419] : memref<128x128xbf16, #tpu.memory_space<vmem>>, vector<128x128xbf16>
    %cst_420 = arith.constant dense<0.000000e+00> : vector<2x128xf32>
    %418 = tpu.matmul %416, %417, %cst_420 {dimension_numbers = #tpu.dot_dimension_numbers<[1], [0], [0], [1], [0, 0, 1, 1], [], []>} : vector<2x128xbf16>, vector<128x128xbf16>, vector<2x128xf32> -> vector<2x128xf32>
    %c0_421 = arith.constant 0 : index
    %c0_422 = arith.constant 0 : index
    %c0_423 = arith.constant 0 : index
    %419 = vector.load %arg10[%c0_421, %c0_422, %c0_423] : memref<1x2x128xf32, #tpu.memory_space<vmem>>, vector<1x2x128xf32>
    %420 = vector.shape_cast %419 : vector<1x2x128xf32> to vector<2x128xf32>
    %421 = vector.shape_cast %418 : vector<2x128xf32> to vector<1x2x128xf32>
    tpu.vector_store %arg10[%c0_421, %c0_422, %c0_423], %421 {strides = array<i32>} : memref<1x2x128xf32, #tpu.memory_space<vmem>>, vector<1x2x128xf32>,
    return
  }
  func.func @transform_0(%arg0: i32) -> (i32, i32, i32) {
    %c0_i32 = arith.constant 0 : i32
    %c0_i32_0 = arith.constant 0 : i32
    %c0_i32_1 = arith.constant 0 : i32
    return %arg0, %c0_i32, %c0_i32_0 : i32, i32, i32
  }
  func.func @transform_1(%arg0: i32) -> (i32, i32) {
    %c0_i32 = arith.constant 0 : i32
    %c0_i32_0 = arith.constant 0 : i32
    %c0_i32_1 = arith.constant 0 : i32
    return %c0_i32, %c0_i32_0 : i32, i32
  }
  func.func @transform_2(%arg0: i32) -> (i32, i32, i32, i32) {
    %c0_i32 = arith.constant 0 : i32
    %c0_i32_0 = arith.constant 0 : i32
    %c0_i32_1 = arith.constant 0 : i32
    %c0_i32_2 = arith.constant 0 : i32
    %c0_i32_3 = arith.constant 0 : i32
    return %c0_i32, %c0_i32_0, %c0_i32_1, %c0_i32_2 : i32, i32, i32, i32
  }
  func.func @transform_3(%arg0: i32) -> (i32, i32, i32) {
    %c0_i32 = arith.constant 0 : i32
    %c0_i32_0 = arith.constant 0 : i32
    %c0_i32_1 = arith.constant 0 : i32
    %c0_i32_2 = arith.constant 0 : i32
    return %c0_i32, %c0_i32_0, %c0_i32_1 : i32, i32, i32
  }
  func.func @transform_4(%arg0: i32) -> (i32, i32, i32) {
    %c0_i32 = arith.constant 0 : i32
    %c0_i32_0 = arith.constant 0 : i32
    %c0_i32_1 = arith.constant 0 : i32
    %c0_i32_2 = arith.constant 0 : i32
    return %c0_i32, %c0_i32_0, %c0_i32_1 : i32, i32, i32
  }
  func.func @transform_5(%arg0: i32) -> (i32, i32) {
    %c0_i32 = arith.constant 0 : i32
    %c0_i32_0 = arith.constant 0 : i32
    %c0_i32_1 = arith.constant 0 : i32
    return %c0_i32, %c0_i32_0 : i32, i32
  }
  func.func @transform_6(%arg0: i32) -> (i32, i32) {
    %c0_i32 = arith.constant 0 : i32
    %c0_i32_0 = arith.constant 0 : i32
    %c0_i32_1 = arith.constant 0 : i32
    return %c0_i32, %c0_i32_0 : i32, i32
  }
  func.func @transform_7(%arg0: i32) -> (i32, i32) {
    %c0_i32 = arith.constant 0 : i32
    %c0_i32_0 = arith.constant 0 : i32
    %c0_i32_1 = arith.constant 0 : i32
    return %c0_i32, %c0_i32_0 : i32, i32
  }
  func.func @transform_8(%arg0: i32) -> (i32, i32) {
    %c0_i32 = arith.constant 0 : i32
    %c0_i32_0 = arith.constant 0 : i32
    %c0_i32_1 = arith.constant 0 : i32
    return %c0_i32, %c0_i32_0 : i32, i32
  }
  func.func @transform_9(%arg0: i32) -> (i32, i32, i32) {
    %c0_i32 = arith.constant 0 : i32
    %c0_i32_0 = arith.constant 0 : i32
    %c0_i32_1 = arith.constant 0 : i32
    return %arg0, %c0_i32, %c0_i32_0 : i32, i32, i32
  }
}

</mosaic_0001>

<bundles_post_ra>
// kernel: tpu_custom_call.1
= control target key start
LH: loop header
LB: loop body
LE: loop exit
PB: predicated region body
PF: predicated region fallthrough
CT: control target
= control target key end

     0   :  { %14 = vsyncpa [#allocation6], 0  ;;  %s16750_s0 = inlined_call_operand.vmem [shape: bf16[1,640,64], index: 0, kind: input, shape index: {}]   ;;  %s16751_s1 = inlined_call_operand.vmem [shape: bf16[64,128], index: 1, kind: input, shape index: {}]   ;;  %s16752_s2 = inlined_call_operand.hbm [shape: bf16[3,9,128,128], index: 2, kind: input, shape index: {}]   ;;  %s16753_s3 = inlined_call_operand.vmem [shape: f32[4,1,128], index: 3, kind: input, shape index: {}]   ;;  %s16754_s4 = inlined_call_operand.vmem [shape: f32[4,1,128], index: 4, kind: input, shape index: {}]   ;;  %s16755_s5 = inlined_call_operand.vmem [shape: bf16[100,267], index: 5, kind: input, shape index: {}]   ;;  %s16756_s6 = inlined_call_operand.vmem [shape: bf16[36,67], index: 6, kind: input, shape index: {}]   ;;  %s16757_s7 = inlined_call_operand.vmem [shape: bf16[16,15], index: 7, kind: input, shape index: {}]   ;;  %s16758_s8 = inlined_call_operand.vmem [shape: bf16[128,128], index: 8, kind: input, shape index: {}]   ;;  %s16759_s9 = inlined_call_operand.hbm [shape: f32[1,2,128], index: 9, kind: output, shape index: {}]  }
   0x1   :  { %15 = vsyncpa [#allocation7], 0  ;;  %s14470_s30 = smov [#allocation5]   ;;  %s14422_s13 = scalar_lea.hbm %s16752_s2, 27648 }
   0x2   :  { %s25_s10 = sshll.u32 %s14470_s30, 4  ;;  %p14423_p0 = scmp.ne.s32.totalorder %s16752_s2, %s14422_s13  ;;  %s26_s10 = int_to_ptr.vmem [resolvable:$true] %s25_s10 }
   0x3   :  { %p14426_p1 = scmp.lt.u32.totalorder %s14422_s13, %s16752_s2 }
   0x5   :  { %p14428_p2 = pnand %p14426_p1, %p14423_p0 }
   0x7   :  { %14431 = shalt.err (!%p14428_p2)
}
   0x8   :  { %s14432_s18 = scalar_lea.vmem %s26_s10, 27648  ;;  %p14437_p4 = scmp.lt.s32.totalorder %s26_s10, %s26_s10 }
   0x9   :  { %p14433_p3 = scmp.ne.s32.totalorder %s26_s10, %s14432_s18  ;;  %p14438_p5 = scmp.lt.s32.totalorder %s14432_s18, %s14432_s18 }
   0xb   :  { %p14439_p6 = por %p14438_p5, %p14437_p4 }
   0xd   :  { %p14440_p7 = pnand %p14439_p6, %p14433_p3 }
   0xf   :  { %14443 = shalt.err (!%p14440_p7)
}
  0x10   :  { %s14471_s19 = smov 64   ;;  %s14472_s20 = smov 4  }
  0x11   :  { %31 = dma.hbm_to_vmem [thread:$0]  %s16752_s2, 27648, %s26_s10, [#allocation6], %s14471_s19, %s14471_s19, %s14472_s20  }
  0x12   :  { %14466 = dma.done.wait [#allocation6], 27648  }
  0x13   :  { %14467 = vsyncadd [#allocation6], 4294939648  ;;  %v13981_v0 = vld [vmem:[%s16751_s1] sm:$0xff]   ;;  %v13983_v2 = vld [vmem:[%s16751_s1 + $0x8] sm:$0xff]   ;;  %vm146_vm0 = vcmask 523264   ;;  %v14473_v61 = vmov 0.0  }
  0x14   :  { %v13982_v1 = vld [vmem:[%s16751_s1] sm:$0xff]   ;;  %12038 = vmatprep.subr.bf16.mxu0 %v13981_v0  ;;  %v13984_v3 = vld [vmem:[%s16751_s1 + $0x8] sm:$0xff]   ;;  %v13985_v4 = vld [vmem:[%s16751_s1 + $0x10] sm:$0xff]   ;;  %48 = vst [vmem:[#allocation2 + $0xc8] sm:$0xff] %v14473_v61  ;;  %vm1897_vm1 = vcmask 1044480   ;;  %vm1898_vm2 = vcmask 1045504  }
  0x15   :  { %12062 = vmatprep.subr.bf16.mxu1 %v13982_v1  ;;  %12039 = vmatpush3.bf16.msra.mxu0 %v13981_v0  ;;  %v13986_v5 = vld [vmem:[%s16751_s1 + $0x10] sm:$0xff]   ;;  %v13987_v6 = vld [vmem:[%s16751_s1 + $0x18] sm:$0xff]   ;;  %v13989_v8 = vld [vmem:[%s16750_s0] sm:$0xff]   ;;  %49 = vst [vmem:[#allocation2 + $0xd0] sm:$0xff] %v14473_v61  ;;  %vm1875_vm3 = vcmask 89088   ;;  %vm14475_vm4 = vmmov 0  }
  0x16   :  { %12063 = vmatpush3.bf16.msra.mxu1 %v13982_v1  ;;  %12040 = vmatprep.subr.bf16.mxu0 %v13983_v2  ;;  %v13988_v7 = vld [vmem:[%s16751_s1 + $0x18] sm:$0xff]   ;;  %v13990_v9 = vld [vmem:[%s16750_s0 + $0x40] sm:$0xff]   ;;  %v13991_v10 = vld [vmem:[%s16750_s0 + $0x8] sm:$0xff]   ;;  %50 = vst [vmem:[#allocation2 + $0xd8] sm:$0xff] %v14473_v61  ;;  %vm6503_vm5 = vcmask 1040384   ;;  %vm6504_vm6 = vcmask 1041408  }
  0x17   :  { %12064 = vmatprep.subr.bf16.mxu1 %v13984_v3  ;;  %12046 = vmatprep.mubr.msk.bf16.mxu0 %vm146_vm0, %v13989_v8  ;;  %v13992_v11 = vld [vmem:[%s16750_s0 + $0x48] sm:$0xff]   ;;  %v13993_v12 = vld [vmem:[%s16750_s0 + $0x10] sm:$0xff]   ;;  %v13995_v14 = vld [vmem:[%s16750_s0 + $0x18] sm:$0xff]   ;;  %51 = vst [vmem:[#allocation2 + $0xe0] sm:$0xff] %v14473_v61  ;;  %vm6493_vm7 = vcmask 547840   ;;  %vm8622_vm8 = vcmask 1046528  }
  0x18   :  { %12070 = vmatprep.mubr.msk.bf16.mxu1 %vm146_vm0, %v13990_v9  ;;  %v13994_v13 = vld [vmem:[%s16750_s0 + $0x50] sm:$0xff]   ;;  %v14001_v15 = vld [vmem:[%s16751_s1] sm:$0xff]   ;;  %v13996_v16 = vld [vmem:[%s16750_s0 + $0x58] sm:$0xff]   ;;  %52 = vst [vmem:[#allocation2 + $0xe8] sm:$0xff] %v14473_v61  ;;  %vm8623_vm9 = vcmask 1047552   ;;  %vm8618_vm10 = vcmask 121856  }
  0x19   :  { %12041 = vmatpush3.bf16.msra.mxu0 %v13983_v2  ;;  %v13997_v17 = vld [vmem:[%s16750_s0 + $0x20] sm:$0xff]   ;;  %v14003_v19 = vld [vmem:[%s16751_s1 + $0x8] sm:$0xff]   ;;  %v14009_v23 = vld [vmem:[%s16751_s1 + $0x10] sm:$0xff]   ;;  %53 = vst [vmem:[#allocation2 + $0xf0] sm:$0xff] %v14473_v61 }
  0x1a   :  { %12065 = vmatpush3.bf16.msra.mxu1 %v13984_v3  ;;  %12042 = vmatprep.subr.bf16.mxu0 %v13985_v4  ;;  %v14002_v18 = vld [vmem:[%s16751_s1] sm:$0xff]   ;;  %v14004_v20 = vld [vmem:[%s16751_s1 + $0x8] sm:$0xff]   ;;  %v14005_v25 = vld [vmem:[%s16750_s0 + $0x30] sm:$0xff]   ;;  %54 = vst [vmem:[#allocation2 + $0xf8] sm:$0xff] %v14473_v61 }
  0x1b   :  { %12066 = vmatprep.subr.bf16.mxu1 %v13986_v5  ;;  %v13998_v21 = vld [vmem:[%s16750_s0 + $0x60] sm:$0xff]   ;;  %v13999_v22 = vld [vmem:[%s16750_s0 + $0x28] sm:$0xff]   ;;  %v14010_v26 = vld [vmem:[%s16751_s1 + $0x10] sm:$0xff]   ;;  %55 = vst [vmem:[#allocation2 + $0x100] sm:$0xff] %v14473_v61 }
  0x1c   :  { %v14000_v24 = vld [vmem:[%s16750_s0 + $0x68] sm:$0xff]   ;;  %v14011_v27 = vld [vmem:[%s16751_s1 + $0x18] sm:$0xff]   ;;  %v14006_v29 = vld [vmem:[%s16750_s0 + $0x70] sm:$0xff]   ;;  %56 = vst [vmem:[#allocation2 + $0x108] sm:$0xff] %v14473_v61 }
  0x1d   :  { %12043 = vmatpush3.bf16.msra.mxu0 %v13985_v4  ;;  %v14012_v28 = vld [vmem:[%s16751_s1 + $0x18] sm:$0xff]   ;;  %v14013_v32 = vld [vmem:[%s16750_s0 + $0x80] sm:$0xff]   ;;  %v14015_v35 = vld [vmem:[%s16750_s0 + $0x88] sm:$0xff]   ;;  %57 = vst [vmem:[#allocation2 + $0x110] sm:$0x3f] %v14473_v61 }
  0x1e   :  { %12067 = vmatpush3.bf16.msra.mxu1 %v13986_v5  ;;  %12044 = vmatprep.subr.bf16.mxu0 %v13987_v6  ;;  %v14007_v30 = vld [vmem:[%s16750_s0 + $0x38] sm:$0xff]   ;;  %v14014_v33 = vld [vmem:[%s16750_s0 + $0xc0] sm:$0xff]   ;;  %v14016_v36 = vld [vmem:[%s16750_s0 + $0xc8] sm:$0xff]  }
  0x1f   :  { %12068 = vmatprep.subr.bf16.mxu1 %v13988_v7  ;;  %v14008_v31 = vld [vmem:[%s16750_s0 + $0x78] sm:$0xff]   ;;  %v14025_v34 = vld [vmem:[%s16751_s1] sm:$0xff]   ;;  %v14017_v37 = vld [vmem:[%s16750_s0 + $0x90] sm:$0xff]  }
  0x20   :  { %v14018_v38 = vld [vmem:[%s16750_s0 + $0xd0] sm:$0xff]   ;;  %v14026_v39 = vld [vmem:[%s16751_s1 + $0x8] sm:$0xff]   ;;  %v14019_v40 = vld [vmem:[%s16750_s0 + $0x98] sm:$0xff]  }
  0x21   :  { %12045 = vmatpush3.bf16.msra.mxu0 %v13987_v6  ;;  %v14020_v41 = vld [vmem:[%s16750_s0 + $0xd8] sm:$0xff]   ;;  %v14021_v42 = vld [vmem:[%s16750_s0 + $0xa0] sm:$0xff]   ;;  %v14031_v43 = vld [vmem:[%s16751_s1 + $0x10] sm:$0xff]  }
  0x22   :  { %12069 = vmatpush3.bf16.msra.mxu1 %v13988_v7  ;;  %12086 = vmatprep.subr.bf16.mxu0 %v14001_v15  ;;  %v14022_v44 = vld [vmem:[%s16750_s0 + $0xe0] sm:$0xff]   ;;  %v14032_v45 = vld [vmem:[%s16751_s1 + $0x18] sm:$0xff]   ;;  %v14023_v46 = vld [vmem:[%s16750_s0 + $0xa8] sm:$0xff]  }
  0x23   :  { %12110 = vmatprep.subr.bf16.mxu1 %v14002_v18  ;;  %v14024_v47 = vld [vmem:[%s16750_s0 + $0xe8] sm:$0xff]   ;;  %v14027_v48 = vld [vmem:[%s16750_s0 + $0xb0] sm:$0xff]   ;;  %v14029_v50 = vld [vmem:[%s16750_s0 + $0xb8] sm:$0xff]  }
  0x24   :  { %12047 = vmatmul.mubr.msk.bf16.vlgmr.msra.gmra.mrb[0].mxu0 %vm146_vm0, %v13991_v10  ;;  %v14028_v49 = vld [vmem:[%s16750_s0 + $0xf0] sm:$0xff]   ;;  %v14030_v51 = vld [vmem:[%s16750_s0 + $0xf8] sm:$0xff]   ;;  %v14033_v52 = vld [vmem:[%s16750_s0 + $0x100] sm:$0xff]  }
  0x25   :  { %12071 = vmatmul.mubr.msk.bf16.vlgmr.msra.gmra.mrb[0].mxu1 %vm146_vm0, %v13992_v11  ;;  %12050 = vmatprep.mubr.msk.bf16.mxu0 %vm146_vm0, %v13993_v12  ;;  %v14034_v53 = vld [vmem:[%s16750_s0 + $0x108] sm:$0xff]   ;;  %v14035_v54 = vld [vmem:[%s16750_s0 + $0x110] sm:$0xff]   ;;  %v14036_v55 = vld [vmem:[%s16750_s0 + $0x118] sm:$0xff]  }
  0x26   :  { %12074 = vmatprep.mubr.msk.bf16.mxu1 %vm146_vm0, %v13994_v13  ;;  %12087 = vmatpush3.bf16.msra.mxu0 %v14001_v15  ;;  %v14037_v56 = vld [vmem:[%s16750_s0 + $0x120] sm:$0xff]   ;;  %v14038_v57 = vld [vmem:[%s16750_s0 + $0x128] sm:$0xff]   ;;  %v14039_v58 = vld [vmem:[%s16750_s0 + $0x130] sm:$0xff]  }
  0x27   :  { %12111 = vmatpush3.bf16.msra.mxu1 %v14002_v18  ;;  %12088 = vmatprep.subr.bf16.mxu0 %v14003_v19  ;;  %v14040_v59 = vld [vmem:[%s16750_s0 + $0x138] sm:$0xff]   ;;  %v14043_v60 = vld [vmem:[%s16755_s5 + $0x4] ss:$12 sps:$4 sm:$0xff]   ;;  %v14768_v63 = vld [vmem:[%s16753_s3] ss:$0 sm:$0xff] }
  0x28   :  { %12112 = vmatprep.subr.bf16.mxu1 %v14004_v20  ;;  %v14049_v62 = vld [vmem:[%s16755_s5 + $0x4c] ss:$12 sps:$4 sm:$0xff]   ;;  %v14773_v1 = vld [vmem:[%s16754_s4] ss:$0 sm:$0xff] }
  0x2a   :  { %12089 = vmatpush3.bf16.msra.mxu0 %v14003_v19 }
  0x2b   :  { %12113 = vmatpush3.bf16.msra.mxu1 %v14004_v20  ;;  %12090 = vmatprep.subr.bf16.mxu0 %v14009_v23 }
  0x2c   :  { %12051 = vmatmul.mubr.msk.bf16.gmra.mrb[4].mxu0 %vm146_vm0, %v13995_v14  ;;  %12114 = vmatprep.subr.bf16.mxu1 %v14010_v26 }
  0x2d   :  { %12075 = vmatmul.mubr.msk.bf16.gmra.mrb[4].mxu1 %vm146_vm0, %v13996_v16  ;;  %12054 = vmatprep.mubr.msk.bf16.mxu0 %vm146_vm0, %v13997_v17 }
  0x2e   :  { %12078 = vmatprep.mubr.msk.bf16.mxu1 %vm146_vm0, %v13998_v21  ;;  %12091 = vmatpush3.bf16.msra.mxu0 %v14009_v23 }
  0x2f   :  { %12115 = vmatpush3.bf16.msra.mxu1 %v14010_v26  ;;  %12092 = vmatprep.subr.bf16.mxu0 %v14011_v27 }
  0x30   :  { %12116 = vmatprep.subr.bf16.mxu1 %v14012_v28 }
  0x32   :  { %12093 = vmatpush3.bf16.msra.mxu0 %v14011_v27 }
  0x33   :  { %12117 = vmatpush3.bf16.msra.mxu1 %v14012_v28  ;;  %12134 = vmatprep.subr.bf16.mxu0 %v14025_v34 }
  0x34   :  { %12055 = vmatmul.mubr.msk.bf16.gmra.mrb[8].mxu0 %vm146_vm0, %v13999_v22 }
  0x35   :  { %12079 = vmatmul.mubr.msk.bf16.gmra.mrb[8].mxu1 %vm146_vm0, %v14000_v24  ;;  %12058 = vmatprep.mubr.msk.bf16.mxu0 %vm146_vm0, %v14005_v25 }
  0x36   :  { %12082 = vmatprep.mubr.msk.bf16.mxu1 %vm146_vm0, %v14006_v29 }
  0x3c   :  { %12059 = vmatmul.mubr.msk.bf16.gmra.mrb[12].mxu0 %vm146_vm0, %v14007_v30 }
  0x3d   :  { %12083 = vmatmul.mubr.msk.bf16.gmra.mrb[12].mxu1 %vm146_vm0, %v14008_v31  ;;  %12094 = vmatprep.mubr.msk.bf16.mxu0 %vm146_vm0, %v14013_v32 }
  0x3e   :  { %12118 = vmatprep.mubr.msk.bf16.mxu1 %vm146_vm0, %v14014_v33 }
  0x44   :  { %12095 = vmatmul.mubr.msk.bf16.vlgmr.msra.gmra.mrb[16].mxu0 %vm146_vm0, %v14015_v35 }
  0x45   :  { %12119 = vmatmul.mubr.msk.bf16.vlgmr.msra.gmra.mrb[16].mxu1 %vm146_vm0, %v14016_v36  ;;  %12098 = vmatprep.mubr.msk.bf16.mxu0 %vm146_vm0, %v14017_v37 }
  0x46   :  { %12122 = vmatprep.mubr.msk.bf16.mxu1 %vm146_vm0, %v14018_v38  ;;  %12135 = vmatpush3.bf16.msra.mxu0 %v14025_v34 }
  0x47   :  { %12136 = vmatprep.subr.bf16.mxu0 %v14026_v39 }
  0x4a   :  { %12137 = vmatpush3.bf16.msra.mxu0 %v14026_v39 }
  0x4b   :  { %12138 = vmatprep.subr.bf16.mxu0 %v14031_v43 }
  0x4c   :  { %12099 = vmatmul.mubr.msk.bf16.gmra.mrb[20].mxu0 %vm146_vm0, %v14019_v40 }
  0x4d   :  { %12123 = vmatmul.mubr.msk.bf16.gmra.mrb[20].mxu1 %vm146_vm0, %v14020_v41  ;;  %12102 = vmatprep.mubr.msk.bf16.mxu0 %vm146_vm0, %v14021_v42 }
  0x4e   :  { %12126 = vmatprep.mubr.msk.bf16.mxu1 %vm146_vm0, %v14022_v44  ;;  %12139 = vmatpush3.bf16.msra.mxu0 %v14031_v43 }
  0x4f   :  { %12140 = vmatprep.subr.bf16.mxu0 %v14032_v45 }
  0x52   :  { %12141 = vmatpush3.bf16.msra.mxu0 %v14032_v45 }
  0x54   :  { %12103 = vmatmul.mubr.msk.bf16.gmra.mrb[24].mxu0 %vm146_vm0, %v14023_v46 }
  0x55   :  { %12127 = vmatmul.mubr.msk.bf16.gmra.mrb[24].mxu1 %vm146_vm0, %v14024_v47  ;;  %12106 = vmatprep.mubr.msk.bf16.mxu0 %vm146_vm0, %v14027_v48 }
  0x56   :  { %12130 = vmatprep.mubr.msk.bf16.mxu1 %vm146_vm0, %v14028_v49 }
  0x5c   :  { %12107 = vmatmul.mubr.msk.bf16.gmra.mrb[28].mxu0 %vm146_vm0, %v14029_v50 }
  0x5d   :  { %12131 = vmatmul.mubr.msk.bf16.gmra.mrb[28].mxu1 %vm146_vm0, %v14030_v51  ;;  %12142 = vmatprep.mubr.msk.bf16.mxu0 %vm146_vm0, %v14033_v52 }
  0x5e   :  { %1960 = vmatprep.mubr.bf16.mxu1 %v14049_v62 }
  0x64   :  { %12143 = vmatmul.mubr.msk.bf16.vlgmr.msra.gmra.mrb[32].mxu0 %vm146_vm0, %v14034_v53 }
  0x65   :  { %12146 = vmatprep.mubr.msk.bf16.mxu0 %vm146_vm0, %v14035_v54 }
  0x6c   :  { %12147 = vmatmul.mubr.msk.bf16.gmra.mrb[36].mxu0 %vm146_vm0, %v14036_v55 }
  0x6d   :  { %12150 = vmatprep.mubr.msk.bf16.mxu0 %vm146_vm0, %v14037_v56 }
  0x74   :  { %12151 = vmatmul.mubr.msk.bf16.gmra.mrb[40].mxu0 %vm146_vm0, %v14038_v57 }
  0x75   :  { %12154 = vmatprep.mubr.msk.bf16.mxu0 %vm146_vm0, %v14039_v58 }
  0x7c   :  { %12155 = vmatmul.mubr.msk.bf16.gmra.mrb[44].mxu0 %vm146_vm0, %v14040_v59 }
  0x7d   :  { %1936 = vmatprep.mubr.bf16.mxu0 %v14043_v60 }
  0xf7   :  { %v12048_v0 = vpop.f32.mrb[0].mxu0 }
  0xf8   :  { %v277_v2 = vmul.f32 %v12048_v0, %v14768_v63  ;;  %v12072_v3 = vpop.f32.mrb[0].mxu1  ;;  %v205_v4 = vpop.f32.mrb[1].mxu0 }
  0xf9   :  { %v564_v5 = vmul.f32 %v12072_v3, %v14768_v63  ;;  %v275_v6 = vmul.f32 %v14768_v63, %v205_v4  ;;  %v492_v7 = vpop.f32.mrb[1].mxu1  ;;  %v12049_v8 = vpop.f32.mrb[2].mxu0 }
  0xfa   :  { %v14779_v9 = vadd.f32 %v14773_v1, %v277_v2  ;;  %v562_v10 = vmul.f32 %v14768_v63, %v492_v7  ;;  %v278_v11 = vmul.f32 %v12049_v8, %v14768_v63  ;;  %v12073_v12 = vpop.f32.mrb[2].mxu1  ;;  %v208_v13 = vpop.f32.mrb[3].mxu0 }
  0xfb   :  { %v14784_v14 = vadd.f32 %v14773_v1, %v564_v5  ;;  %v14787_v15 = vadd.f32 %v14773_v1, %v275_v6  ;;  %v565_v16 = vmul.f32 %v12073_v12, %v14768_v63  ;;  %v276_v17 = vmul.f32 %v14768_v63, %v208_v13  ;;  %v495_v18 = vpop.f32.mrb[3].mxu1 }
  0xfc   :  { %v316_v19 = vmax.f32 %v14779_v9, 0.0  ;;  %v14793_v20 = vadd.f32 %v14773_v1, %v562_v10  ;;  %v14796_v21 = vadd.f32 %v14773_v1, %v278_v11  ;;  %v563_v22 = vmul.f32 %v14768_v63, %v495_v18 }
  0xfd   :  { %v603_v23 = vmax.f32 %v14784_v14, 0.0  ;;  %v314_v24 = vmax.f32 %v14787_v15, 0.0  ;;  %v14802_v25 = vadd.f32 %v14773_v1, %v565_v16  ;;  %v14805_v26 = vadd.f32 %v14773_v1, %v276_v17 }
  0xfe   :  { %332 = vst [vmem:[#allocation3 + $0x10] sm:$0xff] %v316_v19  ;;  %v601_v27 = vmax.f32 %v14793_v20, 0.0  ;;  %v317_v28 = vmax.f32 %v14796_v21, 0.0  ;;  %v14812_v29 = vadd.f32 %v14773_v1, %v563_v22 }
  0xff   :  { %619 = vst [vmem:[#allocation3 + $0x90] sm:$0xff] %v603_v23  ;;  %330 = vst [vmem:[#allocation3] sm:$0xff] %v314_v24  ;;  %v604_v30 = vmax.f32 %v14802_v25, 0.0  ;;  %v315_v31 = vmax.f32 %v14805_v26, 0.0  ;;  %v12052_v32 = vpop.f32.mrb[4].mxu0 }
 0x100   :  { %617 = vst [vmem:[#allocation3 + $0x80] sm:$0xff] %v601_v27  ;;  %333 = vst [vmem:[#allocation3 + $0x18] sm:$0xff] %v317_v28  ;;  %v602_v33 = vmax.f32 %v14812_v29, 0.0  ;;  %v281_v34 = vmul.f32 %v12052_v32, %v14768_v63  ;;  %v12076_v35 = vpop.f32.mrb[4].mxu1  ;;  %v221_v36 = vpop.f32.mrb[5].mxu0 }
 0x101   :  { %620 = vst [vmem:[#allocation3 + $0x98] sm:$0xff] %v604_v30  ;;  %331 = vst [vmem:[#allocation3 + $0x8] sm:$0xff] %v315_v31  ;;  %v568_v37 = vmul.f32 %v12076_v35, %v14768_v63  ;;  %v279_v38 = vmul.f32 %v14768_v63, %v221_v36  ;;  %v508_v39 = vpop.f32.mrb[5].mxu1  ;;  %v12053_v40 = vpop.f32.mrb[6].mxu0 }
 0x102   :  { %618 = vst [vmem:[#allocation3 + $0x88] sm:$0xff] %v602_v33  ;;  %v14835_v41 = vadd.f32 %v14773_v1, %v281_v34  ;;  %v566_v42 = vmul.f32 %v14768_v63, %v508_v39  ;;  %v282_v43 = vmul.f32 %v12053_v40, %v14768_v63  ;;  %v12077_v44 = vpop.f32.mrb[6].mxu1  ;;  %v224_v45 = vpop.f32.mrb[7].mxu0 }
 0x103   :  { %v14840_v46 = vadd.f32 %v14773_v1, %v568_v37  ;;  %v14843_v47 = vadd.f32 %v14773_v1, %v279_v38  ;;  %v569_v48 = vmul.f32 %v12077_v44, %v14768_v63  ;;  %v280_v49 = vmul.f32 %v14768_v63, %v224_v45  ;;  %v511_v50 = vpop.f32.mrb[7].mxu1 }
 0x104   :  { %v16777_v51 = vmax.f32 %v14835_v41, 0.0  ;;  %v14849_v52 = vadd.f32 %v14773_v1, %v566_v42  ;;  %v14852_v53 = vadd.f32 %v14773_v1, %v282_v43  ;;  %v567_v54 = vmul.f32 %v14768_v63, %v511_v50 }
 0x105   :  { %v16779_v55 = vmax.f32 %v14840_v46, 0.0  ;;  %v318_v56 = vmax.f32 %v14843_v47, 0.0  ;;  %v14858_v57 = vadd.f32 %v14773_v1, %v569_v48  ;;  %v14861_v58 = vadd.f32 %v14773_v1, %v280_v49 }
 0x106   :  { %336 = vst [vmem:[#allocation3 + $0x30] sm:$0xff] %v16777_v51  ;;  %v605_v59 = vmax.f32 %v14849_v52, 0.0  ;;  %v16771_v60 = vmax.f32 %v14852_v53, 0.0  ;;  %v14868_v61 = vadd.f32 %v14773_v1, %v567_v54 }
 0x107   :  { %623 = vst [vmem:[#allocation3 + $0xb0] sm:$0xff] %v16779_v55  ;;  %334 = vst [vmem:[#allocation3 + $0x20] sm:$0xff] %v318_v56  ;;  %v16778_v62 = vmax.f32 %v14858_v57, 0.0  ;;  %v319_v0 = vmax.f32 %v14861_v58, 0.0  ;;  %v12056_v2 = vpop.f32.mrb[8].mxu0  ;;  %v14876_v3 = vld [vmem:[#allocation3 + $0x12] sm:$0xff] }
 0x108   :  { %v14878_v4 = vld [vmem:[#allocation3 + $0x13] sm:$0xff]  ;;  %621 = vst [vmem:[#allocation3 + $0xa0] sm:$0xff] %v605_v59  ;;  %337 = vst [vmem:[#allocation3 + $0x38] sm:$0xff] %v16771_v60  ;;  %v606_v6 = vmax.f32 %v14868_v61, 0.0  ;;  %v285_v7 = vmul.f32 %v12056_v2, %v14768_v63  ;;  %v12080_v8 = vpop.f32.mrb[8].mxu1  ;;  %v237_v10 = vpop.f32.mrb[9].mxu0 }
 0x109   :  { %v1530_v5 = vld [vmem:[#allocation3 + $0x11] sm:$0xff]  ;;  %v1528_v13 = vld [vmem:[#allocation3 + $0x1] sm:$0xff]  ;;  %v1664_v16 = vmax.f32 %v14876_v3, %v14878_v4  ;;  %624 = vst [vmem:[#allocation3 + $0xb8] sm:$0xff] %v16778_v62  ;;  %335 = vst [vmem:[#allocation3 + $0x28] sm:$0xff] %v319_v0  ;;  %v572_v18 = vmul.f32 %v12080_v8, %v14768_v63  ;;  %v283_v22 = vmul.f32 %v14768_v63, %v237_v10  ;;  %v524_v32 = vpop.f32.mrb[9].mxu1  ;;  %v12057_v34 = vpop.f32.mrb[10].mxu0 }
 0x10a   :  { %v1612_v11 = vld [vmem:[#allocation3 + $0x92] sm:$0xff]  ;;  %v14890_v17 = vmax.f32 %v316_v19, %v1530_v5  ;;  %v1544_v35 = vld [vmem:[#allocation3 + $0x81] sm:$0xff]  ;;  %v1562_v37 = vmax.f32 %v314_v24, %v1528_v13  ;;  %622 = vst [vmem:[#allocation3 + $0xa8] sm:$0xff] %v606_v6  ;;  %v14903_v9 = vadd.f32 %v14773_v1, %v285_v7  ;;  %v570_v19 = vmul.f32 %v14768_v63, %v524_v32  ;;  %v12081_v39 = vpop.f32.mrb[10].mxu1  ;;  %v240_v40 = vpop.f32.mrb[11].mxu0  ;;  %v1545_v48 = vld [vmem:[#allocation3 + $0x89] sm:$0xff] }
 0x10b   :  { %v1646_v12 = vld [vmem:[#allocation3 + $0x93] sm:$0xff]  ;;  %v286_v38 = vmul.f32 %v12057_v34, %v14768_v63  ;;  %v1578_v42 = vmax.f32 %v601_v27, %v1544_v35  ;;  %v14910_v43 = vadd.f32 %v14773_v1, %v572_v18  ;;  %v14913_v15 = vadd.f32 %v14773_v1, %v283_v22  ;;  %v527_v45 = vpop.f32.mrb[11].mxu1  ;;  %v1529_v54 = vld [vmem:[#allocation3 + $0x9] sm:$0xff] }
 0x10c   :  { %v1680_v36 = vmax.f32 %v1612_v11, %v1646_v12  ;;  %v573_v24 = vmul.f32 %v12081_v39, %v14768_v63  ;;  %v284_v44 = vmul.f32 %v14768_v63, %v240_v40  ;;  %v16761_v49 = vmax.f32 %v14903_v9, 0.0  ;;  %v1546_v32 = vld [vmem:[#allocation3 + $0x91] sm:$0xff] }
 0x10d   :  { %v14919_v50 = vadd.f32 %v14773_v1, %v570_v19  ;;  %v14922_v20 = vadd.f32 %v14773_v1, %v286_v38  ;;  %v571_v27 = vmul.f32 %v14768_v63, %v527_v45  ;;  %v16763_v2 = vmax.f32 %v14910_v43, 0.0 }
 0x10e   :  { %v16766_v5 = vmax.f32 %v14913_v15, 0.0  ;;  %v14928_v7 = vadd.f32 %v14773_v1, %v573_v24  ;;  %v14931_v8 = vadd.f32 %v14773_v1, %v284_v44  ;;  %340 = vst [vmem:[#allocation3 + $0x50] sm:$0xff] %v16761_v49  ;;  %v1579_v13 = vmax.f32 %v602_v33, %v1545_v48  ;;  %v14942_v18 = vld [vmem:[#allocation3 + $0x1a] sm:$0xff] }
 0x10f   :  { %v16770_v10 = vmax.f32 %v14919_v50, 0.0  ;;  %v16760_v11 = vmax.f32 %v14922_v20, 0.0  ;;  %v14938_v12 = vadd.f32 %v14773_v1, %v571_v27  ;;  %v14944_v22 = vld [vmem:[#allocation3 + $0x1b] sm:$0xff]  ;;  %627 = vst [vmem:[#allocation3 + $0xd0] sm:$0xff] %v16763_v2  ;;  %v12060_v19 = vpop.f32.mrb[12].mxu0  ;;  %v1714_v29 = vmax.f32 %v1578_v42, %v1680_v36  ;;  %v1634_v62 = vld [vmem:[#allocation3 + $0x33] sm:$0xff] }
 0x110   :  { %338 = vst [vmem:[#allocation3 + $0x40] sm:$0xff] %v16766_v5  ;;  %v16762_v34 = vmax.f32 %v14928_v7, 0.0  ;;  %v16764_v35 = vmax.f32 %v14931_v8, 0.0  ;;  %v1613_v38 = vld [vmem:[#allocation3 + $0x9a] sm:$0xff]  ;;  %v1563_v33 = vmax.f32 %v315_v31, %v1529_v54  ;;  %v289_v24 = vmul.f32 %v12060_v19, %v14768_v63  ;;  %v12084_v44 = vpop.f32.mrb[12].mxu1  ;;  %v253_v45 = vpop.f32.mrb[13].mxu0 }
 0x111   :  { %v1647_v39 = vld [vmem:[#allocation3 + $0x9b] sm:$0xff]  ;;  %625 = vst [vmem:[#allocation3 + $0xc0] sm:$0xff] %v16770_v10  ;;  %341 = vst [vmem:[#allocation3 + $0x58] sm:$0xff] %v16760_v11  ;;  %v16767_v40 = vmax.f32 %v14938_v12, 0.0  ;;  %v1665_v27 = vmax.f32 %v14942_v18, %v14944_v22  ;;  %v576_v26 = vmul.f32 %v12084_v44, %v14768_v63  ;;  %v287_v31 = vmul.f32 %v14768_v63, %v253_v45  ;;  %v540_v36 = vpop.f32.mrb[13].mxu1  ;;  %v12061_v42 = vpop.f32.mrb[14].mxu0 }
 0x112   :  { %v1681_v48 = vmax.f32 %v1613_v38, %v1647_v39  ;;  %628 = vst [vmem:[#allocation3 + $0xd8] sm:$0xff] %v16762_v34  ;;  %339 = vst [vmem:[#allocation3 + $0x48] sm:$0xff] %v16764_v35  ;;  %v1698_v54 = vmax.f32 %v1562_v37, %v1664_v16  ;;  %v14973_v19 = vmax.f32 %v603_v23, %v1546_v32  ;;  %v12085_v39 = vpop.f32.mrb[14].mxu1  ;;  %v256_v44 = vpop.f32.mrb[15].mxu0  ;;  %v1649_v11 = vld [vmem:[#allocation3 + $0xab] sm:$0xff]  ;;  %v1531_v2 = vld [vmem:[#allocation3 + $0x19] sm:$0xff] }
 0x113   :  { %626 = vst [vmem:[#allocation3 + $0xc8] sm:$0xff] %v16767_v40  ;;  %v14978_v18 = vadd.f32 %v14773_v1, %v289_v24  ;;  %v574_v22 = vmul.f32 %v14768_v63, %v540_v36  ;;  %v290_v38 = vmul.f32 %v12061_v42, %v14768_v63  ;;  %v14983_v3 = vadd.f32 %v14773_v1, %v576_v26  ;;  %v543_v16 = vpop.f32.mrb[15].mxu1  ;;  %v1614_v26 = vld [vmem:[#allocation3 + $0xa2] sm:$0xff] }
 0x114   :  { %v1715_v45 = vmax.f32 %v1579_v13, %v1681_v48  ;;  %v14986_v14 = vadd.f32 %v14773_v1, %v287_v31  ;;  %v577_v23 = vmul.f32 %v12085_v39, %v14768_v63  ;;  %v288_v4 = vmul.f32 %v14768_v63, %v256_v44  ;;  %v1547_v48 = vld [vmem:[#allocation3 + $0x99] sm:$0xff]  ;;  %v1615_v44 = vld [vmem:[#allocation3 + $0xaa] sm:$0xff] }
 0x115   :  { %v16765_v37 = vmax.f32 %v14978_v18, 0.0  ;;  %v14992_v32 = vadd.f32 %v14773_v1, %v574_v22  ;;  %v14995_v24 = vadd.f32 %v14773_v1, %v290_v38  ;;  %v575_v13 = vmul.f32 %v14768_v63, %v543_v16  ;;  %v1648_v22 = vld [vmem:[#allocation3 + $0xa3] sm:$0xff] }
 0x116   :  { %v16768_v31 = vmax.f32 %v14983_v3, 0.0  ;;  %v16769_v36 = vmax.f32 %v14986_v14, 0.0  ;;  %v15001_v42 = vadd.f32 %v14773_v1, %v577_v23  ;;  %v15004_v39 = vadd.f32 %v14773_v1, %v288_v4  ;;  %v1598_v23 = vld [vmem:[#allocation3 + $0x22] sm:$0xff] }
 0x117   :  { %344 = vst [vmem:[#allocation3 + $0x70] sm:$0xff] %v16765_v37  ;;  %v16776_v38 = vmax.f32 %v14992_v32, 0.0  ;;  %v16772_v16 = vmax.f32 %v14995_v24, 0.0  ;;  %v15011_v49 = vadd.f32 %v14773_v1, %v575_v13  ;;  %v1766_v34 = vpack.c.bf16 %v1715_v45, %v1714_v29  ;;  %v1632_v35 = vld [vmem:[#allocation3 + $0x23] sm:$0xff]  ;;  %v12096_v40 = vpop.f32.mrb[16].mxu0  ;;  %v1635_v55 = vld [vmem:[#allocation3 + $0x3b] sm:$0xff] }
 0x118   :  { %631 = vst [vmem:[#allocation3 + $0xf0] sm:$0xff] %v16768_v31  ;;  %342 = vst [vmem:[#allocation3 + $0x60] sm:$0xff] %v16769_v36  ;;  %v16773_v4 = vmax.f32 %v15001_v42, 0.0  ;;  %v16774_v37 = vmax.f32 %v15004_v39, 0.0  ;;  %v1699_v5 = vmax.f32 %v1563_v33, %v1665_v27  ;;  %v1581_v13 = vmax.f32 %v604_v30, %v1547_v48  ;;  %v779_v10 = vpop.f32.mrb[17].mxu0  ;;  %v1599_v33 = vld [vmem:[#allocation3 + $0x2a] sm:$0xff] }
 0x119   :  { %629 = vst [vmem:[#allocation3 + $0xe0] sm:$0xff] %v16776_v38  ;;  %345 = vst [vmem:[#allocation3 + $0x78] sm:$0xff] %v16772_v16  ;;  %v16775_v29 = vmax.f32 %v15011_v49, 0.0  ;;  %11301 = vmatprep.subr.bf16.mxu0 %v1766_v34  ;;  %13446 = vmatprep.subr.bf16.mxu1 %v1766_v34  ;;  %v851_v45 = vmul.f32 %v12096_v40, %v14768_v63  ;;  %v1682_v31 = vmax.f32 %v1614_v26, %v1648_v22  ;;  %v1633_v27 = vld [vmem:[#allocation3 + $0x2b] sm:$0xff]  ;;  %v15027_v60 = vpop.f32.mrb[16].mxu1  ;;  %v12097_v48 = vpop.f32.mrb[18].mxu0 }
 0x11a   :  { %v1683_v36 = vmax.f32 %v1615_v44, %v1649_v11  ;;  %632 = vst [vmem:[#allocation3 + $0xf8] sm:$0xff] %v16773_v4  ;;  %343 = vst [vmem:[#allocation3 + $0x68] sm:$0xff] %v16774_v37  ;;  %v1758_v25 = vpack.c.bf16 %v1699_v5, %v1698_v54  ;;  %v849_v30 = vmul.f32 %v14768_v63, %v779_v10  ;;  %v15036_v11 = vpop.f32.mrb[17].mxu1  ;;  %v782_v5 = vpop.f32.mrb[19].mxu0  ;;  %v1548_v54 = vld [vmem:[#allocation3 + $0xa1] sm:$0xff]  ;;  %v1549_v10 = vld [vmem:[#allocation3 + $0xa9] sm:$0xff] }
 0x11b   :  { %v1565_v34 = vmax.f32 %v317_v28, %v1531_v2  ;;  %v1666_v40 = vmax.f32 %v1598_v23, %v1632_v35  ;;  %630 = vst [vmem:[#allocation3 + $0xe8] sm:$0xff] %v16775_v29  ;;  %v874_v26 = vadd.f32 %v14773_v1, %v851_v45  ;;  %v1716_v44 = vmax.f32 %v14973_v19, %v1682_v31  ;;  %v1616_v4 = vld [vmem:[#allocation3 + $0xb2] sm:$0xff]  ;;  %v15043_v37 = vpop.f32.mrb[18].mxu1  ;;  %v1617_v35 = vld [vmem:[#allocation3 + $0xba] sm:$0xff]  ;;  %v1533_v38 = vld [vmem:[#allocation3 + $0x29] sm:$0xff] }
 0x11c   :  { %v1717_v22 = vmax.f32 %v1581_v13, %v1683_v36  ;;  %v852_v16 = vmul.f32 %v12097_v48, %v14768_v63  ;;  %11302 = vmatpush3.bf16.msra.mxu0 %v1758_v25  ;;  %13454 = vmatpush3.bf16.msra.mxu1 %v1758_v25  ;;  %v15046_v21 = vadd.f32 %v14773_v1, %v849_v30  ;;  %v1650_v23 = vld [vmem:[#allocation3 + $0xb3] sm:$0xff]  ;;  %v1651_v19 = vld [vmem:[#allocation3 + $0xbb] sm:$0xff]  ;;  %v15049_v31 = vpop.f32.mrb[19].mxu1  ;;  %v16821_v58 = vmax.f32 %v14840_v46, 0.0 }
 0x11d   :  { %v850_v28 = vmul.f32 %v14768_v63, %v782_v5  ;;  %v1667_v2 = vmax.f32 %v1599_v33, %v1633_v27  ;;  %v890_v36 = vmax.f32 %v874_v26, 0.0  ;;  %v1700_v48 = vmax.f32 %v14890_v17, %v1666_v40  ;;  %v1532_v29 = vld [vmem:[#allocation3 + $0x21] sm:$0xff]  ;;  %v1600_v25 = vld [vmem:[#allocation3 + $0x32] sm:$0xff] }
 0x11e   :  { %v1767_v13 = vpack.c.bf16 %v1717_v22, %v1716_v44  ;;  %v875_v45 = vadd.f32 %v14773_v1, %v852_v16  ;;  %v888_v30 = vmax.f32 %v15046_v21, 0.0  ;;  %v1582_v33 = vmax.f32 %v605_v59, %v1548_v54  ;;  %v1601_v27 = vld [vmem:[#allocation3 + $0x3a] sm:$0xff]  ;;  %v1550_v44 = vld [vmem:[#allocation3 + $0xb1] sm:$0xff] }
 0x11f   :  { %v873_v51 = vadd.f32 %v14773_v1, %v850_v28  ;;  %v1701_v5 = vmax.f32 %v1565_v34, %v1667_v2  ;;  %906 = vst [vmem:[#allocation3 + $0x110] sm:$0xff] %v890_v36  ;;  %v1583_v17 = vmax.f32 %v606_v6, %v1549_v10  ;;  %v1684_v40 = vmax.f32 %v1616_v4, %v1650_v23  ;;  %v12100_v54 = vpop.f32.mrb[20].mxu0  ;;  %v1551_v28 = vld [vmem:[#allocation3 + $0xb9] sm:$0xff]  ;;  %v1618_v2 = vld [vmem:[#allocation3 + $0xc2] sm:$0xff] }
 0x120   :  { %11303 = vmatprep.subr.bf16.mxu0 %v1767_v13  ;;  %13447 = vmatprep.subr.bf16.mxu1 %v1767_v13  ;;  %v891_v16 = vmax.f32 %v875_v45, 0.0  ;;  %v1685_v26 = vmax.f32 %v1617_v35, %v1651_v19  ;;  %904 = vst [vmem:[#allocation3 + $0x100] sm:$0xff] %v888_v30  ;;  %v1566_v52 = vmax.f32 %v318_v56, %v1532_v29  ;;  %v1619_v35 = vld [vmem:[#allocation3 + $0xca] sm:$0xff]  ;;  %v795_v36 = vpop.f32.mrb[21].mxu0  ;;  %v16822_v45 = vmax.f32 %v14858_v57, 0.0 }
 0x121   :  { %v889_v34 = vmax.f32 %v873_v51, 0.0  ;;  %v1759_v22 = vpack.c.bf16 %v1701_v5, %v1700_v48  ;;  %v1567_v59 = vmax.f32 %v319_v0, %v1533_v38  ;;  %v1718_v61 = vmax.f32 %v1582_v33, %v1684_v40  ;;  %v1652_v23 = vld [vmem:[#allocation3 + $0xc3] sm:$0xff]  ;;  %v1653_v19 = vld [vmem:[#allocation3 + $0xcb] sm:$0xff]  ;;  %v15065_v51 = vpop.f32.mrb[20].mxu1  ;;  %v12101_v38 = vpop.f32.mrb[22].mxu0 }
 0x122   :  { %907 = vst [vmem:[#allocation3 + $0x118] sm:$0xff] %v891_v16  ;;  %v1719_v6 = vmax.f32 %v1583_v17, %v1685_v26  ;;  %v1668_v4 = vmax.f32 %v1600_v25, %v1634_v62  ;;  %v1669_v10 = vmax.f32 %v1601_v27, %v1635_v55  ;;  %v855_v47 = vmul.f32 %v12100_v54, %v14768_v63  ;;  %v1082_v62 = vpop.f32.mrb[21].mxu1  ;;  %v15076_v5 = vpop.f32.mrb[23].mxu0  ;;  %v1534_v26 = vld [vmem:[#allocation3 + $0x31] sm:$0xff] }
 0x123   :  { %905 = vst [vmem:[#allocation3 + $0x108] sm:$0xff] %v889_v34  ;;  %11304 = vmatpush3.bf16.msra.mxu0 %v1759_v22  ;;  %13455 = vmatpush3.bf16.msra.mxu1 %v1759_v22  ;;  %v1138_v56 = vmul.f32 %v15027_v60, %v14768_v63  ;;  %v1584_v0 = vmax.f32 %v16821_v58, %v1550_v44  ;;  %v15074_v25 = vpop.f32.mrb[22].mxu1  ;;  %v15367_v21 = vld [vmem:[%s16755_s5] ss:$12 sps:$4 sm:$0xff]  }
 0x124   :  { %v1768_v55 = vpack.c.bf16 %v1719_v6, %v1718_v61  ;;  %v1702_v29 = vmax.f32 %v1566_v52, %v1668_v4  ;;  %v1703_v13 = vmax.f32 %v1567_v59, %v1669_v10  ;;  %v1585_v48 = vmax.f32 %v16822_v45, %v1551_v28  ;;  %v15082_v16 = vpop.f32.mrb[23].mxu1  ;;  %v1535_v59 = vld [vmem:[#allocation3 + $0x39] sm:$0xff]  ;;  %v1602_v61 = vld [vmem:[#allocation3 + $0x42] sm:$0xff] }
 0x125   :  { %v15079_v33 = vadd.f32 %v14773_v1, %v855_v47  ;;  %v1161_v60 = vadd.f32 %v14773_v1, %v1138_v56  ;;  %v1686_v27 = vmax.f32 %v1618_v2, %v1652_v23  ;;  %v1687_v46 = vmax.f32 %v1619_v35, %v1653_v19  ;;  %v1636_v6 = vld [vmem:[#allocation3 + $0x43] sm:$0xff] }
 0x126   :  { %11305 = vmatprep.subr.bf16.mxu0 %v1768_v55  ;;  %13448 = vmatprep.subr.bf16.mxu1 %v1768_v55  ;;  %v1760_v17 = vpack.c.bf16 %v1703_v13, %v1702_v29  ;;  %v853_v40 = vmul.f32 %v14768_v63, %v795_v36  ;;  %v1136_v57 = vmul.f32 %v14768_v63, %v15036_v11  ;;  %v16823_v35 = vmax.f32 %v14835_v41, 0.0  ;;  %v1603_v19 = vld [vmem:[#allocation3 + $0x4a] sm:$0xff]  ;;  %v1552_v45 = vld [vmem:[#allocation3 + $0xc1] sm:$0xff] }
 0x127   :  { %v16786_v44 = vmax.f32 %v15079_v33, 0.0  ;;  %v1177_v34 = vmax.f32 %v1161_v60, 0.0  ;;  %v1720_v22 = vmax.f32 %v1584_v0, %v1686_v27  ;;  %v1721_v52 = vmax.f32 %v1585_v48, %v1687_v46  ;;  %v1637_v36 = vld [vmem:[#allocation3 + $0x4b] sm:$0xff]  ;;  %v15099_v47 = vpop.f32.mrb[24].mxu0 }
 0x128   :  { %11306 = vmatpush3.bf16.msra.mxu0 %v1760_v17  ;;  %13456 = vmatpush3.bf16.msra.mxu1 %v1760_v17  ;;  %v876_v54 = vadd.f32 %v14773_v1, %v853_v40  ;;  %v1159_v28 = vadd.f32 %v14773_v1, %v1136_v57  ;;  %v856_v2 = vmul.f32 %v12101_v38, %v14768_v63  ;;  %v16824_v38 = vmax.f32 %v14852_v53, 0.0  ;;  %v15106_v29 = vpop.f32.mrb[24].mxu1  ;;  %v1553_v48 = vld [vmem:[#allocation3 + $0xc9] sm:$0xff]  ;;  %v1620_v60 = vld [vmem:[#allocation3 + $0xd2] sm:$0xff] }
 0x129   :  { %910 = vst [vmem:[#allocation3 + $0x130] sm:$0xff] %v16786_v44  ;;  %1193 = vst [vmem:[#allocation3 + $0x190] sm:$0xff] %v1177_v34  ;;  %v1769_v11 = vpack.c.bf16 %v1721_v52, %v1720_v22  ;;  %v1139_v4 = vmul.f32 %v15043_v37, %v14768_v63  ;;  %v1137_v10 = vmul.f32 %v14768_v63, %v15049_v31  ;;  %v15108_v37 = vpop.f32.mrb[25].mxu0  ;;  %v15112_v27 = vpop.f32.mrb[25].mxu1  ;;  %v1654_v34 = vld [vmem:[#allocation3 + $0xd3] sm:$0xff]  ;;  %v1655_v22 = vld [vmem:[#allocation3 + $0xdb] sm:$0xff] }
 0x12a   :  { %v1568_v23 = vmax.f32 %v16823_v35, %v1534_v26  ;;  %v892_v56 = vmax.f32 %v876_v54, 0.0  ;;  %v1175_v58 = vmax.f32 %v1159_v28, 0.0  ;;  %v15102_v0 = vadd.f32 %v14773_v1, %v856_v2  ;;  %v15114_v46 = vpop.f32.mrb[26].mxu0  ;;  %v1621_v26 = vld [vmem:[#allocation3 + $0xda] sm:$0xff] }
 0x12b   :  { %v1569_v55 = vmax.f32 %v16824_v38, %v1535_v59  ;;  %11307 = vmatprep.subr.bf16.mxu0 %v1769_v11  ;;  %13449 = vmatprep.subr.bf16.mxu1 %v1769_v11  ;;  %v1162_v41 = vadd.f32 %v14773_v1, %v1139_v4  ;;  %v1160_v31 = vadd.f32 %v14773_v1, %v1137_v10  ;;  %v15120_v52 = vpop.f32.mrb[27].mxu0  ;;  %v15122_v59 = vpop.f32.mrb[26].mxu1  ;;  %v16825_v4 = vmax.f32 %v14919_v50, 0.0  ;;  %v1536_v35 = vld [vmem:[#allocation3 + $0x41] sm:$0xff]  ;;  %v1604_v38 = vld [vmem:[#allocation3 + $0x52] sm:$0xff] }
 0x12c   :  { %v1670_v13 = vmax.f32 %v1602_v61, %v1636_v6  ;;  %908 = vst [vmem:[#allocation3 + $0x120] sm:$0xff] %v892_v56  ;;  %1191 = vst [vmem:[#allocation3 + $0x180] sm:$0xff] %v1175_v58  ;;  %v16785_v53 = vmax.f32 %v15102_v0, 0.0  ;;  %v1671_v17 = vmax.f32 %v1603_v19, %v1637_v36  ;;  %v1142_v40 = vmul.f32 %v15065_v51, %v14768_v63  ;;  %v15126_v6 = vpop.f32.mrb[27].mxu1  ;;  %v1537_v58 = vld [vmem:[#allocation3 + $0x49] sm:$0xff] }
 0x12d   :  { %v1140_v57 = vmul.f32 %v14768_v63, %v1082_v62  ;;  %v1178_v54 = vmax.f32 %v1162_v41, 0.0  ;;  %v1176_v28 = vmax.f32 %v1160_v31, 0.0  ;;  %v1143_v61 = vmul.f32 %v15074_v25, %v14768_v63 }
 0x12e   :  { %v1704_v2 = vmax.f32 %v1568_v23, %v1670_v13  ;;  %911 = vst [vmem:[#allocation3 + $0x138] sm:$0xff] %v16785_v53  ;;  %v1705_v51 = vmax.f32 %v1569_v55, %v1671_v17  ;;  %v15131_v62 = vadd.f32 %v14773_v1, %v1142_v40  ;;  %v1586_v10 = vmax.f32 %v16825_v4, %v1552_v45  ;;  %v1638_v55 = vld [vmem:[#allocation3 + $0x53] sm:$0xff]  ;;  %v1639_v17 = vld [vmem:[#allocation3 + $0x5b] sm:$0xff] }
 0x12f   :  { %v1163_v11 = vadd.f32 %v14773_v1, %v1140_v57  ;;  %1194 = vst [vmem:[#allocation3 + $0x198] sm:$0xff] %v1178_v54  ;;  %1192 = vst [vmem:[#allocation3 + $0x188] sm:$0xff] %v1176_v28  ;;  %v15137_v23 = vadd.f32 %v14773_v1, %v1143_v61  ;;  %v16826_v25 = vmax.f32 %v14938_v12, 0.0  ;;  %v1688_v36 = vmax.f32 %v1620_v60, %v1654_v34  ;;  %v1605_v45 = vld [vmem:[#allocation3 + $0x5a] sm:$0xff]  ;;  %v1554_v40 = vld [vmem:[#allocation3 + $0xd1] sm:$0xff]  ;;  %v15147_v34 = vpop.f32.mrb[28].mxu0 }
 0x130   :  { %v1689_v56 = vmax.f32 %v1621_v26, %v1655_v22  ;;  %v1761_v41 = vpack.c.bf16 %v1705_v51, %v1704_v2  ;;  %v1181_v31 = vmax.f32 %v15131_v62, 0.0  ;;  %v854_v50 = vmul.f32 %v14768_v63, %v15076_v5  ;;  %v1555_v60 = vld [vmem:[#allocation3 + $0xd9] sm:$0xff]  ;;  %v1622_v26 = vld [vmem:[#allocation3 + $0xe2] sm:$0xff]  ;;  %v15156_v51 = vpop.f32.mrb[28].mxu1  ;;  %v1558_v53 = vld [vmem:[#allocation3 + $0xf1] sm:$0xff] }
 0x131   :  { %v1587_v19 = vmax.f32 %v16826_v25, %v1553_v48  ;;  %v1179_v13 = vmax.f32 %v1163_v11, 0.0  ;;  %v16787_v57 = vmax.f32 %v15137_v23, 0.0  ;;  %v1722_v54 = vmax.f32 %v1586_v10, %v1688_v36  ;;  %v1656_v36 = vld [vmem:[#allocation3 + $0xe3] sm:$0xff] }
 0x132   :  { %v1141_v48 = vmul.f32 %v14768_v63, %v15082_v16  ;;  %11308 = vmatpush3.bf16.msra.mxu0 %v1761_v41  ;;  %13457 = vmatpush3.bf16.msra.mxu1 %v1761_v41  ;;  %1197 = vst [vmem:[#allocation3 + $0x1b0] sm:$0xff] %v1181_v31  ;;  %v877_v5 = vadd.f32 %v14773_v1, %v854_v50  ;;  %v16827_v22 = vmax.f32 %v14913_v15, 0.0  ;;  %v16828_v2 = vmax.f32 %v14931_v8, 0.0  ;;  %v15158_v16 = vpop.f32.mrb[29].mxu0  ;;  %v15163_v15 = vpop.f32.mrb[29].mxu1 }
 0x133   :  { %v1723_v12 = vmax.f32 %v1587_v19, %v1689_v56  ;;  %1195 = vst [vmem:[#allocation3 + $0x1a0] sm:$0xff] %v1179_v13  ;;  %1198 = vst [vmem:[#allocation3 + $0x1b8] sm:$0xff] %v16787_v57  ;;  %v1672_v10 = vmax.f32 %v1604_v38, %v1638_v55  ;;  %v1673_v25 = vmax.f32 %v1605_v45, %v1639_v17  ;;  %v1623_v19 = vld [vmem:[#allocation3 + $0xea] sm:$0xff]  ;;  %v16829_v13 = vmax.f32 %v14910_v43, 0.0  ;;  %v15175_v38 = vpop.f32.mrb[30].mxu1 }
 0x134   :  { %v1570_v28 = vmax.f32 %v16827_v22, %v1536_v35  ;;  %v1571_v61 = vmax.f32 %v16828_v2, %v1537_v58  ;;  %v1164_v4 = vadd.f32 %v14773_v1, %v1141_v48  ;;  %v1657_v56 = vld [vmem:[#allocation3 + $0xeb] sm:$0xff]  ;;  %v15165_v35 = vpop.f32.mrb[30].mxu0  ;;  %v893_v8 = vmax.f32 %v877_v5, 0.0  ;;  %v15179_v5 = vpop.f32.mrb[31].mxu1 }
 0x135   :  { %v1770_v11 = vpack.c.bf16 %v1723_v12, %v1722_v54  ;;  %v859_v58 = vmul.f32 %v15099_v47, %v14768_v63  ;;  %v1146_v41 = vmul.f32 %v15106_v29, %v14768_v63  ;;  %v1588_v50 = vmax.f32 %v16829_v13, %v1554_v40  ;;  %v15173_v54 = vpop.f32.mrb[31].mxu0  ;;  %v1538_v2 = vld [vmem:[#allocation3 + $0x51] sm:$0xff] }
 0x136   :  { %v1180_v55 = vmax.f32 %v1164_v4, 0.0  ;;  %v1706_v45 = vmax.f32 %v1570_v28, %v1672_v10  ;;  %v1707_v17 = vmax.f32 %v1571_v61, %v1673_v25  ;;  %v16830_v12 = vmax.f32 %v14928_v7, 0.0  ;;  %909 = vst [vmem:[#allocation3 + $0x128] sm:$0xff] %v893_v8  ;;  %v1539_v61 = vld [vmem:[#allocation3 + $0x59] sm:$0xff]  ;;  %v1606_v25 = vld [vmem:[#allocation3 + $0x62] sm:$0xff]  ;;  %v1661_v57 = vld [vmem:[#allocation3 + $0x10b] sm:$0xff] }
 0x137   :  { %11309 = vmatprep.subr.bf16.mxu0 %v1770_v11  ;;  %13450 = vmatprep.subr.bf16.mxu1 %v1770_v11  ;;  %v15182_v47 = vadd.f32 %v14773_v1, %v859_v58  ;;  %v15185_v43 = vadd.f32 %v14773_v1, %v1146_v41  ;;  %v1690_v29 = vmax.f32 %v1622_v26, %v1656_v36  ;;  %v1607_v36 = vld [vmem:[#allocation3 + $0x6a] sm:$0xff]  ;;  %v1556_v8 = vld [vmem:[#allocation3 + $0xe1] sm:$0xff]  ;;  %v15204_v58 = vpop.f32.mrb[32].mxu0 }
 0x138   :  { %v1589_v48 = vmax.f32 %v16830_v12, %v1555_v60  ;;  %v1691_v40 = vmax.f32 %v1623_v19, %v1657_v56  ;;  %1196 = vst [vmem:[#allocation3 + $0x1a8] sm:$0xff] %v1180_v55  ;;  %v1762_v22 = vpack.c.bf16 %v1707_v17, %v1706_v45  ;;  %v857_v28 = vmul.f32 %v14768_v63, %v15108_v37  ;;  %v1640_v19 = vld [vmem:[#allocation3 + $0x63] sm:$0xff]  ;;  %v1641_v56 = vld [vmem:[#allocation3 + $0x6b] sm:$0xff] }
 0x139   :  { %v1144_v7 = vmul.f32 %v14768_v63, %v15112_v27  ;;  %v860_v60 = vmul.f32 %v15114_v46, %v14768_v63  ;;  %v16780_v11 = vmax.f32 %v15182_v47, 0.0  ;;  %v16781_v4 = vmax.f32 %v15185_v43, 0.0  ;;  %v1557_v12 = vld [vmem:[#allocation3 + $0xe9] sm:$0xff] }
 0x13a   :  { %v1724_v10 = vmax.f32 %v1588_v50, %v1690_v29  ;;  %v1725_v26 = vmax.f32 %v1589_v48, %v1691_v40  ;;  %11310 = vmatpush3.bf16.msra.mxu0 %v1762_v22  ;;  %13458 = vmatpush3.bf16.msra.mxu1 %v1762_v22  ;;  %v15196_v37 = vadd.f32 %v14773_v1, %v857_v28  ;;  %v16831_v50 = vmax.f32 %v14903_v9, 0.0  ;;  %v1624_v48 = vld [vmem:[#allocation3 + $0xf2] sm:$0xff]  ;;  %v15216_v40 = vpop.f32.mrb[33].mxu0 }
 0x13b   :  { %v15199_v27 = vadd.f32 %v14773_v1, %v1144_v7  ;;  %v15202_v46 = vadd.f32 %v14773_v1, %v860_v60  ;;  %914 = vst [vmem:[#allocation3 + $0x150] sm:$0xff] %v16780_v11  ;;  %1201 = vst [vmem:[#allocation3 + $0x1d0] sm:$0xff] %v16781_v4  ;;  %v858_v13 = vmul.f32 %v14768_v63, %v15120_v52  ;;  %v16832_v45 = vmax.f32 %v14922_v20, 0.0  ;;  %v1658_v29 = vld [vmem:[#allocation3 + $0xf3] sm:$0xff]  ;;  %v1541_v52 = vld [vmem:[#allocation3 + $0x69] sm:$0xff] }
 0x13c   :  { %v1771_v41 = vpack.c.bf16 %v1725_v26, %v1724_v10  ;;  %v1572_v55 = vmax.f32 %v16831_v50, %v1538_v2  ;;  %v16783_v22 = vmax.f32 %v15196_v37, 0.0  ;;  %v1674_v60 = vmax.f32 %v1606_v25, %v1640_v19  ;;  %v1540_v10 = vld [vmem:[#allocation3 + $0x61] sm:$0xff]  ;;  %v15221_v26 = vpop.f32.mrb[34].mxu0  ;;  %v1642_v11 = vld [vmem:[#allocation3 + $0x73] sm:$0xff] }
 0x13d   :  { %v1573_v17 = vmax.f32 %v16832_v45, %v1539_v61  ;;  %v16784_v28 = vmax.f32 %v15199_v27, 0.0  ;;  %v16782_v7 = vmax.f32 %v15202_v46, 0.0  ;;  %v15224_v9 = vadd.f32 %v14773_v1, %v858_v13  ;;  %v1625_v61 = vld [vmem:[#allocation3 + $0xfa] sm:$0xff]  ;;  %v15228_v45 = vpop.f32.mrb[35].mxu0  ;;  %v15239_v19 = vld [vmem:[%s16753_s3] ss:$0 sm:$0xff] }
 0x13e   :  { %11311 = vmatprep.subr.bf16.mxu0 %v1771_v41  ;;  %13451 = vmatprep.subr.bf16.mxu1 %v1771_v41  ;;  %v1675_v20 = vmax.f32 %v1607_v36, %v1641_v56  ;;  %v1147_v2 = vmul.f32 %v15122_v59, %v14768_v63  ;;  %v1659_v50 = vld [vmem:[#allocation3 + $0xfb] sm:$0xff]  ;;  %912 = vst [vmem:[#allocation3 + $0x140] sm:$0xff] %v16783_v22  ;;  %v16833_v59 = vmax.f32 %v14992_v32, 0.0  ;;  %v16834_v56 = vmax.f32 %v15011_v49, 0.0  ;;  %v1608_v13 = vld [vmem:[#allocation3 + $0x72] sm:$0xff] }
 0x13f   :  { %1199 = vst [vmem:[#allocation3 + $0x1c0] sm:$0xff] %v16784_v28  ;;  %915 = vst [vmem:[#allocation3 + $0x158] sm:$0xff] %v16782_v7  ;;  %v1708_v25 = vmax.f32 %v1572_v55, %v1674_v60  ;;  %v1145_v63 = vmul.f32 %v15239_v19, %v15126_v6  ;;  %v16803_v4 = vmax.f32 %v15224_v9, 0.0  ;;  %v1692_v60 = vmax.f32 %v1624_v48, %v1658_v29  ;;  %v1609_v22 = vld [vmem:[#allocation3 + $0x7a] sm:$0xff]  ;;  %v15254_v32 = vld [vmem:[%s16754_s4] ss:$0 sm:$0xff] }
 0x140   :  { %v1590_v36 = vmax.f32 %v16833_v59, %v1556_v8  ;;  %v1591_v41 = vmax.f32 %v16834_v56, %v1557_v12  ;;  %v1709_v7 = vmax.f32 %v1573_v17, %v1675_v20  ;;  %v15249_v55 = vadd.f32 %v14773_v1, %v1147_v2  ;;  %v1643_v28 = vld [vmem:[#allocation3 + $0x7b] sm:$0xff]  ;;  %v1627_v29 = vld [vmem:[#allocation3 + $0x10a] sm:$0xff] }
 0x141   :  { %v15257_v49 = vadd.f32 %v15254_v32, %v1145_v63  ;;  %v1693_v6 = vmax.f32 %v1625_v61, %v1659_v50  ;;  %v16835_v8 = vmax.f32 %v14986_v14, 0.0  ;;  %v16836_v17 = vmax.f32 %v15004_v39, 0.0  ;;  %v1559_v20 = vld [vmem:[#allocation3 + $0xf9] sm:$0xff]  ;;  %v1626_v48 = vld [vmem:[#allocation3 + $0x102] sm:$0xff]  ;;  %913 = vst [vmem:[#allocation3 + $0x148] sm:$0xff] %v16803_v4 }
 0x142   :  { %v1763_v2 = vpack.c.bf16 %v1709_v7, %v1708_v25  ;;  %v16802_v59 = vmax.f32 %v15249_v55, 0.0  ;;  %v1726_v56 = vmax.f32 %v1590_v36, %v1692_v60  ;;  %v1676_v44 = vmax.f32 %v1608_v13, %v1642_v11  ;;  %v1660_v63 = vld [vmem:[#allocation3 + $0x103] sm:$0xff] }
 0x143   :  { %v1574_v12 = vmax.f32 %v16835_v8, %v1540_v10  ;;  %v1575_v1 = vmax.f32 %v16836_v17, %v1541_v52  ;;  %v1184_v61 = vmax.f32 %v15257_v49, 0.0  ;;  %v1727_v14 = vmax.f32 %v1591_v41, %v1693_v6  ;;  %v15269_v52 = vpop.f32.mrb[36].mxu0 }
 0x144   :  { %v1677_v10 = vmax.f32 %v1609_v22, %v1643_v28  ;;  %v863_v39 = vmul.f32 %v15239_v19, %v15147_v34  ;;  %11312 = vmatpush3.bf16.msra.mxu0 %v1763_v2  ;;  %13459 = vmatpush3.bf16.msra.mxu1 %v1763_v2  ;;  %1202 = vst [vmem:[#allocation3 + $0x1d8] sm:$0xff] %v16802_v59  ;;  %v16837_v50 = vmax.f32 %v14983_v3, 0.0  ;;  %v16788_v36 = vmov 65535   ;;  %v15279_v28 = vpop.f32.mrb[37].mxu0  ;;  %v1542_v2 = vld [vmem:[#allocation3 + $0x71] sm:$0xff] }
 0x145   :  { %v1710_v7 = vmax.f32 %v1574_v12, %v1676_v44  ;;  %v1150_v11 = vmul.f32 %v15239_v19, %v15156_v51  ;;  %v1899_v22 = vsel %vm1897_vm1, 4294967295, %v16788_v36  ;;  %1200 = vst [vmem:[#allocation3 + $0x1c8] sm:$0xff] %v1184_v61  ;;  %v1772_v34 = vpack.c.bf16 %v1727_v14, %v1726_v56  ;;  %v15288_v60 = vpop.f32.mrb[38].mxu0  ;;  %v1543_v56 = vld [vmem:[#allocation3 + $0x79] sm:$0xff]  ;;  %v1644_v14 = vld [vmem:[#allocation3 + $0x83] sm:$0xff] }
 0x146   :  { %v1592_v25 = vmax.f32 %v16837_v50, %v1558_v53  ;;  %v1711_v41 = vmax.f32 %v1575_v1, %v1677_v10  ;;  %v15284_v13 = vadd.f32 %v15254_v32, %v863_v39  ;;  %v16838_v44 = vmax.f32 %v15001_v42, 0.0  ;;  %v15295_v12 = vpop.f32.mrb[39].mxu0  ;;  %v1611_v39 = vld [vmem:[#allocation3 + $0x8a] sm:$0xff] }
 0x147   :  { %v15291_v3 = vadd.f32 %v15254_v32, %v1150_v11  ;;  %v1694_v53 = vmax.f32 %v1626_v48, %v1660_v63  ;;  %v1695_v6 = vmax.f32 %v1627_v29, %v1661_v57  ;;  %v861_v8 = vmul.f32 %v15239_v19, %v15158_v16  ;;  %11313 = vmatprep.subr.bf16.mxu0 %v1772_v34  ;;  %v1610_v63 = vld [vmem:[#allocation3 + $0x82] sm:$0xff] }
 0x148   :  { %v1593_v51 = vmax.f32 %v16838_v44, %v1559_v20  ;;  %13452 = vmatprep.subr.bf16.mxu1 %v1772_v34  ;;  %v1764_v17 = vpack.c.bf16 %v1711_v41, %v1710_v7  ;;  %v16791_v1 = vmax.f32 %v15284_v13, 0.0  ;;  %v1148_v42 = vmul.f32 %v15239_v19, %v15163_v15  ;;  %v1645_v7 = vld [vmem:[#allocation3 + $0x8b] sm:$0xff] }
 0x149   :  { %v864_v20 = vmul.f32 %v15239_v19, %v15165_v35  ;;  %v16792_v57 = vmax.f32 %v15291_v3, 0.0  ;;  %v1728_v48 = vmax.f32 %v1592_v25, %v1694_v53  ;;  %v15304_v16 = vadd.f32 %v15254_v32, %v861_v8  ;;  %v1527_v53 = vld [vmem:[#allocation3 + $0x108] sm:$0x7] }
 0x14a   :  { %v1729_v29 = vmax.f32 %v1593_v51, %v1695_v6  ;;  %11314 = vmatpush3.bf16.msra.mxu0 %v1764_v17  ;;  %13460 = vmatpush3.bf16.msra.mxu1 %v1764_v17  ;;  %918 = vst [vmem:[#allocation3 + $0x170] sm:$0xff] %v16791_v1  ;;  %v15309_v15 = vadd.f32 %v15254_v32, %v1148_v42  ;;  %v15317_v11 = vsel %vm1898_vm2, %v1899_v22, 0  ;;  %v16839_v34 = vmax.f32 %v14978_v18, 0.0  ;;  %v1560_v6 = vld [vmem:[#allocation3 + $0x101] sm:$0xff]  ;;  %v15390_v1 = vld [vmem:[%s16755_s5 + $0x64] ss:$12 sps:$4 sm:$0xff]  }
 0x14b   :  { %v15312_v35 = vadd.f32 %v15254_v32, %v864_v20  ;;  %v862_v10 = vmul.f32 %v15239_v19, %v15173_v54  ;;  %1205 = vst [vmem:[#allocation3 + $0x1f0] sm:$0xff] %v16792_v57  ;;  %v16795_v25 = vmax.f32 %v15304_v16, 0.0  ;;  %v16840_v44 = vmax.f32 %v14995_v24, 0.0  ;;  %v1561_v54 = vld [vmem:[#allocation3 + $0x109] sm:$0x7]  ;;  %v1628_v20 = vld [vmem:[#allocation3 + $0x112] sm:$0xff] }
 0x14c   :  { %v1773_v50 = vpack.c.bf16 %v1729_v29, %v1728_v48  ;;  %v1576_v41 = vmax.f32 %v16839_v34, %v1542_v2  ;;  %v16801_v8 = vmax.f32 %v15309_v15, 0.0  ;;  %v1678_v42 = vmax.f32 %v1610_v63, %v1644_v14  ;;  %v1662_v48 = vld [vmem:[#allocation3 + $0x113] sm:$0xff]  ;;  %v1663_v29 = vld [vmem:[#allocation3 + $0x11b] sm:$0x7]  ;;  %v15340_v63 = vld [vmem:[%s16753_s3] ss:$0 sm:$0xff] }
 0x14d   :  { %v1577_v51 = vmax.f32 %v16840_v44, %v1543_v56  ;;  %v16790_v22 = vmax.f32 %v15312_v35, 0.0  ;;  %v15329_v17 = vadd.f32 %v15254_v32, %v862_v10  ;;  %916 = vst [vmem:[#allocation3 + $0x160] sm:$0xff] %v16795_v25  ;;  %v1679_v18 = vmax.f32 %v1611_v39, %v1645_v7  ;;  %v1629_v56 = vld [vmem:[#allocation3 + $0x11a] sm:$0x7]  ;;  %v15354_v39 = vld [vmem:[#allocation3 + $0x19e] sm:$0xff]  ;;  %v2128_v36 = vld [vmem:[#allocation3 + $0x127] sm:$0xff] }
 0x14e   :  { %11315 = vmatprep.subr.bf16.mxu0 %v1773_v50  ;;  %13453 = vmatprep.subr.bf16.mxu1 %v1773_v50  ;;  %v1151_v24 = vmul.f32 %v15239_v19, %v15175_v38  ;;  %v1149_v2 = vmul.f32 %v15239_v19, %v15179_v5  ;;  %1203 = vst [vmem:[#allocation3 + $0x1e0] sm:$0xff] %v16801_v8  ;;  %v15352_v19 = vld [vmem:[%s16754_s4] ss:$0 sm:$0xff]  ;;  %16842 = vst [vmem:[#allocation12_spill] sm:$0xff] %v15390_v1  ;;  %v16849_v8 = vmax.f32 %v15196_v37, 0.0  ;;  %v2115_v4 = vld [vmem:[#allocation3 + $0x1ce] sm:$0xff] }
 0x14f   :  { %919 = vst [vmem:[#allocation3 + $0x178] sm:$0xff] %v16790_v22  ;;  %v16794_v14 = vmax.f32 %v15329_v17, 0.0  ;;  %v1712_v10 = vmax.f32 %v1576_v41, %v1678_v42  ;;  %v1594_v38 = vmax.f32 %v888_v30, %v1560_v6  ;;  %v1595_v5 = vmax.f32 %v1527_v53, %v1561_v54  ;;  %v2110_v41 = vld [vmem:[#allocation3 + $0x1a6] sm:$0xff]  ;;  %v15378_v6 = vld [vmem:[%s16755_s5 + $0x48] ss:$12 sps:$4 sm:$0xff]  }
 0x150   :  { %v1713_v7 = vmax.f32 %v1577_v51, %v1679_v18  ;;  %v15357_v50 = vadd.f32 %v15254_v32, %v1151_v24  ;;  %v15360_v34 = vadd.f32 %v15254_v32, %v1149_v2  ;;  %v1696_v44 = vmax.f32 %v1628_v20, %v1662_v48  ;;  %v2143_v42 = vld [vmem:[#allocation3 + $0x19f] sm:$0xff]  ;;  %16841 = vst [vmem:[#allocation11_spill] sm:$0xff] %v15378_v6  ;;  %v2144_v54 = vld [vmem:[#allocation3 + $0x1a7] sm:$0xff]  ;;  %v2245_v20 = vld [vmem:[#allocation3 + $0x1b1] sm:$0xff] }
 0x151   :  { %917 = vst [vmem:[#allocation3 + $0x168] sm:$0xff] %v16794_v14  ;;  %v1697_v30 = vmax.f32 %v1629_v56, %v1663_v29  ;;  %v1425_v51 = vmul.f32 %v15204_v58, %v15340_v63  ;;  %v1423_v53 = vmul.f32 %v15340_v63, %v15216_v40  ;;  %v1426_v32 = vmul.f32 %v15221_v26, %v15340_v63  ;;  %v2246_v48 = vld [vmem:[#allocation3 + $0x1b9] sm:$0xff]  ;;  %v15385_v40 = vld [vmem:[%s16755_s5 + $0x1c] ss:$12 sps:$4 sm:$0xff]  }
 0x152   :  { %v2093_v18 = vld [vmem:[#allocation3 + $0x11e] sm:$0xff]  ;;  %v1765_v2 = vpack.c.bf16 %v1713_v7, %v1712_v10  ;;  %v16793_v56 = vmax.f32 %v15357_v50, 0.0  ;;  %v16800_v58 = vmax.f32 %v15360_v34, 0.0  ;;  %v1730_v29 = vmax.f32 %v1594_v38, %v1696_v44  ;;  %v2094_v26 = vld [vmem:[#allocation3 + $0x126] sm:$0xff]  ;;  %v2229_v22 = vld [vmem:[#allocation3 + $0x131] sm:$0xff] }
 0x153   :  { %v2127_v24 = vld [vmem:[#allocation3 + $0x11f] sm:$0xff]  ;;  %v1731_v57 = vmax.f32 %v1595_v5, %v1697_v30  ;;  %v15393_v10 = vadd.f32 %v15352_v19, %v1425_v51  ;;  %v15396_v7 = vadd.f32 %v15352_v19, %v1423_v53  ;;  %v15399_v38 = vadd.f32 %v15352_v19, %v1426_v32  ;;  %v15408_v51 = vld [vmem:[#allocation2 + $0xc8] sm:$0xff] }
 0x154   :  { %11316 = vmatpush3.bf16.msra.mxu0 %v1765_v2  ;;  %13461 = vmatpush3.bf16.msra.mxu1 %v1765_v2  ;;  %1206 = vst [vmem:[#allocation3 + $0x1f8] sm:$0xff] %v16793_v56  ;;  %1204 = vst [vmem:[#allocation3 + $0x1e8] sm:$0xff] %v16800_v58  ;;  %v1424_v5 = vmul.f32 %v15340_v63, %v15228_v45  ;;  %v2177_v44 = vmax.f32 %v15354_v39, %v2143_v42  ;;  %v2230_v14 = vld [vmem:[#allocation3 + $0x139] sm:$0xff]  ;;  %v16843_v39 = vmax.f32 %v15137_v23, 0.0 }
 0x155   :  { %v2178_v30 = vmax.f32 %v2110_v41, %v2144_v54  ;;  %12158 = vmatprep.subr.bf16.mxu0 %v15408_v51  ;;  %v1774_v53 = vpack.c.bf16 %v1731_v57, %v1730_v29  ;;  %v16796_v32 = vmax.f32 %v15393_v10, 0.0  ;;  %v16799_v2 = vmax.f32 %v15396_v7, 0.0  ;;  %v15421_v54 = vld [vmem:[#allocation3 + $0x1b6] sm:$0xff] }
 0x156   :  { %v16797_v56 = vmax.f32 %v15399_v38, 0.0  ;;  %v15415_v25 = vadd.f32 %v15352_v19, %v1424_v5  ;;  %v2279_v45 = vmax.f32 %v1181_v31, %v2245_v20  ;;  %v2280_v41 = vmax.f32 %v16843_v39, %v2246_v48  ;;  %v2111_v20 = vld [vmem:[#allocation3 + $0x1ae] sm:$0xff]  ;;  %v2250_v49 = vld [vmem:[#allocation3 + $0x1d9] sm:$0xff] }
 0x157   :  { %v2161_v42 = vmax.f32 %v2093_v18, %v2127_v24  ;;  %1937 = vmatmul.mubr.bf16.vlgmr.msra.gmra.mrb[48].mxu0 %v15367_v21  ;;  %v1902_v57 = vand.u32 %v15317_v11, %v1774_v53  ;;  %1480 = vst [vmem:[#allocation3 + $0x210] sm:$0xff] %v16796_v32  ;;  %1478 = vst [vmem:[#allocation3 + $0x200] sm:$0xff] %v16799_v2  ;;  %1961 = vmatmul.mubr.bf16.vlgmr.msra.gmra.mrb[32].mxu1 %v15378_v6  ;;  %v16844_v23 = vmax.f32 %v15079_v33, 0.0  ;;  %v2145_v48 = vld [vmem:[#allocation3 + $0x1af] sm:$0xff]  ;;  %v2146_v18 = vld [vmem:[#allocation3 + $0x1b7] sm:$0xff] }
 0x158   :  { %1481 = vst [vmem:[#allocation3 + $0x218] sm:$0xff] %v16797_v56  ;;  %v2162_v62 = vmax.f32 %v2094_v26, %v2128_v36  ;;  %v16798_v24 = vmax.f32 %v15415_v25, 0.0  ;;  %1944 = vmatprep.mubr.bf16.mxu0 %v15385_v40  ;;  %v2313_v29 = vmax.f32 %v2177_v44, %v2279_v45  ;;  %v2314_v5 = vmax.f32 %v2178_v30, %v2280_v41  ;;  %v2247_v32 = vld [vmem:[#allocation3 + $0x1c1] sm:$0xff]  ;;  %v15450_v44 = vld [vmem:[#allocation3 + $0x12e] sm:$0xff] }
 0x159   :  { %v2263_v31 = vmax.f32 %v16844_v23, %v2229_v22  ;;  %v16845_v53 = vmax.f32 %v15102_v0, 0.0  ;;  %1968 = vmatprep.mubr.bf16.mxu1 %v15390_v1  ;;  %12159 = vmatpush3.bf16.msra.mxu0 %v1902_v57  ;;  %v15442_v33 = vld [vmem:[%s16755_s5 + $0x18] ss:$12 sps:$4 sm:$0xff]   ;;  %v1429_v22 = vmul.f32 %v15269_v52, %v15340_v63  ;;  %v1427_v26 = vmul.f32 %v15340_v63, %v15279_v28  ;;  %v15455_v23 = vld [vmem:[#allocation3 + $0x136] sm:$0xff] }
 0x15a   :  { %v1430_v0 = vmul.f32 %v15288_v60, %v15340_v63  ;;  %v2129_v30 = vld [vmem:[#allocation3 + $0x12f] sm:$0xff]  ;;  %1479 = vst [vmem:[#allocation3 + $0x208] sm:$0xff] %v16798_v24  ;;  %v2365_v45 = vpack.c.bf16 %v2314_v5, %v2313_v29  ;;  %v2179_v57 = vmax.f32 %v2111_v20, %v2145_v48  ;;  %v2130_v52 = vld [vmem:[#allocation3 + $0x137] sm:$0xff]  ;;  %12188 = vmatprep.subr.bf16.mxu0 %v15408_v51  ;;  %v16847_v48 = vmax.f32 %v15199_v27, 0.0  ;;  %v2231_v29 = vld [vmem:[#allocation3 + $0x141] sm:$0xff] }
 0x15b   :  { %v2264_v39 = vmax.f32 %v16845_v53, %v2230_v14  ;;  %v2297_v36 = vmax.f32 %v2161_v42, %v2263_v31  ;;  %v2248_v14 = vld [vmem:[#allocation3 + $0x1c9] sm:$0xff]  ;;  %v2180_v42 = vmax.f32 %v15421_v54, %v2146_v18  ;;  %v2113_v60 = vld [vmem:[#allocation3 + $0x1be] sm:$0xff]  ;;  %v15472_v54 = vadd.f32 %v15352_v19, %v1427_v26 }
 0x15c   :  { %v15460_v28 = vld [vmem:[%s16755_s5 + $0x34] ss:$12 sps:$4 sm:$0xff]   ;;  %v1453_v20 = vadd.f32 %v15352_v19, %v1430_v0  ;;  %v2281_v18 = vmax.f32 %v16847_v48, %v2247_v32  ;;  %11367 = vmatprep.subr.bf16.mxu1 %v2365_v45  ;;  %v1428_v26 = vmul.f32 %v15340_v63, %v15295_v12  ;;  %v2163_v0 = vmax.f32 %v15450_v44, %v2129_v30  ;;  %v2249_v48 = vld [vmem:[#allocation3 + $0x1d1] sm:$0xff] }
 0x15d   :  { %v2298_v41 = vmax.f32 %v2162_v62, %v2264_v39  ;;  %v15466_v31 = vld [vmem:[%s16755_s5 + $0x60] ss:$12 sps:$4 sm:$0xff]   ;;  %v15469_v62 = vadd.f32 %v15352_v19, %v1429_v22  ;;  %v2147_v53 = vld [vmem:[#allocation3 + $0x1bf] sm:$0xff]  ;;  %v2282_v22 = vmax.f32 %v1184_v61, %v2248_v14  ;;  %v2164_v30 = vmax.f32 %v15455_v23, %v2130_v52 }
 0x15e   :  { %16846 = vst [vmem:[#allocation13_spill] sm:$0xff] %v15466_v31  ;;  %v2232_v5 = vld [vmem:[#allocation3 + $0x149] sm:$0xff]  ;;  %v15487_v24 = vld [vmem:[#allocation3 + $0x13e] sm:$0xff]  ;;  %v2233_v12 = vld [vmem:[#allocation3 + $0x151] sm:$0xff]  ;;  %v15498_v44 = vadd.f32 %v15352_v19, %v1428_v26  ;;  %v2265_v59 = vmax.f32 %v16849_v8, %v2231_v29  ;;  %v16851_v19 = vmax.f32 %v15224_v9, 0.0  ;;  %v16852_v37 = vmax.f32 %v15185_v43, 0.0 }
 0x15f   :  { %v15480_v39 = vld [vmem:[%s16755_s5 + $0x7c] ss:$12 sps:$4 sm:$0xff]   ;;  %v2357_v56 = vpack.c.bf16 %v2298_v41, %v2297_v36  ;;  %v16804_v58 = vmax.f32 %v15469_v62, 0.0  ;;  %v1469_v36 = vmax.f32 %v1453_v20, 0.0  ;;  %v2315_v41 = vmax.f32 %v2179_v57, %v2281_v18  ;;  %v2116_v45 = vld [vmem:[#allocation3 + $0x1d6] sm:$0xff]  ;;  %1945 = vmatmul.mubr.bf16.gmra.mrb[52].mxu0 %v15442_v33  ;;  %1969 = vmatmul.mubr.bf16.gmra.mrb[36].mxu1 %v15466_v31 }
 0x160   :  { %16848 = vst [vmem:[#allocation14_spill] sm:$0xff] %v15480_v39  ;;  %v2114_v27 = vld [vmem:[#allocation3 + $0x1c6] sm:$0xff]  ;;  %v2316_v63 = vmax.f32 %v2180_v42, %v2282_v22  ;;  %v2150_v20 = vld [vmem:[#allocation3 + $0x1d7] sm:$0xff]  ;;  %v16850_v57 = vmax.f32 %v15472_v54, 0.0  ;;  %v2181_v42 = vmax.f32 %v2113_v60, %v2147_v53  ;;  %v2283_v8 = vmax.f32 %v16852_v37, %v2249_v48  ;;  %v2149_v18 = vld [vmem:[#allocation3 + $0x1cf] sm:$0xff]  ;;  %1952 = vmatprep.mubr.bf16.mxu0 %v15460_v28 }
 0x161   :  { %v2148_v32 = vld [vmem:[#allocation3 + $0x1c7] sm:$0xff]  ;;  %v15489_v2 = vld [vmem:[#allocation3 + $0x13f] sm:$0xff]  ;;  %11368 = vmatpush3.bf16.msra.mxu1 %v2357_v56  ;;  %1484 = vst [vmem:[#allocation3 + $0x230] sm:$0xff] %v16804_v58  ;;  %1485 = vst [vmem:[#allocation3 + $0x238] sm:$0xff] %v1469_v36  ;;  %v2266_v56 = vmax.f32 %v16851_v19, %v2232_v5  ;;  %v16809_v1 = vmax.f32 %v15498_v44, 0.0  ;;  %v16853_v9 = vmax.f32 %v15249_v55, 0.0  ;;  %1976 = vmatprep.mubr.bf16.mxu1 %v15480_v39 }
 0x162   :  { %v15493_v61 = vld [vmem:[#allocation3 + $0x146] sm:$0xff]  ;;  %1482 = vst [vmem:[#allocation3 + $0x220] sm:$0xff] %v16850_v57  ;;  %v2182_v23 = vmax.f32 %v2114_v27, %v2148_v32  ;;  %v2234_v52 = vld [vmem:[#allocation3 + $0x159] sm:$0xff]  ;;  %v15512_v22 = vld [vmem:[#allocation3 + $0x14e] sm:$0xff]  ;;  %v2366_v58 = vpack.c.bf16 %v2316_v63, %v2315_v41  ;;  %v2299_v57 = vmax.f32 %v2163_v0, %v2265_v59  ;;  %v2317_v48 = vmax.f32 %v2181_v42, %v2283_v8 }
 0x163   :  { %v15495_v14 = vld [vmem:[#allocation3 + $0x147] sm:$0xff]  ;;  %v15514_v26 = vld [vmem:[#allocation3 + $0x14f] sm:$0xff]  ;;  %v2284_v60 = vmax.f32 %v16853_v9, %v2250_v49  ;;  %v15522_v43 = vld [vmem:[#allocation3 + $0x157] sm:$0xff]  ;;  %v2300_v27 = vmax.f32 %v2164_v30, %v2266_v56  ;;  %v2165_v59 = vmax.f32 %v15487_v24, %v15489_v2  ;;  %1483 = vst [vmem:[#allocation3 + $0x228] sm:$0xff] %v16809_v1  ;;  %v16854_v2 = vmax.f32 %v15182_v47, 0.0 }
 0x164   :  { %v2251_v29 = vld [vmem:[#allocation3 + $0x1e1] sm:$0xff]  ;;  %v2252_v5 = vld [vmem:[#allocation3 + $0x1e9] sm:$0xff]  ;;  %v15520_v53 = vld [vmem:[#allocation3 + $0x156] sm:$0xff]  ;;  %v2166_v55 = vmax.f32 %v15493_v61, %v15495_v14  ;;  %11369 = vmatprep.subr.bf16.mxu1 %v2366_v58  ;;  %v16855_v61 = vmax.f32 %v15202_v46, 0.0  ;;  %v2183_v19 = vmax.f32 %v2115_v4, %v2149_v18  ;;  %v2184_v9 = vmax.f32 %v2116_v45, %v2150_v20 }
 0x165   :  { %v15528_v32 = vld [vmem:[%s16755_s5 + $0x30] ss:$12 sps:$4 sm:$0xff]   ;;  %v2236_v36 = vld [vmem:[#allocation3 + $0x169] sm:$0xff]  ;;  %v2318_v30 = vmax.f32 %v2182_v23, %v2284_v60  ;;  %v2267_v24 = vmax.f32 %v16854_v2, %v2233_v12  ;;  %v2358_v8 = vpack.c.bf16 %v2300_v27, %v2299_v57  ;;  %v16856_v31 = vmax.f32 %v15309_v15, 0.0 }
 0x166   :  { %v2235_v0 = vld [vmem:[#allocation3 + $0x161] sm:$0xff]  ;;  %v2268_v14 = vmax.f32 %v16855_v61, %v2234_v52  ;;  %v2253_v42 = vld [vmem:[#allocation3 + $0x1f1] sm:$0xff]  ;;  %v2254_v37 = vld [vmem:[#allocation3 + $0x1f9] sm:$0xff]  ;;  %v16857_v58 = vmax.f32 %v15360_v34, 0.0  ;;  %v2167_v57 = vmax.f32 %v15512_v22, %v15514_v26  ;;  %v2168_v34 = vmax.f32 %v15520_v53, %v15522_v43 }
 0x167   :  { %v15534_v41 = vld [vmem:[#allocation3 + $0x1de] sm:$0xff]  ;;  %v15536_v49 = vld [vmem:[#allocation3 + $0x1e6] sm:$0xff]  ;;  %v2285_v39 = vmax.f32 %v16856_v31, %v2251_v29  ;;  %v2237_v46 = vld [vmem:[#allocation3 + $0x171] sm:$0xff]  ;;  %v2367_v52 = vpack.c.bf16 %v2318_v30, %v2317_v48  ;;  %v2301_v4 = vmax.f32 %v2165_v59, %v2267_v24  ;;  %11370 = vmatpush3.bf16.msra.mxu1 %v2358_v8  ;;  %v16858_v20 = vmax.f32 %v15304_v16, 0.0  ;;  %1953 = vmatmul.mubr.bf16.gmra.mrb[56].mxu0 %v15528_v32 }
 0x168   :  { %v15538_v63 = vld [vmem:[#allocation3 + $0x1df] sm:$0xff]  ;;  %v2152_v56 = vld [vmem:[#allocation3 + $0x1e7] sm:$0xff]  ;;  %v2286_v6 = vmax.f32 %v16857_v58, %v2252_v5  ;;  %v2302_v18 = vmax.f32 %v2166_v55, %v2268_v14  ;;  %v16859_v22 = vmax.f32 %v15329_v17, 0.0  ;;  %v15571_v53 = vld [vmem:[#allocation3 + $0x1f6] sm:$0xff]  ;;  %v16860_v17 = vmax.f32 %v15291_v3, 0.0  ;;  %12160 = vmatprep.mubr.msk.bf16.mxu0 %vm14475_vm4, %v15408_v51 }
 0x169   :  { %v2101_v1 = vld [vmem:[#allocation3 + $0x15e] sm:$0xff]  ;;  %v15551_v23 = vld [vmem:[#allocation3 + $0x166] sm:$0xff]  ;;  %v2319_v15 = vmax.f32 %v2183_v19, %v2285_v39  ;;  %v2269_v29 = vmax.f32 %v16858_v20, %v2235_v0  ;;  %11371 = vmatprep.subr.bf16.mxu1 %v2367_v52  ;;  %v2185_v39 = vmax.f32 %v15534_v41, %v15538_v63  ;;  %v2119_v27 = vld [vmem:[#allocation3 + $0x1ee] sm:$0xff] }
 0x16a   :  { %v2135_v47 = vld [vmem:[#allocation3 + $0x15f] sm:$0xff]  ;;  %v15553_v12 = vld [vmem:[#allocation3 + $0x167] sm:$0xff]  ;;  %v2320_v31 = vmax.f32 %v2184_v9, %v2286_v6  ;;  %v2359_v5 = vpack.c.bf16 %v2302_v18, %v2301_v4  ;;  %v2270_v26 = vmax.f32 %v16859_v22, %v2236_v36  ;;  %v2186_v6 = vmax.f32 %v15536_v49, %v2152_v56  ;;  %v2153_v16 = vld [vmem:[#allocation3 + $0x1ef] sm:$0xff] }
 0x16b   :  { %v2238_v45 = vld [vmem:[#allocation3 + $0x179] sm:$0xff]  ;;  %v15573_v43 = vld [vmem:[#allocation3 + $0x16e] sm:$0xff]  ;;  %v2303_v55 = vmax.f32 %v2167_v57, %v2269_v29  ;;  %v2287_v0 = vmax.f32 %v16860_v17, %v2253_v42  ;;  %v16861_v36 = vmax.f32 %v15357_v50, 0.0  ;;  %v2255_v49 = vld [vmem:[#allocation3 + $0x201] sm:$0xff]  ;;  %v2169_v9 = vmax.f32 %v2101_v1, %v2135_v47 }
 0x16c   :  { %v15564_v60 = vld [vmem:[%s16755_s5 + $0x78] ss:$12 sps:$4 sm:$0xff]   ;;  %v2368_v59 = vpack.c.bf16 %v2320_v31, %v2319_v15  ;;  %v2154_v63 = vld [vmem:[#allocation3 + $0x1f7] sm:$0xff]  ;;  %v2304_v8 = vmax.f32 %v2168_v34, %v2270_v26  ;;  %v2170_v3 = vmax.f32 %v15551_v23, %v15553_v12  ;;  %v16862_v50 = vmax.f32 %v15284_v13, 0.0  ;;  %11372 = vmatpush3.bf16.msra.mxu1 %v2359_v5 }
 0x16d   :  { %v15575_v48 = vld [vmem:[#allocation3 + $0x16f] sm:$0xff]  ;;  %v2288_v41 = vmax.f32 %v16861_v36, %v2254_v37  ;;  %v2138_v24 = vld [vmem:[#allocation3 + $0x177] sm:$0xff]  ;;  %v2205_v61 = vld [vmem:[#allocation3 + $0x180] sm:$0xff]  ;;  %v2321_v4 = vmax.f32 %v2185_v39, %v2287_v0  ;;  %v16863_v57 = vmax.f32 %v15312_v35, 0.0  ;;  %v2187_v47 = vmax.f32 %v2119_v27, %v2153_v16  ;;  %1977 = vmatmul.mubr.bf16.gmra.mrb[40].mxu1 %v15564_v60 }
 0x16e   :  { %v2256_v30 = vld [vmem:[#allocation3 + $0x209] sm:$0xff]  ;;  %v2104_v2 = vld [vmem:[#allocation3 + $0x176] sm:$0xff]  ;;  %v2239_v19 = vld [vmem:[#allocation3 + $0x181] sm:$0xff]  ;;  %v2271_v42 = vmax.f32 %v16862_v50, %v2237_v46  ;;  %11373 = vmatprep.subr.bf16.mxu1 %v2368_v59  ;;  %v2360_v13 = vpack.c.bf16 %v2304_v8, %v2303_v55  ;;  %v2188_v31 = vmax.f32 %v15571_v53, %v2154_v63  ;;  %v16864_v34 = vmax.f32 %v15396_v7, 0.0 }
 0x16f   :  { %v2206_v14 = vld [vmem:[#allocation3 + $0x188] sm:$0xff]  ;;  %v15588_v37 = vld [vmem:[#allocation3 + $0x1fe] sm:$0xff]  ;;  %v2322_v18 = vmax.f32 %v2186_v6, %v2288_v41  ;;  %v2272_v1 = vmax.f32 %v16863_v57, %v2238_v45  ;;  %v2257_v12 = vld [vmem:[#allocation3 + $0x211] sm:$0xff]  ;;  %v16865_v16 = vmax.f32 %v15415_v25, 0.0  ;;  %v2171_v53 = vmax.f32 %v15573_v43, %v15575_v48 }
 0x170   :  { %v2240_v56 = vld [vmem:[#allocation3 + $0x189] sm:$0xff]  ;;  %v15590_v58 = vld [vmem:[#allocation3 + $0x1ff] sm:$0xff]  ;;  %v2305_v46 = vmax.f32 %v2169_v9, %v2271_v42  ;;  %v2289_v20 = vmax.f32 %v16864_v34, %v2255_v49  ;;  %v2241_v45 = vld [vmem:[#allocation3 + $0x191] sm:$0xff]  ;;  %v2172_v0 = vmax.f32 %v2104_v2, %v2138_v24  ;;  %v2273_v36 = vmax.f32 %v2205_v61, %v2239_v19  ;;  %11374 = vmatpush3.bf16.msra.mxu1 %v2360_v13 }
 0x171   :  { %v14053_v52 = vld [vmem:[%s16755_s5 + $0x8] ss:$12 sps:$4 sm:$0xff]   ;;  %v2122_v15 = vld [vmem:[#allocation3 + $0x206] sm:$0xff]  ;;  %v2369_v6 = vpack.c.bf16 %v2322_v18, %v2321_v4  ;;  %v2306_v27 = vmax.f32 %v2170_v3, %v2272_v1  ;;  %v2290_v59 = vmax.f32 %v16865_v16, %v2256_v30  ;;  %v2274_v41 = vmax.f32 %v2206_v14, %v2240_v56  ;;  %v2228_v1 = vld [vmem:[#allocation3 + $0x238] sm:$0x7] }
 0x172   :  { %v2156_v23 = vld [vmem:[#allocation3 + $0x207] sm:$0xff]  ;;  %v2258_v29 = vld [vmem:[#allocation3 + $0x219] sm:$0xff]  ;;  %v2207_v35 = vld [vmem:[#allocation3 + $0x190] sm:$0xff]  ;;  %v2323_v17 = vmax.f32 %v2187_v47, %v2289_v20  ;;  %v2189_v30 = vmax.f32 %v15588_v37, %v15590_v58  ;;  %v2307_v18 = vmax.f32 %v2171_v53, %v2273_v36  ;;  %v16866_v24 = vmax.f32 %v15393_v10, 0.0  ;;  %12161 = vmatmul.mubr.msk.bf16.vlgmr.msra.gmra.mrb[60].mxu0 %vm1875_vm3, %v14053_v52 }
 0x173   :  { %v2105_v5 = vld [vmem:[#allocation3 + $0x17e] sm:$0xff]  ;;  %v15600_v22 = vld [vmem:[#allocation3 + $0x186] sm:$0xff]  ;;  %v2123_v63 = vld [vmem:[#allocation3 + $0x20e] sm:$0xff]  ;;  %v2361_v3 = vpack.c.bf16 %v2306_v27, %v2305_v46  ;;  %v2324_v25 = vmax.f32 %v2188_v31, %v2290_v59  ;;  %v2190_v43 = vmax.f32 %v2122_v15, %v2156_v23  ;;  %11375 = vmatprep.subr.bf16.mxu1 %v2369_v6  ;;  %v2308_v2 = vmax.f32 %v2172_v0, %v2274_v41 }
 0x174   :  { %v2139_v26 = vld [vmem:[#allocation3 + $0x17f] sm:$0xff]  ;;  %v15602_v39 = vld [vmem:[#allocation3 + $0x187] sm:$0xff]  ;;  %v2124_v49 = vld [vmem:[#allocation3 + $0x216] sm:$0xff]  ;;  %v2291_v61 = vmax.f32 %v16866_v24, %v2257_v12  ;;  %v16867_v14 = vmax.f32 %v15399_v38, 0.0  ;;  %v2275_v23 = vmax.f32 %v2207_v35, %v2241_v45  ;;  %12164 = vmatprep.mubr.msk.bf16.mxu0 %vm14475_vm4, %v15408_v51  ;;  %v16868_v35 = vmax.f32 %v15472_v54, 0.0 }
 0x175   :  { %v2208_v55 = vld [vmem:[#allocation3 + $0x198] sm:$0xff]  ;;  %v2157_v8 = vld [vmem:[#allocation3 + $0x20f] sm:$0xff]  ;;  %v2259_v50 = vld [vmem:[#allocation3 + $0x221] sm:$0xff]  ;;  %v2370_v37 = vpack.c.bf16 %v2324_v25, %v2323_v17  ;;  %v2173_v58 = vmax.f32 %v2105_v5, %v2139_v26  ;;  %v2174_v15 = vmax.f32 %v15600_v22, %v15602_v39  ;;  %v2362_v34 = vpack.c.bf16 %v2308_v2, %v2307_v18  ;;  %11376 = vmatpush3.bf16.msra.mxu1 %v2361_v3 }
 0x176   :  { %v2242_v7 = vld [vmem:[#allocation3 + $0x199] sm:$0xff]  ;;  %v2260_v48 = vld [vmem:[#allocation3 + $0x229] sm:$0xff]  ;;  %v2292_v19 = vmax.f32 %v16867_v14, %v2258_v29  ;;  %v2126_v56 = vld [vmem:[#allocation3 + $0x226] sm:$0x7]  ;;  %v2325_v38 = vmax.f32 %v2189_v30, %v2291_v61  ;;  %v2191_v26 = vmax.f32 %v2123_v63, %v2157_v8  ;;  %v2293_v45 = vmax.f32 %v16868_v35, %v2259_v50 }
 0x177   :  { %v2158_v9 = vld [vmem:[#allocation3 + $0x217] sm:$0xff]  ;;  %v2159_v4 = vld [vmem:[#allocation3 + $0x21f] sm:$0xff]  ;;  %v2160_v57 = vld [vmem:[#allocation3 + $0x227] sm:$0x7]  ;;  %v2276_v29 = vmax.f32 %v2208_v55, %v2242_v7  ;;  %v2309_v22 = vmax.f32 %v2173_v58, %v2275_v23  ;;  %11377 = vmatprep.subr.bf16.mxu1 %v2370_v37  ;;  %v16869_v7 = vmax.f32 %v15498_v44, 0.0  ;;  %v16870_v3 = vmax.f32 %v15469_v62, 0.0 }
 0x178   :  { %v2125_v42 = vld [vmem:[#allocation3 + $0x21e] sm:$0xff]  ;;  %v2261_v47 = vld [vmem:[#allocation3 + $0x231] sm:$0xff]  ;;  %v2262_v13 = vld [vmem:[#allocation3 + $0x239] sm:$0x7]  ;;  %v2326_v20 = vmax.f32 %v2190_v43, %v2292_v19  ;;  %v2192_v39 = vmax.f32 %v2124_v49, %v2158_v9  ;;  %v2327_v36 = vmax.f32 %v2191_v26, %v2293_v45  ;;  %v2194_v41 = vmax.f32 %v2126_v56, %v2160_v57  ;;  %v12152_v56 = vpop.f32.mrb[40].mxu0 }
 0x179   :  { %v2107_v46 = vld [vmem:[#allocation3 + $0x18e] sm:$0xff]  ;;  %v2108_v31 = vld [vmem:[#allocation3 + $0x196] sm:$0xff]  ;;  %v2209_v6 = vld [vmem:[#allocation3 + $0x1a0] sm:$0xff]  ;;  %v2310_v55 = vmax.f32 %v2174_v15, %v2276_v29  ;;  %v2294_v17 = vmax.f32 %v16869_v7, %v2260_v48  ;;  %v2193_v0 = vmax.f32 %v2125_v42, %v2159_v4  ;;  %v2295_v63 = vmax.f32 %v16870_v3, %v2261_v47  ;;  %11378 = vmatpush3.bf16.msra.mxu1 %v2362_v34  ;;  %v1385_v57 = vpop.f32.mrb[41].mxu0 }
 0x17a   :  { %v2141_v10 = vld [vmem:[#allocation3 + $0x18f] sm:$0xff]  ;;  %v2142_v12 = vld [vmem:[#allocation3 + $0x197] sm:$0xff]  ;;  %v2243_v52 = vld [vmem:[#allocation3 + $0x1a1] sm:$0xff]  ;;  %v2371_v53 = vpack.c.bf16 %v2326_v20, %v2325_v38  ;;  %v2296_v49 = vmax.f32 %v2228_v1, %v2262_v13  ;;  %v12153_v47 = vpop.f32.mrb[42].mxu0 }
 0x17b   :  { %v2210_v27 = vld [vmem:[#allocation3 + $0x1a8] sm:$0xff]  ;;  %v1756_v59 = vld [vmem:[%s16755_s5 + $0x90] sm:$0x33]  ;;  %v2328_v8 = vmax.f32 %v2192_v39, %v2294_v17  ;;  %v2175_v54 = vmax.f32 %v2107_v46, %v2141_v10  ;;  %v2176_v9 = vmax.f32 %v2108_v31, %v2142_v12  ;;  %v2329_v50 = vmax.f32 %v2193_v0, %v2295_v63  ;;  %v1388_v13 = vpop.f32.mrb[43].mxu0 }
 0x17c   :  { %v2244_v16 = vld [vmem:[#allocation3 + $0x1a9] sm:$0xff]  ;;  %v2330_v25 = vmax.f32 %v2194_v41, %v2296_v49  ;;  %v2277_v30 = vmax.f32 %v2209_v6, %v2243_v52  ;;  %11379 = vmatprep.subr.bf16.mxu1 %v2371_v53  ;;  %v10876_v2 = vcombine.high %v1756_v59, %v1756_v59  ;;  %v10875_v44 = vcombine.low %v1756_v59, %v1756_v59  ;;  %v16873_v46 = vld [vmem:[#allocation13_spill] sm:$0xff]  ;;  %v16874_v10 = vld [vmem:[#allocation14_spill] sm:$0xff] }
 0x17d   :  { %v14054_v5 = vld [vmem:[%s16755_s5 + $0x20] ss:$12 sps:$4 sm:$0xff]   ;;  %v2278_v43 = vmax.f32 %v2210_v27, %v2244_v16  ;;  %v2372_v18 = vpack.c.bf16 %v2328_v8, %v2327_v36  ;;  %v2363_v48 = vpack.c.bf16 %v2310_v55, %v2309_v22  ;;  %v14055_v61 = vld [vmem:[%s16755_s5 + $0x38] ss:$12 sps:$4 sm:$0xff]   ;;  %v14060_v1 = vld [vmem:[%s16755_s5 + $0x68] ss:$12 sps:$4 sm:$0xff]  }
 0x17e   :  { %12165 = vmatmul.mubr.msk.bf16.gmra.mrb[64].mxu0 %vm1875_vm3, %v14054_v5  ;;  %v2373_v42 = vpack.c.bf16 %v2330_v25, %v2329_v50  ;;  %v2311_v4 = vmax.f32 %v2175_v54, %v2277_v30  ;;  %1984 = vmatprep.mubr.bf16.mxu1 %v10876_v2  ;;  %v14384_v19 = vld [vmem:[%s16755_s5 + $0x4] ss:$12 sps:$4 sm:$0xff]   ;;  %v14068_v31 = vld [vmem:[%s16755_s5 + $0x8] ss:$12 sps:$4 sm:$0xff]   ;;  %v14069_v38 = vld [vmem:[%s16755_s5 + $0x20] ss:$12 sps:$4 sm:$0xff]  }
 0x17f   :  { %v2312_v62 = vmax.f32 %v2176_v9, %v2278_v43  ;;  %12168 = vmatprep.mubr.msk.bf16.mxu0 %vm14475_vm4, %v15408_v51  ;;  %11380 = vmatpush3.bf16.msra.mxu1 %v2363_v48  ;;  %v16872_v58 = vld [vmem:[#allocation12_spill] sm:$0xff]  ;;  %v2355_v12 = vld [vmem:[%s16755_s5 + $0x90] sm:$0x33]  ;;  %v14077_v6 = vld [vmem:[#allocation5 + $0x40] sm:$0xff]  }
 0x180   :  { %v2496_v24 = vand.u32 %v2373_v42, %v15317_v11  ;;  %11381 = vmatprep.subr.bf16.mxu1 %v2372_v18  ;;  %1985 = vmatmul.mubr.bf16.gmra.mrb[44].mxu1 %v10875_v44  ;;  %v14056_v11 = vld [vmem:[%s16755_s5 + $0x50] ss:$12 sps:$4 sm:$0xff]   ;;  %v10904_v34 = vcombine.high %v2355_v12, %v2355_v12  ;;  %v10903_v20 = vcombine.low %v2355_v12, %v2355_v12  ;;  %v14070_v29 = vld [vmem:[%s16755_s5 + $0x38] ss:$12 sps:$4 sm:$0xff]   ;;  %v14072_v27 = vld [vmem:[%s16755_s5 + $0x68] ss:$12 sps:$4 sm:$0xff]  }
 0x181   :  { %v2364_v14 = vpack.c.bf16 %v2312_v62, %v2311_v4  ;;  %2530 = vmatprep.mubr.bf16.mxu1 %v14384_v19  ;;  %v14078_v52 = vld [vmem:[#allocation5 + $0x48] sm:$0xff]   ;;  %v14079_v16 = vld [vmem:[#allocation5 + $0x50] sm:$0xff]   ;;  %v14080_v22 = vld [vmem:[#allocation5 + $0x58] sm:$0xff]  }
 0x182   :  { %12189 = vmatpush3.bf16.msra.mxu0 %v2496_v24  ;;  %v14073_v5 = vld [vmem:[%s16755_s5 + $0x80] ss:$12 sps:$4 sm:$0xff]   ;;  %v14076_v39 = vld [vmem:[%s16755_s5 + $0x98] ss:$0 sps:$4 sm:$0x33]  }
 0x183   :  { %11382 = vmatpush3.bf16.msra.mxu1 %v2364_v14  ;;  %v14081_v26 = vld [vmem:[#allocation5 + $0x60] sm:$0xff]   ;;  %v14082_v35 = vld [vmem:[#allocation5 + $0x68] sm:$0xff]   ;;  %v14083_v45 = vld [vmem:[#allocation5 + $0x70] sm:$0xff]  }
 0x184   :  { %12218 = vmatprep.subr.bf16.mxu1 %v14077_v6  ;;  %v14084_v59 = vld [vmem:[#allocation5 + $0x78] sm:$0xff]   ;;  %v15725_v53 = vld [vmem:[#allocation5] sm:$0xff]   ;;  %v14090_v55 = vld [vmem:[#allocation5 + $0x48] sm:$0xff]  }
 0x185   :  { %v14092_v7 = vld [vmem:[#allocation5 + $0x50] sm:$0xff]   ;;  %v14094_v17 = vld [vmem:[#allocation5 + $0x58] sm:$0xff]   ;;  %v14096_v0 = vld [vmem:[#allocation5 + $0x60] sm:$0xff]  }
 0x186   :  { %12169 = vmatmul.mubr.msk.bf16.gmra.mrb[68].mxu0 %vm1875_vm3, %v14055_v61  ;;  %v14098_v36 = vld [vmem:[#allocation5 + $0x68] sm:$0xff]   ;;  %v14100_v41 = vld [vmem:[#allocation5 + $0x70] sm:$0xff]   ;;  %v14102_v3 = vld [vmem:[#allocation5 + $0x78] sm:$0xff]  }
 0x187   :  { %12172 = vmatprep.mubr.msk.bf16.mxu0 %vm14475_vm4, %v15408_v51  ;;  %v15728_v63 = vld [vmem:[#allocation5] sm:$0xff]  }
 0x188   :  { %2531 = vmatmul.mubr.bf16.vlgmr.msra.gmra.mrb[48].mxu1 %v15367_v21  ;;  %v14064_v21 = vld [vmem:[%s16755_s5 + $0x80] ss:$12 sps:$4 sm:$0xff]  }
 0x189   :  { %2538 = vmatprep.mubr.bf16.mxu1 %v15385_v40  ;;  %v14385_v40 = vld [vmem:[%s16755_s5 + $0x4c] ss:$12 sps:$4 sm:$0xff]   ;;  %12219 = vmatpush3.bf16.msra.mxu1 %v14077_v6 }
 0x18a   :  { %12220 = vmatprep.subr.bf16.mxu1 %v14078_v52 }
 0x18d   :  { %12221 = vmatpush3.bf16.msra.mxu1 %v14078_v52 }
 0x18e   :  { %12173 = vmatmul.mubr.msk.bf16.gmra.mrb[72].mxu0 %vm1875_vm3, %v14056_v11  ;;  %12222 = vmatprep.subr.bf16.mxu1 %v14079_v16 }
 0x18f   :  { %12176 = vmatprep.mubr.msk.bf16.mxu0 %vm14475_vm4, %v15408_v51 }
 0x190   :  { %2539 = vmatmul.mubr.bf16.gmra.mrb[52].mxu1 %v15442_v33  ;;  %v12156_v33 = vpop.f32.mrb[44].mxu0 }
 0x191   :  { %2546 = vmatprep.mubr.bf16.mxu1 %v15460_v28  ;;  %v16871_v28 = vld [vmem:[#allocation11_spill] sm:$0xff]  ;;  %v1401_v37 = vpop.f32.mrb[45].mxu0  ;;  %12223 = vmatpush3.bf16.msra.mxu1 %v14079_v16 }
 0x192   :  { %v12157_v15 = vpop.f32.mrb[46].mxu0  ;;  %12224 = vmatprep.subr.bf16.mxu1 %v14080_v22 }
 0x193   :  { %v1404_v23 = vpop.f32.mrb[47].mxu0 }
 0x195   :  { %12225 = vmatpush3.bf16.msra.mxu1 %v14080_v22 }
 0x196   :  { %12177 = vmatmul.mubr.msk.bf16.gmra.mrb[76].mxu0 %vm1875_vm3, %v14060_v1  ;;  %12226 = vmatprep.subr.bf16.mxu1 %v14081_v26 }
 0x197   :  { %12180 = vmatprep.mubr.msk.bf16.mxu0 %vm14475_vm4, %v15408_v51 }
 0x198   :  { %2547 = vmatmul.mubr.bf16.gmra.mrb[56].mxu1 %v15528_v32  ;;  %v14067_v32 = vld [vmem:[%s16755_s5 + $0x98] ss:$0 sps:$4 sm:$0x33]  }
 0x199   :  { %2554 = vmatprep.mubr.bf16.mxu1 %v14385_v40  ;;  %12227 = vmatpush3.bf16.msra.mxu1 %v14081_v26 }
 0x19a   :  { %12228 = vmatprep.subr.bf16.mxu1 %v14082_v35 }
 0x19d   :  { %12229 = vmatpush3.bf16.msra.mxu1 %v14082_v35 }
 0x19e   :  { %12181 = vmatmul.mubr.msk.bf16.gmra.mrb[80].mxu0 %vm1875_vm3, %v14064_v21  ;;  %12230 = vmatprep.subr.bf16.mxu1 %v14083_v45 }
 0x19f   :  { %12184 = vmatprep.mubr.msk.bf16.mxu0 %vm14475_vm4, %v15408_v51 }
 0x1a0   :  { %2555 = vmatmul.mubr.bf16.gmra.mrb[60].mxu1 %v16871_v28 }
 0x1a1   :  { %2562 = vmatprep.mubr.bf16.mxu1 %v16872_v58  ;;  %12231 = vmatpush3.bf16.msra.mxu1 %v14083_v45 }
 0x1a2   :  { %12232 = vmatprep.subr.bf16.mxu1 %v14084_v59 }
 0x1a5   :  { %12233 = vmatpush3.bf16.msra.mxu1 %v14084_v59 }
 0x1a6   :  { %12185 = vmatmul.mubr.msk.bf16.gmra.mrb[84].mxu0 %vm1875_vm3, %v14067_v32  ;;  %12250 = vmatprep.subr.bf16.mxu1 %v15725_v53 }
 0x1a7   :  { %12190 = vmatprep.mubr.msk.bf16.mxu0 %vm14475_vm4, %v15408_v51 }
 0x1a8   :  { %2563 = vmatmul.mubr.bf16.gmra.mrb[64].mxu1 %v16873_v46 }
 0x1a9   :  { %2570 = vmatprep.mubr.bf16.mxu1 %v16874_v10 }
 0x1ae   :  { %12191 = vmatmul.mubr.msk.bf16.vlgmr.msra.gmra.mrb[88].mxu0 %vm1875_vm3, %v14068_v31 }
 0x1af   :  { %12194 = vmatprep.mubr.msk.bf16.mxu0 %vm14475_vm4, %v15408_v51 }
 0x1b0   :  { %2571 = vmatmul.mubr.bf16.gmra.mrb[68].mxu1 %v15564_v60  ;;  %v14071_v60 = vld [vmem:[%s16755_s5 + $0x50] ss:$12 sps:$4 sm:$0xff]  }
 0x1b1   :  { %2578 = vmatprep.mubr.bf16.mxu1 %v10904_v34 }
 0x1b6   :  { %12195 = vmatmul.mubr.msk.bf16.gmra.mrb[92].mxu0 %vm1875_vm3, %v14069_v38 }
 0x1b7   :  { %12198 = vmatprep.mubr.msk.bf16.mxu0 %vm14475_vm4, %v15408_v51 }
 0x1b8   :  { %2579 = vmatmul.mubr.bf16.gmra.mrb[72].mxu1 %v10903_v20 }
 0x1be   :  { %12199 = vmatmul.mubr.msk.bf16.gmra.mrb[96].mxu0 %vm1875_vm3, %v14070_v29 }
 0x1bf   :  { %12202 = vmatprep.mubr.msk.bf16.mxu0 %vm14475_vm4, %v15408_v51 }
 0x1c6   :  { %12203 = vmatmul.mubr.msk.bf16.gmra.mrb[100].mxu0 %vm1875_vm3, %v14071_v60 }
 0x1c7   :  { %12206 = vmatprep.mubr.msk.bf16.mxu0 %vm14475_vm4, %v15408_v51 }
 0x1ce   :  { %12207 = vmatmul.mubr.msk.bf16.gmra.mrb[104].mxu0 %vm1875_vm3, %v14072_v27 }
 0x1cf   :  { %12210 = vmatprep.mubr.msk.bf16.mxu0 %vm14475_vm4, %v15408_v51 }
 0x1d6   :  { %12211 = vmatmul.mubr.msk.bf16.gmra.mrb[108].mxu0 %vm1875_vm3, %v14073_v5 }
 0x1d7   :  { %12214 = vmatprep.mubr.msk.bf16.mxu0 %vm14475_vm4, %v15408_v51  ;;  %v14088_v51 = vld [vmem:[#allocation5 + $0x40] sm:$0xff]  }
 0x1d8   :  { %12506 = vmatprep.subr.bf16.mxu0 %v14088_v51 }
 0x1d9   :  { %12507 = vmatpush3.bf16.msra.mxu0 %v14088_v51 }
 0x1da   :  { %12508 = vmatprep.subr.bf16.mxu0 %v14090_v55 }
 0x1dd   :  { %12509 = vmatpush3.bf16.msra.mxu0 %v14090_v55 }
 0x1de   :  { %12215 = vmatmul.mubr.msk.bf16.gmra.mrb[112].mxu0 %vm1875_vm3, %v14076_v39  ;;  %12510 = vmatprep.subr.bf16.mxu0 %v14092_v7 }
 0x1e1   :  { %12511 = vmatpush3.bf16.msra.mxu0 %v14092_v7 }
 0x1e2   :  { %12512 = vmatprep.subr.bf16.mxu0 %v14094_v17 }
 0x1e5   :  { %12513 = vmatpush3.bf16.msra.mxu0 %v14094_v17 }
 0x1e6   :  { %12514 = vmatprep.subr.bf16.mxu0 %v14096_v0 }
 0x1e9   :  { %12515 = vmatpush3.bf16.msra.mxu0 %v14096_v0 }
 0x1ea   :  { %12516 = vmatprep.subr.bf16.mxu0 %v14098_v36 }
 0x1ed   :  { %12517 = vmatpush3.bf16.msra.mxu0 %v14098_v36 }
 0x1ee   :  { %12518 = vmatprep.subr.bf16.mxu0 %v14100_v41 }
 0x1f1   :  { %12519 = vmatpush3.bf16.msra.mxu0 %v14100_v41 }
 0x1f2   :  { %12520 = vmatprep.subr.bf16.mxu0 %v14102_v3 }
 0x1f5   :  { %12521 = vmatpush3.bf16.msra.mxu0 %v14102_v3 }
 0x1f6   :  { %12538 = vmatprep.subr.bf16.mxu0 %v15728_v63 }
 0x22a   :  { %v11317_v49 = vpop.f32.mrb[48].mxu0  ;;  %v11335_v8 = vpop.f32.mrb[32].mxu1 }
 0x22b   :  { %v11318_v54 = vpop.f32.mrb[49].mxu0  ;;  %v11336_v9 = vpop.f32.mrb[33].mxu1 }
 0x22c   :  { %v11319_v50 = vadd.f32 %v11318_v54, %v11317_v49  ;;  %v11320_v25 = vpop.f32.mrb[50].mxu0  ;;  %v15731_v30 = vadd.f32 %v11336_v9, %v11335_v8  ;;  %v11338_v43 = vpop.f32.mrb[34].mxu1 }
 0x22d   :  { %v11321_v18 = vpop.f32.mrb[51].mxu0  ;;  %v11339_v2 = vpop.f32.mrb[35].mxu1 }
 0x22e   :  { %v11322_v44 = vadd.f32 %v11321_v18, %v11320_v25  ;;  %v15733_v48 = vadd.f32 %v11339_v2, %v11338_v43 }
 0x232   :  { %v11323_v42 = vpop.f32.mrb[52].mxu0  ;;  %v11341_v62 = vpop.f32.mrb[36].mxu1 }
 0x233   :  { %v11324_v4 = vpop.f32.mrb[53].mxu0  ;;  %v11342_v14 = vpop.f32.mrb[37].mxu1 }
 0x234   :  { %v11325_v24 = vadd.f32 %v11324_v4, %v11323_v42  ;;  %v11326_v61 = vpop.f32.mrb[54].mxu0  ;;  %v15735_v11 = vadd.f32 %v11342_v14, %v11341_v62  ;;  %v11344_v56 = vpop.f32.mrb[38].mxu1 }
 0x235   :  { %v11327_v19 = vpop.f32.mrb[55].mxu0  ;;  %v11345_v1 = vpop.f32.mrb[39].mxu1 }
 0x236   :  { %v11328_v57 = vadd.f32 %v11327_v19, %v11326_v61  ;;  %v15737_v47 = vadd.f32 %v11345_v1, %v11344_v56  ;;  %v14086_v1 = vld [vmem:[#allocation5 + $0x8] sm:$0xff]  }
 0x23a   :  { %v11329_v13 = vpop.f32.mrb[56].mxu0 }
 0x23b   :  { %v11330_v21 = vpop.f32.mrb[57].mxu0 }
 0x23c   :  { %v11331_v40 = vadd.f32 %v11330_v21, %v11329_v13  ;;  %v11332_v33 = vpop.f32.mrb[58].mxu0 }
 0x23d   :  { %v11333_v28 = vpop.f32.mrb[59].mxu0 }
 0x23e   :  { %v11334_v37 = vadd.f32 %v11333_v28, %v11332_v33  ;;  %v14087_v28 = vld [vmem:[#allocation5 + $0x10] sm:$0xff]  }
 0x240   :  { %v11347_v32 = vpop.f32.mrb[40].mxu1 }
 0x241   :  { %v11348_v58 = vpop.f32.mrb[41].mxu1 }
 0x242   :  { %v15739_v15 = vadd.f32 %v11348_v58, %v11347_v32  ;;  %v11350_v23 = vpop.f32.mrb[42].mxu1 }
 0x243   :  { %v11351_v46 = vpop.f32.mrb[43].mxu1 }
 0x244   :  { %v15741_v10 = vadd.f32 %v11351_v46, %v11350_v23 }
 0x245   :  { %v2026_v31 = vpop.f32.mrb[60].mxu0 }
 0x246   :  { %v15743_v12 = vadd.f32 %v11319_v50, %v2026_v31  ;;  %v12162_v34 = vpop.f32.mrb[61].mxu0 }
 0x247   :  { %v2029_v38 = vpop.f32.mrb[62].mxu0 }
 0x248   :  { %2080 = vst [vmem:[#allocation2] sm:$0xff] %v15743_v12  ;;  %v15746_v20 = vadd.f32 %v11322_v44, %v2029_v38  ;;  %v12163_v29 = vpop.f32.mrb[63].mxu0 }
 0x24a   :  { %2081 = vst [vmem:[#allocation2 + $0x8] sm:$0xff] %v15746_v20  ;;  %v2703_v60 = vpack.c.bf16 %v15746_v20, %v15743_v12  ;;  %v14101_v20 = vld [vmem:[#allocation5 + $0x88] sm:$0xff]  }
 0x251   :  { %v2034_v6 = vpop.f32.mrb[64].mxu0  ;;  %v2727_v36 = vld [vmem:[#allocation2 + $0x1] sm:$0xff] }
 0x252   :  { %v15751_v27 = vadd.f32 %v11325_v24, %v2034_v6  ;;  %v12166_v52 = vpop.f32.mrb[65].mxu0  ;;  %v14089_v6 = vld [vmem:[#allocation5 + $0x18] sm:$0xff]  }
 0x253   :  { %v2037_v16 = vpop.f32.mrb[66].mxu0  ;;  %v11353_v26 = vpop.f32.mrb[44].mxu1 }
 0x254   :  { %2082 = vst [vmem:[#allocation2 + $0x10] sm:$0xff] %v15751_v27  ;;  %v15754_v5 = vadd.f32 %v11328_v57, %v2037_v16  ;;  %v12167_v22 = vpop.f32.mrb[67].mxu0  ;;  %v11354_v39 = vpop.f32.mrb[45].mxu1 }
 0x255   :  { %v15757_v35 = vadd.f32 %v11354_v39, %v11353_v26  ;;  %v11356_v45 = vpop.f32.mrb[46].mxu1  ;;  %v14091_v39 = vld [vmem:[#allocation5 + $0x20] sm:$0xff]  }
 0x256   :  { %2083 = vst [vmem:[#allocation2 + $0x18] sm:$0xff] %v15754_v5  ;;  %v2704_v59 = vpack.c.bf16 %v15754_v5, %v15751_v27  ;;  %v11357_v51 = vpop.f32.mrb[47].mxu1 }
 0x259   :  { %v2042_v55 = vpop.f32.mrb[68].mxu0 }
 0x25a   :  { %v15761_v7 = vadd.f32 %v11331_v40, %v2042_v55  ;;  %v12170_v17 = vpop.f32.mrb[69].mxu0 }
 0x25b   :  { %v2045_v0 = vpop.f32.mrb[70].mxu0  ;;  %v2728_v41 = vld [vmem:[#allocation2 + $0x9] sm:$0xff]  ;;  %v11383_v54 = vpop.f32.mrb[48].mxu1 }
 0x25c   :  { %2084 = vst [vmem:[#allocation2 + $0x20] sm:$0xff] %v15761_v7  ;;  %v15764_v3 = vadd.f32 %v11334_v37, %v2045_v0  ;;  %v12171_v49 = vpop.f32.mrb[71].mxu0  ;;  %v2743_v8 = vpack.c.bf16 %v2728_v41, %v2727_v36  ;;  %v11384_v9 = vpop.f32.mrb[49].mxu1 }
 0x25d   :  { %v15767_v50 = vadd.f32 %v11384_v9, %v11383_v54  ;;  %v11386_v25 = vpop.f32.mrb[50].mxu1  ;;  %v2729_v24 = vld [vmem:[#allocation2 + $0x11] sm:$0xff]  ;;  %v14093_v9 = vld [vmem:[#allocation5 + $0x28] sm:$0xff]  }
 0x25e   :  { %2085 = vst [vmem:[#allocation2 + $0x28] sm:$0xff] %v15764_v3  ;;  %12234 = vmatprep.mubr.bf16.mxu1 %v2743_v8  ;;  %v2705_v43 = vpack.c.bf16 %v15764_v3, %v15761_v7  ;;  %v11387_v18 = vpop.f32.mrb[51].mxu1 }
 0x25f   :  { %v15771_v2 = vadd.f32 %v11387_v18, %v11386_v25 }
 0x261   :  { %v2050_v44 = vpop.f32.mrb[72].mxu0 }
 0x262   :  { %v15774_v42 = vadd.f32 %v15731_v30, %v2050_v44  ;;  %v12174_v4 = vpop.f32.mrb[73].mxu0 }
 0x263   :  { %v2053_v62 = vpop.f32.mrb[74].mxu0  ;;  %v2730_v61 = vld [vmem:[#allocation2 + $0x19] sm:$0xff]  ;;  %v11389_v57 = vpop.f32.mrb[52].mxu1 }
 0x264   :  { %2086 = vst [vmem:[#allocation2 + $0x30] sm:$0xff] %v15774_v42  ;;  %v15778_v14 = vadd.f32 %v15733_v48, %v2053_v62  ;;  %v12175_v19 = vpop.f32.mrb[75].mxu0  ;;  %v2744_v56 = vpack.c.bf16 %v2730_v61, %v2729_v24  ;;  %v11390_v13 = vpop.f32.mrb[53].mxu1  ;;  %v14095_v62 = vld [vmem:[#allocation5 + $0x30] sm:$0xff]  }
 0x265   :  { %v15781_v21 = vadd.f32 %v11390_v13, %v11389_v57  ;;  %v11392_v30 = vpop.f32.mrb[54].mxu1  ;;  %v2731_v46 = vld [vmem:[#allocation2 + $0x21] sm:$0xff] }
 0x266   :  { %2087 = vst [vmem:[#allocation2 + $0x38] sm:$0xff] %v15778_v14  ;;  %12235 = vmatmul.mubr.bf16.vlgmr.msra.gmra.mrb[76].mxu1 %v2744_v56  ;;  %v2706_v40 = vpack.c.bf16 %v15778_v14, %v15774_v42  ;;  %v11393_v33 = vpop.f32.mrb[55].mxu1 }
 0x267   :  { %12251 = vmatpush3.bf16.msra.mxu1 %v15725_v53  ;;  %v15786_v48 = vadd.f32 %v11393_v33, %v11392_v30 }
 0x268   :  { %12252 = vmatprep.subr.bf16.mxu1 %v14086_v1 }
 0x269   :  { %v2058_v37 = vpop.f32.mrb[76].mxu0 }
 0x26a   :  { %v15789_v32 = vadd.f32 %v15735_v11, %v2058_v37  ;;  %v12178_v58 = vpop.f32.mrb[77].mxu0 }
 0x26b   :  { %v2061_v23 = vpop.f32.mrb[78].mxu0  ;;  %v2732_v31 = vld [vmem:[#allocation2 + $0x29] sm:$0xff]  ;;  %12253 = vmatpush3.bf16.msra.mxu1 %v14086_v1  ;;  %v11395_v29 = vpop.f32.mrb[56].mxu1 }
 0x26c   :  { %2088 = vst [vmem:[#allocation2 + $0x40] sm:$0xff] %v15789_v32  ;;  %v15793_v34 = vadd.f32 %v15737_v47, %v2061_v23  ;;  %v12179_v53 = vpop.f32.mrb[79].mxu0  ;;  %v2745_v38 = vpack.c.bf16 %v2732_v31, %v2731_v46  ;;  %12254 = vmatprep.subr.bf16.mxu1 %v14087_v28  ;;  %v11396_v52 = vpop.f32.mrb[57].mxu1  ;;  %v15821_v31 = vld [vmem:[#allocation5 + $0x80] sm:$0xff]  }
 0x26d   :  { %v15796_v11 = vadd.f32 %v11396_v52, %v11395_v29  ;;  %v11398_v16 = vpop.f32.mrb[58].mxu1  ;;  %v2733_v0 = vld [vmem:[#allocation2 + $0x31] sm:$0xff] }
 0x26e   :  { %2089 = vst [vmem:[#allocation2 + $0x48] sm:$0xff] %v15793_v34  ;;  %12238 = vmatprep.mubr.bf16.mxu1 %v2745_v38  ;;  %v2707_v22 = vpack.c.bf16 %v15793_v34, %v15789_v32  ;;  %v11399_v26 = vpop.f32.mrb[59].mxu1 }
 0x26f   :  { %12255 = vmatpush3.bf16.msra.mxu1 %v14087_v28  ;;  %v15800_v47 = vadd.f32 %v11399_v26, %v11398_v16  ;;  %v14097_v28 = vld [vmem:[#allocation5 + $0x38] sm:$0xff]  }
 0x270   :  { %12256 = vmatprep.subr.bf16.mxu1 %v14089_v6 }
 0x271   :  { %v2066_v45 = vpop.f32.mrb[80].mxu0 }
 0x272   :  { %v15803_v51 = vadd.f32 %v15739_v15, %v2066_v45  ;;  %v12182_v55 = vpop.f32.mrb[81].mxu0 }
 0x273   :  { %v2069_v17 = vpop.f32.mrb[82].mxu0  ;;  %v2734_v36 = vld [vmem:[#allocation2 + $0x39] sm:$0xff]  ;;  %12257 = vmatpush3.bf16.msra.mxu1 %v14089_v6  ;;  %v11401_v54 = vpop.f32.mrb[60].mxu1 }
 0x274   :  { %2090 = vst [vmem:[#allocation2 + $0x50] sm:$0xff] %v15803_v51  ;;  %v15807_v41 = vadd.f32 %v15741_v10, %v2069_v17  ;;  %v12183_v49 = vpop.f32.mrb[83].mxu0  ;;  %v2746_v8 = vpack.c.bf16 %v2734_v36, %v2733_v0  ;;  %12258 = vmatprep.subr.bf16.mxu1 %v14091_v39  ;;  %v11402_v25 = vpop.f32.mrb[61].mxu1 }
 0x275   :  { %v15810_v15 = vadd.f32 %v11402_v25, %v11401_v54  ;;  %v11404_v18 = vpop.f32.mrb[62].mxu1  ;;  %v2735_v57 = vld [vmem:[#allocation2 + $0x41] sm:$0xff] }
 0x276   :  { %2091 = vst [vmem:[#allocation2 + $0x58] sm:$0xff] %v15807_v41  ;;  %12239 = vmatmul.mubr.bf16.gmra.mrb[80].mxu1 %v2746_v8  ;;  %v2708_v44 = vpack.c.bf16 %v15807_v41, %v15803_v51  ;;  %v11405_v4 = vpop.f32.mrb[63].mxu1 }
 0x277   :  { %12259 = vmatpush3.bf16.msra.mxu1 %v14091_v39  ;;  %v15814_v10 = vadd.f32 %v11405_v4, %v11404_v18 }
 0x278   :  { %12260 = vmatprep.subr.bf16.mxu1 %v14093_v9 }
 0x279   :  { %v2074_v24 = vpop.f32.mrb[84].mxu0 }
 0x27a   :  { %v2075_v61 = vadd.f32 %v15757_v35, %v2074_v24  ;;  %v12186_v19 = vpop.f32.mrb[85].mxu0 }
 0x27b   :  { %v2077_v56 = vpop.f32.mrb[86].mxu0  ;;  %v2736_v1 = vld [vmem:[#allocation2 + $0x49] sm:$0xff]  ;;  %12261 = vmatpush3.bf16.msra.mxu1 %v14093_v9  ;;  %v11407_v33 = vpop.f32.mrb[64].mxu1 }
 0x27c   :  { %2092 = vst [vmem:[#allocation2 + $0x60] sm:$0xf] %v2075_v61  ;;  %v12187_v13 = vpop.f32.mrb[87].mxu0  ;;  %v2747_v30 = vpack.c.bf16 %v2736_v1, %v2735_v57  ;;  %12262 = vmatprep.subr.bf16.mxu1 %v14095_v62  ;;  %v11408_v37 = vpop.f32.mrb[65].mxu1 }
 0x27d   :  { %v15817_v58 = vadd.f32 %v11408_v37, %v11407_v33  ;;  %v11410_v23 = vpop.f32.mrb[66].mxu1  ;;  %v2737_v52 = vld [vmem:[#allocation2 + $0x51] sm:$0xff] }
 0x27e   :  { %12242 = vmatprep.mubr.bf16.mxu1 %v2747_v30  ;;  %v11411_v46 = vpop.f32.mrb[67].mxu1  ;;  %v15834_v30 = vld [vmem:[#allocation2 + $0x58] sm:$0xff] }
 0x27f   :  { %12263 = vmatpush3.bf16.msra.mxu1 %v14095_v62  ;;  %v15819_v35 = vadd.f32 %v11411_v46, %v11410_v23 }
 0x280   :  { %12264 = vmatprep.subr.bf16.mxu1 %v14097_v28 }
 0x281   :  { %v2620_v53 = vpop.f32.mrb[88].mxu0 }
 0x282   :  { %v2621_v38 = vadd.f32 %v15767_v50, %v2620_v53  ;;  %v12192_v29 = vpop.f32.mrb[89].mxu0 }
 0x283   :  { %v2623_v6 = vpop.f32.mrb[90].mxu0  ;;  %v2738_v16 = vld [vmem:[#allocation2 + $0x59] sm:$0xff]  ;;  %12265 = vmatpush3.bf16.msra.mxu1 %v14097_v28  ;;  %v11413_v55 = vpop.f32.mrb[68].mxu1 }
 0x284   :  { %2674 = vst [vmem:[#allocation2 + $0x64] sm:$0xff] %v2621_v38  ;;  %v2624_v26 = vadd.f32 %v15771_v2, %v2623_v6  ;;  %v12193_v39 = vpop.f32.mrb[91].mxu0  ;;  %v2748_v45 = vpack.c.bf16 %v2738_v16, %v2737_v52  ;;  %12282 = vmatprep.subr.bf16.mxu1 %v15821_v31  ;;  %v11414_v17 = vpop.f32.mrb[69].mxu1 }
 0x285   :  { %v15826_v0 = vadd.f32 %v11414_v17, %v11413_v55  ;;  %v11416_v36 = vpop.f32.mrb[70].mxu1 }
 0x286   :  { %2675 = vst [vmem:[#allocation2 + $0x6c] sm:$0xff] %v2624_v26  ;;  %12243 = vmatmul.mubr.bf16.gmra.mrb[84].mxu1 %v2748_v45  ;;  %v11417_v50 = vpop.f32.mrb[71].mxu1 }
 0x287   :  { %v15828_v49 = vadd.f32 %v11417_v50, %v11416_v36 }
 0x289   :  { %v2628_v8 = vpop.f32.mrb[92].mxu0 }
 0x28a   :  { %v2629_v54 = vadd.f32 %v15781_v21, %v2628_v8  ;;  %v12196_v9 = vpop.f32.mrb[93].mxu0 }
 0x28b   :  { %v2631_v25 = vpop.f32.mrb[94].mxu0  ;;  %v11419_v4 = vpop.f32.mrb[72].mxu1  ;;  %v2739_v62 = vld [vmem:[#allocation2 + $0x61] sm:$0xff] }
 0x28c   :  { %2676 = vst [vmem:[#allocation2 + $0x74] sm:$0xff] %v2629_v54  ;;  %v2632_v2 = vadd.f32 %v15786_v48, %v2631_v25  ;;  %v12197_v18 = vpop.f32.mrb[95].mxu0  ;;  %v11420_v61 = vpop.f32.mrb[73].mxu1  ;;  %v15836_v21 = vld [vmem:[#allocation2 + $0x60] sm:$0xff] }
 0x28d   :  { %v2740_v24 = vld [vmem:[#allocation2 + $0x69] sm:$0xff]  ;;  %v15832_v56 = vadd.f32 %v11420_v61, %v11419_v4  ;;  %v11422_v57 = vpop.f32.mrb[74].mxu1  ;;  %v6783_v25 = vld [vmem:[#allocation2 + $0x61] sm:$0xff] }
 0x28e   :  { %2677 = vst [vmem:[#allocation2 + $0x7c] sm:$0xff] %v2632_v2  ;;  %v2749_v19 = vpack.c.bf16 %v2740_v24, %v2739_v62  ;;  %v11423_v1 = vpop.f32.mrb[75].mxu1  ;;  %v14108_v18 = vld [vmem:[#allocation5 + $0x8] sm:$0xff]   ;;  %v14105_v24 = vld [vmem:[#allocation5 + $0xa0] sm:$0xff]  }
 0x290   :  { %12246 = vmatprep.mubr.bf16.mxu1 %v2749_v19  ;;  %v14110_v19 = vld [vmem:[#allocation5 + $0x10] sm:$0xff]  }
 0x291   :  { %v2636_v13 = vpop.f32.mrb[96].mxu0 }
 0x292   :  { %v2637_v33 = vadd.f32 %v15796_v11, %v2636_v13  ;;  %v12200_v48 = vpop.f32.mrb[97].mxu0  ;;  %v15845_v11 = vld [vmem:[#allocation2 + $0x68] sm:$0xff] }
 0x293   :  { %v2639_v37 = vpop.f32.mrb[98].mxu0  ;;  %v2741_v53 = vld [vmem:[#allocation2 + $0x71] sm:$0xff] }
 0x294   :  { %2678 = vst [vmem:[#allocation2 + $0x84] sm:$0xff] %v2637_v33  ;;  %v2640_v23 = vadd.f32 %v15800_v47, %v2639_v37  ;;  %v12201_v46 = vpop.f32.mrb[99].mxu0  ;;  %v15847_v52 = vld [vmem:[#allocation2 + $0x70] sm:$0xff] }
 0x295   :  { %v2742_v38 = vld [vmem:[#allocation2 + $0x79] sm:$0xff]  ;;  %v15869_v54 = vld [vmem:[#allocation2 + $0x6e] sm:$0xff] }
 0x296   :  { %2679 = vst [vmem:[#allocation2 + $0x8c] sm:$0xff] %v2640_v23  ;;  %v2750_v29 = vpack.c.bf16 %v2742_v38, %v2741_v53  ;;  %v14109_v48 = vld [vmem:[#allocation5 + $0xb0] sm:$0xff]   ;;  %v2702_v23 = vld [vmem:[#allocation2 + $0x78] sm:$0xff] }
 0x297   :  { %v14114_v46 = vld [vmem:[#allocation5 + $0x20] sm:$0xff]   ;;  %v15887_v38 = vld [vmem:[#allocation2 + $0xa] sm:$0xff] }
 0x298   :  { %12247 = vmatmul.mubr.bf16.gmra.mrb[88].mxu1 %v2750_v29  ;;  %v2701_v51 = vld [vmem:[#allocation2 + $0x70] sm:$0xff] }
 0x299   :  { %v2644_v6 = vpop.f32.mrb[100].mxu0  ;;  %12266 = vmatprep.mubr.bf16.mxu1 %v2703_v60  ;;  %v15856_v60 = vld [vmem:[#allocation2 + $0x5e] sm:$0xff]  ;;  %v2710_v29 = vpack.c.bf16 %v2702_v23, %v2701_v51  ;;  %v14119_v23 = vld [vmem:[#allocation5 + $0xd8] sm:$0xff]  }
 0x29a   :  { %v2645_v16 = vadd.f32 %v15810_v15, %v2644_v6  ;;  %v12204_v26 = vpop.f32.mrb[101].mxu0  ;;  %v15858_v15 = vld [vmem:[#allocation2 + $0x66] sm:$0xff]  ;;  %v15936_v51 = vld [vmem:[#allocation2 + $0x5a] sm:$0xff] }
 0x29b   :  { %v2647_v39 = vpop.f32.mrb[102].mxu0  ;;  %v4592_v17 = vld [vmem:[#allocation2 + $0x81] sm:$0xff]  ;;  %16878 = vst [vmem:[#allocation14_spill] sm:$0xff] %v15936_v51 }
 0x29c   :  { %2680 = vst [vmem:[#allocation2 + $0x94] sm:$0xff] %v2645_v16  ;;  %v2648_v45 = vadd.f32 %v15814_v10, %v2647_v39  ;;  %v12205_v55 = vpop.f32.mrb[103].mxu0  ;;  %v15864_v10 = vld [vmem:[#allocation2 + $0x76] sm:$0xff]  ;;  %v14116_v39 = vld [vmem:[#allocation5 + $0x28] sm:$0xff]  }
 0x29d   :  { %v4593_v36 = vld [vmem:[#allocation2 + $0x89] sm:$0xff]  ;;  %v14111_v16 = vld [vmem:[#allocation5 + $0xb8] sm:$0xff]  }
 0x29e   :  { %2681 = vst [vmem:[#allocation2 + $0x9c] sm:$0xff] %v2648_v45  ;;  %v4608_v12 = vpack.c.bf16 %v4593_v36, %v4592_v17  ;;  %v4601_v45 = vld [vmem:[#allocation2 + $0xc9] sm:$0xff]  ;;  %v4602_v55 = vld [vmem:[#allocation2 + $0xd1] sm:$0xff]  ;;  %v4603_v17 = vld [vmem:[#allocation2 + $0xd9] sm:$0xff] }
 0x29f   :  { %v14113_v36 = vld [vmem:[#allocation5 + $0xc0] sm:$0xff]   ;;  %v14252_v51 = vld [vmem:[#allocation5 + $0x308] sm:$0xff]  }
 0x2a0   :  { %12267 = vmatmul.mubr.bf16.vlgmr.msra.gmra.mrb[76].mxu1 %v2704_v59  ;;  %12522 = vmatprep.mubr.bf16.mxu0 %v4608_v12  ;;  %v14103_v59 = vld [vmem:[#allocation5 + $0x90] sm:$0xff]   ;;  %v4604_v12 = vld [vmem:[#allocation2 + $0xe1] sm:$0xff] }
 0x2a1   :  { %v2652_v50 = vpop.f32.mrb[104].mxu0  ;;  %12270 = vmatprep.mubr.bf16.mxu1 %v2705_v43  ;;  %12283 = vmatpush3.bf16.msra.mxu1 %v15821_v31 }
 0x2a2   :  { %v2653_v27 = vadd.f32 %v15817_v58, %v2652_v50  ;;  %v12208_v5 = vpop.f32.mrb[105].mxu0  ;;  %12284 = vmatprep.subr.bf16.mxu1 %v14101_v20  ;;  %v14104_v58 = vld [vmem:[#allocation5 + $0x98] sm:$0xff]   ;;  %v15890_v50 = vld [vmem:[#allocation2 + $0x1a] sm:$0xff] }
 0x2a3   :  { %v2655_v9 = vpop.f32.mrb[106].mxu0  ;;  %v4594_v43 = vld [vmem:[#allocation2 + $0x91] sm:$0xff] }
 0x2a4   :  { %2682 = vst [vmem:[#allocation2 + $0xa4] sm:$0xff] %v2653_v27  ;;  %v2656_v7 = vadd.f32 %v15819_v35, %v2655_v9  ;;  %v12209_v3 = vpop.f32.mrb[107].mxu0  ;;  %v4605_v27 = vld [vmem:[#allocation2 + $0xe9] sm:$0xff] }
 0x2a5   :  { %12285 = vmatpush3.bf16.msra.mxu1 %v14101_v20  ;;  %v4595_v31 = vld [vmem:[#allocation2 + $0x99] sm:$0xff]  ;;  %v15892_v9 = vld [vmem:[#allocation2 + $0x2a] sm:$0xff] }
 0x2a6   :  { %2683 = vst [vmem:[#allocation2 + $0xac] sm:$0xff] %v2656_v7  ;;  %12286 = vmatprep.subr.bf16.mxu1 %v14103_v59  ;;  %v4609_v2 = vpack.c.bf16 %v4595_v31, %v4594_v43  ;;  %v15894_v7 = vld [vmem:[#allocation2 + $0x12] sm:$0xff]  ;;  %v15898_v43 = vld [vmem:[#allocation2 + $0x22] sm:$0xff] }
 0x2a7   :  { %v3075_v3 = vpack.c.bf16 %v15890_v50, %v15894_v7  ;;  %v14115_v31 = vld [vmem:[#allocation5 + $0xc8] sm:$0xff]  }
 0x2a8   :  { %12271 = vmatmul.mubr.bf16.gmra.mrb[80].mxu1 %v2706_v40  ;;  %12523 = vmatmul.mubr.bf16.vlgmr.msra.gmra.mrb[116].mxu0 %v4609_v2  ;;  %v2700_v40 = vld [vmem:[#allocation2 + $0x68] sm:$0xff]  ;;  %v4614_v2 = vpack.c.bf16 %v4605_v27, %v4604_v12  ;;  %v4554_v27 = vld [vmem:[#allocation2 + $0x90] sm:$0xff] }
 0x2a9   :  { %v2660_v4 = vpop.f32.mrb[108].mxu0  ;;  %12274 = vmatprep.mubr.bf16.mxu1 %v2707_v22  ;;  %12287 = vmatpush3.bf16.msra.mxu1 %v14103_v59  ;;  %v2699_v22 = vld [vmem:[#allocation2 + $0x60] sm:$0xff]  ;;  %v4613_v59 = vpack.c.bf16 %v4603_v17, %v4602_v55  ;;  %v15952_v12 = vld [vmem:[#allocation2 + $0x6a] sm:$0xff] }
 0x2aa   :  { %v2661_v35 = vadd.f32 %v15826_v0, %v2660_v4  ;;  %v12212_v62 = vpop.f32.mrb[109].mxu0  ;;  %12288 = vmatprep.subr.bf16.mxu1 %v14104_v58  ;;  %12539 = vmatpush3.bf16.msra.mxu0 %v15728_v63  ;;  %v14107_v0 = vld [vmem:[#allocation5 + $0xa8] sm:$0xff]   ;;  %v2709_v1 = vpack.c.bf16 %v2700_v40, %v2699_v22  ;;  %v14112_v63 = vld [vmem:[#allocation5 + $0x18] sm:$0xff]   ;;  %v14121_v55 = vld [vmem:[#allocation5 + $0xe0] sm:$0xff]  }
 0x2ab   :  { %v2663_v61 = vpop.f32.mrb[110].mxu0  ;;  %12540 = vmatprep.subr.bf16.mxu0 %v14108_v18  ;;  %v4596_v57 = vld [vmem:[#allocation2 + $0xa1] sm:$0xff]  ;;  %v15902_v4 = vld [vmem:[#allocation2 + $0x59] sm:$0xff]  ;;  %v14117_v62 = vld [vmem:[#allocation5 + $0xd0] sm:$0xff]  }
 0x2ac   :  { %2684 = vst [vmem:[#allocation2 + $0xb4] sm:$0xff] %v2661_v35  ;;  %v2664_v42 = vadd.f32 %v15828_v49, %v2663_v61  ;;  %v12213_v14 = vpop.f32.mrb[111].mxu0  ;;  %16875 = vst [vmem:[#allocation11_spill] sm:$0xff] %v15902_v4  ;;  %v15904_v35 = vld [vmem:[#allocation2 + $0x61] sm:$0xff]  ;;  %v15906_v61 = vld [vmem:[#allocation2 + $0x69] sm:$0xff] }
 0x2ad   :  { %12289 = vmatpush3.bf16.msra.mxu1 %v14104_v58  ;;  %v4597_v32 = vld [vmem:[#allocation2 + $0xa9] sm:$0xff]  ;;  %v3076_v58 = vpack.c.bf16 %v15892_v9, %v15898_v43  ;;  %16876 = vst [vmem:[#allocation12_spill] sm:$0xff] %v15906_v61  ;;  %v4607_v14 = vld [vmem:[#allocation2 + $0xf9] sm:$0xff] }
 0x2ae   :  { %2685 = vst [vmem:[#allocation2 + $0xbc] sm:$0xff] %v2664_v42  ;;  %12290 = vmatprep.subr.bf16.mxu1 %v14105_v24  ;;  %v4610_v34 = vpack.c.bf16 %v4597_v32, %v4596_v57  ;;  %12541 = vmatpush3.bf16.msra.mxu0 %v14108_v18  ;;  %v14118_v18 = vld [vmem:[#allocation5 + $0x30] sm:$0xff]   ;;  %v14120_v40 = vld [vmem:[#allocation5 + $0x38] sm:$0xff]   ;;  %v15950_v17 = vld [vmem:[#allocation2 + $0x5a] sm:$0xff] }
 0x2af   :  { %12542 = vmatprep.subr.bf16.mxu0 %v14110_v19  ;;  %v15912_v57 = vld [vmem:[#allocation2 + $0x58] sm:$0xff]  ;;  %v15918_v22 = vld [vmem:[#allocation2 + $0x68] sm:$0xff] }
 0x2b0   :  { %12275 = vmatmul.mubr.bf16.gmra.mrb[84].mxu1 %v2708_v44  ;;  %12526 = vmatprep.mubr.bf16.mxu0 %v4610_v34  ;;  %v15916_v34 = vld [vmem:[#allocation2 + $0x60] sm:$0xff]  ;;  %v6784_v42 = vld [vmem:[#allocation2 + $0x69] sm:$0xff]  ;;  %v14270_v4 = vld [vmem:[#allocation5 + $0x398] sm:$0xff]  }
 0x2b1   :  { %v2668_v49 = vpop.f32.mrb[112].mxu0  ;;  %12278 = vmatprep.mubr.bf16.mxu1 %v2709_v1  ;;  %12291 = vmatpush3.bf16.msra.mxu1 %v14105_v24  ;;  %v4606_v24 = vld [vmem:[#allocation2 + $0xf1] sm:$0xff]  ;;  %v15922_v1 = vld [vmem:[#allocation2 + $0x3a] sm:$0xff] }
 0x2b2   :  { %v2669_v13 = vadd.f32 %v15832_v56, %v2668_v49  ;;  %v12216_v33 = vpop.f32.mrb[113].mxu0  ;;  %12292 = vmatprep.subr.bf16.mxu1 %v14107_v0  ;;  %12543 = vmatpush3.bf16.msra.mxu0 %v14110_v19  ;;  %v3058_v56 = vld [vmem:[#allocation2 + $0x2] sm:$0xff]  ;;  %v15908_v19 = vld [vmem:[#allocation2 + $0x71] sm:$0xff] }
 0x2b3   :  { %v2671_v37 = vpop.f32.mrb[114].mxu0  ;;  %12544 = vmatprep.subr.bf16.mxu0 %v14112_v63  ;;  %v4598_v41 = vld [vmem:[#allocation2 + $0xb1] sm:$0xff]  ;;  %v3074_v26 = vpack.c.bf16 %v15887_v38, %v3058_v56  ;;  %16877 = vst [vmem:[#allocation13_spill] sm:$0xff] %v15908_v19  ;;  %v14268_v19 = vld [vmem:[#allocation5 + $0x388] sm:$0xff]  }
 0x2b4   :  { %2686 = vst [vmem:[#allocation2 + $0xc4] sm:$0xf] %v2669_v13  ;;  %v12217_v53 = vpop.f32.mrb[115].mxu0  ;;  %v4615_v13 = vpack.c.bf16 %v4607_v14, %v4606_v24  ;;  %v15928_v33 = vld [vmem:[#allocation2 + $0x4a] sm:$0xff]  ;;  %v15944_v56 = vld [vmem:[#allocation2 + $0x72] sm:$0xff] }
 0x2b5   :  { %12293 = vmatpush3.bf16.msra.mxu1 %v14107_v0  ;;  %v4599_v44 = vld [vmem:[#allocation2 + $0xb9] sm:$0xff]  ;;  %v15920_v0 = vld [vmem:[#allocation2 + $0x70] sm:$0xff]  ;;  %v4553_v37 = vld [vmem:[#allocation2 + $0x88] sm:$0xff]  ;;  %16881 = vst [vmem:[#allocation17_spill] sm:$0xff] %v15944_v56 }
 0x2b6   :  { %12294 = vmatprep.subr.bf16.mxu1 %v14109_v48  ;;  %v4611_v6 = vpack.c.bf16 %v4599_v44, %v4598_v41  ;;  %12545 = vmatpush3.bf16.msra.mxu0 %v14112_v63  ;;  %v15934_v53 = vld [vmem:[#allocation2 + $0x42] sm:$0xff]  ;;  %v14125_v14 = vld [vmem:[#allocation5 + $0xf0] sm:$0xff]  }
 0x2b7   :  { %12546 = vmatprep.subr.bf16.mxu0 %v14114_v46  ;;  %v15938_v41 = vld [vmem:[#allocation2 + $0x62] sm:$0xff]  ;;  %v3078_v44 = vpack.c.bf16 %v15928_v33, %v15934_v53 }
 0x2b8   :  { %12279 = vmatmul.mubr.bf16.gmra.mrb[88].mxu1 %v2710_v29  ;;  %12527 = vmatmul.mubr.bf16.gmra.mrb[120].mxu0 %v4611_v6  ;;  %16879 = vst [vmem:[#allocation15_spill] sm:$0xff] %v15938_v41  ;;  %v4552_v29 = vld [vmem:[#allocation2 + $0x80] sm:$0xff]  ;;  %v15942_v6 = vld [vmem:[#allocation2 + $0x6a] sm:$0xff]  ;;  %v14254_v41 = vld [vmem:[#allocation5 + $0x318] sm:$0xff]  }
 0x2b9   :  { %12295 = vmatpush3.bf16.msra.mxu1 %v14109_v48  ;;  %12298 = vmatprep.mubr.bf16.mxu1 %v3074_v26  ;;  %v15930_v48 = vld [vmem:[#allocation2 + $0x32] sm:$0xff]  ;;  %16880 = vst [vmem:[#allocation16_spill] sm:$0xff] %v15942_v6  ;;  %v4568_v26 = vpack.c.bf16 %v4553_v37, %v4552_v29  ;;  %v14126_v37 = vld [vmem:[#allocation5 + $0x90] sm:$0xff]  }
 0x2ba   :  { %12296 = vmatprep.subr.bf16.mxu1 %v14111_v16  ;;  %12547 = vmatpush3.bf16.msra.mxu0 %v14114_v46  ;;  %v3077_v46 = vpack.c.bf16 %v15922_v1, %v15930_v48 }
 0x2bb   :  { %v4600_v20 = vld [vmem:[#allocation2 + $0xc1] sm:$0xff]  ;;  %12548 = vmatprep.subr.bf16.mxu0 %v14116_v39 }
 0x2bc   :  { %v4612_v5 = vpack.c.bf16 %v4601_v45, %v4600_v20  ;;  %v15954_v20 = vld [vmem:[#allocation2 + $0x52] sm:$0xff] }
 0x2bd   :  { %12297 = vmatpush3.bf16.msra.mxu1 %v14111_v16 }
 0x2be   :  { %12530 = vmatprep.mubr.bf16.mxu0 %v4612_v5  ;;  %12314 = vmatprep.subr.bf16.mxu1 %v14113_v36  ;;  %v4557_v5 = vld [vmem:[#allocation2 + $0xa8] sm:$0xff] }
 0x2bf   :  { %12549 = vmatpush3.bf16.msra.mxu0 %v14116_v39  ;;  %v14122_v39 = vld [vmem:[#allocation5 + $0x80] sm:$0xff]  }
 0x2c0   :  { %12299 = vmatmul.mubr.bf16.vlgmr.msra.gmra.mrb[76].mxu1 %v3075_v3  ;;  %12531 = vmatmul.mubr.bf16.gmra.mrb[124].mxu0 %v4613_v59  ;;  %v3079_v59 = vpack.c.bf16 %v15950_v17, %v15954_v20 }
 0x2c1   :  { %12302 = vmatprep.mubr.bf16.mxu1 %v3076_v58  ;;  %12315 = vmatpush3.bf16.msra.mxu1 %v14113_v36  ;;  %v4555_v36 = vld [vmem:[#allocation2 + $0x98] sm:$0xff]  ;;  %v4556_v58 = vld [vmem:[#allocation2 + $0xa0] sm:$0xff] }
 0x2c2   :  { %12316 = vmatprep.subr.bf16.mxu1 %v14115_v31  ;;  %12534 = vmatprep.mubr.bf16.mxu0 %v4614_v2  ;;  %v4569_v3 = vpack.c.bf16 %v4555_v36, %v4554_v27  ;;  %v4570_v24 = vpack.c.bf16 %v4557_v5, %v4556_v58  ;;  %v14128_v36 = vld [vmem:[#allocation5 + $0x98] sm:$0xff]   ;;  %v14386_v27 = vld [vmem:[#allocation2 + $0xc8] sm:$0xff]  ;;  %v3278_v58 = vpack.c.bf16 %v15930_v48, %v15892_v9 }
 0x2c3   :  { %12550 = vmatprep.subr.bf16.mxu0 %v14118_v18  ;;  %v3280_v9 = vpack.c.bf16 %v15954_v20, %v15928_v33  ;;  %v14135_v48 = vld [vmem:[#allocation5 + $0x118] sm:$0xff]  }
 0x2c4   :  { %12551 = vmatpush3.bf16.msra.mxu0 %v14118_v18  ;;  %v14123_v18 = vld [vmem:[#allocation5 + $0xe8] sm:$0xff]   ;;  %v15987_v20 = vld [vmem:[#allocation2 + $0x92] sm:$0xff] }
 0x2c5   :  { %12317 = vmatpush3.bf16.msra.mxu1 %v14115_v31  ;;  %12552 = vmatprep.subr.bf16.mxu0 %v14120_v40  ;;  %v15958_v31 = vld [vmem:[#allocation2 + $0x62] sm:$0xff] }
 0x2c6   :  { %12318 = vmatprep.subr.bf16.mxu1 %v14117_v62  ;;  %v3080_v2 = vpack.c.bf16 %v15952_v12, %v15958_v31  ;;  %v3281_v33 = vpack.c.bf16 %v15958_v31, %v15950_v17  ;;  %v14141_v17 = vld [vmem:[#allocation5 + $0x130] sm:$0xff]   ;;  %v15997_v31 = vld [vmem:[#allocation2 + $0xba] sm:$0xff] }
 0x2c8   :  { %12303 = vmatmul.mubr.bf16.gmra.mrb[80].mxu1 %v3077_v46  ;;  %12535 = vmatmul.mubr.bf16.gmra.mrb[128].mxu0 %v4615_v13  ;;  %v4559_v13 = vld [vmem:[#allocation2 + $0xb8] sm:$0xff]  ;;  %v4558_v46 = vld [vmem:[#allocation2 + $0xb0] sm:$0xff] }
 0x2c9   :  { %12306 = vmatprep.mubr.bf16.mxu1 %v3078_v44  ;;  %12319 = vmatpush3.bf16.msra.mxu1 %v14117_v62  ;;  %v14124_v62 = vld [vmem:[#allocation5 + $0x88] sm:$0xff]  }
 0x2ca   :  { %12554 = vmatprep.mubr.bf16.mxu0 %v4568_v26  ;;  %12320 = vmatprep.subr.bf16.mxu1 %v14119_v23  ;;  %v4560_v44 = vld [vmem:[#allocation2 + $0xc0] sm:$0xff]  ;;  %v4571_v26 = vpack.c.bf16 %v4559_v13, %v4558_v46  ;;  %v14136_v13 = vld [vmem:[#allocation5 + $0xb8] sm:$0xff]  }
 0x2cb   :  { %12553 = vmatpush3.bf16.msra.mxu0 %v14120_v40  ;;  %v15962_v40 = vld [vmem:[#allocation2 + $0x7a] sm:$0xff]  ;;  %v4572_v5 = vpack.c.bf16 %v14386_v27, %v4560_v44  ;;  %v15983_v44 = vld [vmem:[#allocation2 + $0xaa] sm:$0xff] }
 0x2cc   :  { %12570 = vmatprep.subr.bf16.mxu0 %v14122_v39  ;;  %v14137_v46 = vld [vmem:[#allocation5 + $0x120] sm:$0xff]  }
 0x2cd   :  { %12321 = vmatpush3.bf16.msra.mxu1 %v14119_v23  ;;  %v15964_v23 = vld [vmem:[#allocation2 + $0x72] sm:$0xff] }
 0x2ce   :  { %12322 = vmatprep.subr.bf16.mxu1 %v14121_v55  ;;  %v3081_v29 = vpack.c.bf16 %v15962_v40, %v15964_v23 }
 0x2d0   :  { %12307 = vmatmul.mubr.bf16.gmra.mrb[84].mxu1 %v3079_v59  ;;  %12555 = vmatmul.mubr.bf16.vlgmr.msra.gmra.mrb[116].mxu0 %v4569_v3  ;;  %v14129_v59 = vld [vmem:[#allocation5 + $0x100] sm:$0xff]  }
 0x2d1   :  { %12310 = vmatprep.mubr.bf16.mxu1 %v3080_v2  ;;  %12323 = vmatpush3.bf16.msra.mxu1 %v14121_v55  ;;  %v14127_v55 = vld [vmem:[#allocation5 + $0xf8] sm:$0xff]   ;;  %v14130_v3 = vld [vmem:[#allocation5 + $0xa0] sm:$0xff]   ;;  %v4573_v2 = vpack.c.bf16 %v14386_v27, %v14386_v27  ;;  %v14140_v27 = vld [vmem:[#allocation5 + $0xc8] sm:$0xff]  }
 0x2d2   :  { %12558 = vmatprep.mubr.bf16.mxu0 %v4570_v24  ;;  %12571 = vmatpush3.bf16.msra.mxu0 %v14122_v39  ;;  %v3276_v39 = vpack.c.bf16 %v15894_v7, %v15887_v38  ;;  %v3277_v38 = vpack.c.bf16 %v15898_v43, %v15890_v50  ;;  %v14131_v7 = vld [vmem:[#allocation5 + $0x108] sm:$0xff]   ;;  %v14134_v24 = vld [vmem:[#allocation5 + $0xb0] sm:$0xff]   ;;  %v3279_v50 = vpack.c.bf16 %v15934_v53, %v15922_v1  ;;  %v14138_v1 = vld [vmem:[#allocation5 + $0xc0] sm:$0xff]  }
 0x2d3   :  { %12324 = vmatprep.subr.bf16.mxu1 %v14123_v18  ;;  %12572 = vmatprep.subr.bf16.mxu0 %v14124_v62  ;;  %v4922_v43 = vld [vmem:[#allocation2 + $0x82] sm:$0xff]  ;;  %v15981_v53 = vld [vmem:[#allocation2 + $0x9a] sm:$0xff] }
 0x2d5   :  { %12325 = vmatpush3.bf16.msra.mxu1 %v14123_v18  ;;  %v14132_v18 = vld [vmem:[#allocation5 + $0xa8] sm:$0xff]  }
 0x2d6   :  { %12573 = vmatpush3.bf16.msra.mxu0 %v14124_v62  ;;  %12326 = vmatprep.subr.bf16.mxu1 %v14125_v14  ;;  %v14133_v62 = vld [vmem:[#allocation5 + $0x110] sm:$0xff]  }
 0x2d7   :  { %12574 = vmatprep.subr.bf16.mxu0 %v14126_v37 }
 0x2d8   :  { %12311 = vmatmul.mubr.bf16.gmra.mrb[88].mxu1 %v3081_v29  ;;  %12559 = vmatmul.mubr.bf16.gmra.mrb[120].mxu0 %v4571_v26  ;;  %v4939_v29 = vpack.c.bf16 %v15981_v53, %v15987_v20  ;;  %v3282_v26 = vpack.c.bf16 %v15964_v23, %v15952_v12  ;;  %v3463_v12 = vld [vmem:[#allocation2 + $0x13] sm:$0xff]  ;;  %v15999_v23 = vld [vmem:[#allocation2 + $0xc2] sm:$0xff] }
 0x2d9   :  { %12327 = vmatpush3.bf16.msra.mxu1 %v14125_v14  ;;  %12330 = vmatprep.mubr.bf16.mxu1 %v3276_v39  ;;  %v15974_v14 = vld [vmem:[#allocation2 + $0x8a] sm:$0xff]  ;;  %v15993_v39 = vld [vmem:[#allocation2 + $0xa2] sm:$0xff] }
 0x2da   :  { %12562 = vmatprep.mubr.bf16.mxu0 %v4572_v5  ;;  %12575 = vmatpush3.bf16.msra.mxu0 %v14126_v37  ;;  %v4938_v37 = vpack.c.bf16 %v15974_v14, %v4922_v43  ;;  %v14142_v5 = vld [vmem:[#allocation5 + $0xd0] sm:$0xff]  }
 0x2db   :  { %12328 = vmatprep.subr.bf16.mxu1 %v14127_v55  ;;  %12576 = vmatprep.subr.bf16.mxu0 %v14128_v36 }
 0x2dd   :  { %12329 = vmatpush3.bf16.msra.mxu1 %v14127_v55  ;;  %v14139_v55 = vld [vmem:[#allocation5 + $0x128] sm:$0xff]  }
 0x2de   :  { %12577 = vmatpush3.bf16.msra.mxu0 %v14128_v36  ;;  %12346 = vmatprep.subr.bf16.mxu1 %v14129_v59  ;;  %v4940_v36 = vpack.c.bf16 %v15983_v44, %v15993_v39 }
 0x2df   :  { %12578 = vmatprep.subr.bf16.mxu0 %v14130_v3 }
 0x2e0   :  { %12331 = vmatmul.mubr.bf16.vlgmr.msra.gmra.mrb[76].mxu1 %v3277_v38  ;;  %12563 = vmatmul.mubr.bf16.gmra.mrb[124].mxu0 %v4573_v2  ;;  %v3462_v38 = vld [vmem:[#allocation2 + $0xb] sm:$0xff] }
 0x2e1   :  { %12334 = vmatprep.mubr.bf16.mxu1 %v3278_v58  ;;  %12347 = vmatpush3.bf16.msra.mxu1 %v14129_v59  ;;  %v16001_v59 = vld [vmem:[#allocation2 + $0xca] sm:$0xff]  ;;  %v3478_v58 = vpack.c.bf16 %v3463_v12, %v3462_v38  ;;  %v16024_v12 = vld [vmem:[#allocation2 + $0xfa] sm:$0xff] }
 0x2e2   :  { %12579 = vmatpush3.bf16.msra.mxu0 %v14130_v3  ;;  %12348 = vmatprep.subr.bf16.mxu1 %v14131_v7  ;;  %v3283_v3 = vpack.c.bf16 %v4922_v43, %v15962_v40  ;;  %v16010_v40 = vld [vmem:[#allocation2 + $0xd2] sm:$0xff]  ;;  %v3465_v43 = vld [vmem:[#allocation2 + $0x23] sm:$0xff] }
 0x2e3   :  { %12580 = vmatprep.subr.bf16.mxu0 %v14132_v18  ;;  %12566 = vmatprep.mubr.bf16.mxu0 %v4573_v2  ;;  %v3469_v38 = vld [vmem:[#allocation2 + $0x43] sm:$0xff] }
 0x2e5   :  { %12349 = vmatpush3.bf16.msra.mxu1 %v14131_v7 }
 0x2e6   :  { %12581 = vmatpush3.bf16.msra.mxu0 %v14132_v18  ;;  %12350 = vmatprep.subr.bf16.mxu1 %v14133_v62  ;;  %v14143_v18 = vld [vmem:[#allocation5 + $0x138] sm:$0xff]  }
 0x2e7   :  { %12582 = vmatprep.subr.bf16.mxu0 %v14134_v24 }
 0x2e8   :  { %12335 = vmatmul.mubr.bf16.gmra.mrb[80].mxu1 %v3279_v50  ;;  %12567 = vmatmul.mubr.bf16.gmra.mrb[128].mxu0 %v4573_v2  ;;  %v16004_v2 = vld [vmem:[#allocation2 + $0xb2] sm:$0xff]  ;;  %v16012_v50 = vld [vmem:[#allocation2 + $0xda] sm:$0xff] }
 0x2e9   :  { %12338 = vmatprep.mubr.bf16.mxu1 %v3280_v9  ;;  %12351 = vmatpush3.bf16.msra.mxu1 %v14133_v62  ;;  %v4941_v7 = vpack.c.bf16 %v15997_v31, %v16004_v2  ;;  %v4942_v62 = vpack.c.bf16 %v16001_v59, %v15999_v23  ;;  %v14145_v9 = vld [vmem:[#allocation5 + $0x140] sm:$0xff]  }
 0x2ea   :  { %12583 = vmatpush3.bf16.msra.mxu0 %v14134_v24  ;;  %12586 = vmatprep.mubr.bf16.mxu0 %v4938_v37  ;;  %v14144_v24 = vld [vmem:[#allocation5 + $0xd8] sm:$0xff]  }
 0x2eb   :  { %12352 = vmatprep.subr.bf16.mxu1 %v14135_v48  ;;  %12584 = vmatprep.subr.bf16.mxu0 %v14136_v13  ;;  %v3467_v37 = vld [vmem:[#allocation2 + $0x33] sm:$0xff] }
 0x2ed   :  { %12353 = vmatpush3.bf16.msra.mxu1 %v14135_v48  ;;  %v14146_v48 = vld [vmem:[#allocation5 + $0xe0] sm:$0xff]  }
 0x2ee   :  { %12585 = vmatpush3.bf16.msra.mxu0 %v14136_v13  ;;  %12354 = vmatprep.subr.bf16.mxu1 %v14137_v46  ;;  %v4943_v13 = vpack.c.bf16 %v16012_v50, %v16010_v40 }
 0x2ef   :  { %12602 = vmatprep.subr.bf16.mxu0 %v14138_v1 }
 0x2f0   :  { %12339 = vmatmul.mubr.bf16.gmra.mrb[84].mxu1 %v3281_v33  ;;  %v3464_v33 = vld [vmem:[#allocation2 + $0x1b] sm:$0xff] }
 0x2f1   :  { %12587 = vmatmul.mubr.bf16.vlgmr.msra.gmra.mrb[116].mxu0 %v4939_v29  ;;  %12342 = vmatprep.mubr.bf16.mxu1 %v3282_v26  ;;  %v3479_v29 = vpack.c.bf16 %v3465_v43, %v3464_v33  ;;  %v3466_v26 = vld [vmem:[#allocation2 + $0x2b] sm:$0xff]  ;;  %v14153_v33 = vld [vmem:[#allocation5 + $0x160] sm:$0xff]  }
 0x2f2   :  { %12355 = vmatpush3.bf16.msra.mxu1 %v14137_v46  ;;  %12590 = vmatprep.mubr.bf16.mxu0 %v4940_v36  ;;  %v16016_v46 = vld [vmem:[#allocation2 + $0xe2] sm:$0xff]  ;;  %v3480_v36 = vpack.c.bf16 %v3467_v37, %v3466_v26  ;;  %v5139_v37 = vpack.c.bf16 %v15987_v20, %v15974_v14  ;;  %v14154_v26 = vld [vmem:[#allocation5 + $0x100] sm:$0xff]  }
 0x2f3   :  { %12603 = vmatpush3.bf16.msra.mxu0 %v14138_v1  ;;  %12356 = vmatprep.subr.bf16.mxu1 %v14139_v55  ;;  %v16018_v1 = vld [vmem:[#allocation2 + $0xea] sm:$0xff]  ;;  %v14155_v20 = vld [vmem:[#allocation5 + $0x168] sm:$0xff]  }
 0x2f4   :  { %12604 = vmatprep.subr.bf16.mxu0 %v14140_v27 }
 0x2f6   :  { %12357 = vmatpush3.bf16.msra.mxu1 %v14139_v55  ;;  %v14147_v55 = vld [vmem:[#allocation5 + $0x148] sm:$0xff]  }
 0x2f7   :  { %12605 = vmatpush3.bf16.msra.mxu0 %v14140_v27  ;;  %12358 = vmatprep.subr.bf16.mxu1 %v14141_v17  ;;  %v14148_v27 = vld [vmem:[#allocation5 + $0xe8] sm:$0xff]  }
 0x2f8   :  { %12343 = vmatmul.mubr.bf16.gmra.mrb[88].mxu1 %v3283_v3  ;;  %12606 = vmatprep.subr.bf16.mxu0 %v14142_v5  ;;  %v14149_v3 = vld [vmem:[#allocation5 + $0x150] sm:$0xff]  }
 0x2f9   :  { %12591 = vmatmul.mubr.bf16.gmra.mrb[120].mxu0 %v4941_v7  ;;  %12362 = vmatprep.mubr.bf16.mxu1 %v3478_v58  ;;  %v14150_v7 = vld [vmem:[#allocation5 + $0xf0] sm:$0xff]  }
 0x2fa   :  { %12359 = vmatpush3.bf16.msra.mxu1 %v14141_v17  ;;  %12594 = vmatprep.mubr.bf16.mxu0 %v4942_v62  ;;  %v4944_v17 = vpack.c.bf16 %v16018_v1, %v16016_v46  ;;  %v3468_v62 = vld [vmem:[#allocation2 + $0x3b] sm:$0xff] }
 0x2fb   :  { %12607 = vmatpush3.bf16.msra.mxu0 %v14142_v5  ;;  %12360 = vmatprep.subr.bf16.mxu1 %v14143_v18  ;;  %v16022_v5 = vld [vmem:[#allocation2 + $0xf2] sm:$0xff] }
 0x2fc   :  { %12608 = vmatprep.subr.bf16.mxu0 %v14144_v24  ;;  %v4945_v58 = vpack.c.bf16 %v16024_v12, %v16022_v5 }
 0x2fe   :  { %12361 = vmatpush3.bf16.msra.mxu1 %v14143_v18  ;;  %v3471_v18 = vld [vmem:[#allocation2 + $0x53] sm:$0xff] }
 0x2ff   :  { %12609 = vmatpush3.bf16.msra.mxu0 %v14144_v24  ;;  %12378 = vmatprep.subr.bf16.mxu1 %v14145_v9  ;;  %v3481_v24 = vpack.c.bf16 %v3469_v38, %v3468_v62  ;;  %v5140_v38 = vpack.c.bf16 %v15993_v39, %v15981_v53  ;;  %v14158_v62 = vld [vmem:[#allocation5 + $0x110] sm:$0xff]   ;;  %v3476_v53 = vld [vmem:[#allocation2 + $0x7b] sm:$0xff] }
 0x300   :  { %12610 = vmatprep.subr.bf16.mxu0 %v14146_v48 }
 0x301   :  { %12363 = vmatmul.mubr.bf16.vlgmr.msra.gmra.mrb[76].mxu1 %v3479_v29  ;;  %12595 = vmatmul.mubr.bf16.gmra.mrb[124].mxu0 %v4943_v13  ;;  %v14151_v13 = vld [vmem:[#allocation5 + $0x158] sm:$0xff]   ;;  %v3473_v29 = vld [vmem:[#allocation2 + $0x63] sm:$0xff] }
 0x302   :  { %12366 = vmatprep.mubr.bf16.mxu1 %v3480_v36  ;;  %12379 = vmatpush3.bf16.msra.mxu1 %v14145_v9  ;;  %v3470_v9 = vld [vmem:[#allocation2 + $0x4b] sm:$0xff]  ;;  %v3472_v36 = vld [vmem:[#allocation2 + $0x5b] sm:$0xff] }
 0x303   :  { %12611 = vmatpush3.bf16.msra.mxu0 %v14146_v48  ;;  %12380 = vmatprep.subr.bf16.mxu1 %v14147_v55  ;;  %v3482_v43 = vpack.c.bf16 %v3471_v18, %v3470_v9  ;;  %v14152_v48 = vld [vmem:[#allocation5 + $0xf8] sm:$0xff]   ;;  %v14157_v18 = vld [vmem:[#allocation5 + $0x170] sm:$0xff]  }
 0x304   :  { %12612 = vmatprep.subr.bf16.mxu0 %v14148_v27  ;;  %12598 = vmatprep.mubr.bf16.mxu0 %v4944_v17  ;;  %v3474_v17 = vld [vmem:[#allocation2 + $0x6b] sm:$0xff] }
 0x305   :  { %v3664_v9 = vld [vmem:[#allocation2 + $0xc] sm:$0xff] }
 0x306   :  { %12381 = vmatpush3.bf16.msra.mxu1 %v14147_v55  ;;  %v3475_v55 = vld [vmem:[#allocation2 + $0x73] sm:$0xff] }
 0x307   :  { %12613 = vmatpush3.bf16.msra.mxu0 %v14148_v27  ;;  %12382 = vmatprep.subr.bf16.mxu1 %v14149_v3  ;;  %v3483_v27 = vpack.c.bf16 %v3473_v29, %v3472_v36  ;;  %v3484_v14 = vpack.c.bf16 %v3475_v55, %v3474_v17  ;;  %v14163_v55 = vld [vmem:[#allocation5 + $0x188] sm:$0xff]   ;;  %v14165_v17 = vld [vmem:[#allocation5 + $0x190] sm:$0xff]  }
 0x308   :  { %12614 = vmatprep.subr.bf16.mxu0 %v14150_v7 }
 0x309   :  { %12367 = vmatmul.mubr.bf16.gmra.mrb[80].mxu1 %v3481_v24  ;;  %12599 = vmatmul.mubr.bf16.gmra.mrb[128].mxu0 %v4945_v58  ;;  %v3477_v58 = vld [vmem:[#allocation2 + $0x83] sm:$0xff]  ;;  %v16034_v24 = vld [vmem:[#allocation2 + $0x14] sm:$0xff] }
 0x30a   :  { %12370 = vmatprep.mubr.bf16.mxu1 %v3482_v43  ;;  %12383 = vmatpush3.bf16.msra.mxu1 %v14149_v3  ;;  %v5141_v3 = vpack.c.bf16 %v16004_v2, %v15983_v44  ;;  %v3485_v39 = vpack.c.bf16 %v3477_v58, %v3476_v53  ;;  %v5143_v44 = vpack.c.bf16 %v16010_v40, %v16001_v59  ;;  %v16041_v59 = vld [vmem:[#allocation2 + $0x24] sm:$0xff]  ;;  %v14162_v40 = vld [vmem:[#allocation5 + $0x120] sm:$0xff]   ;;  %v16066_v58 = vld [vmem:[#allocation2 + $0x4c] sm:$0xff] }
 0x30b   :  { %12615 = vmatpush3.bf16.msra.mxu0 %v14150_v7  ;;  %12618 = vmatprep.mubr.bf16.mxu0 %v5139_v37  ;;  %v14156_v7 = vld [vmem:[#allocation5 + $0x108] sm:$0xff]   ;;  %v5142_v2 = vpack.c.bf16 %v15999_v23, %v15997_v31  ;;  %v3680_v43 = vpack.c.bf16 %v16034_v24, %v3664_v9  ;;  %v14161_v37 = vld [vmem:[#allocation5 + $0x180] sm:$0xff]   ;;  %v5144_v31 = vpack.c.bf16 %v16016_v46, %v16012_v50  ;;  %v14167_v53 = vld [vmem:[#allocation5 + $0x198] sm:$0xff]  }
 0x30c   :  { %12384 = vmatprep.subr.bf16.mxu1 %v14151_v13  ;;  %12616 = vmatprep.subr.bf16.mxu0 %v14152_v48  ;;  %v16045_v23 = vld [vmem:[#allocation2 + $0x34] sm:$0xff]  ;;  %v5145_v50 = vpack.c.bf16 %v16022_v5, %v16018_v1  ;;  %v5138_v46 = vld [vmem:[#allocation2 + $0x102] sm:$0xff] }
 0x30d   :  { %v5325_v1 = vld [vmem:[#allocation2 + $0x93] sm:$0xff] }
 0x30e   :  { %12385 = vmatpush3.bf16.msra.mxu1 %v14151_v13  ;;  %v14159_v13 = vld [vmem:[#allocation5 + $0x178] sm:$0xff]   ;;  %v14169_v9 = vld [vmem:[#allocation5 + $0x1a0] sm:$0xff]  }
 0x30f   :  { %12617 = vmatpush3.bf16.msra.mxu0 %v14152_v48  ;;  %12386 = vmatprep.subr.bf16.mxu1 %v14153_v33  ;;  %v14160_v48 = vld [vmem:[#allocation5 + $0x118] sm:$0xff]  }
 0x310   :  { %12634 = vmatprep.subr.bf16.mxu0 %v14154_v26 }
 0x311   :  { %12371 = vmatmul.mubr.bf16.gmra.mrb[84].mxu1 %v3483_v27  ;;  %v14164_v27 = vld [vmem:[#allocation5 + $0x128] sm:$0xff]  }
 0x312   :  { %12619 = vmatmul.mubr.bf16.vlgmr.msra.gmra.mrb[116].mxu0 %v5140_v38  ;;  %12374 = vmatprep.mubr.bf16.mxu1 %v3484_v14  ;;  %v16057_v38 = vld [vmem:[#allocation2 + $0x44] sm:$0xff] }
 0x313   :  { %12387 = vmatpush3.bf16.msra.mxu1 %v14153_v33  ;;  %12622 = vmatprep.mubr.bf16.mxu0 %v5141_v3  ;;  %v16047_v33 = vld [vmem:[#allocation2 + $0x1c] sm:$0xff]  ;;  %v14166_v14 = vld [vmem:[#allocation5 + $0x130] sm:$0xff]   ;;  %v16060_v3 = vld [vmem:[#allocation2 + $0x54] sm:$0xff] }
 0x314   :  { %12635 = vmatpush3.bf16.msra.mxu0 %v14154_v26  ;;  %12388 = vmatprep.subr.bf16.mxu1 %v14155_v20  ;;  %v3681_v29 = vpack.c.bf16 %v16041_v59, %v16047_v33  ;;  %v16051_v26 = vld [vmem:[#allocation2 + $0x2c] sm:$0xff] }
 0x315   :  { %12636 = vmatprep.subr.bf16.mxu0 %v14156_v7  ;;  %v3682_v36 = vpack.c.bf16 %v16045_v23, %v16051_v26 }
 0x317   :  { %12389 = vmatpush3.bf16.msra.mxu1 %v14155_v20  ;;  %v5146_v20 = vpack.c.bf16 %v5138_v46, %v16024_v12  ;;  %v14168_v12 = vld [vmem:[#allocation5 + $0x138] sm:$0xff]  }
 0x318   :  { %12637 = vmatpush3.bf16.msra.mxu0 %v14156_v7  ;;  %12390 = vmatprep.subr.bf16.mxu1 %v14157_v18  ;;  %v16062_v7 = vld [vmem:[#allocation2 + $0x3c] sm:$0xff] }
 0x319   :  { %12375 = vmatmul.mubr.bf16.gmra.mrb[88].mxu1 %v3485_v39  ;;  %12638 = vmatprep.subr.bf16.mxu0 %v14158_v62  ;;  %v3683_v5 = vpack.c.bf16 %v16057_v38, %v16062_v7 }
 0x31a   :  { %12623 = vmatmul.mubr.bf16.gmra.mrb[120].mxu0 %v5142_v2  ;;  %12394 = vmatprep.mubr.bf16.mxu1 %v3680_v43  ;;  %v14170_v2 = vld [vmem:[#allocation5 + $0x140] sm:$0xff]   ;;  %v5327_v43 = vld [vmem:[#allocation2 + $0xa3] sm:$0xff] }
 0x31b   :  { %12391 = vmatpush3.bf16.msra.mxu1 %v14157_v18  ;;  %12626 = vmatprep.mubr.bf16.mxu0 %v5143_v44  ;;  %v3684_v18 = vpack.c.bf16 %v16060_v3, %v16066_v58  ;;  %v16070_v44 = vld [vmem:[#allocation2 + $0x64] sm:$0xff] }
 0x31c   :  { %12639 = vmatpush3.bf16.msra.mxu0 %v14158_v62  ;;  %12392 = vmatprep.subr.bf16.mxu1 %v14159_v13  ;;  %v5324_v62 = vld [vmem:[#allocation2 + $0x8b] sm:$0xff] }
 0x31d   :  { %12640 = vmatprep.subr.bf16.mxu0 %v14160_v48  ;;  %v5340_v39 = vpack.c.bf16 %v5325_v1, %v5324_v62  ;;  %v5332_v1 = vld [vmem:[#allocation2 + $0xcb] sm:$0xff] }
 0x31e   :  { %v14174_v62 = vld [vmem:[#allocation5 + $0x150] sm:$0xff]  }
 0x31f   :  { %12393 = vmatpush3.bf16.msra.mxu1 %v14159_v13  ;;  %v16072_v13 = vld [vmem:[#allocation2 + $0x74] sm:$0xff] }
 0x320   :  { %12641 = vmatpush3.bf16.msra.mxu0 %v14160_v48  ;;  %12410 = vmatprep.subr.bf16.mxu1 %v14161_v37  ;;  %v16074_v48 = vld [vmem:[#allocation2 + $0x5c] sm:$0xff] }
 0x321   :  { %12642 = vmatprep.subr.bf16.mxu0 %v14162_v40 }
 0x322   :  { %12395 = vmatmul.mubr.bf16.vlgmr.msra.gmra.mrb[76].mxu1 %v3681_v29  ;;  %12627 = vmatmul.mubr.bf16.gmra.mrb[124].mxu0 %v5144_v31  ;;  %v5326_v31 = vld [vmem:[#allocation2 + $0x9b] sm:$0xff]  ;;  %v16078_v29 = vld [vmem:[#allocation2 + $0x6c] sm:$0xff] }
 0x323   :  { %12398 = vmatprep.mubr.bf16.mxu1 %v3682_v36  ;;  %12411 = vmatpush3.bf16.msra.mxu1 %v14161_v37  ;;  %v5329_v37 = vld [vmem:[#allocation2 + $0xb3] sm:$0xff]  ;;  %v3686_v36 = vpack.c.bf16 %v16072_v13, %v16078_v29 }
 0x324   :  { %12643 = vmatpush3.bf16.msra.mxu0 %v14162_v40  ;;  %12412 = vmatprep.subr.bf16.mxu1 %v14163_v55  ;;  %v3685_v40 = vpack.c.bf16 %v16070_v44, %v16074_v48 }
 0x325   :  { %12644 = vmatprep.subr.bf16.mxu0 %v14164_v27  ;;  %12630 = vmatprep.mubr.bf16.mxu0 %v5145_v50  ;;  %v14171_v50 = vld [vmem:[#allocation5 + $0x1a8] sm:$0xff]  }
 0x327   :  { %12413 = vmatpush3.bf16.msra.mxu1 %v14163_v55  ;;  %v5341_v55 = vpack.c.bf16 %v5327_v43, %v5326_v31  ;;  %v5334_v31 = vld [vmem:[#allocation2 + $0xdb] sm:$0xff] }
 0x328   :  { %12645 = vmatpush3.bf16.msra.mxu0 %v14164_v27  ;;  %12414 = vmatprep.subr.bf16.mxu1 %v14165_v17  ;;  %v5328_v27 = vld [vmem:[#allocation2 + $0xab] sm:$0xff] }
 0x329   :  { %12646 = vmatprep.subr.bf16.mxu0 %v14166_v14  ;;  %v5342_v46 = vpack.c.bf16 %v5329_v37, %v5328_v27  ;;  %v14175_v37 = vld [vmem:[#allocation5 + $0x1b8] sm:$0xff]   ;;  %v14178_v27 = vld [vmem:[#allocation5 + $0x160] sm:$0xff]  }
 0x32a   :  { %12399 = vmatmul.mubr.bf16.gmra.mrb[80].mxu1 %v3683_v5  ;;  %12631 = vmatmul.mubr.bf16.gmra.mrb[128].mxu0 %v5146_v20  ;;  %v14173_v20 = vld [vmem:[#allocation5 + $0x1b0] sm:$0xff]   ;;  %v5333_v5 = vld [vmem:[#allocation2 + $0xd3] sm:$0xff] }
 0x32b   :  { %12402 = vmatprep.mubr.bf16.mxu1 %v3684_v18  ;;  %12415 = vmatpush3.bf16.msra.mxu1 %v14165_v17  ;;  %v14172_v17 = vld [vmem:[#allocation5 + $0x148] sm:$0xff]   ;;  %v5344_v43 = vpack.c.bf16 %v5333_v5, %v5332_v1 }
 0x32c   :  { %12647 = vmatpush3.bf16.msra.mxu0 %v14166_v14  ;;  %12650 = vmatprep.mubr.bf16.mxu0 %v5340_v39  ;;  %v16082_v14 = vld [vmem:[#allocation2 + $0x84] sm:$0xff]  ;;  %v5330_v39 = vld [vmem:[#allocation2 + $0xbb] sm:$0xff] }
 0x32d   :  { %12416 = vmatprep.subr.bf16.mxu1 %v14167_v53  ;;  %12648 = vmatprep.subr.bf16.mxu0 %v14168_v12  ;;  %v5331_v18 = vld [vmem:[#allocation2 + $0xc3] sm:$0xff] }
 0x32e   :  { %v14180_v1 = vld [vmem:[#allocation5 + $0x168] sm:$0xff]  }
 0x32f   :  { %12417 = vmatpush3.bf16.msra.mxu1 %v14167_v53  ;;  %v16084_v53 = vld [vmem:[#allocation2 + $0x7c] sm:$0xff] }
 0x330   :  { %12649 = vmatpush3.bf16.msra.mxu0 %v14168_v12  ;;  %12418 = vmatprep.subr.bf16.mxu1 %v14169_v9  ;;  %v3687_v12 = vpack.c.bf16 %v16082_v14, %v16084_v53 }
 0x331   :  { %12666 = vmatprep.subr.bf16.mxu0 %v14170_v2 }
 0x332   :  { %12403 = vmatmul.mubr.bf16.gmra.mrb[84].mxu1 %v3685_v40  ;;  %v14176_v40 = vld [vmem:[#allocation5 + $0x158] sm:$0xff]  }
 0x333   :  { %12651 = vmatmul.mubr.bf16.vlgmr.msra.gmra.mrb[116].mxu0 %v5341_v55  ;;  %12406 = vmatprep.mubr.bf16.mxu1 %v3686_v36  ;;  %v5335_v55 = vld [vmem:[#allocation2 + $0xe3] sm:$0xff]  ;;  %v14177_v36 = vld [vmem:[#allocation5 + $0x1c0] sm:$0xff]  }
 0x334   :  { %12419 = vmatpush3.bf16.msra.mxu1 %v14169_v9  ;;  %12654 = vmatprep.mubr.bf16.mxu0 %v5342_v46  ;;  %v5343_v9 = vpack.c.bf16 %v5331_v18, %v5330_v39  ;;  %v5336_v46 = vld [vmem:[#allocation2 + $0xeb] sm:$0xff]  ;;  %v5338_v18 = vld [vmem:[#allocation2 + $0xfb] sm:$0xff] }
 0x335   :  { %12667 = vmatpush3.bf16.msra.mxu0 %v14170_v2  ;;  %12420 = vmatprep.subr.bf16.mxu1 %v14171_v50  ;;  %v3882_v2 = vpack.c.bf16 %v16047_v33, %v16034_v24  ;;  %v3883_v24 = vpack.c.bf16 %v16051_v26, %v16041_v59  ;;  %v14179_v33 = vld [vmem:[#allocation5 + $0x1c8] sm:$0xff]   ;;  %v14182_v59 = vld [vmem:[#allocation5 + $0x170] sm:$0xff]   ;;  %v16094_v39 = vld [vmem:[#allocation2 + $0x94] sm:$0xff] }
 0x336   :  { %12668 = vmatprep.subr.bf16.mxu0 %v14172_v17 }
 0x338   :  { %12421 = vmatpush3.bf16.msra.mxu1 %v14171_v50  ;;  %v5345_v50 = vpack.c.bf16 %v5335_v55, %v5334_v31  ;;  %v16103_v31 = vld [vmem:[#allocation2 + $0xb4] sm:$0xff] }
 0x339   :  { %12669 = vmatpush3.bf16.msra.mxu0 %v14172_v17  ;;  %12422 = vmatprep.subr.bf16.mxu1 %v14173_v20  ;;  %v5337_v17 = vld [vmem:[#allocation2 + $0xf3] sm:$0xff] }
 0x33a   :  { %12407 = vmatmul.mubr.bf16.gmra.mrb[88].mxu1 %v3687_v12  ;;  %12670 = vmatprep.subr.bf16.mxu0 %v14174_v62  ;;  %v5346_v5 = vpack.c.bf16 %v5337_v17, %v5336_v46  ;;  %v14181_v12 = vld [vmem:[#allocation5 + $0x1d0] sm:$0xff]   ;;  %v14188_v17 = vld [vmem:[#allocation5 + $0x188] sm:$0xff]  }
 0x33b   :  { %12655 = vmatmul.mubr.bf16.gmra.mrb[120].mxu0 %v5343_v9  ;;  %12426 = vmatprep.mubr.bf16.mxu1 %v3882_v2  ;;  %v14183_v9 = vld [vmem:[#allocation5 + $0x1d8] sm:$0xff]  }
 0x33c   :  { %12423 = vmatpush3.bf16.msra.mxu1 %v14173_v20  ;;  %12658 = vmatprep.mubr.bf16.mxu0 %v5344_v43  ;;  %v3884_v20 = vpack.c.bf16 %v16062_v7, %v16045_v23  ;;  %v3885_v23 = vpack.c.bf16 %v16066_v58, %v16057_v38  ;;  %v3886_v7 = vpack.c.bf16 %v16074_v48, %v16060_v3  ;;  %v5525_v43 = vld [vmem:[#allocation2 + $0x8c] sm:$0xff]  ;;  %v14186_v38 = vld [vmem:[#allocation5 + $0x180] sm:$0xff]   ;;  %v16101_v58 = vld [vmem:[#allocation2 + $0xa4] sm:$0xff] }
 0x33d   :  { %12671 = vmatpush3.bf16.msra.mxu0 %v14174_v62  ;;  %12424 = vmatprep.subr.bf16.mxu1 %v14175_v37  ;;  %v5339_v62 = vld [vmem:[#allocation2 + $0x103] sm:$0xff]  ;;  %v14184_v2 = vld [vmem:[#allocation5 + $0x178] sm:$0xff]   ;;  %v3887_v3 = vpack.c.bf16 %v16078_v29, %v16070_v44 }
 0x33e   :  { %12672 = vmatprep.subr.bf16.mxu0 %v14176_v40  ;;  %v5347_v26 = vpack.c.bf16 %v5339_v62, %v5338_v18  ;;  %v16107_v48 = vld [vmem:[#allocation2 + $0x9c] sm:$0xff]  ;;  %v14189_v44 = vld [vmem:[#allocation5 + $0x1f0] sm:$0xff]   ;;  %v16117_v29 = vld [vmem:[#allocation2 + $0xd4] sm:$0xff] }
 0x33f   :  { %v5542_v55 = vpack.c.bf16 %v16101_v58, %v16107_v48 }
 0x340   :  { %12425 = vmatpush3.bf16.msra.mxu1 %v14175_v37  ;;  %v5541_v37 = vpack.c.bf16 %v16094_v39, %v5525_v43 }
 0x341   :  { %12673 = vmatpush3.bf16.msra.mxu0 %v14176_v40  ;;  %12442 = vmatprep.subr.bf16.mxu1 %v14177_v36  ;;  %v14185_v40 = vld [vmem:[#allocation5 + $0x1e0] sm:$0xff]  }
 0x342   :  { %12674 = vmatprep.subr.bf16.mxu0 %v14178_v27 }
 0x343   :  { %12427 = vmatmul.mubr.bf16.vlgmr.msra.gmra.mrb[76].mxu1 %v3883_v24  ;;  %12659 = vmatmul.mubr.bf16.gmra.mrb[124].mxu0 %v5345_v50  ;;  %v14187_v50 = vld [vmem:[#allocation5 + $0x1e8] sm:$0xff]  }
 0x344   :  { %12430 = vmatprep.mubr.bf16.mxu1 %v3884_v20  ;;  %12443 = vmatpush3.bf16.msra.mxu1 %v14177_v36  ;;  %v3888_v36 = vpack.c.bf16 %v16084_v53, %v16072_v13  ;;  %v16119_v24 = vld [vmem:[#allocation2 + $0xc4] sm:$0xff]  ;;  %v3889_v20 = vpack.c.bf16 %v5525_v43, %v16082_v14  ;;  %v16130_v14 = vld [vmem:[#allocation2 + $0xdc] sm:$0xff]  ;;  %v4071_v43 = vld [vmem:[#allocation2 + $0x2d] sm:$0xff] }
 0x345   :  { %12675 = vmatpush3.bf16.msra.mxu0 %v14178_v27  ;;  %12444 = vmatprep.subr.bf16.mxu1 %v14179_v33  ;;  %v16113_v27 = vld [vmem:[#allocation2 + $0xac] sm:$0xff]  ;;  %v4069_v53 = vld [vmem:[#allocation2 + $0x1d] sm:$0xff] }
 0x346   :  { %12676 = vmatprep.subr.bf16.mxu0 %v14180_v1  ;;  %12662 = vmatprep.mubr.bf16.mxu0 %v5346_v5  ;;  %v5543_v46 = vpack.c.bf16 %v16103_v31, %v16113_v27  ;;  %v14190_v13 = vld [vmem:[#allocation5 + $0x190] sm:$0xff]   ;;  %v4068_v5 = vld [vmem:[#allocation2 + $0x15] sm:$0xff] }
 0x348   :  { %12445 = vmatpush3.bf16.msra.mxu1 %v14179_v33  ;;  %v16121_v33 = vld [vmem:[#allocation2 + $0xcc] sm:$0xff] }
 0x349   :  { %12677 = vmatpush3.bf16.msra.mxu0 %v14180_v1  ;;  %12446 = vmatprep.subr.bf16.mxu1 %v14181_v12  ;;  %v16124_v1 = vld [vmem:[#allocation2 + $0xbc] sm:$0xff]  ;;  %v5545_v18 = vpack.c.bf16 %v16117_v29, %v16121_v33 }
 0x34a   :  { %12678 = vmatprep.subr.bf16.mxu0 %v14182_v59  ;;  %v5544_v62 = vpack.c.bf16 %v16119_v24, %v16124_v1 }
 0x34b   :  { %12431 = vmatmul.mubr.bf16.gmra.mrb[80].mxu1 %v3885_v23  ;;  %12663 = vmatmul.mubr.bf16.gmra.mrb[128].mxu0 %v5347_v26  ;;  %v14192_v26 = vld [vmem:[#allocation5 + $0x198] sm:$0xff]   ;;  %v16132_v23 = vld [vmem:[#allocation2 + $0xe4] sm:$0xff] }
 0x34c   :  { %12434 = vmatprep.mubr.bf16.mxu1 %v3886_v7  ;;  %12447 = vmatpush3.bf16.msra.mxu1 %v14181_v12  ;;  %v4084_v12 = vpack.c.bf16 %v4069_v53, %v4068_v5  ;;  %v14193_v7 = vld [vmem:[#allocation5 + $0x200] sm:$0xff]   ;;  %v16144_v53 = vld [vmem:[#allocation2 + $0x104] sm:$0xff]  ;;  %v4075_v5 = vld [vmem:[#allocation2 + $0x4d] sm:$0xff] }
 0x34d   :  { %12679 = vmatpush3.bf16.msra.mxu0 %v14182_v59  ;;  %12682 = vmatprep.mubr.bf16.mxu0 %v5541_v37  ;;  %v14191_v59 = vld [vmem:[#allocation5 + $0x1f8] sm:$0xff]   ;;  %v4073_v37 = vld [vmem:[#allocation2 + $0x3d] sm:$0xff] }
 0x34e   :  { %12448 = vmatprep.subr.bf16.mxu1 %v14183_v9  ;;  %12680 = vmatprep.subr.bf16.mxu0 %v14184_v2 }
 0x350   :  { %12449 = vmatpush3.bf16.msra.mxu1 %v14183_v9  ;;  %v14194_v9 = vld [vmem:[#allocation5 + $0x1a0] sm:$0xff]  }
 0x351   :  { %12681 = vmatpush3.bf16.msra.mxu0 %v14184_v2  ;;  %12450 = vmatprep.subr.bf16.mxu1 %v14185_v40  ;;  %v5546_v2 = vpack.c.bf16 %v16132_v23, %v16130_v14 }
 0x352   :  { %12698 = vmatprep.subr.bf16.mxu0 %v14186_v38 }
 0x353   :  { %12435 = vmatmul.mubr.bf16.gmra.mrb[84].mxu1 %v3887_v3  ;;  %v4070_v3 = vld [vmem:[#allocation2 + $0x25] sm:$0xff] }
 0x354   :  { %12683 = vmatmul.mubr.bf16.vlgmr.msra.gmra.mrb[116].mxu0 %v5542_v55  ;;  %12438 = vmatprep.mubr.bf16.mxu1 %v3888_v36  ;;  %v4085_v55 = vpack.c.bf16 %v4071_v43, %v4070_v3  ;;  %v4072_v36 = vld [vmem:[#allocation2 + $0x35] sm:$0xff] }
 0x355   :  { %12451 = vmatpush3.bf16.msra.mxu1 %v14185_v40  ;;  %12686 = vmatprep.mubr.bf16.mxu0 %v5543_v46  ;;  %v16136_v40 = vld [vmem:[#allocation2 + $0xec] sm:$0xff]  ;;  %v4086_v46 = vpack.c.bf16 %v4073_v37, %v4072_v36  ;;  %v5742_v37 = vpack.c.bf16 %v16107_v48, %v16094_v39  ;;  %v14201_v3 = vld [vmem:[#allocation5 + $0x220] sm:$0xff]   ;;  %v14203_v48 = vld [vmem:[#allocation5 + $0x228] sm:$0xff]  }
 0x356   :  { %12699 = vmatpush3.bf16.msra.mxu0 %v14186_v38  ;;  %12452 = vmatprep.subr.bf16.mxu1 %v14187_v50  ;;  %v16138_v38 = vld [vmem:[#allocation2 + $0xf4] sm:$0xff] }
 0x357   :  { %12700 = vmatprep.subr.bf16.mxu0 %v14188_v17  ;;  %v14202_v36 = vld [vmem:[#allocation5 + $0x1c0] sm:$0xff]  }
 0x359   :  { %12453 = vmatpush3.bf16.msra.mxu1 %v14187_v50  ;;  %v14195_v50 = vld [vmem:[#allocation5 + $0x208] sm:$0xff]  }
 0x35a   :  { %12701 = vmatpush3.bf16.msra.mxu0 %v14188_v17  ;;  %12454 = vmatprep.subr.bf16.mxu1 %v14189_v44  ;;  %v14196_v17 = vld [vmem:[#allocation5 + $0x1a8] sm:$0xff]  }
 0x35b   :  { %12439 = vmatmul.mubr.bf16.gmra.mrb[88].mxu1 %v3889_v20  ;;  %12702 = vmatprep.subr.bf16.mxu0 %v14190_v13  ;;  %v14197_v20 = vld [vmem:[#allocation5 + $0x210] sm:$0xff]  }
 0x35c   :  { %12687 = vmatmul.mubr.bf16.gmra.mrb[120].mxu0 %v5544_v62  ;;  %12458 = vmatprep.mubr.bf16.mxu1 %v4084_v12  ;;  %v4077_v12 = vld [vmem:[#allocation2 + $0x5d] sm:$0xff] }
 0x35d   :  { %12455 = vmatpush3.bf16.msra.mxu1 %v14189_v44  ;;  %12690 = vmatprep.mubr.bf16.mxu0 %v5545_v18  ;;  %v5547_v44 = vpack.c.bf16 %v16138_v38, %v16136_v40  ;;  %v14198_v18 = vld [vmem:[#allocation5 + $0x1b0] sm:$0xff]  }
 0x35e   :  { %12703 = vmatpush3.bf16.msra.mxu0 %v14190_v13  ;;  %12456 = vmatprep.subr.bf16.mxu1 %v14191_v59  ;;  %v16142_v13 = vld [vmem:[#allocation2 + $0xfc] sm:$0xff] }
 0x35f   :  { %12704 = vmatprep.subr.bf16.mxu0 %v14192_v26  ;;  %v5548_v62 = vpack.c.bf16 %v16144_v53, %v16142_v13 }
 0x361   :  { %12457 = vmatpush3.bf16.msra.mxu1 %v14191_v59  ;;  %v4074_v59 = vld [vmem:[#allocation2 + $0x45] sm:$0xff] }
 0x362   :  { %12705 = vmatpush3.bf16.msra.mxu0 %v14192_v26  ;;  %12474 = vmatprep.subr.bf16.mxu1 %v14193_v7  ;;  %v4087_v26 = vpack.c.bf16 %v4075_v5, %v4074_v59  ;;  %v5743_v5 = vpack.c.bf16 %v16113_v27, %v16101_v58  ;;  %v14206_v59 = vld [vmem:[#allocation5 + $0x1d0] sm:$0xff]  }
 0x363   :  { %12706 = vmatprep.subr.bf16.mxu0 %v14194_v9  ;;  %v4082_v58 = vld [vmem:[#allocation2 + $0x85] sm:$0xff] }
 0x364   :  { %12459 = vmatmul.mubr.bf16.vlgmr.msra.gmra.mrb[76].mxu1 %v4085_v55  ;;  %12691 = vmatmul.mubr.bf16.gmra.mrb[124].mxu0 %v5546_v2  ;;  %v14199_v2 = vld [vmem:[#allocation5 + $0x218] sm:$0xff]  }
 0x365   :  { %12462 = vmatprep.mubr.bf16.mxu1 %v4086_v46  ;;  %12475 = vmatpush3.bf16.msra.mxu1 %v14193_v7  ;;  %v4076_v7 = vld [vmem:[#allocation2 + $0x55] sm:$0xff]  ;;  %v4079_v55 = vld [vmem:[#allocation2 + $0x6d] sm:$0xff]  ;;  %v4078_v46 = vld [vmem:[#allocation2 + $0x65] sm:$0xff] }
 0x366   :  { %12707 = vmatpush3.bf16.msra.mxu0 %v14194_v9  ;;  %12476 = vmatprep.subr.bf16.mxu1 %v14195_v50  ;;  %v4088_v43 = vpack.c.bf16 %v4077_v12, %v4076_v7  ;;  %v14200_v9 = vld [vmem:[#allocation5 + $0x1b8] sm:$0xff]   ;;  %v14205_v12 = vld [vmem:[#allocation5 + $0x230] sm:$0xff]  }
 0x367   :  { %12708 = vmatprep.subr.bf16.mxu0 %v14196_v17  ;;  %12694 = vmatprep.mubr.bf16.mxu0 %v5547_v44  ;;  %v4080_v44 = vld [vmem:[#allocation2 + $0x75] sm:$0xff] }
 0x368   :  { %v4270_v7 = vld [vmem:[#allocation2 + $0x16] sm:$0xff] }
 0x369   :  { %12477 = vmatpush3.bf16.msra.mxu1 %v14195_v50  ;;  %v4081_v50 = vld [vmem:[#allocation2 + $0x7d] sm:$0xff] }
 0x36a   :  { %12709 = vmatpush3.bf16.msra.mxu0 %v14196_v17  ;;  %12478 = vmatprep.subr.bf16.mxu1 %v14197_v20  ;;  %v4089_v17 = vpack.c.bf16 %v4079_v55, %v4078_v46  ;;  %v4090_v39 = vpack.c.bf16 %v4081_v50, %v4080_v44  ;;  %v16162_v50 = vld [vmem:[#allocation2 + $0xc8] sm:$0xff] }
 0x36b   :  { %12710 = vmatprep.subr.bf16.mxu0 %v14198_v18  ;;  %v14211_v44 = vld [vmem:[#allocation5 + $0x1f0] sm:$0xff]  }
 0x36c   :  { %12463 = vmatmul.mubr.bf16.gmra.mrb[80].mxu1 %v4087_v26  ;;  %12695 = vmatmul.mubr.bf16.gmra.mrb[128].mxu0 %v5548_v62  ;;  %v4083_v62 = vld [vmem:[#allocation2 + $0x8d] sm:$0xff]  ;;  %v4271_v26 = vld [vmem:[#allocation2 + $0x1e] sm:$0xff] }
 0x36d   :  { %12466 = vmatprep.mubr.bf16.mxu1 %v4088_v43  ;;  %12479 = vmatpush3.bf16.msra.mxu1 %v14197_v20  ;;  %v5744_v20 = vpack.c.bf16 %v16124_v1, %v16103_v31  ;;  %v4091_v27 = vpack.c.bf16 %v4083_v62, %v4082_v58  ;;  %v5746_v43 = vpack.c.bf16 %v16130_v14, %v16117_v29  ;;  %v4275_v14 = vld [vmem:[#allocation2 + $0x3e] sm:$0xff] }
 0x36e   :  { %12711 = vmatpush3.bf16.msra.mxu0 %v14198_v18  ;;  %12714 = vmatprep.mubr.bf16.mxu0 %v5742_v37  ;;  %v14204_v18 = vld [vmem:[#allocation5 + $0x1c8] sm:$0xff]   ;;  %v5745_v31 = vpack.c.bf16 %v16121_v33, %v16119_v24  ;;  %v4286_v1 = vpack.c.bf16 %v4271_v26, %v4270_v7  ;;  %v4273_v37 = vld [vmem:[#allocation2 + $0x2e] sm:$0xff]  ;;  %v5747_v29 = vpack.c.bf16 %v16136_v40, %v16132_v23  ;;  %v14213_v58 = vld [vmem:[#allocation5 + $0x200] sm:$0xff]  }
 0x36f   :  { %12480 = vmatprep.subr.bf16.mxu1 %v14199_v2  ;;  %12712 = vmatprep.subr.bf16.mxu0 %v14200_v9  ;;  %v4272_v24 = vld [vmem:[#allocation2 + $0x26] sm:$0xff]  ;;  %v5748_v33 = vpack.c.bf16 %v16142_v13, %v16138_v38  ;;  %v4277_v40 = vld [vmem:[#allocation2 + $0x4e] sm:$0xff]  ;;  %v4279_v13 = vld [vmem:[#allocation2 + $0x5e] sm:$0xff] }
 0x370   :  { %v4287_v55 = vpack.c.bf16 %v4273_v37, %v4272_v24  ;;  %v5741_v23 = vld [vmem:[#allocation2 + $0x10c] sm:$0xff] }
 0x371   :  { %12481 = vmatpush3.bf16.msra.mxu1 %v14199_v2  ;;  %v14207_v2 = vld [vmem:[#allocation5 + $0x238] sm:$0xff]   ;;  %v5749_v38 = vpack.c.bf16 %v5741_v23, %v16144_v53  ;;  %v4280_v7 = vld [vmem:[#allocation2 + $0x66] sm:$0xff] }
 0x372   :  { %12713 = vmatpush3.bf16.msra.mxu0 %v14200_v9  ;;  %12482 = vmatprep.subr.bf16.mxu1 %v14201_v3  ;;  %v14208_v9 = vld [vmem:[#allocation5 + $0x1d8] sm:$0xff]   ;;  %v4284_v23 = vld [vmem:[#allocation2 + $0x86] sm:$0xff] }
 0x373   :  { %12730 = vmatprep.subr.bf16.mxu0 %v14202_v36  ;;  %v4281_v26 = vld [vmem:[#allocation2 + $0x6e] sm:$0xff] }
 0x374   :  { %12467 = vmatmul.mubr.bf16.gmra.mrb[84].mxu1 %v4089_v17  ;;  %v14210_v17 = vld [vmem:[#allocation5 + $0x1e8] sm:$0xff]   ;;  %v5930_v53 = vld [vmem:[#allocation2 + $0xad] sm:$0xff] }
 0x375   :  { %12715 = vmatmul.mubr.bf16.vlgmr.msra.gmra.mrb[116].mxu0 %v5743_v5  ;;  %12470 = vmatprep.mubr.bf16.mxu1 %v4090_v39  ;;  %v5928_v5 = vld [vmem:[#allocation2 + $0x9d] sm:$0xff]  ;;  %v4276_v39 = vld [vmem:[#allocation2 + $0x46] sm:$0xff]  ;;  %v4285_v24 = vld [vmem:[#allocation2 + $0x8e] sm:$0xff] }
 0x376   :  { %12483 = vmatpush3.bf16.msra.mxu1 %v14201_v3  ;;  %12718 = vmatprep.mubr.bf16.mxu0 %v5744_v20  ;;  %v14209_v3 = vld [vmem:[#allocation5 + $0x1e0] sm:$0xff]  }
 0x377   :  { %12731 = vmatpush3.bf16.msra.mxu0 %v14202_v36  ;;  %12484 = vmatprep.subr.bf16.mxu1 %v14203_v48  ;;  %v4274_v36 = vld [vmem:[#allocation2 + $0x36] sm:$0xff] }
 0x378   :  { %12732 = vmatprep.subr.bf16.mxu0 %v14204_v18  ;;  %v4288_v46 = vpack.c.bf16 %v4275_v14, %v4274_v36  ;;  %v4278_v20 = vld [vmem:[#allocation2 + $0x56] sm:$0xff] }
 0x379   :  { %v4290_v62 = vpack.c.bf16 %v4279_v13, %v4278_v20  ;;  %v5936_v36 = vld [vmem:[#allocation2 + $0xdd] sm:$0xff]  ;;  %v14216_v13 = vld [vmem:[#allocation5 + $0x218] sm:$0xff]  }
 0x37a   :  { %12485 = vmatpush3.bf16.msra.mxu1 %v14203_v48  ;;  %v4289_v48 = vpack.c.bf16 %v4277_v40, %v4276_v39  ;;  %v4293_v40 = vpack.c.bf16 %v4285_v24, %v4284_v23  ;;  %v5938_v39 = vld [vmem:[#allocation2 + $0xed] sm:$0xff]  ;;  %v5939_v20 = vld [vmem:[#allocation2 + $0xf5] sm:$0xff] }
 0x37b   :  { %12733 = vmatpush3.bf16.msra.mxu0 %v14204_v18  ;;  %12486 = vmatprep.subr.bf16.mxu1 %v14205_v12  ;;  %v5927_v18 = vld [vmem:[#allocation2 + $0x95] sm:$0xff]  ;;  %v6138_v23 = vld [vmem:[#allocation2 + $0xe6] sm:$0xff] }
 0x37c   :  { %12471 = vmatmul.mubr.bf16.gmra.mrb[88].mxu1 %v4091_v27  ;;  %12734 = vmatprep.subr.bf16.mxu0 %v14206_v59  ;;  %v4283_v27 = vld [vmem:[#allocation2 + $0x7e] sm:$0xff]  ;;  %v6136_v24 = vld [vmem:[#allocation2 + $0xd6] sm:$0xff] }
 0x37d   :  { %12719 = vmatmul.mubr.bf16.gmra.mrb[120].mxu0 %v5745_v31  ;;  %12490 = vmatprep.mubr.bf16.mxu1 %v4286_v1  ;;  %v4291_v31 = vpack.c.bf16 %v4281_v26, %v4280_v7  ;;  %v5929_v1 = vld [vmem:[#allocation2 + $0xa5] sm:$0xff] }
 0x37e   :  { %12487 = vmatpush3.bf16.msra.mxu1 %v14205_v12  ;;  %12722 = vmatprep.mubr.bf16.mxu0 %v5746_v43  ;;  %v5943_v12 = vpack.c.bf16 %v5928_v5, %v5927_v18  ;;  %v5932_v43 = vld [vmem:[#allocation2 + $0xbd] sm:$0xff]  ;;  %v5937_v5 = vld [vmem:[#allocation2 + $0xe5] sm:$0xff] }
 0x37f   :  { %12735 = vmatpush3.bf16.msra.mxu0 %v14206_v59  ;;  %12488 = vmatprep.subr.bf16.mxu1 %v14207_v2  ;;  %v14212_v59 = vld [vmem:[#allocation5 + $0x1f8] sm:$0xff]   ;;  %v5940_v18 = vld [vmem:[#allocation2 + $0xfd] sm:$0xff]  ;;  %v5941_v26 = vld [vmem:[#allocation2 + $0x105] sm:$0xff] }
 0x380   :  { %12736 = vmatprep.subr.bf16.mxu0 %v14208_v9  ;;  %v6129_v7 = vld [vmem:[#allocation2 + $0x9e] sm:$0xff] }
 0x382   :  { %12489 = vmatpush3.bf16.msra.mxu1 %v14207_v2  ;;  %v4282_v2 = vld [vmem:[#allocation2 + $0x76] sm:$0xff] }
 0x383   :  { %12737 = vmatpush3.bf16.msra.mxu0 %v14208_v9  ;;  %12794 = vmatprep.subr.bf16.mxu1 %v16162_v50  ;;  %v5944_v9 = vpack.c.bf16 %v5930_v53, %v5929_v1  ;;  %v4292_v37 = vpack.c.bf16 %v4283_v27, %v4282_v2  ;;  %v14219_v53 = vld [vmem:[#allocation5 + $0x230] sm:$0xff]  }
 0x384   :  { %12738 = vmatprep.subr.bf16.mxu0 %v14209_v3  ;;  %v6131_v2 = vld [vmem:[#allocation2 + $0xae] sm:$0xff] }
 0x385   :  { %12491 = vmatmul.mubr.bf16.vlgmr.msra.gmra.mrb[76].mxu1 %v4287_v55  ;;  %12723 = vmatmul.mubr.bf16.gmra.mrb[124].mxu0 %v5747_v29  ;;  %v14214_v29 = vld [vmem:[#allocation5 + $0x208] sm:$0xff]   ;;  %v5935_v55 = vld [vmem:[#allocation2 + $0xd5] sm:$0xff] }
 0x386   :  { %12494 = vmatprep.mubr.bf16.mxu1 %v4288_v46  ;;  %12726 = vmatprep.mubr.bf16.mxu0 %v5748_v33  ;;  %v14215_v33 = vld [vmem:[#allocation5 + $0x210] sm:$0xff]  }
 0x387   :  { %12739 = vmatpush3.bf16.msra.mxu0 %v14209_v3  ;;  %v5931_v3 = vld [vmem:[#allocation2 + $0xb5] sm:$0xff]  ;;  %v5933_v46 = vld [vmem:[#allocation2 + $0xc5] sm:$0xff] }
 0x388   :  { %12740 = vmatprep.subr.bf16.mxu0 %v14210_v17  ;;  %v5945_v14 = vpack.c.bf16 %v5932_v43, %v5931_v3  ;;  %v6128_v43 = vld [vmem:[#allocation2 + $0x96] sm:$0xff] }
 0x389   :  { %v6144_v1 = vpack.c.bf16 %v6129_v7, %v6128_v43 }
 0x38b   :  { %12741 = vmatpush3.bf16.msra.mxu0 %v14210_v17  ;;  %v5934_v17 = vld [vmem:[#allocation2 + $0xcd] sm:$0xff] }
 0x38c   :  { %12742 = vmatprep.subr.bf16.mxu0 %v14211_v44 }
 0x38d   :  { %12495 = vmatmul.mubr.bf16.gmra.mrb[80].mxu1 %v4289_v48  ;;  %12727 = vmatmul.mubr.bf16.gmra.mrb[128].mxu0 %v5749_v38  ;;  %v5946_v38 = vpack.c.bf16 %v5934_v17, %v5933_v46  ;;  %v14217_v48 = vld [vmem:[#allocation5 + $0x220] sm:$0xff]  }
 0x38e   :  { %12498 = vmatprep.mubr.bf16.mxu1 %v4290_v62  ;;  %12746 = vmatprep.mubr.bf16.mxu0 %v5943_v12  ;;  %v5948_v62 = vpack.c.bf16 %v5938_v39, %v5937_v5  ;;  %v5949_v12 = vpack.c.bf16 %v5940_v18, %v5939_v20  ;;  %v6142_v39 = vld [vmem:[#allocation2 + $0x106] sm:$0xff]  ;;  %v14227_v18 = vld [vmem:[#allocation5 + $0x280] sm:$0xff]  }
 0x38f   :  { %12743 = vmatpush3.bf16.msra.mxu0 %v14211_v44  ;;  %v5947_v44 = vpack.c.bf16 %v5936_v36, %v5935_v55  ;;  %v6134_v55 = vld [vmem:[#allocation2 + $0xc6] sm:$0xff]  ;;  %v6135_v36 = vld [vmem:[#allocation2 + $0xce] sm:$0xff] }
 0x390   :  { %12744 = vmatprep.subr.bf16.mxu0 %v14212_v59  ;;  %v6147_v17 = vpack.c.bf16 %v6135_v36, %v6134_v55 }
 0x393   :  { %12745 = vmatpush3.bf16.msra.mxu0 %v14212_v59  ;;  %v14218_v59 = vld [vmem:[#allocation5 + $0x228] sm:$0xff]  }
 0x394   :  { %12762 = vmatprep.subr.bf16.mxu0 %v14213_v58 }
 0x395   :  { %12499 = vmatmul.mubr.bf16.gmra.mrb[84].mxu1 %v4291_v31  ;;  %v14220_v31 = vld [vmem:[#allocation5 + $0x238] sm:$0xff]  }
 0x396   :  { %12747 = vmatmul.mubr.bf16.vlgmr.msra.gmra.mrb[116].mxu0 %v5944_v9  ;;  %12502 = vmatprep.mubr.bf16.mxu1 %v4292_v37  ;;  %v6133_v9 = vld [vmem:[#allocation2 + $0xbe] sm:$0xff]  ;;  %v6130_v37 = vld [vmem:[#allocation2 + $0xa6] sm:$0xff] }
 0x397   :  { %12750 = vmatprep.mubr.bf16.mxu0 %v5945_v14  ;;  %12763 = vmatpush3.bf16.msra.mxu0 %v14213_v58  ;;  %v5942_v58 = vld [vmem:[#allocation2 + $0x10d] sm:$0xff]  ;;  %v6145_v3 = vpack.c.bf16 %v6131_v2, %v6130_v37 }
 0x398   :  { %12764 = vmatprep.subr.bf16.mxu0 %v14214_v29  ;;  %v5950_v27 = vpack.c.bf16 %v5942_v58, %v5941_v26  ;;  %v16176_v26 = vld [vmem:[%s16754_s4 + $0x1] ss:$0 sm:$0xff] }
 0x39b   :  { %12765 = vmatpush3.bf16.msra.mxu0 %v14214_v29  ;;  %v6132_v29 = vld [vmem:[#allocation2 + $0xb6] sm:$0xff] }
 0x39c   :  { %12766 = vmatprep.subr.bf16.mxu0 %v14215_v33  ;;  %v6146_v14 = vpack.c.bf16 %v6133_v9, %v6132_v29 }
 0x39d   :  { %12503 = vmatmul.mubr.bf16.gmra.mrb[88].mxu1 %v4293_v40  ;;  %v6139_v40 = vld [vmem:[#allocation2 + $0xee] sm:$0xff] }
 0x39e   :  { %12751 = vmatmul.mubr.bf16.gmra.mrb[120].mxu0 %v5946_v38  ;;  %12804 = vmatprep.mubr.msk.bf16.mxu1 %vm14475_vm4, %v16162_v50  ;;  %v6141_v38 = vld [vmem:[#allocation2 + $0xfe] sm:$0xff] }
 0x39f   :  { %12767 = vmatpush3.bf16.msra.mxu0 %v14215_v33  ;;  %12754 = vmatprep.mubr.bf16.mxu0 %v5947_v44  ;;  %v6137_v33 = vld [vmem:[#allocation2 + $0xde] sm:$0xff]  ;;  %v6140_v44 = vld [vmem:[#allocation2 + $0xf6] sm:$0xff] }
 0x3a0   :  { %12768 = vmatprep.subr.bf16.mxu0 %v14216_v13  ;;  %v6148_v46 = vpack.c.bf16 %v6137_v33, %v6136_v24  ;;  %v6150_v5 = vpack.c.bf16 %v6141_v38, %v6140_v44 }
 0x3a3   :  { %12769 = vmatpush3.bf16.msra.mxu0 %v14216_v13  ;;  %v6149_v13 = vpack.c.bf16 %v6139_v40, %v6138_v23 }
 0x3a4   :  { %12770 = vmatprep.subr.bf16.mxu0 %v14217_v48 }
 0x3a6   :  { %12755 = vmatmul.mubr.bf16.gmra.mrb[124].mxu0 %v5948_v62  ;;  %v14228_v62 = vld [vmem:[#allocation5 + $0x288] sm:$0xff]  }
 0x3a7   :  { %12771 = vmatpush3.bf16.msra.mxu0 %v14217_v48  ;;  %12758 = vmatprep.mubr.bf16.mxu0 %v5949_v12  ;;  %v6143_v48 = vld [vmem:[#allocation2 + $0x10e] sm:$0xff]  ;;  %v16171_v12 = vld [vmem:[%s16753_s3 + $0x1] ss:$0 sm:$0xff] }
 0x3a8   :  { %12772 = vmatprep.subr.bf16.mxu0 %v14218_v59  ;;  %v6151_v20 = vpack.c.bf16 %v6143_v48, %v6142_v39 }
 0x3ab   :  { %12773 = vmatpush3.bf16.msra.mxu0 %v14218_v59 }
 0x3ac   :  { %12774 = vmatprep.subr.bf16.mxu0 %v14219_v53 }
 0x3ae   :  { %12759 = vmatmul.mubr.bf16.gmra.mrb[128].mxu0 %v5950_v27 }
 0x3af   :  { %12775 = vmatpush3.bf16.msra.mxu0 %v14219_v53  ;;  %12778 = vmatprep.mubr.bf16.mxu0 %v6144_v1 }
 0x3b0   :  { %12776 = vmatprep.subr.bf16.mxu0 %v14220_v31 }
 0x3b3   :  { %12777 = vmatpush3.bf16.msra.mxu0 %v14220_v31 }
 0x3b4   :  { %12838 = vmatprep.subr.bf16.mxu0 %v14227_v18 }
 0x3b6   :  { %12779 = vmatmul.mubr.bf16.vlgmr.msra.gmra.mrb[116].mxu0 %v6145_v3 }
 0x3b7   :  { %12782 = vmatprep.mubr.bf16.mxu0 %v6146_v14  ;;  %12839 = vmatpush3.bf16.msra.mxu0 %v14227_v18 }
 0x3b8   :  { %12840 = vmatprep.subr.bf16.mxu0 %v14228_v62 }
 0x3bb   :  { %12841 = vmatpush3.bf16.msra.mxu0 %v14228_v62 }
 0x3be   :  { %12783 = vmatmul.mubr.bf16.gmra.mrb[120].mxu0 %v6147_v17 }
 0x3bf   :  { %12786 = vmatprep.mubr.bf16.mxu0 %v6148_v46 }
 0x3c6   :  { %12787 = vmatmul.mubr.bf16.gmra.mrb[124].mxu0 %v6149_v13 }
 0x3c7   :  { %12790 = vmatprep.mubr.bf16.mxu0 %v6150_v5 }
 0x3ce   :  { %12791 = vmatmul.mubr.bf16.gmra.mrb[128].mxu0 %v6151_v20 }
 0x458   :  { %v12492_v59 = vpop.f32.mrb[76].mxu1 }
 0x459   :  { %v4482_v58 = vmul.f32 %v12492_v59, %v16171_v12  ;;  %v4393_v53 = vpop.f32.mrb[77].mxu1 }
 0x45a   :  { %v4480_v27 = vmul.f32 %v16171_v12, %v4393_v53  ;;  %v12493_v7 = vpop.f32.mrb[78].mxu1 }
 0x45b   :  { %v16181_v43 = vadd.f32 %v16176_v26, %v4482_v58  ;;  %v4483_v31 = vmul.f32 %v12493_v7, %v16171_v12  ;;  %v4396_v1 = vpop.f32.mrb[79].mxu1 }
 0x45c   :  { %v4504_v2 = vadd.f32 %v16176_v26, %v4480_v27  ;;  %v4481_v9 = vmul.f32 %v16171_v12, %v4396_v1 }
 0x45d   :  { %v4522_v37 = vmax.f32 %v16181_v43, 0.0  ;;  %v16188_v3 = vadd.f32 %v16176_v26, %v4483_v31 }
 0x45e   :  { %v4520_v29 = vmax.f32 %v4504_v2, 0.0  ;;  %v4505_v14 = vadd.f32 %v16176_v26, %v4481_v9 }
 0x45f   :  { %4538 = vst [vmem:[#allocation3 + $0x10] sm:$0xff] %v4522_v37  ;;  %v4523_v24 = vmax.f32 %v16188_v3, 0.0 }
 0x460   :  { %4536 = vst [vmem:[#allocation3] sm:$0xff] %v4520_v29  ;;  %v4521_v33 = vmax.f32 %v4505_v14, 0.0  ;;  %v12496_v55 = vpop.f32.mrb[80].mxu1 }
 0x461   :  { %4539 = vst [vmem:[#allocation3 + $0x18] sm:$0xff] %v4523_v24  ;;  %v4486_v36 = vmul.f32 %v12496_v55, %v16171_v12  ;;  %v4409_v46 = vpop.f32.mrb[81].mxu1 }
 0x462   :  { %4537 = vst [vmem:[#allocation3 + $0x8] sm:$0xff] %v4521_v33  ;;  %v4484_v17 = vmul.f32 %v16171_v12, %v4409_v46  ;;  %v12497_v23 = vpop.f32.mrb[82].mxu1 }
 0x463   :  { %v16199_v40 = vadd.f32 %v16176_v26, %v4486_v36  ;;  %v4487_v44 = vmul.f32 %v12497_v23, %v16171_v12  ;;  %v4412_v38 = vpop.f32.mrb[83].mxu1 }
 0x464   :  { %v4508_v13 = vadd.f32 %v16176_v26, %v4484_v17  ;;  %v4485_v5 = vmul.f32 %v16171_v12, %v4412_v38 }
 0x465   :  { %v4526_v39 = vmax.f32 %v16199_v40, 0.0  ;;  %v16206_v48 = vadd.f32 %v16176_v26, %v4487_v44 }
 0x466   :  { %v4524_v20 = vmax.f32 %v4508_v13, 0.0  ;;  %v4509_v18 = vadd.f32 %v16176_v26, %v4485_v5 }
 0x467   :  { %4542 = vst [vmem:[#allocation3 + $0x30] sm:$0xff] %v4526_v39  ;;  %v4527_v62 = vmax.f32 %v16206_v48, 0.0 }
 0x468   :  { %4540 = vst [vmem:[#allocation3 + $0x20] sm:$0xff] %v4524_v20  ;;  %v4525_v59 = vmax.f32 %v4509_v18, 0.0  ;;  %v12500_v58 = vpop.f32.mrb[84].mxu1  ;;  %v6435_v53 = vld [vmem:[#allocation3 + $0x12] sm:$0xff] }
 0x469   :  { %v6444_v27 = vld [vmem:[#allocation3 + $0x13] sm:$0xff]  ;;  %4543 = vst [vmem:[#allocation3 + $0x38] sm:$0xff] %v4527_v62  ;;  %v4425_v7 = vpop.f32.mrb[85].mxu1  ;;  %v6416_v31 = vld [vmem:[#allocation3 + $0x1] sm:$0xff]  ;;  %v6417_v1 = vld [vmem:[#allocation3 + $0x9] sm:$0xff] }
 0x46a   :  { %v6434_v2 = vld [vmem:[#allocation3 + $0xa] sm:$0xff]  ;;  %v6453_v9 = vmax.f32 %v6435_v53, %v6444_v27  ;;  %4541 = vst [vmem:[#allocation3 + $0x28] sm:$0xff] %v4525_v59  ;;  %v4488_v14 = vmul.f32 %v16171_v12, %v4425_v7  ;;  %v12501_v55 = vpop.f32.mrb[86].mxu1  ;;  %v6425_v36 = vmax.f32 %v4520_v29, %v6416_v31  ;;  %v6426_v46 = vmax.f32 %v4521_v33, %v6417_v1 }
 0x46b   :  { %v6443_v17 = vld [vmem:[#allocation3 + $0xb] sm:$0xff]  ;;  %v4428_v23 = vpop.f32.mrb[87].mxu1 }
 0x46c   :  { %v6452_v44 = vmax.f32 %v6434_v2, %v6443_v17  ;;  %v4512_v38 = vadd.f32 %v16176_v26, %v4488_v14  ;;  %v4489_v13 = vmul.f32 %v16171_v12, %v4428_v23  ;;  %v6462_v5 = vmax.f32 %v6426_v46, %v6453_v9  ;;  %v6418_v16 = vld [vmem:[#allocation3 + $0x11] sm:$0xff] }
 0x46d   :  { %v6427_v9 = vmax.f32 %v4522_v37, %v6418_v16 }
 0x46e   :  { %v6461_v18 = vmax.f32 %v6425_v36, %v6452_v44  ;;  %v4528_v58 = vmax.f32 %v4512_v38, 0.0  ;;  %v4513_v45 = vadd.f32 %v16176_v26, %v4489_v13 }
 0x46f   :  { %v6419_v27 = vld [vmem:[#allocation3 + $0x19] sm:$0xff] }
 0x470   :  { %v6475_v53 = vpack.c.bf16 %v6462_v5, %v6461_v18  ;;  %v6436_v32 = vld [vmem:[#allocation3 + $0x1a] sm:$0xff]  ;;  %4544 = vst [vmem:[#allocation3 + $0x40] sm:$0xff] %v4528_v58  ;;  %v4529_v29 = vmax.f32 %v4513_v45, 0.0  ;;  %v12504_v33 = vpop.f32.mrb[88].mxu1  ;;  %v6439_v1 = vld [vmem:[#allocation3 + $0x32] sm:$0xff] }
 0x471   :  { %v6445_v7 = vld [vmem:[#allocation3 + $0x1b] sm:$0xff]  ;;  %v6448_v2 = vld [vmem:[#allocation3 + $0x33] sm:$0xff]  ;;  %v4494_v14 = vmul.f32 %v12504_v33, %v16171_v12  ;;  %v4441_v55 = vpop.f32.mrb[89].mxu1  ;;  %v6446_v46 = vld [vmem:[#allocation3 + $0x23] sm:$0xff] }
 0x472   :  { %v6454_v31 = vmax.f32 %v6436_v32, %v6445_v7  ;;  %12795 = vmatpush3.bf16.msra.mxu1 %v6475_v53  ;;  %v6437_v36 = vld [vmem:[#allocation3 + $0x22] sm:$0xff]  ;;  %v6457_v23 = vmax.f32 %v6439_v1, %v6448_v2  ;;  %4545 = vst [vmem:[#allocation3 + $0x48] sm:$0xff] %v4529_v29  ;;  %v4492_v44 = vmul.f32 %v16171_v12, %v4441_v55  ;;  %v12505_v38 = vpop.f32.mrb[90].mxu1  ;;  %v6438_v18 = vld [vmem:[#allocation3 + $0x2a] sm:$0xff] }
 0x473   :  { %v6420_v17 = vld [vmem:[#allocation3 + $0x21] sm:$0xff]  ;;  %12796 = vmatprep.subr.bf16.mxu1 %v16162_v50  ;;  %v6428_v32 = vmax.f32 %v4523_v24, %v6419_v27  ;;  %v6455_v45 = vmax.f32 %v6437_v36, %v6446_v46  ;;  %v6421_v13 = vld [vmem:[#allocation3 + $0x29] sm:$0xff]  ;;  %v4518_v16 = vadd.f32 %v16176_v26, %v4494_v14  ;;  %v4495_v43 = vmul.f32 %v12505_v38, %v16171_v12  ;;  %v4444_v37 = vpop.f32.mrb[91].mxu1  ;;  %v6422_v46 = vld [vmem:[#allocation3 + $0x31] sm:$0xff] }
 0x474   :  { %v6429_v5 = vmax.f32 %v4524_v20, %v6420_v17  ;;  %v6447_v58 = vld [vmem:[#allocation3 + $0x2b] sm:$0xff]  ;;  %v6430_v53 = vmax.f32 %v4525_v59, %v6421_v13  ;;  %v4516_v29 = vadd.f32 %v16176_v26, %v4492_v44  ;;  %v4493_v33 = vmul.f32 %v16171_v12, %v4444_v37 }
 0x475   :  { %v6456_v7 = vmax.f32 %v6438_v18, %v6447_v58  ;;  %v6463_v1 = vmax.f32 %v6427_v9, %v6454_v31  ;;  %v6464_v2 = vmax.f32 %v6428_v32, %v6455_v45  ;;  %v4534_v3 = vmax.f32 %v4518_v16, 0.0 }
 0x476   :  { %v4519_v24 = vadd.f32 %v16176_v26, %v4495_v43  ;;  %v6466_v20 = vmax.f32 %v6430_v53, %v6457_v23  ;;  %v4532_v55 = vmax.f32 %v4516_v29, 0.0  ;;  %v4517_v36 = vadd.f32 %v16176_v26, %v4493_v33 }
 0x477   :  { %v6465_v27 = vmax.f32 %v6429_v5, %v6456_v7  ;;  %v6476_v14 = vpack.c.bf16 %v6464_v2, %v6463_v1  ;;  %4550 = vst [vmem:[#allocation3 + $0x70] sm:$0xff] %v4534_v3  ;;  %v6423_v38 = vld [vmem:[#allocation3 + $0x39] sm:$0xff]  ;;  %v6424_v32 = vld [vmem:[#allocation3 + $0x41] sm:$0x7]  ;;  %v6431_v58 = vmax.f32 %v4526_v39, %v6422_v46  ;;  %v16882_v1 = vmov 65535  }
 0x478   :  { %v4535_v17 = vmax.f32 %v4519_v24, 0.0  ;;  %v6440_v13 = vld [vmem:[#allocation3 + $0x3a] sm:$0xff]  ;;  %4548 = vst [vmem:[#allocation3 + $0x60] sm:$0xff] %v4532_v55  ;;  %v4533_v18 = vmax.f32 %v4517_v36, 0.0  ;;  %v6432_v16 = vmax.f32 %v4527_v62, %v6423_v38  ;;  %v6505_v2 = vsel %vm6503_vm5, 4294967295, %v16882_v1 }
 0x479   :  { %v6477_v59 = vpack.c.bf16 %v6466_v20, %v6465_v27  ;;  %v6449_v44 = vld [vmem:[#allocation3 + $0x3b] sm:$0xff]  ;;  %12797 = vmatpush3.bf16.msra.mxu1 %v6476_v14  ;;  %v6450_v45 = vld [vmem:[#allocation3 + $0x43] sm:$0xff]  ;;  %v6451_v37 = vld [vmem:[#allocation3 + $0x4b] sm:$0x7]  ;;  %v16238_v40 = vsel %vm6504_vm6, %v6505_v2, 0 }
 0x47a   :  { %v6458_v31 = vmax.f32 %v6440_v13, %v6449_v44  ;;  %v6415_v9 = vld [vmem:[#allocation3 + $0x40] sm:$0x7]  ;;  %4551 = vst [vmem:[#allocation3 + $0x78] sm:$0xff] %v4535_v17  ;;  %12798 = vmatprep.subr.bf16.mxu1 %v16162_v50  ;;  %v6442_v5 = vld [vmem:[#allocation3 + $0x4a] sm:$0x7]  ;;  %4549 = vst [vmem:[#allocation3 + $0x68] sm:$0xff] %v4533_v18 }
 0x47b   :  { %v6441_v23 = vld [vmem:[#allocation3 + $0x42] sm:$0xff]  ;;  %v6433_v53 = vmax.f32 %v6415_v9, %v6424_v32  ;;  %v6460_v7 = vmax.f32 %v6442_v5, %v6451_v37 }
 0x47c   :  { %v6459_v43 = vmax.f32 %v6441_v23, %v6450_v45  ;;  %v6467_v29 = vmax.f32 %v6431_v58, %v6458_v31  ;;  %v14221_v13 = vld [vmem:[%s16756_s6] sm:$0xff]  }
 0x47d   :  { %12799 = vmatpush3.bf16.msra.mxu1 %v6477_v59  ;;  %v6469_v3 = vmax.f32 %v6433_v53, %v6460_v7 }
 0x47e   :  { %v6468_v33 = vmax.f32 %v6432_v16, %v6459_v43  ;;  %12800 = vmatprep.subr.bf16.mxu1 %v16162_v50  ;;  %v14222_v43 = vld [vmem:[%s16756_s6 + $0x8] sm:$0xff]  }
 0x47f   :  { %v6479_v27 = vpack.c.bf16 %v6469_v3, %v6469_v3 }
 0x480   :  { %v6478_v24 = vpack.c.bf16 %v6468_v33, %v6467_v29 }
 0x481   :  { %v6599_v39 = vld [vmem:[#allocation3 + $0x76] sm:$0xff]  ;;  %v6571_v62 = vld [vmem:[#allocation3 + $0x64] sm:$0xff]  ;;  %v6572_v20 = vld [vmem:[#allocation3 + $0x6c] sm:$0xff]  ;;  %v6508_v14 = vand.u32 %v16238_v40, %v6479_v27 }
 0x482   :  { %12801 = vmatpush3.bf16.msra.mxu1 %v6478_v24  ;;  %v6608_v48 = vld [vmem:[#allocation3 + $0x77] sm:$0xff]  ;;  %v6580_v55 = vld [vmem:[#allocation3 + $0x65] sm:$0xff]  ;;  %v6581_v46 = vld [vmem:[#allocation3 + $0x6d] sm:$0xff] }
 0x483   :  { %12802 = vmatprep.subr.bf16.mxu1 %v16162_v50  ;;  %v6617_v36 = vmax.f32 %v6599_v39, %v6608_v48  ;;  %v6589_v17 = vmax.f32 %v6571_v62, %v6580_v55  ;;  %v6598_v59 = vld [vmem:[#allocation3 + $0x6e] sm:$0xff]  ;;  %v6590_v44 = vmax.f32 %v6572_v20, %v6581_v46  ;;  %v14223_v46 = vld [vmem:[%s16756_s6 + $0x10] ss:$0 sps:$4 sm:$0x33]  }
 0x484   :  { %v6607_v38 = vld [vmem:[#allocation3 + $0x6f] sm:$0xff] }
 0x485   :  { %v6616_v18 = vmax.f32 %v6598_v59, %v6607_v38  ;;  %v6626_v9 = vmax.f32 %v6590_v44, %v6617_v36 }
 0x486   :  { %12803 = vmatpush3.bf16.msra.mxu1 %v6508_v14 }
 0x487   :  { %12816 = vmatprep.subr.bf16.mxu1 %v16162_v50  ;;  %v6625_v31 = vmax.f32 %v6589_v17, %v6616_v18 }
 0x489   :  { %12805 = vmatmul.mubr.msk.bf16.vlgmr.msra.gmra.mrb[92].mxu1 %vm6493_vm7, %v14221_v13  ;;  %v6639_v32 = vpack.c.bf16 %v6626_v9, %v6625_v31  ;;  %v12780_v23 = vpop.f32.mrb[116].mxu0 }
 0x48a   :  { %12808 = vmatprep.mubr.msk.bf16.mxu1 %vm14475_vm4, %v16162_v50  ;;  %v6338_v45 = vmul.f32 %v12780_v23, %v16171_v12  ;;  %v6250_v5 = vpop.f32.mrb[117].mxu0  ;;  %v6573_v23 = vld [vmem:[#allocation3 + $0x74] sm:$0xff] }
 0x48b   :  { %12817 = vmatpush3.bf16.msra.mxu1 %v6639_v32  ;;  %v6336_v58 = vmul.f32 %v16171_v12, %v6250_v5  ;;  %v12781_v16 = vpop.f32.mrb[118].mxu0 }
 0x48c   :  { %12818 = vmatprep.subr.bf16.mxu1 %v16162_v50  ;;  %v6361_v37 = vadd.f32 %v16176_v26, %v6338_v45  ;;  %v6339_v53 = vmul.f32 %v12781_v16, %v16171_v12  ;;  %v6253_v7 = vpop.f32.mrb[119].mxu0  ;;  %v6582_v45 = vld [vmem:[#allocation3 + $0x75] sm:$0xff] }
 0x48d   :  { %v6359_v29 = vadd.f32 %v16176_v26, %v6336_v58  ;;  %v6337_v33 = vmul.f32 %v16171_v12, %v6253_v7 }
 0x48e   :  { %v6377_v2 = vmax.f32 %v6361_v37, 0.0  ;;  %v6362_v3 = vadd.f32 %v16176_v26, %v6339_v53 }
 0x48f   :  { %v6375_v24 = vmax.f32 %v6359_v29, 0.0  ;;  %v6360_v27 = vadd.f32 %v16176_v26, %v6337_v33 }
 0x490   :  { %6393 = vst [vmem:[#allocation3 + $0x90] sm:$0xff] %v6377_v2  ;;  %v6378_v39 = vmax.f32 %v6362_v3, 0.0 }
 0x491   :  { %12809 = vmatmul.mubr.msk.bf16.gmra.mrb[96].mxu1 %vm6493_vm7, %v14222_v43  ;;  %6391 = vst [vmem:[#allocation3 + $0x80] sm:$0xff] %v6375_v24  ;;  %v6376_v48 = vmax.f32 %v6360_v27, 0.0  ;;  %v12784_v62 = vpop.f32.mrb[120].mxu0  ;;  %v6591_v24 = vmax.f32 %v6573_v23, %v6582_v45 }
 0x492   :  { %12812 = vmatprep.mubr.msk.bf16.mxu1 %vm14475_vm4, %v16162_v50  ;;  %6394 = vst [vmem:[#allocation3 + $0x98] sm:$0xff] %v6378_v39  ;;  %v6342_v20 = vmul.f32 %v12784_v62, %v16171_v12  ;;  %v6266_v55 = vpop.f32.mrb[121].mxu0 }
 0x493   :  { %6392 = vst [vmem:[#allocation3 + $0x88] sm:$0xff] %v6376_v48  ;;  %v6340_v36 = vmul.f32 %v16171_v12, %v6266_v55  ;;  %v12785_v14 = vpop.f32.mrb[122].mxu0 }
 0x494   :  { %v6365_v17 = vadd.f32 %v16176_v26, %v6342_v20  ;;  %v6343_v59 = vmul.f32 %v12785_v14, %v16171_v12  ;;  %v6269_v38 = vpop.f32.mrb[123].mxu0 }
 0x495   :  { %v6363_v13 = vadd.f32 %v16176_v26, %v6340_v36  ;;  %v6341_v44 = vmul.f32 %v16171_v12, %v6269_v38 }
 0x496   :  { %v6381_v18 = vmax.f32 %v6365_v17, 0.0  ;;  %v6366_v31 = vadd.f32 %v16176_v26, %v6343_v59 }
 0x497   :  { %v6379_v9 = vmax.f32 %v6363_v13, 0.0  ;;  %v6364_v32 = vadd.f32 %v16176_v26, %v6341_v44 }
 0x498   :  { %6397 = vst [vmem:[#allocation3 + $0xb0] sm:$0xff] %v6381_v18  ;;  %v6382_v5 = vmax.f32 %v6366_v31, 0.0  ;;  %v6574_v58 = vld [vmem:[#allocation3 + $0x7c] sm:$0xff] }
 0x499   :  { %12813 = vmatmul.mubr.msk.bf16.gmra.mrb[100].mxu1 %vm6493_vm7, %v14223_v46  ;;  %v6583_v16 = vld [vmem:[#allocation3 + $0x7d] sm:$0xff]  ;;  %6395 = vst [vmem:[#allocation3 + $0xa0] sm:$0xff] %v6379_v9  ;;  %v6380_v37 = vmax.f32 %v6364_v32, 0.0  ;;  %v12788_v53 = vpop.f32.mrb[124].mxu0 }
 0x49a   :  { %v6600_v43 = vld [vmem:[#allocation3 + $0x7e] sm:$0xff]  ;;  %12826 = vmatprep.mubr.msk.bf16.mxu1 %vm14475_vm4, %v16162_v50  ;;  %v6603_v29 = vld [vmem:[#allocation3 + $0x96] sm:$0xff]  ;;  %6398 = vst [vmem:[#allocation3 + $0xb8] sm:$0xff] %v6382_v5  ;;  %v6346_v2 = vmul.f32 %v12788_v53, %v16171_v12  ;;  %v6282_v3 = vpop.f32.mrb[125].mxu0  ;;  %v6601_v27 = vld [vmem:[#allocation3 + $0x86] sm:$0xff]  ;;  %v6592_v36 = vmax.f32 %v6574_v58, %v6583_v16 }
 0x49b   :  { %v6609_v7 = vld [vmem:[#allocation3 + $0x7f] sm:$0xff]  ;;  %v6612_v33 = vld [vmem:[#allocation3 + $0x97] sm:$0xff]  ;;  %v6610_v39 = vld [vmem:[#allocation3 + $0x87] sm:$0xff]  ;;  %6396 = vst [vmem:[#allocation3 + $0xa8] sm:$0xff] %v6380_v37  ;;  %v6344_v20 = vmul.f32 %v16171_v12, %v6282_v3  ;;  %v12789_v55 = vpop.f32.mrb[126].mxu0 }
 0x49c   :  { %v6618_v48 = vmax.f32 %v6600_v43, %v6609_v7  ;;  %v6575_v62 = vld [vmem:[#allocation3 + $0x84] sm:$0xff]  ;;  %v6619_v14 = vmax.f32 %v6601_v27, %v6610_v39  ;;  %v6576_v46 = vld [vmem:[#allocation3 + $0x8c] sm:$0xff]  ;;  %v6621_v38 = vmax.f32 %v6603_v29, %v6612_v33  ;;  %v6369_v13 = vadd.f32 %v16176_v26, %v6346_v2  ;;  %v6285_v18 = vpop.f32.mrb[127].mxu0  ;;  %v6577_v3 = vld [vmem:[#allocation3 + $0x94] sm:$0xff] }
 0x49d   :  { %v6584_v17 = vld [vmem:[#allocation3 + $0x85] sm:$0xff]  ;;  %v6585_v59 = vld [vmem:[#allocation3 + $0x8d] sm:$0xff]  ;;  %v6347_v44 = vmul.f32 %v12789_v55, %v16171_v12  ;;  %v6367_v45 = vadd.f32 %v16176_v26, %v6344_v20  ;;  %v6345_v5 = vmul.f32 %v16171_v12, %v6285_v18 }
 0x49e   :  { %v6627_v31 = vmax.f32 %v6591_v24, %v6618_v48  ;;  %v6593_v9 = vmax.f32 %v6575_v62, %v6584_v17  ;;  %v6602_v32 = vld [vmem:[#allocation3 + $0x8e] sm:$0xff]  ;;  %v6628_v43 = vmax.f32 %v6592_v36, %v6619_v14  ;;  %v6594_v58 = vmax.f32 %v6576_v46, %v6585_v59 }
 0x49f   :  { %v6611_v23 = vld [vmem:[#allocation3 + $0x8f] sm:$0xff]  ;;  %v6385_v16 = vmax.f32 %v6369_v13, 0.0  ;;  %v6370_v37 = vadd.f32 %v16176_v26, %v6347_v44  ;;  %v6383_v7 = vmax.f32 %v6367_v45, 0.0  ;;  %v6368_v29 = vadd.f32 %v16176_v26, %v6345_v5 }
 0x4a0   :  { %v6620_v53 = vmax.f32 %v6602_v32, %v6611_v23  ;;  %v6640_v33 = vpack.c.bf16 %v6628_v43, %v6627_v31  ;;  %v6630_v2 = vmax.f32 %v6594_v58, %v6621_v38  ;;  %v6586_v24 = vld [vmem:[#allocation3 + $0x95] sm:$0xff]  ;;  %v6587_v62 = vld [vmem:[#allocation3 + $0x9d] sm:$0xff]  ;;  %v6588_v31 = vld [vmem:[#allocation3 + $0xa5] sm:$0x7] }
 0x4a1   :  { %6401 = vst [vmem:[#allocation3 + $0xd0] sm:$0xff] %v6385_v16  ;;  %v6386_v27 = vmax.f32 %v6370_v37, 0.0  ;;  %v6578_v48 = vld [vmem:[#allocation3 + $0x9c] sm:$0xff]  ;;  %6399 = vst [vmem:[#allocation3 + $0xc0] sm:$0xff] %v6383_v7  ;;  %v6384_v55 = vmax.f32 %v6368_v29, 0.0  ;;  %v12792_v36 = vpop.f32.mrb[128].mxu0  ;;  %v6595_v38 = vmax.f32 %v6577_v3, %v6586_v24 }
 0x4a2   :  { %v6629_v39 = vmax.f32 %v6593_v9, %v6620_v53  ;;  %v6604_v20 = vld [vmem:[#allocation3 + $0x9e] sm:$0xff]  ;;  %12819 = vmatpush3.bf16.msra.mxu1 %v6640_v33  ;;  %v6350_v17 = vmul.f32 %v12792_v36, %v16171_v12  ;;  %v6298_v59 = vpop.f32.mrb[129].mxu0  ;;  %v6605_v13 = vld [vmem:[#allocation3 + $0xa6] sm:$0xff]  ;;  %v6596_v45 = vmax.f32 %v6578_v48, %v6587_v62  ;;  %v6606_v43 = vld [vmem:[#allocation3 + $0xae] sm:$0x7] }
 0x4a3   :  { %v6613_v14 = vld [vmem:[#allocation3 + $0x9f] sm:$0xff]  ;;  %6402 = vst [vmem:[#allocation3 + $0xd8] sm:$0xff] %v6386_v27  ;;  %12820 = vmatprep.subr.bf16.mxu1 %v16162_v50  ;;  %v6614_v44 = vld [vmem:[#allocation3 + $0xa7] sm:$0xff]  ;;  %6400 = vst [vmem:[#allocation3 + $0xc8] sm:$0xff] %v6384_v55  ;;  %v6348_v9 = vmul.f32 %v16171_v12, %v6298_v59  ;;  %v12793_v32 = vpop.f32.mrb[130].mxu0 }
 0x4a4   :  { %v6579_v46 = vld [vmem:[#allocation3 + $0xa4] sm:$0x7]  ;;  %v6622_v18 = vmax.f32 %v6604_v20, %v6613_v14  ;;  %v6641_v23 = vpack.c.bf16 %v6630_v2, %v6629_v39  ;;  %v6623_v5 = vmax.f32 %v6605_v13, %v6614_v44  ;;  %v6615_v58 = vld [vmem:[#allocation3 + $0xaf] sm:$0x7]  ;;  %v6373_v16 = vadd.f32 %v16176_v26, %v6350_v17  ;;  %v6301_v53 = vpop.f32.mrb[131].mxu0  ;;  %v14229_v59 = vld [vmem:[#allocation5 + $0x290] sm:$0xff]  }
 0x4a5   :  { %v6351_v37 = vmul.f32 %v12793_v32, %v16171_v12  ;;  %v6597_v7 = vmax.f32 %v6579_v46, %v6588_v31  ;;  %v6624_v29 = vmax.f32 %v6606_v43, %v6615_v58  ;;  %v6371_v33 = vadd.f32 %v16176_v26, %v6348_v9  ;;  %v14224_v17 = vld [vmem:[%s16756_s6] sm:$0xff]   ;;  %12842 = vmatprep.subr.bf16.mxu0 %v14229_v59  ;;  %v14234_v31 = vld [vmem:[#allocation5 + $0x2b8] sm:$0xff]  }
 0x4a6   :  { %v6349_v3 = vmul.f32 %v16171_v12, %v6301_v53  ;;  %12821 = vmatpush3.bf16.msra.mxu1 %v6641_v23  ;;  %v6631_v24 = vmax.f32 %v6595_v38, %v6622_v18  ;;  %v6632_v27 = vmax.f32 %v6596_v45, %v6623_v5  ;;  %v6389_v20 = vmax.f32 %v6373_v16, 0.0  ;;  %12843 = vmatpush3.bf16.msra.mxu0 %v14229_v59  ;;  %v14230_v38 = vld [vmem:[#allocation5 + $0x298] sm:$0xff]   ;;  %v14231_v13 = vld [vmem:[#allocation5 + $0x2a0] sm:$0xff]   ;;  %v14232_v44 = vld [vmem:[#allocation5 + $0x2a8] sm:$0xff]  }
 0x4a7   :  { %v6374_v2 = vadd.f32 %v16176_v26, %v6351_v37  ;;  %12822 = vmatprep.subr.bf16.mxu1 %v16162_v50  ;;  %v6633_v39 = vmax.f32 %v6597_v7, %v6624_v29  ;;  %v6387_v48 = vmax.f32 %v6371_v33, 0.0  ;;  %12844 = vmatprep.subr.bf16.mxu0 %v14230_v38  ;;  %v14233_v18 = vld [vmem:[#allocation5 + $0x2b0] sm:$0xff]   ;;  %v14235_v9 = vld [vmem:[#allocation5 + $0x240] sm:$0xff]  }
 0x4a8   :  { %v6372_v62 = vadd.f32 %v16176_v26, %v6349_v3  ;;  %v6642_v55 = vpack.c.bf16 %v6632_v27, %v6631_v24  ;;  %6405 = vst [vmem:[#allocation3 + $0xf0] sm:$0xff] %v6389_v20  ;;  %v14225_v26 = vld [vmem:[%s16756_s6 + $0x8] sm:$0xff]  }
 0x4a9   :  { %v6390_v36 = vmax.f32 %v6374_v2, 0.0  ;;  %v6643_v14 = vpack.c.bf16 %v6633_v39, %v6633_v39  ;;  %6403 = vst [vmem:[#allocation3 + $0xe0] sm:$0xff] %v6387_v48 }
 0x4aa   :  { %v6388_v46 = vmax.f32 %v6372_v62, 0.0  ;;  %12823 = vmatpush3.bf16.msra.mxu1 %v6642_v55  ;;  %12845 = vmatpush3.bf16.msra.mxu0 %v14230_v38  ;;  %v14236_v55 = vld [vmem:[#allocation5 + $0x248] sm:$0xff]   ;;  %v14241_v38 = vld [vmem:[#allocation5 + $0x270] sm:$0xff]  }
 0x4ab   :  { %6406 = vst [vmem:[#allocation3 + $0xf8] sm:$0xff] %v6390_v36  ;;  %12824 = vmatprep.subr.bf16.mxu1 %v16162_v50  ;;  %v6667_v12 = vand.u32 %v6643_v14, %v16238_v40  ;;  %v14226_v40 = vld [vmem:[%s16756_s6 + $0x10] ss:$0 sps:$4 sm:$0x33]   ;;  %12846 = vmatprep.subr.bf16.mxu0 %v14231_v13  ;;  %v14238_v14 = vld [vmem:[#allocation5 + $0x258] sm:$0xff]  }
 0x4ac   :  { %6404 = vst [vmem:[#allocation3 + $0xe8] sm:$0xff] %v6388_v46  ;;  %v14237_v36 = vld [vmem:[#allocation5 + $0x250] sm:$0xff]   ;;  %v14239_v46 = vld [vmem:[#allocation5 + $0x260] sm:$0xff]  }
 0x4ae   :  { %12825 = vmatpush3.bf16.msra.mxu1 %v6667_v12  ;;  %12847 = vmatpush3.bf16.msra.mxu0 %v14231_v13 }
 0x4af   :  { %13126 = vmatprep.subr.bf16.mxu1 %v16162_v50  ;;  %12848 = vmatprep.subr.bf16.mxu0 %v14232_v44 }
 0x4b1   :  { %12827 = vmatmul.mubr.msk.bf16.vlgmr.msra.gmra.mrb[104].mxu1 %vm6493_vm7, %v14224_v17  ;;  %v14240_v17 = vld [vmem:[#allocation5 + $0x268] sm:$0xff]  }
 0x4b2   :  { %12830 = vmatprep.mubr.msk.bf16.mxu1 %vm14475_vm4, %v16162_v50  ;;  %12849 = vmatpush3.bf16.msra.mxu0 %v14232_v44  ;;  %v14242_v44 = vld [vmem:[#allocation5 + $0x278] sm:$0xff]  }
 0x4b3   :  { %12850 = vmatprep.subr.bf16.mxu0 %v14233_v18 }
 0x4b6   :  { %12851 = vmatpush3.bf16.msra.mxu0 %v14233_v18 }
 0x4b7   :  { %12852 = vmatprep.subr.bf16.mxu0 %v14234_v31 }
 0x4b9   :  { %12831 = vmatmul.mubr.msk.bf16.gmra.mrb[108].mxu1 %vm6493_vm7, %v14225_v26 }
 0x4ba   :  { %12834 = vmatprep.mubr.msk.bf16.mxu1 %vm14475_vm4, %v16162_v50  ;;  %12853 = vmatpush3.bf16.msra.mxu0 %v14234_v31 }
 0x4bb   :  { %12870 = vmatprep.subr.bf16.mxu0 %v14235_v9 }
 0x4c1   :  { %12835 = vmatmul.mubr.msk.bf16.gmra.mrb[112].mxu1 %vm6493_vm7, %v14226_v40 }
 0x4c2   :  { %13128 = vmatprep.mubr.msk.bf16.mxu1 %vm14475_vm4, %v16162_v50 }
 0x55c   :  { %v16317_v50 = vpop.f32.mrb[92].mxu1 }
 0x55d   :  { %6566 = vst [vmem:[#allocation2] sm:$0xff] %v16317_v50  ;;  %v12806_v32 = vpop.f32.mrb[93].mxu1 }
 0x55e   :  { %v16320_v23 = vpop.f32.mrb[94].mxu1 }
 0x55f   :  { %6567 = vst [vmem:[#allocation2 + $0x8] sm:$0xff] %v16320_v23  ;;  %v12807_v45 = vpop.f32.mrb[95].mxu1  ;;  %v6746_v5 = vpack.c.bf16 %v16320_v23, %v16317_v50  ;;  %v16427_v50 = vld [vmem:[#allocation2 + $0x48] sm:$0xff] }
 0x564   :  { %v16325_v43 = vpop.f32.mrb[96].mxu1 }
 0x565   :  { %6568 = vst [vmem:[#allocation2 + $0x10] sm:$0xff] %v16325_v43  ;;  %v12810_v58 = vpop.f32.mrb[97].mxu1 }
 0x566   :  { %v16330_v37 = vpop.f32.mrb[98].mxu1  ;;  %v6771_v29 = vld [vmem:[#allocation2 + $0x1] sm:$0xff] }
 0x567   :  { %6569 = vst [vmem:[#allocation2 + $0x18] sm:$0xff] %v16330_v37  ;;  %v12811_v53 = vpop.f32.mrb[99].mxu1  ;;  %v6747_v7 = vpack.c.bf16 %v16330_v37, %v16325_v43 }
 0x56c   :  { %v6560_v33 = vpop.f32.mrb[100].mxu1  ;;  %v6772_v3 = vld [vmem:[#allocation2 + $0x9] sm:$0xff] }
 0x56d   :  { %6570 = vst [vmem:[#allocation2 + $0x20] sm:$0xf] %v6560_v33  ;;  %v6787_v24 = vpack.c.bf16 %v6772_v3, %v6771_v29  ;;  %v12814_v27 = vpop.f32.mrb[101].mxu1  ;;  %v16353_v3 = vld [vmem:[#allocation5 + $0x2c0] sm:$0xff]  }
 0x56e   :  { %v6563_v20 = vpop.f32.mrb[102].mxu1  ;;  %v6773_v39 = vld [vmem:[#allocation2 + $0x11] sm:$0xff] }
 0x56f   :  { %12854 = vmatprep.mubr.bf16.mxu0 %v6787_v24  ;;  %v12815_v2 = vpop.f32.mrb[103].mxu1 }
 0x574   :  { %v6774_v48 = vld [vmem:[#allocation2 + $0x19] sm:$0xff] }
 0x575   :  { %v6788_v62 = vpack.c.bf16 %v6774_v48, %v6773_v39 }
 0x577   :  { %12855 = vmatmul.mubr.bf16.vlgmr.msra.gmra.mrb[132].mxu0 %v6788_v62 }
 0x578   :  { %12871 = vmatpush3.bf16.msra.mxu0 %v14235_v9  ;;  %v7103_v9 = vld [vmem:[#allocation2 + $0xa] sm:$0xff] }
 0x579   :  { %12872 = vmatprep.subr.bf16.mxu0 %v14236_v55 }
 0x57c   :  { %12873 = vmatpush3.bf16.msra.mxu0 %v14236_v55 }
 0x57d   :  { %12874 = vmatprep.subr.bf16.mxu0 %v14237_v36 }
 0x580   :  { %12875 = vmatpush3.bf16.msra.mxu0 %v14237_v36 }
 0x581   :  { %12876 = vmatprep.subr.bf16.mxu0 %v14238_v14 }
 0x584   :  { %12877 = vmatpush3.bf16.msra.mxu0 %v14238_v14  ;;  %v16335_v12 = vpop.f32.mrb[104].mxu1 }
 0x585   :  { %12878 = vmatprep.subr.bf16.mxu0 %v14239_v46  ;;  %6725 = vst [vmem:[#allocation2 + $0x24] sm:$0xff] %v16335_v12  ;;  %v12828_v26 = vpop.f32.mrb[105].mxu1 }
 0x586   :  { %v16338_v40 = vpop.f32.mrb[106].mxu1 }
 0x587   :  { %6726 = vst [vmem:[#allocation2 + $0x2c] sm:$0xff] %v16338_v40  ;;  %v12829_v59 = vpop.f32.mrb[107].mxu1 }
 0x588   :  { %12879 = vmatpush3.bf16.msra.mxu0 %v14239_v46 }
 0x589   :  { %12880 = vmatprep.subr.bf16.mxu0 %v14240_v17 }
 0x58c   :  { %12881 = vmatpush3.bf16.msra.mxu0 %v14240_v17  ;;  %v16341_v13 = vpop.f32.mrb[108].mxu1  ;;  %v16343_v18 = vld [vmem:[#allocation2 + $0x20] sm:$0xff] }
 0x58d   :  { %12882 = vmatprep.subr.bf16.mxu0 %v14241_v38  ;;  %6727 = vst [vmem:[#allocation2 + $0x34] sm:$0xff] %v16341_v13  ;;  %v12832_v31 = vpop.f32.mrb[109].mxu1  ;;  %v6775_v58 = vld [vmem:[#allocation2 + $0x21] sm:$0xff] }
 0x58e   :  { %v16350_v45 = vpop.f32.mrb[110].mxu1  ;;  %v6776_v53 = vld [vmem:[#allocation2 + $0x29] sm:$0xff] }
 0x58f   :  { %6728 = vst [vmem:[#allocation2 + $0x3c] sm:$0xff] %v16350_v45  ;;  %v12833_v29 = vpop.f32.mrb[111].mxu1  ;;  %v6789_v33 = vpack.c.bf16 %v6776_v53, %v6775_v58  ;;  %v16356_v27 = vld [vmem:[#allocation2 + $0x28] sm:$0xff] }
 0x590   :  { %12883 = vmatpush3.bf16.msra.mxu0 %v14241_v38  ;;  %v16366_v26 = vld [vmem:[#allocation2 + $0x29] sm:$0xff] }
 0x591   :  { %12884 = vmatprep.subr.bf16.mxu0 %v14242_v44  ;;  %12858 = vmatprep.mubr.bf16.mxu0 %v6789_v33  ;;  %v16376_v58 = vld [vmem:[#allocation2 + $0x2a] sm:$0xff]  ;;  %v7106_v56 = vld [vmem:[#allocation2 + $0x22] sm:$0xff] }
 0x592   :  { %16883 = vst [vmem:[#allocation18_spill] sm:$0xff] %v16376_v58  ;;  %v6781_v33 = vld [vmem:[#allocation2 + $0x51] sm:$0xff]  ;;  %v7510_v61 = vld [vmem:[#allocation2 + $0x27] sm:$0xff] }
 0x594   :  { %12885 = vmatpush3.bf16.msra.mxu0 %v14242_v44  ;;  %v6719_v24 = vpop.f32.mrb[112].mxu1  ;;  %v16358_v20 = vld [vmem:[#allocation2 + $0x30] sm:$0xff]  ;;  %v16372_v44 = vld [vmem:[#allocation2 + $0x28] sm:$0xff] }
 0x595   :  { %12902 = vmatprep.subr.bf16.mxu0 %v16353_v3  ;;  %6729 = vst [vmem:[#allocation2 + $0x44] sm:$0xf] %v6719_v24  ;;  %v12836_v2 = vpop.f32.mrb[113].mxu1  ;;  %v6777_v62 = vld [vmem:[#allocation2 + $0x31] sm:$0xff] }
 0x596   :  { %v6722_v48 = vpop.f32.mrb[114].mxu1  ;;  %v6778_v55 = vld [vmem:[#allocation2 + $0x39] sm:$0xff]  ;;  %v16362_v46 = vld [vmem:[#allocation2 + $0x2e] sm:$0xff] }
 0x597   :  { %v12837_v36 = vpop.f32.mrb[115].mxu1  ;;  %v6790_v14 = vpack.c.bf16 %v6778_v55, %v6777_v62  ;;  %v16364_v17 = vld [vmem:[#allocation2 + $0x36] sm:$0xff]  ;;  %v6780_v2 = vld [vmem:[#allocation2 + $0x49] sm:$0xff] }
 0x598   :  { %v16370_v38 = vld [vmem:[#allocation2 + $0x31] sm:$0xff]  ;;  %v6782_v48 = vld [vmem:[#allocation2 + $0x59] sm:$0xff] }
 0x599   :  { %v16374_v31 = vld [vmem:[#allocation2 + $0x30] sm:$0xff]  ;;  %12859 = vmatmul.mubr.bf16.gmra.mrb[136].mxu0 %v6790_v14  ;;  %v16386_v55 = vld [vmem:[#allocation2 + $0x38] sm:$0xff]  ;;  %v6792_v8 = vpack.c.bf16 %v6782_v48, %v6781_v33  ;;  %v14389_v48 = vld [vmem:[#allocation2 + $0x60] sm:$0xff] }
 0x59a   :  { %v16378_v53 = vld [vmem:[#allocation2 + $0x32] sm:$0xff]  ;;  %v16410_v39 = vld [vmem:[#allocation2 + $0x3a] sm:$0xff]  ;;  %v14390_v33 = vld [vmem:[#allocation2 + $0x68] sm:$0xff] }
 0x59b   :  { %16884 = vst [vmem:[#allocation19_spill] sm:$0xff] %v16378_v53  ;;  %v16400_v32 = vld [vmem:[#allocation2 + $0x38] sm:$0xff]  ;;  %16886 = vst [vmem:[#allocation21_spill] sm:$0xff] %v16410_v39  ;;  %v6752_v29 = vpack.c.bf16 %v14390_v33, %v14389_v48 }
 0x59c   :  { %v6779_v62 = vld [vmem:[#allocation2 + $0x41] sm:$0xff]  ;;  %v16404_v47 = vld [vmem:[#allocation2 + $0x39] sm:$0xff]  ;;  %v6785_v24 = vld [vmem:[#allocation2 + $0x71] sm:$0xff] }
 0x59d   :  { %v16388_v36 = vld [vmem:[#allocation2 + $0x40] sm:$0xff]  ;;  %v6791_v14 = vpack.c.bf16 %v6780_v2, %v6779_v62  ;;  %v6793_v62 = vpack.c.bf16 %v6784_v42, %v6783_v25 }
 0x59e   :  { %v16390_v49 = vld [vmem:[#allocation2 + $0x3e] sm:$0xff]  ;;  %v16392_v63 = vld [vmem:[#allocation2 + $0x46] sm:$0xff] }
 0x59f   :  { %12862 = vmatprep.mubr.bf16.mxu0 %v6791_v14  ;;  %v16398_v59 = vld [vmem:[#allocation2 + $0x41] sm:$0xff]  ;;  %v6786_v14 = vld [vmem:[#allocation2 + $0x79] sm:$0xff] }
 0x5a0   :  { %v16402_v2 = vld [vmem:[#allocation2 + $0x40] sm:$0xff]  ;;  %v6794_v25 = vpack.c.bf16 %v6786_v14, %v6785_v24  ;;  %v6749_v24 = vpack.c.bf16 %v16386_v55, %v16358_v20  ;;  %v6750_v14 = vpack.c.bf16 %v16427_v50, %v16388_v36 }
 0x5a1   :  { %v16406_v28 = vld [vmem:[#allocation2 + $0x42] sm:$0xff]  ;;  %12863 = vmatmul.mubr.bf16.gmra.mrb[140].mxu0 %v6792_v8  ;;  %v6748_v8 = vpack.c.bf16 %v16356_v27, %v16343_v18  ;;  %v14251_v33 = vld [vmem:[#allocation5 + $0x300] sm:$0xff]  }
 0x5a2   :  { %16885 = vst [vmem:[#allocation20_spill] sm:$0xff] %v16406_v28  ;;  %12866 = vmatprep.mubr.bf16.mxu0 %v6793_v62  ;;  %v14244_v42 = vld [vmem:[#allocation5 + $0x2c8] sm:$0xff]   ;;  %v14245_v62 = vld [vmem:[#allocation5 + $0x2d0] sm:$0xff]   ;;  %v7105_v48 = vld [vmem:[#allocation2 + $0x1a] sm:$0xff] }
 0x5a3   :  { %v7507_v28 = vld [vmem:[#allocation2 + $0xf] sm:$0xff] }
 0x5a9   :  { %12867 = vmatmul.mubr.bf16.gmra.mrb[144].mxu0 %v6794_v25  ;;  %v14388_v25 = vld [vmem:[#allocation2 + $0x58] sm:$0xff] }
 0x5aa   :  { %12886 = vmatprep.mubr.bf16.mxu0 %v6746_v5  ;;  %v14246_v5 = vld [vmem:[#allocation5 + $0x2d8] sm:$0xff]  }
 0x5b1   :  { %12887 = vmatmul.mubr.bf16.vlgmr.msra.gmra.mrb[132].mxu0 %v6747_v7  ;;  %v14247_v7 = vld [vmem:[#allocation5 + $0x2e0] sm:$0xff]  }
 0x5b2   :  { %12890 = vmatprep.mubr.bf16.mxu0 %v6748_v8  ;;  %12903 = vmatpush3.bf16.msra.mxu0 %v16353_v3  ;;  %v16431_v3 = vld [vmem:[#allocation2 + $0x50] sm:$0xff]  ;;  %v14248_v8 = vld [vmem:[#allocation5 + $0x2e8] sm:$0xff]  }
 0x5b3   :  { %12904 = vmatprep.subr.bf16.mxu0 %v14244_v42 }
 0x5b6   :  { %12905 = vmatpush3.bf16.msra.mxu0 %v14244_v42  ;;  %v6751_v42 = vpack.c.bf16 %v14388_v25, %v16431_v3  ;;  %v14250_v25 = vld [vmem:[#allocation5 + $0x2f8] sm:$0xff]  }
 0x5b7   :  { %12906 = vmatprep.subr.bf16.mxu0 %v14245_v62 }
 0x5b9   :  { %12891 = vmatmul.mubr.bf16.gmra.mrb[136].mxu0 %v6749_v24  ;;  %v14249_v24 = vld [vmem:[#allocation5 + $0x2f0] sm:$0xff]  }
 0x5ba   :  { %12894 = vmatprep.mubr.bf16.mxu0 %v6750_v14  ;;  %12907 = vmatpush3.bf16.msra.mxu0 %v14245_v62  ;;  %v16434_v14 = vld [vmem:[#allocation2 + $0x78] sm:$0xff]  ;;  %v7102_v62 = vld [vmem:[#allocation2 + $0x2] sm:$0xff] }
 0x5bb   :  { %12908 = vmatprep.subr.bf16.mxu0 %v14246_v5  ;;  %v7118_v6 = vpack.c.bf16 %v7103_v9, %v7102_v62  ;;  %v7109_v9 = vld [vmem:[#allocation2 + $0x3a] sm:$0xff]  ;;  %v7111_v62 = vld [vmem:[#allocation2 + $0x4a] sm:$0xff] }
 0x5be   :  { %12909 = vmatpush3.bf16.msra.mxu0 %v14246_v5  ;;  %v14391_v5 = vld [vmem:[#allocation2 + $0x70] sm:$0xff] }
 0x5bf   :  { %12910 = vmatprep.subr.bf16.mxu0 %v14247_v7  ;;  %v6753_v16 = vpack.c.bf16 %v16434_v14, %v14391_v5  ;;  %v14253_v5 = vld [vmem:[#allocation5 + $0x310] sm:$0xff]  }
 0x5c1   :  { %12895 = vmatmul.mubr.bf16.gmra.mrb[140].mxu0 %v6751_v42 }
 0x5c2   :  { %12898 = vmatprep.mubr.bf16.mxu0 %v6752_v29  ;;  %12911 = vmatpush3.bf16.msra.mxu0 %v14247_v7  ;;  %v7104_v29 = vld [vmem:[#allocation2 + $0x12] sm:$0xff]  ;;  %v7107_v7 = vld [vmem:[#allocation2 + $0x2a] sm:$0xff] }
 0x5c3   :  { %12912 = vmatprep.subr.bf16.mxu0 %v14248_v8  ;;  %v7119_v42 = vpack.c.bf16 %v7105_v48, %v7104_v29  ;;  %v7115_v29 = vld [vmem:[#allocation2 + $0x6a] sm:$0xff] }
 0x5c6   :  { %12913 = vmatpush3.bf16.msra.mxu0 %v14248_v8  ;;  %v7120_v8 = vpack.c.bf16 %v7107_v7, %v7106_v56  ;;  %v7113_v56 = vld [vmem:[#allocation2 + $0x5a] sm:$0xff]  ;;  %v7114_v7 = vld [vmem:[#allocation2 + $0x62] sm:$0xff] }
 0x5c7   :  { %12914 = vmatprep.subr.bf16.mxu0 %v14249_v24 }
 0x5c9   :  { %12899 = vmatmul.mubr.bf16.gmra.mrb[144].mxu0 %v6753_v16  ;;  %v7110_v16 = vld [vmem:[#allocation2 + $0x42] sm:$0xff] }
 0x5ca   :  { %12915 = vmatpush3.bf16.msra.mxu0 %v14249_v24  ;;  %12918 = vmatprep.mubr.bf16.mxu0 %v7118_v6  ;;  %v7108_v6 = vld [vmem:[#allocation2 + $0x32] sm:$0xff]  ;;  %v7122_v39 = vpack.c.bf16 %v7111_v62, %v7110_v16  ;;  %v7304_v16 = vld [vmem:[#allocation2 + $0x6] sm:$0xff]  ;;  %v14259_v62 = vld [vmem:[#allocation5 + $0x340] sm:$0xff]  }
 0x5cb   :  { %12916 = vmatprep.subr.bf16.mxu0 %v14250_v25  ;;  %v7121_v24 = vpack.c.bf16 %v7109_v9, %v7108_v6  ;;  %v7117_v9 = vld [vmem:[#allocation2 + $0x7a] sm:$0xff] }
 0x5ce   :  { %12917 = vmatpush3.bf16.msra.mxu0 %v14250_v25  ;;  %v14255_v25 = vld [vmem:[#allocation5 + $0x320] sm:$0xff]  }
 0x5cf   :  { %12934 = vmatprep.subr.bf16.mxu0 %v14251_v33 }
 0x5d1   :  { %12919 = vmatmul.mubr.bf16.vlgmr.msra.gmra.mrb[132].mxu0 %v7119_v42  ;;  %v14256_v42 = vld [vmem:[#allocation5 + $0x328] sm:$0xff]  }
 0x5d2   :  { %12922 = vmatprep.mubr.bf16.mxu0 %v7120_v8  ;;  %12935 = vmatpush3.bf16.msra.mxu0 %v14251_v33  ;;  %v7112_v33 = vld [vmem:[#allocation2 + $0x52] sm:$0xff]  ;;  %v14257_v8 = vld [vmem:[#allocation5 + $0x330] sm:$0xff]  }
 0x5d3   :  { %12936 = vmatprep.subr.bf16.mxu0 %v14252_v51  ;;  %v7123_v48 = vpack.c.bf16 %v7113_v56, %v7112_v33  ;;  %v16440_v56 = vld [vmem:[#allocation2 + $0x1e] sm:$0xff]  ;;  %v16446_v33 = vld [vmem:[#allocation2 + $0x26] sm:$0xff] }
 0x5d6   :  { %12937 = vmatpush3.bf16.msra.mxu0 %v14252_v51  ;;  %v7124_v51 = vpack.c.bf16 %v7115_v29, %v7114_v7  ;;  %v7322_v7 = vpack.c.bf16 %v16362_v46, %v16446_v33 }
 0x5d7   :  { %12938 = vmatprep.subr.bf16.mxu0 %v14253_v5 }
 0x5d9   :  { %12923 = vmatmul.mubr.bf16.gmra.mrb[136].mxu0 %v7121_v24 }
 0x5da   :  { %12926 = vmatprep.mubr.bf16.mxu0 %v7122_v39  ;;  %12939 = vmatpush3.bf16.msra.mxu0 %v14253_v5  ;;  %v16437_v39 = vld [vmem:[#allocation2 + $0xe] sm:$0xff] }
 0x5db   :  { %12940 = vmatprep.subr.bf16.mxu0 %v14254_v41  ;;  %v7116_v5 = vld [vmem:[#allocation2 + $0x72] sm:$0xff]  ;;  %v7320_v24 = vpack.c.bf16 %v16437_v39, %v7304_v16 }
 0x5dc   :  { %v7125_v6 = vpack.c.bf16 %v7117_v9, %v7116_v5  ;;  %v14262_v9 = vld [vmem:[#allocation5 + $0x358] sm:$0xff]   ;;  %v14263_v5 = vld [vmem:[#allocation5 + $0x360] sm:$0xff]  }
 0x5de   :  { %12941 = vmatpush3.bf16.msra.mxu0 %v14254_v41  ;;  %v14258_v41 = vld [vmem:[#allocation5 + $0x338] sm:$0xff]  }
 0x5df   :  { %12942 = vmatprep.subr.bf16.mxu0 %v14255_v25 }
 0x5e1   :  { %12927 = vmatmul.mubr.bf16.gmra.mrb[140].mxu0 %v7123_v48  ;;  %v14260_v48 = vld [vmem:[#allocation5 + $0x348] sm:$0xff]  }
 0x5e2   :  { %12930 = vmatprep.mubr.bf16.mxu0 %v7124_v51  ;;  %12943 = vmatpush3.bf16.msra.mxu0 %v14255_v25  ;;  %v16442_v25 = vld [vmem:[#allocation2 + $0x16] sm:$0xff]  ;;  %v7323_v51 = vpack.c.bf16 %v16390_v49, %v16364_v17 }
 0x5e3   :  { %12944 = vmatprep.subr.bf16.mxu0 %v14256_v42  ;;  %v7321_v29 = vpack.c.bf16 %v16440_v56, %v16442_v25 }
 0x5e6   :  { %12945 = vmatpush3.bf16.msra.mxu0 %v14256_v42  ;;  %v14261_v42 = vld [vmem:[#allocation5 + $0x350] sm:$0xff]  }
 0x5e7   :  { %12946 = vmatprep.subr.bf16.mxu0 %v14257_v8 }
 0x5e9   :  { %12931 = vmatmul.mubr.bf16.gmra.mrb[144].mxu0 %v7125_v6  ;;  %v16456_v6 = vld [vmem:[#allocation2 + $0x56] sm:$0xff] }
 0x5ea   :  { %12947 = vmatpush3.bf16.msra.mxu0 %v14257_v8  ;;  %12950 = vmatprep.mubr.bf16.mxu0 %v7320_v24  ;;  %v16452_v8 = vld [vmem:[#allocation2 + $0x4e] sm:$0xff] }
 0x5eb   :  { %12948 = vmatprep.subr.bf16.mxu0 %v14258_v41  ;;  %v7324_v16 = vpack.c.bf16 %v16452_v8, %v16392_v63 }
 0x5ee   :  { %12949 = vmatpush3.bf16.msra.mxu0 %v14258_v41  ;;  %v14392_v41 = vld [vmem:[#allocation2 + $0x5e] sm:$0xff] }
 0x5ef   :  { %12966 = vmatprep.subr.bf16.mxu0 %v14259_v62  ;;  %v7325_v24 = vpack.c.bf16 %v14392_v41, %v16456_v6  ;;  %v14266_v41 = vld [vmem:[#allocation5 + $0x378] sm:$0xff]  }
 0x5f1   :  { %12951 = vmatmul.mubr.bf16.vlgmr.msra.gmra.mrb[132].mxu0 %v7321_v29  ;;  %v14393_v29 = vld [vmem:[#allocation2 + $0x66] sm:$0xff] }
 0x5f2   :  { %12954 = vmatprep.mubr.bf16.mxu0 %v7322_v7  ;;  %12967 = vmatpush3.bf16.msra.mxu0 %v14259_v62  ;;  %v14264_v62 = vld [vmem:[#allocation5 + $0x368] sm:$0xff]  }
 0x5f3   :  { %12968 = vmatprep.subr.bf16.mxu0 %v14260_v48 }
 0x5f6   :  { %12969 = vmatpush3.bf16.msra.mxu0 %v14260_v48  ;;  %v14394_v48 = vld [vmem:[#allocation2 + $0x6e] sm:$0xff] }
 0x5f7   :  { %12970 = vmatprep.subr.bf16.mxu0 %v14261_v42  ;;  %v7326_v7 = vpack.c.bf16 %v14394_v48, %v14393_v29  ;;  %v7509_v29 = vld [vmem:[#allocation2 + $0x1f] sm:$0xff]  ;;  %v7508_v48 = vld [vmem:[#allocation2 + $0x17] sm:$0xff] }
 0x5f9   :  { %12955 = vmatmul.mubr.bf16.gmra.mrb[136].mxu0 %v7323_v51  ;;  %v14265_v51 = vld [vmem:[#allocation5 + $0x370] sm:$0xff]  }
 0x5fa   :  { %12958 = vmatprep.mubr.bf16.mxu0 %v7324_v16  ;;  %12971 = vmatpush3.bf16.msra.mxu0 %v14261_v42  ;;  %v16459_v16 = vld [vmem:[#allocation2 + $0x7e] sm:$0xff]  ;;  %v7506_v42 = vld [vmem:[#allocation2 + $0x7] sm:$0xff] }
 0x5fb   :  { %12972 = vmatprep.subr.bf16.mxu0 %v14262_v9  ;;  %v7522_v53 = vpack.c.bf16 %v7507_v28, %v7506_v42  ;;  %v7513_v28 = vld [vmem:[#allocation2 + $0x3f] sm:$0xff]  ;;  %v7515_v42 = vld [vmem:[#allocation2 + $0x4f] sm:$0xff] }
 0x5fe   :  { %12973 = vmatpush3.bf16.msra.mxu0 %v14262_v9  ;;  %v14395_v9 = vld [vmem:[#allocation2 + $0x76] sm:$0xff] }
 0x5ff   :  { %12974 = vmatprep.subr.bf16.mxu0 %v14263_v5  ;;  %v7327_v58 = vpack.c.bf16 %v16459_v16, %v14395_v9  ;;  %v14269_v9 = vld [vmem:[#allocation5 + $0x390] sm:$0xff]  }
 0x601   :  { %12959 = vmatmul.mubr.bf16.gmra.mrb[140].mxu0 %v7325_v24  ;;  %v14267_v24 = vld [vmem:[#allocation5 + $0x380] sm:$0xff]  }
 0x602   :  { %12962 = vmatprep.mubr.bf16.mxu0 %v7326_v7  ;;  %12975 = vmatpush3.bf16.msra.mxu0 %v14263_v5  ;;  %v7511_v5 = vld [vmem:[#allocation2 + $0x2f] sm:$0xff]  ;;  %v7523_v7 = vpack.c.bf16 %v7509_v29, %v7508_v48  ;;  %v14271_v29 = vld [vmem:[#allocation5 + $0x3a0] sm:$0xff]  }
 0x603   :  { %12976 = vmatprep.subr.bf16.mxu0 %v14264_v62 }
 0x606   :  { %12977 = vmatpush3.bf16.msra.mxu0 %v14264_v62  ;;  %v7524_v62 = vpack.c.bf16 %v7511_v5, %v7510_v61  ;;  %v7517_v61 = vld [vmem:[#allocation2 + $0x5f] sm:$0xff]  ;;  %v7519_v5 = vld [vmem:[#allocation2 + $0x6f] sm:$0xff] }
 0x607   :  { %12978 = vmatprep.subr.bf16.mxu0 %v14265_v51 }
 0x609   :  { %12963 = vmatmul.mubr.bf16.gmra.mrb[144].mxu0 %v7327_v58  ;;  %v7514_v58 = vld [vmem:[#allocation2 + $0x47] sm:$0xff] }
 0x60a   :  { %12979 = vmatpush3.bf16.msra.mxu0 %v14265_v51  ;;  %12982 = vmatprep.mubr.bf16.mxu0 %v7522_v53  ;;  %v7512_v53 = vld [vmem:[#allocation2 + $0x37] sm:$0xff] }
 0x60b   :  { %12980 = vmatprep.subr.bf16.mxu0 %v14266_v41  ;;  %v7525_v51 = vpack.c.bf16 %v7513_v28, %v7512_v53  ;;  %v14273_v28 = vld [vmem:[#allocation5 + $0x3b0] sm:$0xff]   ;;  %v7520_v53 = vld [vmem:[#allocation2 + $0x77] sm:$0xff] }
 0x60e   :  { %12981 = vmatpush3.bf16.msra.mxu0 %v14266_v41  ;;  %v7526_v41 = vpack.c.bf16 %v7515_v42, %v7514_v58  ;;  %v7521_v58 = vld [vmem:[#allocation2 + $0x7f] sm:$0xff] }
 0x60f   :  { %12998 = vmatprep.subr.bf16.mxu0 %v14267_v24  ;;  %v14275_v42 = vld [vmem:[#allocation5 + $0x3c0] sm:$0xff]  }
 0x611   :  { %12983 = vmatmul.mubr.bf16.vlgmr.msra.gmra.mrb[132].mxu0 %v7523_v7  ;;  %v7518_v7 = vld [vmem:[#allocation2 + $0x67] sm:$0xff] }
 0x612   :  { %12986 = vmatprep.mubr.bf16.mxu0 %v7524_v62  ;;  %12999 = vmatpush3.bf16.msra.mxu0 %v14267_v24  ;;  %v7516_v24 = vld [vmem:[#allocation2 + $0x57] sm:$0xff]  ;;  %v14272_v62 = vld [vmem:[#allocation5 + $0x3a8] sm:$0xff]  }
 0x613   :  { %13000 = vmatprep.subr.bf16.mxu0 %v14268_v19  ;;  %v7527_v48 = vpack.c.bf16 %v7517_v61, %v7516_v24  ;;  %v16889_v61 = vpack.c.bf16 %v16358_v20, %v16356_v27  ;;  %v16890_v24 = vpack.c.bf16 %v16388_v36, %v16386_v55  ;;  %v16891_v27 = vpack.c.bf16 %v15836_v21, %v15834_v30  ;;  %v7723_v55 = vld [vmem:[#allocation2 + $0x80] sm:$0xff]  ;;  %v7910_v36 = vld [vmem:[#allocation2 + $0xc] sm:$0xff] }
 0x614   :  { %v16892_v20 = vpack.c.bf16 %v15847_v52, %v15845_v11  ;;  %v14283_v30 = vld [vmem:[#allocation5 + $0x400] sm:$0xff]   ;;  %v14284_v52 = vld [vmem:[#allocation5 + $0x408] sm:$0xff]  }
 0x615   :  { %v7912_v21 = vld [vmem:[#allocation2 + $0x1c] sm:$0xff] }
 0x616   :  { %13001 = vmatpush3.bf16.msra.mxu0 %v14268_v19  ;;  %v7528_v19 = vpack.c.bf16 %v7519_v5, %v7518_v7  ;;  %v14277_v5 = vld [vmem:[#allocation5 + $0x3d0] sm:$0xff]   ;;  %v14282_v7 = vld [vmem:[#allocation5 + $0x3f8] sm:$0xff]   ;;  %v7927_v11 = vpack.c.bf16 %v16335_v12, %v7912_v21  ;;  %v14287_v12 = vld [vmem:[#allocation5 + $0x420] sm:$0xff]  }
 0x617   :  { %13002 = vmatprep.subr.bf16.mxu0 %v14269_v9  ;;  %v14293_v21 = vld [vmem:[#allocation5 + $0x450] sm:$0xff]  }
 0x619   :  { %12987 = vmatmul.mubr.bf16.gmra.mrb[136].mxu0 %v7525_v51  ;;  %v14274_v51 = vld [vmem:[#allocation5 + $0x3b8] sm:$0xff]  }
 0x61a   :  { %12990 = vmatprep.mubr.bf16.mxu0 %v7526_v41  ;;  %13003 = vmatpush3.bf16.msra.mxu0 %v14269_v9  ;;  %v7529_v9 = vpack.c.bf16 %v7521_v58, %v7520_v53  ;;  %v14276_v41 = vld [vmem:[#allocation5 + $0x3c8] sm:$0xff]   ;;  %v7919_v58 = vld [vmem:[#allocation2 + $0x54] sm:$0xff] }
 0x61b   :  { %13004 = vmatprep.subr.bf16.mxu0 %v14270_v4 }
 0x61e   :  { %13005 = vmatpush3.bf16.msra.mxu0 %v14270_v4  ;;  %v16887_v4 = vpack.c.bf16 %v16325_v43, %v16320_v23  ;;  %v14278_v23 = vld [vmem:[#allocation5 + $0x3d8] sm:$0xff]   ;;  %v7728_v43 = vpack.c.bf16 %v16431_v3, %v16427_v50  ;;  %v14281_v50 = vld [vmem:[#allocation5 + $0x3f0] sm:$0xff]  }
 0x61f   :  { %13006 = vmatprep.subr.bf16.mxu0 %v14271_v29  ;;  %v7911_v3 = vld [vmem:[#allocation2 + $0x14] sm:$0xff] }
 0x621   :  { %12991 = vmatmul.mubr.bf16.gmra.mrb[140].mxu0 %v7527_v48  ;;  %v7731_v48 = vpack.c.bf16 %v7723_v55, %v16434_v14  ;;  %v14285_v14 = vld [vmem:[#allocation5 + $0x410] sm:$0xff]  }
 0x622   :  { %12994 = vmatprep.mubr.bf16.mxu0 %v7528_v19  ;;  %13007 = vmatpush3.bf16.msra.mxu0 %v14271_v29  ;;  %v16888_v29 = vpack.c.bf16 %v16343_v18, %v16330_v37  ;;  %v14279_v37 = vld [vmem:[#allocation5 + $0x3e0] sm:$0xff]   ;;  %v14280_v18 = vld [vmem:[#allocation5 + $0x3e8] sm:$0xff]   ;;  %v16893_v19 = vpack.c.bf16 %v16341_v13, %v16338_v40 }
 0x623   :  { %13008 = vmatprep.subr.bf16.mxu0 %v14272_v62  ;;  %v7923_v40 = vld [vmem:[#allocation2 + $0x74] sm:$0xff]  ;;  %v7920_v13 = vld [vmem:[#allocation2 + $0x5c] sm:$0xff]  ;;  %v8115_v55 = vld [vmem:[#allocation2 + $0x25] sm:$0xff] }
 0x626   :  { %13009 = vmatpush3.bf16.msra.mxu0 %v14272_v62  ;;  %v7926_v62 = vpack.c.bf16 %v7911_v3, %v7910_v36  ;;  %v8117_v36 = vld [vmem:[#allocation2 + $0x35] sm:$0xff]  ;;  %v8114_v3 = vld [vmem:[#allocation2 + $0x1d] sm:$0xff] }
 0x627   :  { %13010 = vmatprep.subr.bf16.mxu0 %v14273_v28 }
 0x629   :  { %12995 = vmatmul.mubr.bf16.gmra.mrb[144].mxu0 %v7529_v9  ;;  %v7918_v9 = vld [vmem:[#allocation2 + $0x4c] sm:$0xff] }
 0x62a   :  { %13011 = vmatpush3.bf16.msra.mxu0 %v14273_v28  ;;  %13014 = vmatprep.mubr.bf16.mxu0 %v16887_v4  ;;  %v7917_v28 = vld [vmem:[#allocation2 + $0x44] sm:$0xff]  ;;  %v7930_v4 = vpack.c.bf16 %v7919_v58, %v7918_v9  ;;  %v14294_v58 = vld [vmem:[#allocation5 + $0x458] sm:$0xff]   ;;  %v14295_v9 = vld [vmem:[#allocation5 + $0x460] sm:$0xff]  }
 0x62b   :  { %13012 = vmatprep.subr.bf16.mxu0 %v14274_v51  ;;  %v7929_v53 = vpack.c.bf16 %v7917_v28, %v16350_v45  ;;  %v14289_v45 = vld [vmem:[#allocation5 + $0x430] sm:$0xff]  }
 0x62c   :  { %v8120_v28 = vld [vmem:[#allocation2 + $0x4d] sm:$0xff] }
 0x62e   :  { %13013 = vmatpush3.bf16.msra.mxu0 %v14274_v51  ;;  %v14286_v51 = vld [vmem:[#allocation5 + $0x418] sm:$0xff]  }
 0x62f   :  { %13030 = vmatprep.subr.bf16.mxu0 %v14275_v42 }
 0x631   :  { %13015 = vmatmul.mubr.bf16.vlgmr.msra.gmra.mrb[132].mxu0 %v16888_v29  ;;  %v7922_v29 = vld [vmem:[#allocation2 + $0x6c] sm:$0xff] }
 0x632   :  { %13018 = vmatprep.mubr.bf16.mxu0 %v16889_v61  ;;  %13031 = vmatpush3.bf16.msra.mxu0 %v14275_v42  ;;  %v7921_v42 = vld [vmem:[#allocation2 + $0x64] sm:$0xff] }
 0x633   :  { %13032 = vmatprep.subr.bf16.mxu0 %v14276_v41  ;;  %v14288_v61 = vld [vmem:[#allocation5 + $0x428] sm:$0xff]  }
 0x636   :  { %13033 = vmatpush3.bf16.msra.mxu0 %v14276_v41  ;;  %v7931_v41 = vpack.c.bf16 %v7921_v42, %v7920_v13  ;;  %v14296_v13 = vld [vmem:[#allocation5 + $0x468] sm:$0xff]  }
 0x637   :  { %13034 = vmatprep.subr.bf16.mxu0 %v14277_v5 }
 0x639   :  { %13019 = vmatmul.mubr.bf16.gmra.mrb[136].mxu0 %v16890_v24  ;;  %v8113_v24 = vld [vmem:[#allocation2 + $0x15] sm:$0xff] }
 0x63a   :  { %13022 = vmatprep.mubr.bf16.mxu0 %v7728_v43  ;;  %13035 = vmatpush3.bf16.msra.mxu0 %v14277_v5  ;;  %v7932_v5 = vpack.c.bf16 %v7923_v40, %v7922_v29  ;;  %v8112_v43 = vld [vmem:[#allocation2 + $0xd] sm:$0xff] }
 0x63b   :  { %13036 = vmatprep.subr.bf16.mxu0 %v14278_v23  ;;  %v8124_v40 = vld [vmem:[#allocation2 + $0x6d] sm:$0xff] }
 0x63c   :  { %v14297_v29 = vld [vmem:[#allocation5 + $0x470] sm:$0xff]  }
 0x63e   :  { %13037 = vmatpush3.bf16.msra.mxu0 %v14278_v23  ;;  %v7925_v23 = vld [vmem:[#allocation2 + $0x84] sm:$0xff] }
 0x63f   :  { %13038 = vmatprep.subr.bf16.mxu0 %v14279_v37 }
 0x641   :  { %13023 = vmatmul.mubr.bf16.gmra.mrb[140].mxu0 %v16891_v27  ;;  %v14290_v27 = vld [vmem:[#allocation5 + $0x438] sm:$0xff]  }
 0x642   :  { %13026 = vmatprep.mubr.bf16.mxu0 %v16892_v20  ;;  %13039 = vmatpush3.bf16.msra.mxu0 %v14279_v37  ;;  %v7924_v37 = vld [vmem:[#allocation2 + $0x7c] sm:$0xff]  ;;  %v8128_v20 = vpack.c.bf16 %v8113_v24, %v8112_v43  ;;  %v8330_v43 = vpack.c.bf16 %v16442_v25, %v16437_v39  ;;  %v8331_v24 = vpack.c.bf16 %v16446_v33, %v16440_v56 }
 0x643   :  { %13040 = vmatprep.subr.bf16.mxu0 %v14280_v18  ;;  %v8334_v39 = vpack.c.bf16 %v16456_v6, %v16452_v8  ;;  %v16895_v25 = vpack.c.bf16 %v16392_v63, %v16390_v49  ;;  %v16896_v56 = vpack.c.bf16 %v15858_v15, %v15856_v60  ;;  %v16897_v33 = vpack.c.bf16 %v15864_v10, %v15869_v54  ;;  %v11150_v63 = vld [vmem:[%s16753_s3 + $0x2] ss:$0 sm:$0xff] }
 0x644   :  { %v11152_v60 = vld [vmem:[%s16754_s4 + $0x2] ss:$0 sm:$0xff] }
 0x646   :  { %13041 = vmatpush3.bf16.msra.mxu0 %v14280_v18  ;;  %v7933_v18 = vpack.c.bf16 %v7925_v23, %v7924_v37  ;;  %v14298_v23 = vld [vmem:[#allocation5 + $0x478] sm:$0xff]   ;;  %v16492_v37 = vld [vmem:[#allocation2 + $0xc8] sm:$0xff] }
 0x647   :  { %13042 = vmatprep.subr.bf16.mxu0 %v14281_v50 }
 0x649   :  { %13027 = vmatmul.mubr.bf16.gmra.mrb[144].mxu0 %v7731_v48  ;;  %v8129_v48 = vpack.c.bf16 %v8115_v55, %v8114_v3 }
 0x64a   :  { %13043 = vmatpush3.bf16.msra.mxu0 %v14281_v50  ;;  %13046 = vmatprep.mubr.bf16.mxu0 %v7926_v62  ;;  %v14291_v50 = vld [vmem:[#allocation5 + $0x440] sm:$0xff]   ;;  %v14292_v62 = vld [vmem:[#allocation5 + $0x448] sm:$0xff]  }
 0x64b   :  { %13044 = vmatprep.subr.bf16.mxu0 %v14282_v7 }
 0x64e   :  { %13045 = vmatpush3.bf16.msra.mxu0 %v14282_v7  ;;  %v8116_v7 = vld [vmem:[#allocation2 + $0x2d] sm:$0xff] }
 0x64f   :  { %13062 = vmatprep.subr.bf16.mxu0 %v14283_v30 }
 0x651   :  { %13047 = vmatmul.mubr.bf16.vlgmr.msra.gmra.mrb[132].mxu0 %v7927_v11  ;;  %v8118_v11 = vld [vmem:[#allocation2 + $0x3d] sm:$0xff] }
 0x652   :  { %13050 = vmatprep.mubr.bf16.mxu0 %v16893_v19  ;;  %13063 = vmatpush3.bf16.msra.mxu0 %v14283_v30  ;;  %v8130_v30 = vpack.c.bf16 %v8117_v36, %v8116_v7  ;;  %v8121_v19 = vld [vmem:[#allocation2 + $0x55] sm:$0xff] }
 0x653   :  { %13064 = vmatprep.subr.bf16.mxu0 %v14284_v52 }
 0x656   :  { %13065 = vmatpush3.bf16.msra.mxu0 %v14284_v52  ;;  %v8119_v52 = vld [vmem:[#allocation2 + $0x45] sm:$0xff] }
 0x657   :  { %13066 = vmatprep.subr.bf16.mxu0 %v14285_v14 }
 0x659   :  { %13051 = vmatmul.mubr.bf16.gmra.mrb[136].mxu0 %v7929_v53  ;;  %v8132_v53 = vpack.c.bf16 %v8121_v19, %v8120_v28 }
 0x65a   :  { %13054 = vmatprep.mubr.bf16.mxu0 %v7930_v4  ;;  %13067 = vmatpush3.bf16.msra.mxu0 %v14285_v14  ;;  %v8131_v14 = vpack.c.bf16 %v8119_v52, %v8118_v11  ;;  %v8125_v4 = vld [vmem:[#allocation2 + $0x75] sm:$0xff] }
 0x65b   :  { %13068 = vmatprep.subr.bf16.mxu0 %v14286_v51 }
 0x65e   :  { %13069 = vmatpush3.bf16.msra.mxu0 %v14286_v51  ;;  %v8123_v51 = vld [vmem:[#allocation2 + $0x65] sm:$0xff] }
 0x65f   :  { %13070 = vmatprep.subr.bf16.mxu0 %v14287_v12 }
 0x661   :  { %13055 = vmatmul.mubr.bf16.gmra.mrb[140].mxu0 %v7931_v41  ;;  %v8134_v41 = vpack.c.bf16 %v8125_v4, %v8124_v40 }
 0x662   :  { %13058 = vmatprep.mubr.bf16.mxu0 %v7932_v5  ;;  %13071 = vmatpush3.bf16.msra.mxu0 %v14287_v12  ;;  %v8122_v12 = vld [vmem:[#allocation2 + $0x5d] sm:$0xff] }
 0x663   :  { %13072 = vmatprep.subr.bf16.mxu0 %v14288_v61  ;;  %v8133_v42 = vpack.c.bf16 %v8123_v51, %v8122_v12  ;;  %v8126_v5 = vld [vmem:[#allocation2 + $0x7d] sm:$0xff] }
 0x666   :  { %13073 = vmatpush3.bf16.msra.mxu0 %v14288_v61  ;;  %v8127_v61 = vld [vmem:[#allocation2 + $0x85] sm:$0xff] }
 0x667   :  { %13074 = vmatprep.subr.bf16.mxu0 %v14289_v45 }
 0x669   :  { %13059 = vmatmul.mubr.bf16.gmra.mrb[144].mxu0 %v7933_v18  ;;  %v16894_v18 = vpack.c.bf16 %v16364_v17, %v16362_v46 }
 0x66a   :  { %13075 = vmatpush3.bf16.msra.mxu0 %v14289_v45  ;;  %13078 = vmatprep.mubr.bf16.mxu0 %v8128_v20  ;;  %v8135_v45 = vpack.c.bf16 %v8127_v61, %v8126_v5 }
 0x66b   :  { %13076 = vmatprep.subr.bf16.mxu0 %v14290_v27 }
 0x66e   :  { %13077 = vmatpush3.bf16.msra.mxu0 %v14290_v27  ;;  %v8329_v27 = vld [vmem:[#allocation2 + $0x86] sm:$0xff] }
 0x66f   :  { %13094 = vmatprep.subr.bf16.mxu0 %v14291_v50  ;;  %v8337_v46 = vpack.c.bf16 %v8329_v27, %v16459_v16 }
 0x671   :  { %13079 = vmatmul.mubr.bf16.vlgmr.msra.gmra.mrb[132].mxu0 %v8129_v48 }
 0x672   :  { %13082 = vmatprep.mubr.bf16.mxu0 %v8130_v30  ;;  %13095 = vmatpush3.bf16.msra.mxu0 %v14291_v50 }
 0x673   :  { %13096 = vmatprep.subr.bf16.mxu0 %v14292_v62 }
 0x676   :  { %13097 = vmatpush3.bf16.msra.mxu0 %v14292_v62 }
 0x677   :  { %13098 = vmatprep.subr.bf16.mxu0 %v14293_v21 }
 0x679   :  { %13083 = vmatmul.mubr.bf16.gmra.mrb[136].mxu0 %v8131_v14 }
 0x67a   :  { %13086 = vmatprep.mubr.bf16.mxu0 %v8132_v53  ;;  %13099 = vmatpush3.bf16.msra.mxu0 %v14293_v21 }
 0x67b   :  { %13100 = vmatprep.subr.bf16.mxu0 %v14294_v58 }
 0x67e   :  { %13101 = vmatpush3.bf16.msra.mxu0 %v14294_v58 }
 0x67f   :  { %13102 = vmatprep.subr.bf16.mxu0 %v14295_v9 }
 0x681   :  { %13087 = vmatmul.mubr.bf16.gmra.mrb[140].mxu0 %v8133_v42 }
 0x682   :  { %13090 = vmatprep.mubr.bf16.mxu0 %v8134_v41  ;;  %13103 = vmatpush3.bf16.msra.mxu0 %v14295_v9 }
 0x683   :  { %13104 = vmatprep.subr.bf16.mxu0 %v14296_v13 }
 0x686   :  { %13105 = vmatpush3.bf16.msra.mxu0 %v14296_v13 }
 0x687   :  { %13106 = vmatprep.subr.bf16.mxu0 %v14297_v29 }
 0x689   :  { %13091 = vmatmul.mubr.bf16.gmra.mrb[144].mxu0 %v8135_v45 }
 0x68a   :  { %13107 = vmatpush3.bf16.msra.mxu0 %v14297_v29  ;;  %13110 = vmatprep.mubr.bf16.mxu0 %v8330_v43 }
 0x68b   :  { %13108 = vmatprep.subr.bf16.mxu0 %v14298_v23 }
 0x68e   :  { %13109 = vmatpush3.bf16.msra.mxu0 %v14298_v23 }
 0x68f   :  { %13426 = vmatprep.subr.bf16.mxu0 %v16492_v37 }
 0x691   :  { %13111 = vmatmul.mubr.bf16.vlgmr.msra.gmra.mrb[132].mxu0 %v8331_v24 }
 0x692   :  { %13114 = vmatprep.mubr.bf16.mxu0 %v16894_v18 }
 0x699   :  { %13115 = vmatmul.mubr.bf16.gmra.mrb[136].mxu0 %v16895_v25 }
 0x69a   :  { %13118 = vmatprep.mubr.bf16.mxu0 %v8334_v39 }
 0x6a1   :  { %13119 = vmatmul.mubr.bf16.gmra.mrb[140].mxu0 %v16896_v56 }
 0x6a2   :  { %13122 = vmatprep.mubr.bf16.mxu0 %v16897_v33  ;;  %v8624_v33 = vsel %vm8622_vm8, 4294967295, %v16882_v1  ;;  %v14299_v1 = vld [vmem:[%s16757_s7] sm:$0xff]  }
 0x6a9   :  { %13123 = vmatmul.mubr.bf16.gmra.mrb[144].mxu0 %v8337_v46 }
 0x6aa   :  { %13442 = vmatprep.mubr.msk.bf16.mxu0 %vm14475_vm4, %v16492_v37 }
 0x764   :  { %v13112_v49 = vpop.f32.mrb[132].mxu0 }
 0x765   :  { %v8526_v15 = vmul.f32 %v13112_v49, %v11150_v63  ;;  %v8437_v17 = vpop.f32.mrb[133].mxu0 }
 0x766   :  { %v8524_v10 = vmul.f32 %v11150_v63, %v8437_v17  ;;  %v13113_v54 = vpop.f32.mrb[134].mxu0 }
 0x767   :  { %v8550_v8 = vadd.f32 %v11152_v60, %v8526_v15  ;;  %v8440_v6 = vpop.f32.mrb[135].mxu0 }
 0x768   :  { %v8548_v16 = vadd.f32 %v11152_v60, %v8524_v10  ;;  %v8525_v20 = vmul.f32 %v11150_v63, %v8440_v6 }
 0x769   :  { %v8566_v50 = vmax.f32 %v8550_v8, 0.0 }
 0x76a   :  { %v8564_v55 = vmax.f32 %v8548_v16, 0.0  ;;  %v8549_v36 = vadd.f32 %v11152_v60, %v8525_v20 }
 0x76b   :  { %8582 = vst [vmem:[#allocation3 + $0x10] sm:$0xff] %v8566_v50 }
 0x76c   :  { %8580 = vst [vmem:[#allocation3] sm:$0xff] %v8564_v55  ;;  %v8565_v3 = vmax.f32 %v8549_v36, 0.0  ;;  %v13116_v48 = vpop.f32.mrb[136].mxu0 }
 0x76d   :  { %v8530_v7 = vmul.f32 %v13116_v48, %v11150_v63  ;;  %v8453_v62 = vpop.f32.mrb[137].mxu0 }
 0x76e   :  { %8581 = vst [vmem:[#allocation3 + $0x8] sm:$0xff] %v8565_v3  ;;  %v8528_v30 = vmul.f32 %v11150_v63, %v8453_v62  ;;  %v13117_v21 = vpop.f32.mrb[138].mxu0 }
 0x76f   :  { %v8554_v11 = vadd.f32 %v11152_v60, %v8530_v7  ;;  %v8531_v52 = vmul.f32 %v13117_v21, %v11150_v63  ;;  %v8456_v19 = vpop.f32.mrb[139].mxu0 }
 0x770   :  { %v8552_v14 = vadd.f32 %v11152_v60, %v8528_v30  ;;  %v8529_v28 = vmul.f32 %v11150_v63, %v8456_v19  ;;  %v8625_v63 = vsel %vm8623_vm9, %v8624_v33, 0  ;;  %v14301_v19 = vld [vmem:[#allocation5 + $0x4c0] sm:$0xff]  }
 0x771   :  { %v8570_v58 = vmax.f32 %v8554_v11, 0.0  ;;  %v8555_v53 = vadd.f32 %v11152_v60, %v8531_v52 }
 0x772   :  { %v8568_v9 = vmax.f32 %v8552_v14, 0.0  ;;  %v8553_v51 = vadd.f32 %v11152_v60, %v8529_v28  ;;  %v14300_v28 = vld [vmem:[%s16757_s7] sm:$0xff]  }
 0x773   :  { %8586 = vst [vmem:[#allocation3 + $0x30] sm:$0xff] %v8570_v58  ;;  %v8571_v4 = vmax.f32 %v8555_v53, 0.0  ;;  %v14302_v58 = vld [vmem:[#allocation5 + $0x4c8] sm:$0xff]   ;;  %v14303_v53 = vld [vmem:[#allocation5 + $0x4d0] sm:$0xff]  }
 0x774   :  { %8584 = vst [vmem:[#allocation3 + $0x20] sm:$0xff] %v8568_v9  ;;  %v8569_v12 = vmax.f32 %v8553_v51, 0.0  ;;  %v13120_v42 = vpop.f32.mrb[140].mxu0  ;;  %v14304_v9 = vld [vmem:[#allocation5 + $0x4d8] sm:$0xff]   ;;  %v14305_v51 = vld [vmem:[#allocation5 + $0x4e0] sm:$0xff]  }
 0x775   :  { %8587 = vst [vmem:[#allocation3 + $0x38] sm:$0xff] %v8571_v4  ;;  %v8469_v40 = vpop.f32.mrb[141].mxu0  ;;  %v8597_v13 = vld [vmem:[#allocation3 + $0x8] sm:$0x7f]  ;;  %v8605_v39 = vld [vmem:[#allocation3 + $0xf] sm:$0x7f] }
 0x776   :  { %v8598_v41 = vld [vmem:[#allocation3 + $0x1] sm:$0xff]  ;;  %v8599_v29 = vld [vmem:[#allocation3 + $0x9] sm:$0x7f]  ;;  %8585 = vst [vmem:[#allocation3 + $0x28] sm:$0xff] %v8569_v12  ;;  %v13121_v61 = vpop.f32.mrb[142].mxu0  ;;  %v14307_v12 = vld [vmem:[#allocation5 + $0x4f0] sm:$0xff]  }
 0x777   :  { %v8600_v5 = vmax.f32 %v8564_v55, %v8598_v41  ;;  %v8601_v45 = vmax.f32 %v8597_v13, %v8599_v29  ;;  %v8602_v23 = vld [vmem:[#allocation3 + $0x6] sm:$0xff]  ;;  %v8603_v43 = vld [vmem:[#allocation3 + $0xe] sm:$0x7f]  ;;  %v8472_v18 = vpop.f32.mrb[143].mxu0  ;;  %v14308_v42 = vld [vmem:[#allocation5 + $0x4f8] sm:$0xff]  }
 0x778   :  { %v8604_v24 = vld [vmem:[#allocation3 + $0x7] sm:$0xff]  ;;  %v8607_v56 = vmax.f32 %v8603_v43, %v8605_v39 }
 0x779   :  { %v8606_v25 = vmax.f32 %v8602_v23, %v8604_v24  ;;  %v14306_v4 = vld [vmem:[#allocation5 + $0x4e8] sm:$0xff]   ;;  %v14309_v40 = vld [vmem:[#allocation5 + $0x480] sm:$0xff]  }
 0x77a   :  { %v8609_v46 = vmax.f32 %v8601_v45, %v8607_v56 }
 0x77b   :  { %v8608_v27 = vmax.f32 %v8600_v5, %v8606_v25 }
 0x77c   :  { %v13124_v49 = vpop.f32.mrb[144].mxu0  ;;  %v8679_v15 = vld [vmem:[#allocation3 + $0x32] sm:$0x7f] }
 0x77d   :  { %v8612_v60 = vpack.c.bf16 %v8609_v46, %v8608_v27  ;;  %v8681_v17 = vld [vmem:[#allocation3 + $0x33] sm:$0x7f]  ;;  %v8485_v10 = vpop.f32.mrb[145].mxu0  ;;  %v8672_v54 = vld [vmem:[#allocation3 + $0x24] sm:$0xff]  ;;  %v8673_v8 = vld [vmem:[#allocation3 + $0x2c] sm:$0x7f] }
 0x77e   :  { %v8674_v6 = vld [vmem:[#allocation3 + $0x25] sm:$0xff]  ;;  %v8683_v16 = vmax.f32 %v8679_v15, %v8681_v17  ;;  %v13125_v20 = vpop.f32.mrb[146].mxu0  ;;  %v8675_v55 = vld [vmem:[#allocation3 + $0x2d] sm:$0x7f] }
 0x77f   :  { %v8627_v50 = vand.u32 %v8625_v63, %v8612_v60  ;;  %v8676_v36 = vmax.f32 %v8672_v54, %v8674_v6  ;;  %v8678_v3 = vld [vmem:[#allocation3 + $0x2a] sm:$0xff]  ;;  %v8488_v7 = vpop.f32.mrb[147].mxu0  ;;  %v8677_v62 = vmax.f32 %v8673_v8, %v8675_v55  ;;  %v14398_v20 = vld [vmem:[#allocation2 + $0x31] sm:$0xff] }
 0x780   :  { %v8680_v48 = vld [vmem:[#allocation3 + $0x2b] sm:$0xff] }
 0x781   :  { %v8682_v30 = vmax.f32 %v8678_v3, %v8680_v48  ;;  %13127 = vmatpush3.bf16.msra.mxu1 %v8627_v50  ;;  %v8685_v11 = vmax.f32 %v8677_v62, %v8683_v16  ;;  %v16560_v15 = vld [vmem:[#allocation2 + $0x21] sm:$0xff]  ;;  %v14397_v8 = vld [vmem:[#allocation2 + $0x29] sm:$0xff]  ;;  %v14399_v50 = vld [vmem:[#allocation2 + $0x39] sm:$0xff] }
 0x782   :  { %13132 = vmatprep.subr.bf16.mxu1 %v16492_v37  ;;  %v14310_v17 = vld [vmem:[#allocation5 + $0x488] sm:$0xff]   ;;  %v8802_v6 = vpack.c.bf16 %v14397_v8, %v16560_v15  ;;  %v14311_v16 = vld [vmem:[#allocation5 + $0x490] sm:$0xff]   ;;  %v8803_v55 = vpack.c.bf16 %v14399_v50, %v14398_v20  ;;  %v14312_v3 = vld [vmem:[#allocation5 + $0x498] sm:$0xff]  }
 0x783   :  { %v8684_v21 = vmax.f32 %v8676_v36, %v8682_v30  ;;  %v16567_v36 = vld [vmem:[#allocation2 + $0x49] sm:$0xff]  ;;  %v14400_v48 = vld [vmem:[#allocation2 + $0x41] sm:$0xff]  ;;  %v16570_v62 = vld [vmem:[#allocation2 + $0x51] sm:$0xff] }
 0x784   :  { %13129 = vmatmul.mubr.msk.bf16.vlgmr.msra.gmra.mrb[116].mxu1 %vm8618_vm10, %v14299_v1  ;;  %v8804_v7 = vpack.c.bf16 %v16567_v36, %v14400_v48  ;;  %v14313_v1 = vld [vmem:[#allocation5 + $0x4a0] sm:$0xff]   ;;  %v14411_v50 = vld [vmem:[#allocation2 + $0x68] sm:$0xff] }
 0x785   :  { %v8688_v52 = vpack.c.bf16 %v8685_v11, %v8684_v21  ;;  %13134 = vmatprep.mubr.msk.bf16.mxu1 %vm14475_vm4, %v16492_v37  ;;  %v14401_v30 = vld [vmem:[#allocation2 + $0x59] sm:$0xff]  ;;  %v14314_v11 = vld [vmem:[#allocation5 + $0x4a8] sm:$0xff]  }
 0x786   :  { %v8805_v21 = vpack.c.bf16 %v14401_v30, %v16570_v62  ;;  %v14409_v8 = vld [vmem:[#allocation2 + $0x58] sm:$0xff]  ;;  %v14410_v20 = vld [vmem:[#allocation2 + $0x60] sm:$0xff] }
 0x787   :  { %v8698_v14 = vand.u32 %v8688_v52, %v8625_v63  ;;  %v14402_v52 = vld [vmem:[#allocation2 + $0x61] sm:$0xff]  ;;  %v16591_v48 = vld [vmem:[#allocation2 + $0x78] sm:$0xff] }
 0x789   :  { %13133 = vmatpush3.bf16.msra.mxu1 %v8698_v14 }
 0x78a   :  { %13138 = vmatprep.subr.bf16.mxu1 %v14301_v19 }
 0x78c   :  { %13135 = vmatmul.mubr.msk.bf16.vlgmr.msra.gmra.mrb[120].mxu1 %vm8618_vm10, %v14300_v28  ;;  %v14315_v28 = vld [vmem:[#allocation5 + $0x4b0] sm:$0xff]  }
 0x78d   :  { %13139 = vmatpush3.bf16.msra.mxu1 %v14301_v19  ;;  %v14403_v19 = vld [vmem:[#allocation2 + $0x69] sm:$0xff] }
 0x78e   :  { %13140 = vmatprep.subr.bf16.mxu1 %v14302_v58  ;;  %v8806_v14 = vpack.c.bf16 %v14403_v19, %v14402_v52  ;;  %v14325_v52 = vld [vmem:[#allocation5 + $0x540] sm:$0xff]  }
 0x791   :  { %13141 = vmatpush3.bf16.msra.mxu1 %v14302_v58  ;;  %v16573_v58 = vld [vmem:[#allocation2 + $0x79] sm:$0xff] }
 0x792   :  { %13142 = vmatprep.subr.bf16.mxu1 %v14303_v53 }
 0x795   :  { %13143 = vmatpush3.bf16.msra.mxu1 %v14303_v53  ;;  %v14404_v53 = vld [vmem:[#allocation2 + $0x71] sm:$0xff] }
 0x796   :  { %13144 = vmatprep.subr.bf16.mxu1 %v14304_v9 }
 0x799   :  { %13145 = vmatpush3.bf16.msra.mxu1 %v14304_v9  ;;  %v8807_v9 = vpack.c.bf16 %v16573_v58, %v14404_v53  ;;  %v14326_v53 = vld [vmem:[#allocation5 + $0x548] sm:$0xff]  }
 0x79a   :  { %13146 = vmatprep.subr.bf16.mxu1 %v14305_v51 }
 0x79d   :  { %13147 = vmatpush3.bf16.msra.mxu1 %v14305_v51  ;;  %v14316_v51 = vld [vmem:[#allocation5 + $0x4b8] sm:$0xff]  }
 0x79e   :  { %13148 = vmatprep.subr.bf16.mxu1 %v14306_v4 }
 0x7a1   :  { %13149 = vmatpush3.bf16.msra.mxu1 %v14306_v4  ;;  %v14317_v4 = vld [vmem:[#allocation5 + $0x500] sm:$0xff]  }
 0x7a2   :  { %13150 = vmatprep.subr.bf16.mxu1 %v14307_v12 }
 0x7a5   :  { %13151 = vmatpush3.bf16.msra.mxu1 %v14307_v12  ;;  %v16579_v12 = vld [vmem:[#allocation2 + $0x20] sm:$0xff] }
 0x7a6   :  { %13152 = vmatprep.subr.bf16.mxu1 %v14308_v42 }
 0x7a9   :  { %13153 = vmatpush3.bf16.msra.mxu1 %v14308_v42  ;;  %v14318_v42 = vld [vmem:[#allocation5 + $0x508] sm:$0xff]  }
 0x7aa   :  { %13170 = vmatprep.subr.bf16.mxu1 %v14309_v40 }
 0x857   :  { %v16529_v13 = vpop.f32.mrb[116].mxu1 }
 0x858   :  { %8670 = vst [vmem:[#allocation2] sm:$0xff] %v16529_v13  ;;  %v13130_v41 = vpop.f32.mrb[117].mxu1 }
 0x859   :  { %v16532_v29 = vpop.f32.mrb[118].mxu1 }
 0x85a   :  { %8671 = vst [vmem:[#allocation2 + $0x8] sm:$0xff] %v16532_v29  ;;  %v13131_v61 = vpop.f32.mrb[119].mxu1  ;;  %v8759_v5 = vpack.c.bf16 %v16532_v29, %v16529_v13  ;;  %v14406_v13 = vld [vmem:[#allocation2 + $0x30] sm:$0xff] }
 0x85b   :  { %v14319_v61 = vld [vmem:[#allocation5 + $0x510] sm:$0xff]  }
 0x85f   :  { %v16537_v45 = vpop.f32.mrb[120].mxu1 }
 0x860   :  { %8741 = vst [vmem:[#allocation2 + $0x10] sm:$0xff] %v16537_v45  ;;  %v13136_v23 = vpop.f32.mrb[121].mxu1  ;;  %v9939_v43 = vpack.c.bf16 %v16537_v45, %v16532_v29  ;;  %v14360_v29 = vld [vmem:[#allocation5 + $0x658] sm:$0xff]  }
 0x861   :  { %v16542_v24 = vpop.f32.mrb[122].mxu1  ;;  %v8784_v25 = vld [vmem:[#allocation2 + $0x1] sm:$0xff] }
 0x862   :  { %8742 = vst [vmem:[#allocation2 + $0x18] sm:$0xff] %v16542_v24  ;;  %v13137_v18 = vpop.f32.mrb[123].mxu1  ;;  %v8760_v39 = vpack.c.bf16 %v16542_v24, %v16537_v45  ;;  %v9115_v30 = vld [vmem:[#allocation2 + $0x2] sm:$0xff] }
 0x863   :  { %v16585_v18 = vld [vmem:[#allocation2 + $0x48] sm:$0xff] }
 0x867   :  { %v16547_v56 = vld [vmem:[#allocation2 + $0x9] sm:$0xff] }
 0x868   :  { %v8800_v33 = vpack.c.bf16 %v16547_v56, %v8784_v25  ;;  %v16550_v27 = vld [vmem:[#allocation2 + $0xa] sm:$0xff]  ;;  %v14320_v25 = vld [vmem:[#allocation5 + $0x518] sm:$0xff]  }
 0x869   :  { %v16552_v46 = vld [vmem:[#allocation2 + $0x11] sm:$0xff]  ;;  %v16554_v63 = vld [vmem:[#allocation2 + $0x19] sm:$0xff] }
 0x86a   :  { %v16556_v49 = vld [vmem:[#allocation2 + $0x12] sm:$0xff]  ;;  %13154 = vmatprep.mubr.bf16.mxu1 %v8800_v33  ;;  %v8801_v60 = vpack.c.bf16 %v16554_v63, %v16552_v46  ;;  %v10141_v10 = vpack.c.bf16 %v16552_v46, %v16547_v56  ;;  %v14408_v33 = vld [vmem:[#allocation2 + $0x40] sm:$0xff]  ;;  %v10145_v46 = vpack.c.bf16 %v16570_v62, %v16567_v36  ;;  %v14371_v36 = vld [vmem:[#allocation5 + $0x6b0] sm:$0xff]  }
 0x86b   :  { %v10343_v54 = vpack.c.bf16 %v16556_v49, %v16550_v27  ;;  %v16595_v19 = vld [vmem:[#allocation2 + $0x1a] sm:$0xff]  ;;  %v14368_v56 = vld [vmem:[#allocation5 + $0x698] sm:$0xff]  }
 0x86c   :  { %13155 = vmatmul.mubr.bf16.vlgmr.msra.gmra.mrb[124].mxu1 %v8801_v60  ;;  %v8763_v60 = vpack.c.bf16 %v16585_v18, %v14408_v33  ;;  %v16605_v33 = vld [vmem:[#allocation2 + $0x52] sm:$0xff] }
 0x86d   :  { %13158 = vmatprep.mubr.bf16.mxu1 %v8802_v6  ;;  %13171 = vmatpush3.bf16.msra.mxu1 %v14309_v40  ;;  %v14405_v40 = vld [vmem:[#allocation2 + $0x28] sm:$0xff]  ;;  %v14372_v62 = vld [vmem:[#allocation5 + $0x6b8] sm:$0xff]  }
 0x86e   :  { %13172 = vmatprep.subr.bf16.mxu1 %v14310_v17  ;;  %v8761_v41 = vpack.c.bf16 %v14405_v40, %v16579_v12  ;;  %v14415_v40 = vld [vmem:[#allocation2 + $0x3a] sm:$0xff] }
 0x871   :  { %13173 = vmatpush3.bf16.msra.mxu1 %v14310_v17  ;;  %v16588_v17 = vld [vmem:[#allocation2 + $0x50] sm:$0xff] }
 0x872   :  { %13174 = vmatprep.subr.bf16.mxu1 %v14311_v16  ;;  %v8764_v6 = vpack.c.bf16 %v14409_v8, %v16588_v17  ;;  %v14330_v8 = vld [vmem:[#allocation5 + $0x568] sm:$0xff]   ;;  %v9943_v45 = vpack.c.bf16 %v16588_v17, %v16585_v18  ;;  %v14363_v18 = vld [vmem:[#allocation5 + $0x670] sm:$0xff]   ;;  %v14364_v17 = vld [vmem:[#allocation5 + $0x678] sm:$0xff]  }
 0x874   :  { %13159 = vmatmul.mubr.bf16.gmra.mrb[128].mxu1 %v8803_v55  ;;  %v8765_v55 = vpack.c.bf16 %v14411_v50, %v14410_v20  ;;  %v14331_v50 = vld [vmem:[#allocation5 + $0x570] sm:$0xff]  }
 0x875   :  { %13162 = vmatprep.mubr.bf16.mxu1 %v8804_v7  ;;  %13175 = vmatpush3.bf16.msra.mxu1 %v14311_v16  ;;  %v14322_v16 = vld [vmem:[#allocation5 + $0x528] sm:$0xff]   ;;  %v14412_v7 = vld [vmem:[#allocation2 + $0x70] sm:$0xff] }
 0x876   :  { %13176 = vmatprep.subr.bf16.mxu1 %v14312_v3 }
 0x879   :  { %13177 = vmatpush3.bf16.msra.mxu1 %v14312_v3  ;;  %v14323_v3 = vld [vmem:[#allocation5 + $0x530] sm:$0xff]  }
 0x87a   :  { %13178 = vmatprep.subr.bf16.mxu1 %v14313_v1 }
 0x87c   :  { %13163 = vmatmul.mubr.bf16.gmra.mrb[132].mxu1 %v8805_v21  ;;  %v14324_v21 = vld [vmem:[#allocation5 + $0x538] sm:$0xff]  }
 0x87d   :  { %13166 = vmatprep.mubr.bf16.mxu1 %v8806_v14  ;;  %13179 = vmatpush3.bf16.msra.mxu1 %v14313_v1  ;;  %v8766_v1 = vpack.c.bf16 %v16591_v48, %v14412_v7  ;;  %v9132_v14 = vpack.c.bf16 %v16595_v19, %v16556_v49  ;;  %v14420_v7 = vld [vmem:[#allocation2 + $0x72] sm:$0xff] }
 0x87e   :  { %13180 = vmatprep.subr.bf16.mxu1 %v14314_v11  ;;  %v16916_v49 = vld [vmem:[#allocation14_spill] sm:$0xff] }
 0x881   :  { %13181 = vmatpush3.bf16.msra.mxu1 %v14314_v11  ;;  %v9131_v11 = vpack.c.bf16 %v16550_v27, %v9115_v30  ;;  %v9317_v30 = vld [vmem:[#allocation2 + $0x4] sm:$0xff]  ;;  %v16915_v27 = vld [vmem:[#allocation15_spill] sm:$0xff] }
 0x882   :  { %13182 = vmatprep.subr.bf16.mxu1 %v14315_v28 }
 0x884   :  { %13167 = vmatmul.mubr.bf16.gmra.mrb[136].mxu1 %v8807_v9  ;;  %v14413_v9 = vld [vmem:[#allocation2 + $0x2a] sm:$0xff] }
 0x885   :  { %13183 = vmatpush3.bf16.msra.mxu1 %v14315_v28  ;;  %13186 = vmatprep.mubr.bf16.mxu1 %v8759_v5  ;;  %v14407_v5 = vld [vmem:[#allocation2 + $0x38] sm:$0xff]  ;;  %v16599_v28 = vld [vmem:[#allocation2 + $0x22] sm:$0xff] }
 0x886   :  { %13184 = vmatprep.subr.bf16.mxu1 %v14316_v51  ;;  %v8762_v23 = vpack.c.bf16 %v14407_v5, %v14406_v13  ;;  %v14328_v13 = vld [vmem:[#allocation5 + $0x558] sm:$0xff]   ;;  %v14416_v5 = vld [vmem:[#allocation2 + $0x42] sm:$0xff] }
 0x889   :  { %13185 = vmatpush3.bf16.msra.mxu1 %v14316_v51  ;;  %v9133_v51 = vpack.c.bf16 %v14413_v9, %v16599_v28  ;;  %v9322_v9 = vld [vmem:[#allocation2 + $0x2c] sm:$0xff] }
 0x88a   :  { %13202 = vmatprep.subr.bf16.mxu1 %v14317_v4 }
 0x88c   :  { %13187 = vmatmul.mubr.bf16.vlgmr.msra.gmra.mrb[124].mxu1 %v8760_v39  ;;  %v14321_v39 = vld [vmem:[#allocation5 + $0x520] sm:$0xff]  }
 0x88d   :  { %13190 = vmatprep.mubr.bf16.mxu1 %v8761_v41  ;;  %13203 = vmatpush3.bf16.msra.mxu1 %v14317_v4  ;;  %v14327_v4 = vld [vmem:[#allocation5 + $0x550] sm:$0xff]  }
 0x88e   :  { %13204 = vmatprep.subr.bf16.mxu1 %v14318_v42 }
 0x891   :  { %13205 = vmatpush3.bf16.msra.mxu1 %v14318_v42  ;;  %v14414_v42 = vld [vmem:[#allocation2 + $0x32] sm:$0xff] }
 0x892   :  { %13206 = vmatprep.subr.bf16.mxu1 %v14319_v61  ;;  %v9134_v41 = vpack.c.bf16 %v14415_v40, %v14414_v42  ;;  %v14334_v42 = vld [vmem:[#allocation5 + $0x588] sm:$0xff]  }
 0x894   :  { %13191 = vmatmul.mubr.bf16.gmra.mrb[128].mxu1 %v8762_v23 }
 0x895   :  { %13194 = vmatprep.mubr.bf16.mxu1 %v8763_v60  ;;  %13207 = vmatpush3.bf16.msra.mxu1 %v14319_v61  ;;  %v16602_v61 = vld [vmem:[#allocation2 + $0x4a] sm:$0xff]  ;;  %v14417_v60 = vld [vmem:[#allocation2 + $0x5a] sm:$0xff] }
 0x896   :  { %13208 = vmatprep.subr.bf16.mxu1 %v14320_v25  ;;  %v9135_v23 = vpack.c.bf16 %v16602_v61, %v14416_v5  ;;  %v9325_v5 = vld [vmem:[#allocation2 + $0x44] sm:$0xff] }
 0x899   :  { %13209 = vmatpush3.bf16.msra.mxu1 %v14320_v25  ;;  %v14329_v25 = vld [vmem:[#allocation5 + $0x560] sm:$0xff]  }
 0x89a   :  { %13210 = vmatprep.subr.bf16.mxu1 %v14321_v39 }
 0x89c   :  { %13195 = vmatmul.mubr.bf16.gmra.mrb[132].mxu1 %v8764_v6  ;;  %v14418_v6 = vld [vmem:[#allocation2 + $0x62] sm:$0xff] }
 0x89d   :  { %13198 = vmatprep.mubr.bf16.mxu1 %v8765_v55  ;;  %13211 = vmatpush3.bf16.msra.mxu1 %v14321_v39  ;;  %v9136_v39 = vpack.c.bf16 %v14417_v60, %v16605_v33  ;;  %v16608_v55 = vld [vmem:[#allocation2 + $0x7a] sm:$0xff]  ;;  %v9326_v60 = vld [vmem:[#allocation2 + $0x4c] sm:$0xff] }
 0x89e   :  { %13212 = vmatprep.subr.bf16.mxu1 %v14322_v16 }
 0x8a1   :  { %13213 = vmatpush3.bf16.msra.mxu1 %v14322_v16  ;;  %v14419_v16 = vld [vmem:[#allocation2 + $0x6a] sm:$0xff] }
 0x8a2   :  { %13214 = vmatprep.subr.bf16.mxu1 %v14323_v3  ;;  %v9137_v20 = vpack.c.bf16 %v14419_v16, %v14418_v6  ;;  %v14337_v6 = vld [vmem:[#allocation5 + $0x5a0] sm:$0xff]  }
 0x8a3   :  { %v9328_v16 = vld [vmem:[#allocation2 + $0x5c] sm:$0xff] }
 0x8a4   :  { %13199 = vmatmul.mubr.bf16.gmra.mrb[136].mxu1 %v8766_v1  ;;  %v9138_v1 = vpack.c.bf16 %v16608_v55, %v14420_v7  ;;  %v9329_v7 = vld [vmem:[#allocation2 + $0x64] sm:$0xff] }
 0x8a5   :  { %13215 = vmatpush3.bf16.msra.mxu1 %v14323_v3  ;;  %13218 = vmatprep.mubr.bf16.mxu1 %v9131_v11  ;;  %v9318_v3 = vld [vmem:[#allocation2 + $0xc] sm:$0xff] }
 0x8a6   :  { %13216 = vmatprep.subr.bf16.mxu1 %v14324_v21  ;;  %v9333_v11 = vpack.c.bf16 %v9318_v3, %v9317_v30 }
 0x8a9   :  { %13217 = vmatpush3.bf16.msra.mxu1 %v14324_v21  ;;  %v14332_v21 = vld [vmem:[#allocation5 + $0x578] sm:$0xff]  }
 0x8aa   :  { %13234 = vmatprep.subr.bf16.mxu1 %v14325_v52 }
 0x8ac   :  { %13219 = vmatmul.mubr.bf16.vlgmr.msra.gmra.mrb[124].mxu1 %v9132_v14  ;;  %v9319_v14 = vld [vmem:[#allocation2 + $0x14] sm:$0xff] }
 0x8ad   :  { %13222 = vmatprep.mubr.bf16.mxu1 %v9133_v51  ;;  %13235 = vmatpush3.bf16.msra.mxu1 %v14325_v52  ;;  %v14333_v52 = vld [vmem:[#allocation5 + $0x580] sm:$0xff]  }
 0x8ae   :  { %13236 = vmatprep.subr.bf16.mxu1 %v14326_v53 }
 0x8b1   :  { %13237 = vmatpush3.bf16.msra.mxu1 %v14326_v53  ;;  %v9320_v53 = vld [vmem:[#allocation2 + $0x1c] sm:$0xff] }
 0x8b2   :  { %13238 = vmatprep.subr.bf16.mxu1 %v14327_v4  ;;  %v9334_v51 = vpack.c.bf16 %v9320_v53, %v9319_v14  ;;  %v9331_v14 = vld [vmem:[#allocation2 + $0x74] sm:$0xff] }
 0x8b4   :  { %13223 = vmatmul.mubr.bf16.gmra.mrb[128].mxu1 %v9134_v41  ;;  %v14335_v41 = vld [vmem:[#allocation5 + $0x590] sm:$0xff]  }
 0x8b5   :  { %13226 = vmatprep.mubr.bf16.mxu1 %v9135_v23  ;;  %13239 = vmatpush3.bf16.msra.mxu1 %v14327_v4  ;;  %v9321_v4 = vld [vmem:[#allocation2 + $0x24] sm:$0xff]  ;;  %v9323_v23 = vld [vmem:[#allocation2 + $0x34] sm:$0xff] }
 0x8b6   :  { %13240 = vmatprep.subr.bf16.mxu1 %v14328_v13  ;;  %v9335_v40 = vpack.c.bf16 %v9322_v9, %v9321_v4  ;;  %v9519_v9 = vld [vmem:[#allocation2 + $0x5] sm:$0xff] }
 0x8b9   :  { %13241 = vmatpush3.bf16.msra.mxu1 %v14328_v13  ;;  %v9324_v13 = vld [vmem:[#allocation2 + $0x3c] sm:$0xff] }
 0x8ba   :  { %13242 = vmatprep.subr.bf16.mxu1 %v14329_v25 }
 0x8bc   :  { %13227 = vmatmul.mubr.bf16.gmra.mrb[132].mxu1 %v9136_v39  ;;  %v14336_v39 = vld [vmem:[#allocation5 + $0x598] sm:$0xff]  }
 0x8bd   :  { %13230 = vmatprep.mubr.bf16.mxu1 %v9137_v20  ;;  %13243 = vmatpush3.bf16.msra.mxu1 %v14329_v25  ;;  %v9336_v25 = vpack.c.bf16 %v9324_v13, %v9323_v23  ;;  %v9330_v20 = vld [vmem:[#allocation2 + $0x6c] sm:$0xff] }
 0x8be   :  { %13244 = vmatprep.subr.bf16.mxu1 %v14330_v8  ;;  %v9339_v30 = vpack.c.bf16 %v9330_v20, %v9329_v7  ;;  %v9524_v13 = vld [vmem:[#allocation2 + $0x2d] sm:$0xff]  ;;  %v9523_v23 = vld [vmem:[#allocation2 + $0x25] sm:$0xff] }
 0x8c1   :  { %13245 = vmatpush3.bf16.msra.mxu1 %v14330_v8  ;;  %v9337_v8 = vpack.c.bf16 %v9326_v60, %v9325_v5  ;;  %v9537_v60 = vpack.c.bf16 %v9524_v13, %v9523_v23  ;;  %v9721_v13 = vld [vmem:[#allocation2 + $0x6] sm:$0xff] }
 0x8c2   :  { %13246 = vmatprep.subr.bf16.mxu1 %v14331_v50 }
 0x8c4   :  { %13231 = vmatmul.mubr.bf16.gmra.mrb[136].mxu1 %v9138_v1  ;;  %v14338_v1 = vld [vmem:[#allocation5 + $0x5a8] sm:$0xff]  }
 0x8c5   :  { %13247 = vmatpush3.bf16.msra.mxu1 %v14331_v50  ;;  %13250 = vmatprep.mubr.bf16.mxu1 %v9333_v11  ;;  %v9327_v50 = vld [vmem:[#allocation2 + $0x54] sm:$0xff]  ;;  %v9332_v11 = vld [vmem:[#allocation2 + $0x7c] sm:$0xff] }
 0x8c6   :  { %13248 = vmatprep.subr.bf16.mxu1 %v14332_v21  ;;  %v9338_v3 = vpack.c.bf16 %v9328_v16, %v9327_v50  ;;  %v9340_v53 = vpack.c.bf16 %v9332_v11, %v9331_v14  ;;  %v9525_v16 = vld [vmem:[#allocation2 + $0x35] sm:$0xff]  ;;  %v9528_v50 = vld [vmem:[#allocation2 + $0x4d] sm:$0xff]  ;;  %v9531_v14 = vld [vmem:[#allocation2 + $0x65] sm:$0xff] }
 0x8c7   :  { %v9529_v11 = vld [vmem:[#allocation2 + $0x55] sm:$0xff] }
 0x8c9   :  { %13249 = vmatpush3.bf16.msra.mxu1 %v14332_v21  ;;  %v14339_v21 = vld [vmem:[#allocation5 + $0x5b0] sm:$0xff]  }
 0x8ca   :  { %13266 = vmatprep.subr.bf16.mxu1 %v14333_v52 }
 0x8cc   :  { %13251 = vmatmul.mubr.bf16.vlgmr.msra.gmra.mrb[124].mxu1 %v9334_v51  ;;  %v14340_v51 = vld [vmem:[#allocation5 + $0x5b8] sm:$0xff]  }
 0x8cd   :  { %13254 = vmatprep.mubr.bf16.mxu1 %v9335_v40  ;;  %13267 = vmatpush3.bf16.msra.mxu1 %v14333_v52  ;;  %v9520_v52 = vld [vmem:[#allocation2 + $0xd] sm:$0xff]  ;;  %v9521_v40 = vld [vmem:[#allocation2 + $0x15] sm:$0xff] }
 0x8ce   :  { %13268 = vmatprep.subr.bf16.mxu1 %v14334_v42  ;;  %v9535_v4 = vpack.c.bf16 %v9520_v52, %v9519_v9 }
 0x8d1   :  { %13269 = vmatpush3.bf16.msra.mxu1 %v14334_v42  ;;  %v14341_v42 = vld [vmem:[#allocation5 + $0x5c0] sm:$0xff]  }
 0x8d2   :  { %13270 = vmatprep.subr.bf16.mxu1 %v14335_v41 }
 0x8d4   :  { %13255 = vmatmul.mubr.bf16.gmra.mrb[128].mxu1 %v9336_v25  ;;  %v14342_v25 = vld [vmem:[#allocation5 + $0x5c8] sm:$0xff]  }
 0x8d5   :  { %13258 = vmatprep.mubr.bf16.mxu1 %v9337_v8  ;;  %13271 = vmatpush3.bf16.msra.mxu1 %v14335_v41  ;;  %v9522_v41 = vld [vmem:[#allocation2 + $0x1d] sm:$0xff] }
 0x8d6   :  { %13272 = vmatprep.subr.bf16.mxu1 %v14336_v39  ;;  %v9536_v5 = vpack.c.bf16 %v9522_v41, %v9521_v40  ;;  %v9526_v8 = vld [vmem:[#allocation2 + $0x3d] sm:$0xff]  ;;  %v9533_v40 = vld [vmem:[#allocation2 + $0x75] sm:$0xff] }
 0x8d7   :  { %v9538_v20 = vpack.c.bf16 %v9526_v8, %v9525_v16  ;;  %v9724_v8 = vld [vmem:[#allocation2 + $0x1e] sm:$0xff] }
 0x8d9   :  { %13273 = vmatpush3.bf16.msra.mxu1 %v14336_v39  ;;  %v14343_v39 = vld [vmem:[#allocation5 + $0x5d0] sm:$0xff]  }
 0x8da   :  { %13274 = vmatprep.subr.bf16.mxu1 %v14337_v6 }
 0x8dc   :  { %13259 = vmatmul.mubr.bf16.gmra.mrb[132].mxu1 %v9338_v3  ;;  %v14344_v3 = vld [vmem:[#allocation5 + $0x5d8] sm:$0xff]  }
 0x8dd   :  { %13262 = vmatprep.mubr.bf16.mxu1 %v9339_v30  ;;  %13275 = vmatpush3.bf16.msra.mxu1 %v14337_v6  ;;  %v9527_v6 = vld [vmem:[#allocation2 + $0x45] sm:$0xff]  ;;  %v9530_v30 = vld [vmem:[#allocation2 + $0x5d] sm:$0xff] }
 0x8de   :  { %13276 = vmatprep.subr.bf16.mxu1 %v14338_v1  ;;  %v9539_v7 = vpack.c.bf16 %v9528_v50, %v9527_v6  ;;  %v9540_v52 = vpack.c.bf16 %v9530_v30, %v9529_v11  ;;  %v9726_v6 = vld [vmem:[#allocation2 + $0x2e] sm:$0xff]  ;;  %v14350_v50 = vld [vmem:[#allocation5 + $0x608] sm:$0xff]  }
 0x8df   :  { %v9729_v30 = vld [vmem:[#allocation2 + $0x46] sm:$0xff] }
 0x8e1   :  { %13277 = vmatpush3.bf16.msra.mxu1 %v14338_v1  ;;  %v14345_v1 = vld [vmem:[#allocation5 + $0x5e0] sm:$0xff]  }
 0x8e2   :  { %13278 = vmatprep.subr.bf16.mxu1 %v14339_v21 }
 0x8e4   :  { %13263 = vmatmul.mubr.bf16.gmra.mrb[136].mxu1 %v9340_v53  ;;  %v14346_v53 = vld [vmem:[#allocation5 + $0x5e8] sm:$0xff]  }
 0x8e5   :  { %13279 = vmatpush3.bf16.msra.mxu1 %v14339_v21  ;;  %13282 = vmatprep.mubr.bf16.mxu1 %v9535_v4  ;;  %v9532_v21 = vld [vmem:[#allocation2 + $0x6d] sm:$0xff]  ;;  %v9534_v4 = vld [vmem:[#allocation2 + $0x7d] sm:$0xff] }
 0x8e6   :  { %13280 = vmatprep.subr.bf16.mxu1 %v14340_v51  ;;  %v9541_v9 = vpack.c.bf16 %v9532_v21, %v9531_v14  ;;  %v9542_v41 = vpack.c.bf16 %v9534_v4, %v9533_v40  ;;  %v9727_v21 = vld [vmem:[#allocation2 + $0x36] sm:$0xff]  ;;  %v9733_v40 = vld [vmem:[#allocation2 + $0x66] sm:$0xff] }
 0x8e7   :  { %v9731_v4 = vld [vmem:[#allocation2 + $0x56] sm:$0xff] }
 0x8e9   :  { %13281 = vmatpush3.bf16.msra.mxu1 %v14340_v51  ;;  %v14347_v51 = vld [vmem:[#allocation5 + $0x5f0] sm:$0xff]  }
 0x8ea   :  { %13298 = vmatprep.subr.bf16.mxu1 %v14341_v42 }
 0x8ec   :  { %13283 = vmatmul.mubr.bf16.vlgmr.msra.gmra.mrb[124].mxu1 %v9536_v5  ;;  %v14348_v5 = vld [vmem:[#allocation5 + $0x5f8] sm:$0xff]  }
 0x8ed   :  { %13286 = vmatprep.mubr.bf16.mxu1 %v9537_v60  ;;  %13299 = vmatpush3.bf16.msra.mxu1 %v14341_v42  ;;  %v9722_v42 = vld [vmem:[#allocation2 + $0xe] sm:$0xff]  ;;  %v14349_v60 = vld [vmem:[#allocation5 + $0x600] sm:$0xff]  }
 0x8ee   :  { %13300 = vmatprep.subr.bf16.mxu1 %v14342_v25  ;;  %v9737_v23 = vpack.c.bf16 %v9722_v42, %v9721_v13 }
 0x8f1   :  { %13301 = vmatpush3.bf16.msra.mxu1 %v14342_v25  ;;  %v14373_v25 = vld [vmem:[%s16758_s8] sm:$0xff]  }
 0x8f2   :  { %13302 = vmatprep.subr.bf16.mxu1 %v14343_v39  ;;  %13427 = vmatpush3.bf16.msra.mxu0 %v14373_v25  ;;  %v9735_v25 = vld [vmem:[#allocation2 + $0x76] sm:$0xff] }
 0x8f3   :  { %13428 = vmatprep.subr.bf16.mxu0 %v16492_v37  ;;  %v14352_v37 = vld [vmem:[#allocation5 + $0x618] sm:$0xff]  }
 0x8f4   :  { %13287 = vmatmul.mubr.bf16.gmra.mrb[128].mxu1 %v9538_v20  ;;  %v9725_v20 = vld [vmem:[#allocation2 + $0x26] sm:$0xff] }
 0x8f5   :  { %13290 = vmatprep.mubr.bf16.mxu1 %v9539_v7  ;;  %13303 = vmatpush3.bf16.msra.mxu1 %v14343_v39  ;;  %v9723_v39 = vld [vmem:[#allocation2 + $0x16] sm:$0xff]  ;;  %v14351_v7 = vld [vmem:[#allocation5 + $0x610] sm:$0xff]  }
 0x8f6   :  { %13304 = vmatprep.subr.bf16.mxu1 %v14344_v3  ;;  %v9738_v16 = vpack.c.bf16 %v9724_v8, %v9723_v39  ;;  %v14356_v39 = vld [vmem:[#allocation5 + $0x638] sm:$0xff]   ;;  %v14357_v8 = vld [vmem:[#allocation5 + $0x640] sm:$0xff]  }
 0x8f9   :  { %13305 = vmatpush3.bf16.msra.mxu1 %v14344_v3  ;;  %v9739_v3 = vpack.c.bf16 %v9726_v6, %v9725_v20  ;;  %v9940_v6 = vpack.c.bf16 %v16579_v12, %v16542_v24  ;;  %v16898_v20 = vpack.c.bf16 %v16374_v31, %v16372_v44  ;;  %v14361_v24 = vld [vmem:[#allocation5 + $0x660] sm:$0xff]   ;;  %v14362_v44 = vld [vmem:[#allocation5 + $0x668] sm:$0xff]   ;;  %v16900_v31 = vpack.c.bf16 %v15916_v34, %v15912_v57 }
 0x8fa   :  { %13306 = vmatprep.subr.bf16.mxu1 %v14345_v1  ;;  %v16901_v12 = vpack.c.bf16 %v15920_v0, %v15918_v22  ;;  %v14365_v57 = vld [vmem:[#allocation5 + $0x680] sm:$0xff]   ;;  %v10142_v34 = vpack.c.bf16 %v16560_v15, %v16554_v63  ;;  %v14366_v22 = vld [vmem:[#allocation5 + $0x688] sm:$0xff]   ;;  %v16902_v0 = vpack.c.bf16 %v16370_v38, %v16366_v26 }
 0x8fb   :  { %v14369_v63 = vld [vmem:[#allocation5 + $0x6a0] sm:$0xff]   ;;  %v14370_v26 = vld [vmem:[#allocation5 + $0x6a8] sm:$0xff]  }
 0x8fc   :  { %13291 = vmatmul.mubr.bf16.gmra.mrb[132].mxu1 %v9540_v52  ;;  %v9730_v52 = vld [vmem:[#allocation2 + $0x4e] sm:$0xff]  ;;  %v16904_v38 = vld [vmem:[#allocation11_spill] sm:$0xff] }
 0x8fd   :  { %13294 = vmatprep.mubr.bf16.mxu1 %v9541_v9  ;;  %13307 = vmatpush3.bf16.msra.mxu1 %v14345_v1  ;;  %v9728_v1 = vld [vmem:[#allocation2 + $0x3e] sm:$0xff]  ;;  %v9741_v14 = vpack.c.bf16 %v9730_v52, %v9729_v30  ;;  %v16905_v15 = vpack.c.bf16 %v15904_v35, %v16904_v38  ;;  %v10344_v35 = vpack.c.bf16 %v16599_v28, %v16595_v19 }
 0x8fe   :  { %13308 = vmatprep.subr.bf16.mxu1 %v14346_v53  ;;  %v9740_v11 = vpack.c.bf16 %v9728_v1, %v9727_v21  ;;  %v9732_v9 = vld [vmem:[#allocation2 + $0x5e] sm:$0xff]  ;;  %v16910_v21 = vld [vmem:[#allocation18_spill] sm:$0xff] }
 0x8ff   :  { %v9742_v42 = vpack.c.bf16 %v9732_v9, %v9731_v4  ;;  %v16909_v30 = vld [vmem:[#allocation19_spill] sm:$0xff]  ;;  %v16912_v52 = vld [vmem:[#allocation20_spill] sm:$0xff] }
 0x900   :  { %v16919_v9 = vld [vmem:[#allocation16_spill] sm:$0xff] }
 0x901   :  { %13309 = vmatpush3.bf16.msra.mxu1 %v14346_v53  ;;  %v14353_v53 = vld [vmem:[#allocation5 + $0x620] sm:$0xff]   ;;  %v10342_v28 = vld [vmem:[#allocation2 + $0x82] sm:$0xff] }
 0x902   :  { %13310 = vmatprep.subr.bf16.mxu1 %v14347_v51  ;;  %v14421_v4 = vld [vmem:[#allocation2 + $0xc8] sm:$0xff] }
 0x904   :  { %13295 = vmatmul.mubr.bf16.gmra.mrb[136].mxu1 %v9542_v41  ;;  %v14354_v41 = vld [vmem:[#allocation5 + $0x628] sm:$0xff]  }
 0x905   :  { %13311 = vmatpush3.bf16.msra.mxu1 %v14347_v51  ;;  %13314 = vmatprep.mubr.bf16.mxu1 %v9737_v23  ;;  %v9734_v51 = vld [vmem:[#allocation2 + $0x6e] sm:$0xff]  ;;  %v9736_v23 = vld [vmem:[#allocation2 + $0x7e] sm:$0xff] }
 0x906   :  { %13312 = vmatprep.subr.bf16.mxu1 %v14348_v5  ;;  %v9743_v13 = vpack.c.bf16 %v9734_v51, %v9733_v40  ;;  %v10350_v51 = vpack.c.bf16 %v10342_v28, %v16608_v55  ;;  %v14377_v55 = vld [vmem:[%s16758_s8 + $0x20] sm:$0xff]   ;;  %v14378_v40 = vld [vmem:[%s16758_s8 + $0x28] sm:$0xff]  }
 0x909   :  { %13313 = vmatpush3.bf16.msra.mxu1 %v14348_v5  ;;  %v14355_v5 = vld [vmem:[#allocation5 + $0x630] sm:$0xff]  }
 0x90a   :  { %13330 = vmatprep.subr.bf16.mxu1 %v14349_v60 }
 0x90c   :  { %13315 = vmatmul.mubr.bf16.vlgmr.msra.gmra.mrb[124].mxu1 %v9738_v16  ;;  %v14358_v16 = vld [vmem:[#allocation5 + $0x648] sm:$0xff]  }
 0x90d   :  { %13318 = vmatprep.mubr.bf16.mxu1 %v9739_v3  ;;  %13331 = vmatpush3.bf16.msra.mxu1 %v14349_v60  ;;  %v9744_v60 = vpack.c.bf16 %v9736_v23, %v9735_v25  ;;  %v16906_v3 = vld [vmem:[#allocation13_spill] sm:$0xff]  ;;  %v16704_v25 = vld [vmem:[%s16754_s4 + $0x3] ss:$0 sm:$0xff] }
 0x90e   :  { %13332 = vmatprep.subr.bf16.mxu1 %v14350_v50 }
 0x911   :  { %13333 = vmatpush3.bf16.msra.mxu1 %v14350_v50  ;;  %v14359_v50 = vld [vmem:[#allocation5 + $0x650] sm:$0xff]  }
 0x912   :  { %13334 = vmatprep.subr.bf16.mxu1 %v14351_v7 }
 0x914   :  { %13319 = vmatmul.mubr.bf16.gmra.mrb[128].mxu1 %v9740_v11  ;;  %v16911_v11 = vpack.c.bf16 %v16909_v30, %v16910_v21 }
 0x915   :  { %13322 = vmatprep.mubr.bf16.mxu1 %v9741_v14  ;;  %13335 = vmatpush3.bf16.msra.mxu1 %v14351_v7  ;;  %v16907_v7 = vld [vmem:[#allocation12_spill] sm:$0xff] }
 0x916   :  { %13336 = vmatprep.subr.bf16.mxu1 %v14352_v37  ;;  %v16908_v1 = vpack.c.bf16 %v16906_v3, %v16907_v7 }
 0x919   :  { %13337 = vmatpush3.bf16.msra.mxu1 %v14352_v37  ;;  %v16913_v37 = vld [vmem:[#allocation21_spill] sm:$0xff] }
 0x91a   :  { %13338 = vmatprep.subr.bf16.mxu1 %v14353_v53  ;;  %v16914_v14 = vpack.c.bf16 %v16912_v52, %v16913_v37 }
 0x91c   :  { %13323 = vmatmul.mubr.bf16.gmra.mrb[132].mxu1 %v9742_v42  ;;  %v14376_v42 = vld [vmem:[%s16758_s8 + $0x18] sm:$0xff]  }
 0x91d   :  { %13326 = vmatprep.mubr.bf16.mxu1 %v9743_v13  ;;  %13339 = vmatpush3.bf16.msra.mxu1 %v14353_v53  ;;  %v16918_v53 = vld [vmem:[#allocation17_spill] sm:$0xff]  ;;  %v14380_v13 = vld [vmem:[%s16758_s8 + $0x38] sm:$0xff]  }
 0x91e   :  { %13340 = vmatprep.subr.bf16.mxu1 %v14354_v41  ;;  %v16920_v19 = vpack.c.bf16 %v16918_v53, %v16919_v9 }
 0x921   :  { %13341 = vmatpush3.bf16.msra.mxu1 %v14354_v41  ;;  %v14379_v41 = vld [vmem:[%s16758_s8 + $0x30] sm:$0xff]  }
 0x922   :  { %13342 = vmatprep.subr.bf16.mxu1 %v14355_v5 }
 0x924   :  { %13327 = vmatmul.mubr.bf16.gmra.mrb[136].mxu1 %v9744_v60 }
 0x925   :  { %13343 = vmatpush3.bf16.msra.mxu1 %v14355_v5  ;;  %13346 = vmatprep.mubr.bf16.mxu1 %v9939_v43  ;;  %v16899_v43 = vpack.c.bf16 %v16402_v2, %v16400_v32  ;;  %v9938_v32 = vld [vmem:[#allocation2 + $0x80] sm:$0xff] }
 0x926   :  { %13344 = vmatprep.subr.bf16.mxu1 %v14356_v39  ;;  %v9946_v2 = vpack.c.bf16 %v9938_v32, %v16591_v48  ;;  %v14367_v48 = vld [vmem:[#allocation5 + $0x690] sm:$0xff]   ;;  %v16699_v5 = vld [vmem:[%s16753_s3 + $0x3] ss:$0 sm:$0xff]  ;;  %s14476_s3 = smov [#allocation8]  }
 0x927   :  { %s10738_s4 = sshll.u32 %s14476_s3, 4  ;;  %s10739_s4 = int_to_ptr.vmem [resolvable:$true] %s10738_s4 }
 0x928   :  { %p14449_p9 = scmp.lt.s32.totalorder %s10739_s4, %s10739_s4 }
 0x929   :  { %13345 = vmatpush3.bf16.msra.mxu1 %v14356_v39 }
 0x92a   :  { %13362 = vmatprep.subr.bf16.mxu1 %v14357_v8 }
 0x92c   :  { %13347 = vmatmul.mubr.bf16.vlgmr.msra.gmra.mrb[124].mxu1 %v9940_v6 }
 0x92d   :  { %13350 = vmatprep.mubr.bf16.mxu1 %v16898_v20  ;;  %13363 = vmatpush3.bf16.msra.mxu1 %v14357_v8 }
 0x92e   :  { %13364 = vmatprep.subr.bf16.mxu1 %v14358_v16 }
 0x931   :  { %13365 = vmatpush3.bf16.msra.mxu1 %v14358_v16 }
 0x932   :  { %13366 = vmatprep.subr.bf16.mxu1 %v14359_v50 }
 0x934   :  { %13351 = vmatmul.mubr.bf16.gmra.mrb[128].mxu1 %v16899_v43 }
 0x935   :  { %13354 = vmatprep.mubr.bf16.mxu1 %v9943_v45  ;;  %13367 = vmatpush3.bf16.msra.mxu1 %v14359_v50 }
 0x936   :  { %13368 = vmatprep.subr.bf16.mxu1 %v14360_v29 }
 0x939   :  { %13369 = vmatpush3.bf16.msra.mxu1 %v14360_v29 }
 0x93a   :  { %13370 = vmatprep.subr.bf16.mxu1 %v14361_v24 }
 0x93c   :  { %13355 = vmatmul.mubr.bf16.gmra.mrb[132].mxu1 %v16900_v31 }
 0x93d   :  { %13358 = vmatprep.mubr.bf16.mxu1 %v16901_v12  ;;  %13371 = vmatpush3.bf16.msra.mxu1 %v14361_v24 }
 0x93e   :  { %13372 = vmatprep.subr.bf16.mxu1 %v14362_v44 }
 0x941   :  { %13373 = vmatpush3.bf16.msra.mxu1 %v14362_v44 }
 0x942   :  { %13374 = vmatprep.subr.bf16.mxu1 %v14363_v18 }
 0x944   :  { %13359 = vmatmul.mubr.bf16.gmra.mrb[136].mxu1 %v9946_v2 }
 0x945   :  { %13375 = vmatpush3.bf16.msra.mxu1 %v14363_v18  ;;  %13378 = vmatprep.mubr.bf16.mxu1 %v10141_v10  ;;  %v16903_v10 = vpack.c.bf16 %v16398_v59, %v16404_v47  ;;  %v10140_v47 = vld [vmem:[#allocation2 + $0x81] sm:$0xff] }
 0x946   :  { %13376 = vmatprep.subr.bf16.mxu1 %v14364_v17  ;;  %v10148_v59 = vpack.c.bf16 %v10140_v47, %v16573_v58  ;;  %v10347_v58 = vpack.c.bf16 %v16605_v33, %v16602_v61  ;;  %v14374_v61 = vld [vmem:[%s16758_s8 + $0x8] sm:$0xff]   ;;  %v14375_v33 = vld [vmem:[%s16758_s8 + $0x10] sm:$0xff]   ;;  %s14444_s8 = scalar_lea.vmem %s10739_s4, 32 }
 0x947   :  { %13429 = vmatpush3.bf16.msra.mxu0 %v14374_v61  ;;  %p14445_p8 = scmp.ne.s32.totalorder %s10739_s4, %s14444_s8  ;;  %p14450_p10 = scmp.lt.s32.totalorder %s14444_s8, %s14444_s8 }
 0x948   :  { %13430 = vmatprep.subr.bf16.mxu0 %v14421_v4 }
 0x949   :  { %13377 = vmatpush3.bf16.msra.mxu1 %v14364_v17  ;;  %p14451_p11 = por %p14450_p10, %p14449_p9 }
 0x94a   :  { %13394 = vmatprep.subr.bf16.mxu1 %v14365_v57 }
 0x94b   :  { %13431 = vmatpush3.bf16.msra.mxu0 %v14375_v33  ;;  %p14452_p12 = pnand %p14451_p11, %p14445_p8 }
 0x94c   :  { %13379 = vmatmul.mubr.bf16.vlgmr.msra.gmra.mrb[124].mxu1 %v10142_v34  ;;  %13432 = vmatprep.subr.bf16.mxu0 %v14421_v4 }
 0x94d   :  { %13382 = vmatprep.mubr.bf16.mxu1 %v16902_v0  ;;  %13395 = vmatpush3.bf16.msra.mxu1 %v14365_v57 }
 0x94e   :  { %13396 = vmatprep.subr.bf16.mxu1 %v14366_v22 }
 0x94f   :  { %13433 = vmatpush3.bf16.msra.mxu0 %v14376_v42 }
 0x950   :  { %13434 = vmatprep.subr.bf16.mxu0 %v14421_v4 }
 0x951   :  { %13397 = vmatpush3.bf16.msra.mxu1 %v14366_v22 }
 0x952   :  { %13398 = vmatprep.subr.bf16.mxu1 %v14367_v48 }
 0x953   :  { %13435 = vmatpush3.bf16.msra.mxu0 %v14377_v55 }
 0x954   :  { %13383 = vmatmul.mubr.bf16.gmra.mrb[128].mxu1 %v16903_v10  ;;  %13436 = vmatprep.subr.bf16.mxu0 %v14421_v4 }
 0x955   :  { %13386 = vmatprep.mubr.bf16.mxu1 %v10145_v46  ;;  %13399 = vmatpush3.bf16.msra.mxu1 %v14367_v48 }
 0x956   :  { %13400 = vmatprep.subr.bf16.mxu1 %v14368_v56 }
 0x957   :  { %13437 = vmatpush3.bf16.msra.mxu0 %v14378_v40 }
 0x958   :  { %13438 = vmatprep.subr.bf16.mxu0 %v14421_v4 }
 0x959   :  { %13401 = vmatpush3.bf16.msra.mxu1 %v14368_v56 }
 0x95a   :  { %13402 = vmatprep.subr.bf16.mxu1 %v14369_v63 }
 0x95b   :  { %13439 = vmatpush3.bf16.msra.mxu0 %v14379_v41 }
 0x95c   :  { %13387 = vmatmul.mubr.bf16.gmra.mrb[132].mxu1 %v16905_v15  ;;  %13440 = vmatprep.subr.bf16.mxu0 %v14421_v4 }
 0x95d   :  { %13390 = vmatprep.mubr.bf16.mxu1 %v16908_v1  ;;  %13403 = vmatpush3.bf16.msra.mxu1 %v14369_v63 }
 0x95e   :  { %13404 = vmatprep.subr.bf16.mxu1 %v14370_v26 }
 0x95f   :  { %13441 = vmatpush3.bf16.msra.mxu0 %v14380_v13 }
 0x961   :  { %13405 = vmatpush3.bf16.msra.mxu1 %v14370_v26 }
 0x962   :  { %13406 = vmatprep.subr.bf16.mxu1 %v14371_v36 }
 0x964   :  { %13391 = vmatmul.mubr.bf16.gmra.mrb[136].mxu1 %v10148_v59 }
 0x965   :  { %13407 = vmatpush3.bf16.msra.mxu1 %v14371_v36  ;;  %13410 = vmatprep.mubr.bf16.mxu1 %v10343_v54  ;;  %v16917_v54 = vpack.c.bf16 %v16915_v27, %v16916_v49 }
 0x966   :  { %13408 = vmatprep.subr.bf16.mxu1 %v14372_v62 }
 0x969   :  { %13409 = vmatpush3.bf16.msra.mxu1 %v14372_v62 }
 0x96c   :  { %13411 = vmatmul.mubr.bf16.vlgmr.msra.gmra.mrb[124].mxu1 %v10344_v35 }
 0x96d   :  { %13414 = vmatprep.mubr.bf16.mxu1 %v16911_v11 }
 0x974   :  { %13415 = vmatmul.mubr.bf16.gmra.mrb[128].mxu1 %v16914_v14 }
 0x975   :  { %13418 = vmatprep.mubr.bf16.mxu1 %v10347_v58 }
 0x97c   :  { %13419 = vmatmul.mubr.bf16.gmra.mrb[132].mxu1 %v16917_v54 }
 0x97d   :  { %13422 = vmatprep.mubr.bf16.mxu1 %v16920_v19 }
 0x984   :  { %13423 = vmatmul.mubr.bf16.gmra.mrb[136].mxu1 %v10350_v51 }
 0xa3f   :  { %v13412_v23 = vpop.f32.mrb[124].mxu1 }
 0xa40   :  { %v10539_v60 = vmul.f32 %v13412_v23, %v16699_v5  ;;  %v10450_v39 = vpop.f32.mrb[125].mxu1 }
 0xa41   :  { %v10537_v8 = vmul.f32 %v16699_v5, %v10450_v39  ;;  %v13413_v6 = vpop.f32.mrb[126].mxu1 }
 0xa42   :  { %v10563_v16 = vadd.f32 %v16704_v25, %v10539_v60  ;;  %v10540_v20 = vmul.f32 %v13413_v6, %v16699_v5  ;;  %v10453_v50 = vpop.f32.mrb[127].mxu1 }
 0xa43   :  { %v10561_v29 = vadd.f32 %v16704_v25, %v10537_v8  ;;  %v10538_v45 = vmul.f32 %v16699_v5, %v10453_v50 }
 0xa44   :  { %v10579_v43 = vmax.f32 %v10563_v16, 0.0  ;;  %v10564_v24 = vadd.f32 %v16704_v25, %v10540_v20 }
 0xa45   :  { %v10577_v44 = vmax.f32 %v10561_v29, 0.0  ;;  %v10562_v31 = vadd.f32 %v16704_v25, %v10538_v45 }
 0xa46   :  { %10595 = vst [vmem:[#allocation3 + $0x10] sm:$0xff] %v10579_v43  ;;  %v10580_v12 = vmax.f32 %v10564_v24, 0.0 }
 0xa47   :  { %10593 = vst [vmem:[#allocation3] sm:$0xff] %v10577_v44  ;;  %v10578_v18 = vmax.f32 %v10562_v31, 0.0  ;;  %v13416_v32 = vpop.f32.mrb[128].mxu1 }
 0xa48   :  { %10596 = vst [vmem:[#allocation3 + $0x18] sm:$0xff] %v10580_v12  ;;  %v10543_v2 = vmul.f32 %v13416_v32, %v16699_v5  ;;  %v10466_v17 = vpop.f32.mrb[129].mxu1 }
 0xa49   :  { %10594 = vst [vmem:[#allocation3 + $0x8] sm:$0xff] %v10578_v18  ;;  %v10541_v57 = vmul.f32 %v16699_v5, %v10466_v17  ;;  %v13417_v34 = vpop.f32.mrb[130].mxu1 }
 0xa4a   :  { %v10567_v22 = vadd.f32 %v16704_v25, %v10543_v2  ;;  %v10544_v0 = vmul.f32 %v13417_v34, %v16699_v5  ;;  %v10469_v48 = vpop.f32.mrb[131].mxu1 }
 0xa4b   :  { %v10565_v56 = vadd.f32 %v16704_v25, %v10541_v57  ;;  %v10542_v46 = vmul.f32 %v16699_v5, %v10469_v48 }
 0xa4c   :  { %v10583_v10 = vmax.f32 %v10567_v22, 0.0  ;;  %v10568_v63 = vadd.f32 %v16704_v25, %v10544_v0 }
 0xa4d   :  { %v10581_v26 = vmax.f32 %v10565_v56, 0.0  ;;  %v10566_v38 = vadd.f32 %v16704_v25, %v10542_v46  ;;  %v10617_v15 = vld [vmem:[#allocation3 + $0x10] sm:$0x1]  ;;  %v10618_v3 = vld [vmem:[#allocation3 + $0x11] sm:$0x1] }
 0xa4e   :  { %10599 = vst [vmem:[#allocation3 + $0x30] sm:$0xff] %v10583_v10  ;;  %v10584_v7 = vmax.f32 %v10568_v63, 0.0  ;;  %v10609_v1 = vld [vmem:[#allocation3] sm:$0x1]  ;;  %v10610_v36 = vld [vmem:[#allocation3 + $0x1] sm:$0x1]  ;;  %v10619_v21 = vmax.f32 %v10617_v15, %v10618_v3 }
 0xa4f   :  { %10597 = vst [vmem:[#allocation3 + $0x20] sm:$0xff] %v10581_v26  ;;  %v10582_v47 = vmax.f32 %v10566_v38, 0.0  ;;  %v13420_v59 = vpop.f32.mrb[132].mxu1  ;;  %v10611_v62 = vmax.f32 %v10609_v1, %v10610_v36  ;;  %v10612_v35 = vld [vmem:[#allocation3 + $0x4] sm:$0x1] }
 0xa50   :  { %v10613_v30 = vld [vmem:[#allocation3 + $0x5] sm:$0x1]  ;;  %10600 = vst [vmem:[#allocation3 + $0x38] sm:$0xff] %v10584_v7  ;;  %v10547_v11 = vmul.f32 %v13420_v59, %v16699_v5  ;;  %v10482_v58 = vpop.f32.mrb[133].mxu1  ;;  %v10620_v37 = vld [vmem:[#allocation3 + $0x14] sm:$0x1] }
 0xa51   :  { %v10614_v52 = vmax.f32 %v10612_v35, %v10613_v30  ;;  %v10621_v14 = vld [vmem:[#allocation3 + $0x15] sm:$0x1]  ;;  %10598 = vst [vmem:[#allocation3 + $0x28] sm:$0xff] %v10582_v47  ;;  %v10545_v27 = vmul.f32 %v16699_v5, %v10482_v58  ;;  %v13421_v49 = vpop.f32.mrb[134].mxu1 }
 0xa52   :  { %v10622_v54 = vmax.f32 %v10620_v37, %v10621_v14  ;;  %v10571_v53 = vadd.f32 %v16704_v25, %v10547_v11  ;;  %v10548_v9 = vmul.f32 %v13421_v49, %v16699_v5  ;;  %v10485_v19 = vpop.f32.mrb[135].mxu1 }
 0xa53   :  { %v10615_v28 = vmax.f32 %v10611_v62, %v10614_v52  ;;  %v10569_v51 = vadd.f32 %v16704_v25, %v10545_v27  ;;  %v10546_v61 = vmul.f32 %v16699_v5, %v10485_v19 }
 0xa54   :  { %v10623_v33 = vmax.f32 %v10619_v21, %v10622_v54  ;;  %v10587_v4 = vmax.f32 %v10571_v53, 0.0  ;;  %v10572_v42 = vadd.f32 %v16704_v25, %v10548_v9 }
 0xa55   :  { %10616 = vst [vmem:[#allocation4] sm:$0x1] %v10615_v28  ;;  %v10585_v55 = vmax.f32 %v10569_v51, 0.0  ;;  %v10570_v40 = vadd.f32 %v16704_v25, %v10546_v61 }
 0xa56   :  { %10624 = vst [vmem:[#allocation4 + $0x1] sm:$0x1] %v10623_v33  ;;  %10603 = vst [vmem:[#allocation3 + $0x50] sm:$0xff] %v10587_v4  ;;  %v10588_v41 = vmax.f32 %v10572_v42, 0.0 }
 0xa57   :  { %10601 = vst [vmem:[#allocation3 + $0x40] sm:$0xff] %v10585_v55  ;;  %v10586_v13 = vmax.f32 %v10570_v40, 0.0  ;;  %v13424_v23 = vpop.f32.mrb[136].mxu1 }
 0xa58   :  { %10604 = vst [vmem:[#allocation3 + $0x58] sm:$0xff] %v10588_v41  ;;  %v10551_v60 = vmul.f32 %v13424_v23, %v16699_v5  ;;  %v10498_v39 = vpop.f32.mrb[137].mxu1 }
 0xa59   :  { %10602 = vst [vmem:[#allocation3 + $0x48] sm:$0xff] %v10586_v13  ;;  %v10549_v8 = vmul.f32 %v16699_v5, %v10498_v39  ;;  %v13425_v6 = vpop.f32.mrb[138].mxu1 }
 0xa5a   :  { %v10575_v16 = vadd.f32 %v16704_v25, %v10551_v60  ;;  %v10552_v20 = vmul.f32 %v13425_v6, %v16699_v5  ;;  %v10501_v50 = vpop.f32.mrb[139].mxu1 }
 0xa5b   :  { %v10573_v29 = vadd.f32 %v16704_v25, %v10549_v8  ;;  %v10550_v45 = vmul.f32 %v16699_v5, %v10501_v50 }
 0xa5c   :  { %v10591_v43 = vmax.f32 %v10575_v16, 0.0  ;;  %v10576_v24 = vadd.f32 %v16704_v25, %v10552_v20 }
 0xa5d   :  { %v10625_v44 = vld [vmem:[#allocation4] sm:$0x3]  ;;  %v10589_v31 = vmax.f32 %v10573_v29, 0.0  ;;  %v10574_v12 = vadd.f32 %v16704_v25, %v10550_v45 }
 0xa5e   :  { %v10626_v18 = vpack.c.bf16 %v10625_v44, %v10625_v44  ;;  %10607 = vst [vmem:[#allocation3 + $0x70] sm:$0xff] %v10591_v43  ;;  %v10592_v32 = vmax.f32 %v10576_v24, 0.0 }
 0xa5f   :  { %10605 = vst [vmem:[#allocation3 + $0x60] sm:$0xff] %v10589_v31  ;;  %v10590_v2 = vmax.f32 %v10574_v12, 0.0 }
 0xa60   :  { %13443 = vmatmul.mubr.bf16.vlgmr.msra.gmra.mrb[148].mxu0 %v10626_v18  ;;  %10608 = vst [vmem:[#allocation3 + $0x78] sm:$0xff] %v10592_v32 }
 0xa61   :  { %10606 = vst [vmem:[#allocation3 + $0x68] sm:$0xff] %v10590_v2 }
 0xb33   :  { %v10725_v17 = vpop.f32.mrb[148].mxu0 }
 0xb34   :  { %10731 = vst [vmem:[#allocation8] sm:$0x3] %v10725_v17  ;;  %v13444_v5 = vpop.f32.mrb[149].mxu0 }
 0xb35   :  { %v10728_v57 = vpop.f32.mrb[150].mxu0 }
 0xb36   :  { %14455 = shalt.err (!%p14452_p12)
}
 0xb37   :  { %s14456_s25 = scalar_lea.hbm %s16759_s9, 32 }
 0xb38   :  { %p14457_p13 = scmp.ne.s32.totalorder %s16759_s9, %s14456_s25  ;;  %p14460_p0 = scmp.lt.u32.totalorder %s14456_s25, %s16759_s9 }
 0xb3a   :  { %p14462_p1 = pnand %p14460_p0, %p14457_p13 }
 0xb3c   :  { %14465 = shalt.err (!%p14462_p1)
}
 0xb3d   :  { %10741 = dma.vmem_to_hbm [thread:$0]  %s10739_s4, 32, %s16759_s9, [#allocation7]   ;;  %v13445_v25 = vpop.f32.mrb[151].mxu0 }
 0xb3e   :  { %14468 = dma.done.wait [#allocation7], 32  }
 0xb3f   :  { %14469 = vsyncadd [#allocation7], 4294967264 }
 0xb40   :  { %10745 = vsyncpa [#allocation6], 1 }
 0xb41   :  { %10746 = vsyncpa [#allocation7], 1 }

</bundles_post_ra>
